<compile_context>
chip_gen: v6e
topology: v6e:2x2x1
jax: 0.10.0
libtpu: 0.0.40
codegen_flags: <defaults>
</compile_context>

<pallas_src>
import functools

import jax
import jax.numpy as jnp
import numpy as np
from jax import lax
from jax.experimental import pallas as pl
from jax.experimental.pallas import tpu as pltpu


# --------------------------------------------------------------------------------------
# shared in-kernel helper
# --------------------------------------------------------------------------------------
def _im2col_T(src, c_in, kh, kw, ho, wo):
    """Transposed im2col: returns the (kh*kw*c_in, ho*wo) patch matrix.

    src: Ref or array of shape (c_in, ho + kh - 1, wo + kw - 1)  (NCHW, pre-padded).
    Row ordering is ((dh*kw + dw)*c_in + ci), matching w.reshape(kh*kw*c_in, c_out).
    Built ONCE per layer and consumed by a single MXU matmul.
    """
    taps = []
    for dh in range(kh):
        for dw in range(kw):
            taps.append(src[:, dh:dh + ho, dw:dw + wo].reshape(c_in, ho * wo))
    return jnp.concatenate(taps, axis=0)


# --------------------------------------------------------------------------------------
# fused ConvBlock kernel: (Conv3x3 -> ReLU -> BN) x 2, one grid step per batch element
# --------------------------------------------------------------------------------------
def conv_block_kernel(x_ref, w1_ref, w2_ref, aff_ref, o_ref, *scratch,
                      H, W, Cin, Cout, padding):
    """x_ref:   (1, Cin, H, W)       NCHW input tile
       w1_ref:  (Cout, 9*Cin)        layer-1 weights (tap,cin)-major columns
       w2_ref:  (Cout, 9*Cout)       layer-2 weights
       aff_ref: (2, 3, Cout, 1)      per-layer [conv bias, bn scale, bn shift]
       o_ref:   (1, Cout, Ho*Wo)     lane-dense output (trailing dim = flattened spatial)
       scratch: (xpad, hpad) VMEM refs when padding=True, else empty
    """
    if padding:
        xpad_ref, hpad_ref = scratch
        # fold the 1-pixel zero halo into the kernel (no wrapper-side jnp.pad)
        xpad_ref[...] = jnp.zeros_like(xpad_ref)
        xpad_ref[:, 1:H + 1, 1:W + 1] = x_ref[0]
        src1, ho1, wo1 = xpad_ref, H, W
    else:
        src1, ho1, wo1 = x_ref[0], H - 2, W - 2

    # ---- layer 1: one im2col matmul (K = 9*Cin), f32 accumulation on the MXU ----
    p1 = _im2col_T(src1, Cin, 3, 3, ho1, wo1)                            # (9*Cin, M1)
    h = jnp.dot(w1_ref[...], p1, preferred_element_type=jnp.float32)     # (Cout, M1)
    h = jnp.maximum(h + aff_ref[0, 0], 0.0) * aff_ref[0, 1] + aff_ref[0, 2]

    # ---- layer 2: intermediate stays in VMEM, never round-trips to HBM ----
    if padding:
        hpad_ref[...] = jnp.zeros_like(hpad_ref)
        hpad_ref[:, 1:H + 1, 1:W + 1] = h.reshape(Cout, ho1, wo1)
        src2, ho2, wo2 = hpad_ref, H, W
    else:
        src2, ho2, wo2 = h.reshape(Cout, ho1, wo1), ho1 - 2, wo1 - 2

    p2 = _im2col_T(src2, Cout, 3, 3, ho2, wo2)                           # (9*Cout, M2)
    y = jnp.dot(w2_ref[...], p2, preferred_element_type=jnp.float32)     # (Cout, M2)
    y = jnp.maximum(y + aff_ref[1, 0], 0.0) * aff_ref[1, 1] + aff_ref[1, 2]

    o_ref[0] = y.astype(o_ref.dtype)   # unmasked lane-dense store


def fold_bn(gamma, beta, mean, var, eps=1e-5):
    """Eval-mode BatchNorm folded into per-channel scale/shift."""
    scale = gamma / jnp.sqrt(var + eps)
    return scale, beta - mean * scale


def conv_block_forward(x_nchw, params, padding=True, batch_norm=True):
    """Pallas implementation of ConvBlock.forward (NCHW in, NCHW out)."""
    N, Cin, H, W = x_nchw.shape
    Cout = params["w1"].shape[-1]
    Ho = H if padding else H - 4
    Wo = W if padding else W - 4

    # weights (3,3,Cin,Cout) HWIO -> (Cout, 9*Cin): each conv becomes one matmul
    w1 = params["w1"].reshape(9 * Cin, Cout).T
    w2 = params["w2"].reshape(9 * Cout, Cout).T

    if batch_norm:
        sc1, sh1 = fold_bn(*params["bn1"])
        sc2, sh2 = fold_bn(*params["bn2"])
    else:
        sc1 = sc2 = jnp.ones((Cout,), jnp.float32)
        sh1 = sh2 = jnp.zeros((Cout,), jnp.float32)
    # merge bias / bn_scale / bn_shift into ONE operand (one DMA descriptor per step)
    aff = jnp.stack([jnp.stack([params["b1"], sc1, sh1]),
                     jnp.stack([params["b2"], sc2, sh2])])[..., None]    # (2,3,Cout,1)

    scratch = ([pltpu.VMEM((Cin, H + 2, W + 2), jnp.float32),
                pltpu.VMEM((Cout, H + 2, W + 2), jnp.float32)]
               if padding else [])

    kernel = functools.partial(conv_block_kernel, H=H, W=W, Cin=Cin, Cout=Cout,
                               padding=padding)
    out = pl.pallas_call(
        kernel,
        out_shape=jax.ShapeDtypeStruct((N, Cout, Ho * Wo), x_nchw.dtype),
        grid_spec=pltpu.PrefetchScalarGridSpec(
            num_scalar_prefetch=0,
            grid=(N,),                      # >=2 parallel steps -> both v7x TensorCores
            in_specs=[
                pl.BlockSpec((1, Cin, H, W), lambda n: (n, 0, 0, 0)),
                pl.BlockSpec((Cout, 9 * Cin), lambda n: (0, 0)),
                pl.BlockSpec((Cout, 9 * Cout), lambda n: (0, 0)),
                pl.BlockSpec((2, 3, Cout, 1), lambda n: (0, 0, 0, 0)),
            ],
            out_specs=pl.BlockSpec((1, Cout, Ho * Wo), lambda n: (n, 0, 0)),
            scratch_shapes=scratch),
        compiler_params=pltpu.CompilerParams(
            dimension_semantics=("parallel",),
            vmem_limit_bytes=32 * 1024 * 1024),
    )(x_nchw, w1, w2, aff)
    return out.reshape(N, Cout, Ho, Wo)    # trivial split of the last dim, no transpose


# --------------------------------------------------------------------------------------
# ConvTranspose2d(k=4, s=2, p=1) kernel == ConvUpBlock.up for up_mode='upconv'
# --------------------------------------------------------------------------------------
def conv_transpose_kernel(x_ref, w_ref, b_ref, o_ref, *,
                          K, Cin, Cout, Hout, Wout, row_chunk):
    """x_ref: (1, Cin, Hout+K-1, Wout+K-1)  zero-dilated + padded input (NCHW)
       w_ref: (Cout, K*K*Cin)               spatially flipped, I/O-swapped weights
       b_ref: (Cout, 1)
       o_ref: (1, Cout, Hout*Wout)          lane-dense output
    Output rows are processed in static chunks to bound vreg pressure."""
    for c in range(Hout // row_chunk):
        r0 = c * row_chunk
        slab = x_ref[0, :, r0:r0 + row_chunk + K - 1, :]          # (Cin, rc+K-1, Wd)
        p = _im2col_T(slab, Cin, K, K, row_chunk, Wout)           # (K*K*Cin, rc*Wout)
        y = jnp.dot(w_ref[...], p, preferred_element_type=jnp.float32) + b_ref[...]
        o_ref[0, :, r0 * Wout:(r0 + row_chunk) * Wout] = y.astype(o_ref.dtype)


def conv_up_forward(x_nchw, params):
    """ConvTranspose2d(in_ch, out_ch, kernel_size=4, stride=2, padding=1)."""
    N, Cin, H, W = x_nchw.shape
    w_t = params["up_w"]                     # PyTorch layout (Cin, Cout, 4, 4)
    Cout = w_t.shape[1]
    K, S, P = 4, 2, 1
    Hout = (H - 1) * S - 2 * P + K
    Wout = (W - 1) * S - 2 * P + K

    # transposed conv == VALID conv over the stride-dilated, (K-1-P)-padded input with
    # the spatially flipped, channel-swapped kernel.
    # TODO(synk): replace the zero-dilated conv with the 4-phase sub-pixel decomposition
    # to avoid the ~4x multiply-by-zero work.
    zero = jnp.zeros((), x_nchw.dtype)
    x_dp = lax.pad(x_nchw, zero,
                   ((0, 0, 0), (0, 0, 0),
                    (K - 1 - P, K - 1 - P, S - 1), (K - 1 - P, K - 1 - P, S - 1)))
    Hd, Wd = x_dp.shape[2], x_dp.shape[3]

    w_conv = jnp.transpose(w_t[:, :, ::-1, ::-1], (2, 3, 0, 1))   # (K,K,Cin,Cout) HWIO
    w2d = w_conv.reshape(K * K * Cin, Cout).T                     # (Cout, K*K*Cin)
    b2d = params["up_b"].reshape(Cout, 1)

    row_chunk = 8 if Hout % 8 == 0 else Hout
    kernel = functools.partial(conv_transpose_kernel, K=K, Cin=Cin, Cout=Cout,
                               Hout=Hout, Wout=Wout, row_chunk=row_chunk)
    out = pl.pallas_call(
        kernel,
        out_shape=jax.ShapeDtypeStruct((N, Cout, Hout * Wout), x_nchw.dtype),
        grid_spec=pltpu.PrefetchScalarGridSpec(
            num_scalar_prefetch=0,
            grid=(N,),
            in_specs=[
                pl.BlockSpec((1, Cin, Hd, Wd), lambda n: (n, 0, 0, 0)),
                pl.BlockSpec((Cout, K * K * Cin), lambda n: (0, 0)),
                pl.BlockSpec((Cout, 1), lambda n: (0, 0)),
            ],
            out_specs=pl.BlockSpec((1, Cout, Hout * Wout), lambda n: (n, 0, 0)),
        ),
        compiler_params=pltpu.CompilerParams(
            dimension_semantics=("parallel",),
            vmem_limit_bytes=32 * 1024 * 1024),
    )(x_dp, w2d, b2d)
    return out.reshape(N, Cout, Hout, Wout)


def conv_up_block_forward(img, params):
    """ConvUpBlock.forward(img): `up = self.up(img); return up` (up_mode='upconv')."""
    # TODO(synk): up_mode='upsample' (bilinear Upsample + grouped 9x9 conv) not implemented.
    return conv_up_forward(img, params)


# --------------------------------------------------------------------------------------
# plain-JAX references
# --------------------------------------------------------------------------------------
def _ref_conv_block(x_nchw, params, padding=True, batch_norm=True):
    pad = "SAME" if padding else "VALID"
    dn = ("NCHW", "HWIO", "NCHW")
    Cout = params["w1"].shape[-1]
    if batch_norm:
        sc1, sh1 = fold_bn(*params["bn1"])
        sc2, sh2 = fold_bn(*params["bn2"])
    else:
        sc1 = sc2 = jnp.ones((Cout,), jnp.float32)
        sh1 = sh2 = jnp.zeros((Cout,), jnp.float32)

    def layer(x, w, b, sc, sh):
        y = lax.conv_general_dilated(x, w, (1, 1), pad, dimension_numbers=dn)
        y = jnp.maximum(y + b[None, :, None, None], 0.0)
        return y * sc[None, :, None, None] + sh[None, :, None, None]

    y = layer(x_nchw, params["w1"], params["b1"], sc1, sh1)
    return layer(y, params["w2"], params["b2"], sc2, sh2)


def _ref_conv_up(x_nchw, w_t, b):
    w_oihw = jnp.transpose(w_t[:, :, ::-1, ::-1], (1, 0, 2, 3))   # (Cout, Cin, 4, 4)
    y = lax.conv_general_dilated(
        x_nchw, w_oihw, window_strides=(1, 1), padding=((2, 2), (2, 2)),
        lhs_dilation=(2, 2), dimension_numbers=("NCHW", "OIHW", "NCHW"))
    return y + b[None, :, None, None]


# --------------------------------------------------------------------------------------
if __name__ == "__main__":
    N, Cin, Cout, H, W = 2, 4, 8, 16, 16
    ks = jax.random.split(jax.random.PRNGKey(0), 14)

    params = {
        # ConvTranspose2d(in_ch=4, out_ch=8, kernel_size=4, stride=2, padding=1)
        "up_w": 0.1 * jax.random.normal(ks[0], (Cin, Cout, 4, 4), jnp.float32),
        "up_b": 0.1 * jax.random.normal(ks[1], (Cout,), jnp.float32),
        # ConvBlock(in_ch=4, out_ch=8): conv weights stored HWIO (3,3,Cin,Cout)
        "w1": 0.1 * jax.random.normal(ks[2], (3, 3, Cin, Cout), jnp.float32),
        "b1": 0.1 * jax.random.normal(ks[3], (Cout,), jnp.float32),
        "w2": 0.1 * jax.random.normal(ks[4], (3, 3, Cout, Cout), jnp.float32),
        "b2": 0.1 * jax.random.normal(ks[5], (Cout,), jnp.float32),
        # BatchNorm2d (eval mode): gamma, beta, running_mean, running_var
        "bn1": (1.0 + 0.1 * jax.random.normal(ks[6], (Cout,), jnp.float32),
                0.1 * jax.random.normal(ks[7], (Cout,), jnp.float32),
                0.1 * jax.random.normal(ks[8], (Cout,), jnp.float32),
                1.0 + 0.1 * jnp.abs(jax.random.normal(ks[9], (Cout,), jnp.float32))),
        "bn2": (1.0 + 0.1 * jax.random.normal(ks[10], (Cout,), jnp.float32),
                0.1 * jax.random.normal(ks[11], (Cout,), jnp.float32),
                0.1 * jax.random.normal(ks[12], (Cout,), jnp.float32),
                1.0 + 0.1 * jnp.abs(jax.random.normal(ks[13], (Cout,), jnp.float32))),
    }
    x = jax.random.normal(jax.random.PRNGKey(42), (N, Cin, H, W), jnp.float32)

    # --- ConvUpBlock.forward (up_mode='upconv'): returns self.up(img) ---
    up = jax.block_until_ready(jax.jit(conv_up_block_forward)(x, params))
    up_ref = _ref_conv_up(x, params["up_w"], params["up_b"])
    assert up.shape == (N, Cout, 2 * H, 2 * W), up.shape
    np.testing.assert_allclose(np.asarray(up), np.asarray(up_ref),
                               rtol=1e-4, atol=1e-4)

    # --- dependent ConvBlock(in_ch=4, out_ch=8, padding, batch_norm=True) ---
    for padding in (True, False):
        fn = jax.jit(functools.partial(conv_block_forward, padding=padding,
                                       batch_norm=True))
        y = jax.block_until_ready(fn(x, params))
        y_ref = _ref_conv_block(x, params, padding=padding, batch_norm=True)
        assert y.shape == y_ref.shape, (y.shape, y_ref.shape)
        np.testing.assert_allclose(np.asarray(y), np.asarray(y_ref),
                                   rtol=1e-4, atol=1e-4)

    print("KERNEL_OK")
</pallas_src>

<mosaic_0001>
module attributes {stable_mosaic.version = 11 : i64} {
  func.func @conv_transpose_kernel(%arg0: i32, %arg1: memref<1x4x35x35xf32, #tpu.memory_space<vmem>>, %arg2: memref<8x64xf32, #tpu.memory_space<vmem>>, %arg3: memref<8x1xf32, #tpu.memory_space<vmem>>, %arg4: memref<1x8x1024xf32, #tpu.memory_space<vmem>>) attributes {dimension_semantics = [#tpu.dimension_semantics<parallel>], iteration_bounds = array<i64: 2>, scalar_prefetch = 0 : i64, scratch_operands = 0 : i64, tpu.core_type = #tpu.core_type<tc>, window_params = [{transform_indices = @transform_0, window_bounds = array<i64: 1, 4, 35, 35>}, {pipeline_mode = #tpu.pipeline_mode<synchronous>, transform_indices = @transform_1, window_bounds = array<i64: 8, 64>}, {pipeline_mode = #tpu.pipeline_mode<synchronous>, transform_indices = @transform_2, window_bounds = array<i64: 8, 1>}, {transform_indices = @transform_3, window_bounds = array<i64: 1, 8, 1024>}]} {
    %c0 = arith.constant 0 : index
    %c0_0 = arith.constant 0 : index
    %c0_1 = arith.constant 0 : index
    %c0_2 = arith.constant 0 : index
    %0 = vector.load %arg1[%c0, %c0_0, %c0_1, %c0_2] : memref<1x4x35x35xf32, #tpu.memory_space<vmem>>, vector<1x4x11x35xf32>
    %1 = vector.shape_cast %0 : vector<1x4x11x35xf32> to vector<4x11x35xf32>
    %2 = vector.extract_strided_slice %1 {offsets = [0, 0, 0], sizes = [4, 8, 32], strides = [1, 1, 1]} : vector<4x11x35xf32> to vector<4x8x32xf32>
    %3 = vector.shape_cast %2 : vector<4x8x32xf32> to vector<4x256xf32>
    %4 = vector.extract_strided_slice %1 {offsets = [0, 0, 1], sizes = [4, 8, 32], strides = [1, 1, 1]} : vector<4x11x35xf32> to vector<4x8x32xf32>
    %5 = vector.shape_cast %4 : vector<4x8x32xf32> to vector<4x256xf32>
    %6 = vector.extract_strided_slice %1 {offsets = [0, 0, 2], sizes = [4, 8, 32], strides = [1, 1, 1]} : vector<4x11x35xf32> to vector<4x8x32xf32>
    %7 = vector.shape_cast %6 : vector<4x8x32xf32> to vector<4x256xf32>
    %8 = vector.extract_strided_slice %1 {offsets = [0, 0, 3], sizes = [4, 8, 32], strides = [1, 1, 1]} : vector<4x11x35xf32> to vector<4x8x32xf32>
    %9 = vector.shape_cast %8 : vector<4x8x32xf32> to vector<4x256xf32>
    %10 = vector.extract_strided_slice %1 {offsets = [0, 1, 0], sizes = [4, 8, 32], strides = [1, 1, 1]} : vector<4x11x35xf32> to vector<4x8x32xf32>
    %11 = vector.shape_cast %10 : vector<4x8x32xf32> to vector<4x256xf32>
    %12 = vector.extract_strided_slice %1 {offsets = [0, 1, 1], sizes = [4, 8, 32], strides = [1, 1, 1]} : vector<4x11x35xf32> to vector<4x8x32xf32>
    %13 = vector.shape_cast %12 : vector<4x8x32xf32> to vector<4x256xf32>
    %14 = vector.extract_strided_slice %1 {offsets = [0, 1, 2], sizes = [4, 8, 32], strides = [1, 1, 1]} : vector<4x11x35xf32> to vector<4x8x32xf32>
    %15 = vector.shape_cast %14 : vector<4x8x32xf32> to vector<4x256xf32>
    %16 = vector.extract_strided_slice %1 {offsets = [0, 1, 3], sizes = [4, 8, 32], strides = [1, 1, 1]} : vector<4x11x35xf32> to vector<4x8x32xf32>
    %17 = vector.shape_cast %16 : vector<4x8x32xf32> to vector<4x256xf32>
    %18 = vector.extract_strided_slice %1 {offsets = [0, 2, 0], sizes = [4, 8, 32], strides = [1, 1, 1]} : vector<4x11x35xf32> to vector<4x8x32xf32>
    %19 = vector.shape_cast %18 : vector<4x8x32xf32> to vector<4x256xf32>
    %20 = vector.extract_strided_slice %1 {offsets = [0, 2, 1], sizes = [4, 8, 32], strides = [1, 1, 1]} : vector<4x11x35xf32> to vector<4x8x32xf32>
    %21 = vector.shape_cast %20 : vector<4x8x32xf32> to vector<4x256xf32>
    %22 = vector.extract_strided_slice %1 {offsets = [0, 2, 2], sizes = [4, 8, 32], strides = [1, 1, 1]} : vector<4x11x35xf32> to vector<4x8x32xf32>
    %23 = vector.shape_cast %22 : vector<4x8x32xf32> to vector<4x256xf32>
    %24 = vector.extract_strided_slice %1 {offsets = [0, 2, 3], sizes = [4, 8, 32], strides = [1, 1, 1]} : vector<4x11x35xf32> to vector<4x8x32xf32>
    %25 = vector.shape_cast %24 : vector<4x8x32xf32> to vector<4x256xf32>
    %26 = vector.extract_strided_slice %1 {offsets = [0, 3, 0], sizes = [4, 8, 32], strides = [1, 1, 1]} : vector<4x11x35xf32> to vector<4x8x32xf32>
    %27 = vector.shape_cast %26 : vector<4x8x32xf32> to vector<4x256xf32>
    %28 = vector.extract_strided_slice %1 {offsets = [0, 3, 1], sizes = [4, 8, 32], strides = [1, 1, 1]} : vector<4x11x35xf32> to vector<4x8x32xf32>
    %29 = vector.shape_cast %28 : vector<4x8x32xf32> to vector<4x256xf32>
    %30 = vector.extract_strided_slice %1 {offsets = [0, 3, 2], sizes = [4, 8, 32], strides = [1, 1, 1]} : vector<4x11x35xf32> to vector<4x8x32xf32>
    %31 = vector.shape_cast %30 : vector<4x8x32xf32> to vector<4x256xf32>
    %32 = vector.extract_strided_slice %1 {offsets = [0, 3, 3], sizes = [4, 8, 32], strides = [1, 1, 1]} : vector<4x11x35xf32> to vector<4x8x32xf32>
    %33 = vector.shape_cast %32 : vector<4x8x32xf32> to vector<4x256xf32>
    %34 = tpu.concatenate %3, %5, %7, %9, %11, %13, %15, %17, %19, %21, %23, %25, %27, %29, %31, %33 in 0 : vector<4x256xf32>, vector<4x256xf32>, vector<4x256xf32>, vector<4x256xf32>, vector<4x256xf32>, vector<4x256xf32>, vector<4x256xf32>, vector<4x256xf32>, vector<4x256xf32>, vector<4x256xf32>, vector<4x256xf32>, vector<4x256xf32>, vector<4x256xf32>, vector<4x256xf32>, vector<4x256xf32>, vector<4x256xf32> -> vector<64x256xf32>
    %c0_3 = arith.constant 0 : index
    %c0_4 = arith.constant 0 : index
    %35 = vector.load %arg2[%c0_3, %c0_4] : memref<8x64xf32, #tpu.memory_space<vmem>>, vector<8x64xf32>
    %cst = arith.constant dense<0.000000e+00> : vector<8x256xf32>
    %36 = tpu.matmul %35, %34, %cst {dimension_numbers = #tpu.dot_dimension_numbers<[1], [0], [0], [1], [0, 0, 1, 1], [], []>} : vector<8x64xf32>, vector<64x256xf32>, vector<8x256xf32> -> vector<8x256xf32>
    %c0_5 = arith.constant 0 : index
    %c0_6 = arith.constant 0 : index
    %37 = vector.load %arg3[%c0_5, %c0_6] : memref<8x1xf32, #tpu.memory_space<vmem>>, vector<8x1xf32>
    %38 = vector.broadcast %37 : vector<8x1xf32> to vector<8x256xf32>
    %39 = arith.addf %36, %38 : vector<8x256xf32>
    %c0_7 = arith.constant 0 : index
    %c0_8 = arith.constant 0 : index
    %c0_9 = arith.constant 0 : index
    %40 = vector.load %arg4[%c0_7, %c0_8, %c0_9] : memref<1x8x1024xf32, #tpu.memory_space<vmem>>, vector<1x8x256xf32>
    %41 = vector.shape_cast %40 : vector<1x8x256xf32> to vector<8x256xf32>
    %42 = vector.shape_cast %39 : vector<8x256xf32> to vector<1x8x256xf32>
    tpu.vector_store %arg4[%c0_7, %c0_8, %c0_9], %42 {strides = array<i32>} : memref<1x8x1024xf32, #tpu.memory_space<vmem>>, vector<1x8x256xf32>,
    %c0_10 = arith.constant 0 : index
    %c0_11 = arith.constant 0 : index
    %c8 = arith.constant 8 : index
    %c0_12 = arith.constant 0 : index
    %43 = vector.load %arg1[%c0_10, %c0_11, %c8, %c0_12] : memref<1x4x35x35xf32, #tpu.memory_space<vmem>>, vector<1x4x11x35xf32>
    %44 = vector.shape_cast %43 : vector<1x4x11x35xf32> to vector<4x11x35xf32>
    %45 = vector.extract_strided_slice %44 {offsets = [0, 0, 0], sizes = [4, 8, 32], strides = [1, 1, 1]} : vector<4x11x35xf32> to vector<4x8x32xf32>
    %46 = vector.shape_cast %45 : vector<4x8x32xf32> to vector<4x256xf32>
    %47 = vector.extract_strided_slice %44 {offsets = [0, 0, 1], sizes = [4, 8, 32], strides = [1, 1, 1]} : vector<4x11x35xf32> to vector<4x8x32xf32>
    %48 = vector.shape_cast %47 : vector<4x8x32xf32> to vector<4x256xf32>
    %49 = vector.extract_strided_slice %44 {offsets = [0, 0, 2], sizes = [4, 8, 32], strides = [1, 1, 1]} : vector<4x11x35xf32> to vector<4x8x32xf32>
    %50 = vector.shape_cast %49 : vector<4x8x32xf32> to vector<4x256xf32>
    %51 = vector.extract_strided_slice %44 {offsets = [0, 0, 3], sizes = [4, 8, 32], strides = [1, 1, 1]} : vector<4x11x35xf32> to vector<4x8x32xf32>
    %52 = vector.shape_cast %51 : vector<4x8x32xf32> to vector<4x256xf32>
    %53 = vector.extract_strided_slice %44 {offsets = [0, 1, 0], sizes = [4, 8, 32], strides = [1, 1, 1]} : vector<4x11x35xf32> to vector<4x8x32xf32>
    %54 = vector.shape_cast %53 : vector<4x8x32xf32> to vector<4x256xf32>
    %55 = vector.extract_strided_slice %44 {offsets = [0, 1, 1], sizes = [4, 8, 32], strides = [1, 1, 1]} : vector<4x11x35xf32> to vector<4x8x32xf32>
    %56 = vector.shape_cast %55 : vector<4x8x32xf32> to vector<4x256xf32>
    %57 = vector.extract_strided_slice %44 {offsets = [0, 1, 2], sizes = [4, 8, 32], strides = [1, 1, 1]} : vector<4x11x35xf32> to vector<4x8x32xf32>
    %58 = vector.shape_cast %57 : vector<4x8x32xf32> to vector<4x256xf32>
    %59 = vector.extract_strided_slice %44 {offsets = [0, 1, 3], sizes = [4, 8, 32], strides = [1, 1, 1]} : vector<4x11x35xf32> to vector<4x8x32xf32>
    %60 = vector.shape_cast %59 : vector<4x8x32xf32> to vector<4x256xf32>
    %61 = vector.extract_strided_slice %44 {offsets = [0, 2, 0], sizes = [4, 8, 32], strides = [1, 1, 1]} : vector<4x11x35xf32> to vector<4x8x32xf32>
    %62 = vector.shape_cast %61 : vector<4x8x32xf32> to vector<4x256xf32>
    %63 = vector.extract_strided_slice %44 {offsets = [0, 2, 1], sizes = [4, 8, 32], strides = [1, 1, 1]} : vector<4x11x35xf32> to vector<4x8x32xf32>
    %64 = vector.shape_cast %63 : vector<4x8x32xf32> to vector<4x256xf32>
    %65 = vector.extract_strided_slice %44 {offsets = [0, 2, 2], sizes = [4, 8, 32], strides = [1, 1, 1]} : vector<4x11x35xf32> to vector<4x8x32xf32>
    %66 = vector.shape_cast %65 : vector<4x8x32xf32> to vector<4x256xf32>
    %67 = vector.extract_strided_slice %44 {offsets = [0, 2, 3], sizes = [4, 8, 32], strides = [1, 1, 1]} : vector<4x11x35xf32> to vector<4x8x32xf32>
    %68 = vector.shape_cast %67 : vector<4x8x32xf32> to vector<4x256xf32>
    %69 = vector.extract_strided_slice %44 {offsets = [0, 3, 0], sizes = [4, 8, 32], strides = [1, 1, 1]} : vector<4x11x35xf32> to vector<4x8x32xf32>
    %70 = vector.shape_cast %69 : vector<4x8x32xf32> to vector<4x256xf32>
    %71 = vector.extract_strided_slice %44 {offsets = [0, 3, 1], sizes = [4, 8, 32], strides = [1, 1, 1]} : vector<4x11x35xf32> to vector<4x8x32xf32>
    %72 = vector.shape_cast %71 : vector<4x8x32xf32> to vector<4x256xf32>
    %73 = vector.extract_strided_slice %44 {offsets = [0, 3, 2], sizes = [4, 8, 32], strides = [1, 1, 1]} : vector<4x11x35xf32> to vector<4x8x32xf32>
    %74 = vector.shape_cast %73 : vector<4x8x32xf32> to vector<4x256xf32>
    %75 = vector.extract_strided_slice %44 {offsets = [0, 3, 3], sizes = [4, 8, 32], strides = [1, 1, 1]} : vector<4x11x35xf32> to vector<4x8x32xf32>
    %76 = vector.shape_cast %75 : vector<4x8x32xf32> to vector<4x256xf32>
    %77 = tpu.concatenate %46, %48, %50, %52, %54, %56, %58, %60, %62, %64, %66, %68, %70, %72, %74, %76 in 0 : vector<4x256xf32>, vector<4x256xf32>, vector<4x256xf32>, vector<4x256xf32>, vector<4x256xf32>, vector<4x256xf32>, vector<4x256xf32>, vector<4x256xf32>, vector<4x256xf32>, vector<4x256xf32>, vector<4x256xf32>, vector<4x256xf32>, vector<4x256xf32>, vector<4x256xf32>, vector<4x256xf32>, vector<4x256xf32> -> vector<64x256xf32>
    %c0_13 = arith.constant 0 : index
    %c0_14 = arith.constant 0 : index
    %78 = vector.load %arg2[%c0_13, %c0_14] : memref<8x64xf32, #tpu.memory_space<vmem>>, vector<8x64xf32>
    %cst_15 = arith.constant dense<0.000000e+00> : vector<8x256xf32>
    %79 = tpu.matmul %78, %77, %cst_15 {dimension_numbers = #tpu.dot_dimension_numbers<[1], [0], [0], [1], [0, 0, 1, 1], [], []>} : vector<8x64xf32>, vector<64x256xf32>, vector<8x256xf32> -> vector<8x256xf32>
    %c0_16 = arith.constant 0 : index
    %c0_17 = arith.constant 0 : index
    %80 = vector.load %arg3[%c0_16, %c0_17] : memref<8x1xf32, #tpu.memory_space<vmem>>, vector<8x1xf32>
    %81 = vector.broadcast %80 : vector<8x1xf32> to vector<8x256xf32>
    %82 = arith.addf %79, %81 : vector<8x256xf32>
    %c0_18 = arith.constant 0 : index
    %c0_19 = arith.constant 0 : index
    %c256 = arith.constant 256 : index
    %83 = vector.load %arg4[%c0_18, %c0_19, %c256] : memref<1x8x1024xf32, #tpu.memory_space<vmem>>, vector<1x8x256xf32>
    %84 = vector.shape_cast %83 : vector<1x8x256xf32> to vector<8x256xf32>
    %85 = vector.shape_cast %82 : vector<8x256xf32> to vector<1x8x256xf32>
    tpu.vector_store %arg4[%c0_18, %c0_19, %c256], %85 {strides = array<i32>} : memref<1x8x1024xf32, #tpu.memory_space<vmem>>, vector<1x8x256xf32>,
    %c0_20 = arith.constant 0 : index
    %c0_21 = arith.constant 0 : index
    %c16 = arith.constant 16 : index
    %c0_22 = arith.constant 0 : index
    %86 = vector.load %arg1[%c0_20, %c0_21, %c16, %c0_22] : memref<1x4x35x35xf32, #tpu.memory_space<vmem>>, vector<1x4x11x35xf32>
    %87 = vector.shape_cast %86 : vector<1x4x11x35xf32> to vector<4x11x35xf32>
    %88 = vector.extract_strided_slice %87 {offsets = [0, 0, 0], sizes = [4, 8, 32], strides = [1, 1, 1]} : vector<4x11x35xf32> to vector<4x8x32xf32>
    %89 = vector.shape_cast %88 : vector<4x8x32xf32> to vector<4x256xf32>
    %90 = vector.extract_strided_slice %87 {offsets = [0, 0, 1], sizes = [4, 8, 32], strides = [1, 1, 1]} : vector<4x11x35xf32> to vector<4x8x32xf32>
    %91 = vector.shape_cast %90 : vector<4x8x32xf32> to vector<4x256xf32>
    %92 = vector.extract_strided_slice %87 {offsets = [0, 0, 2], sizes = [4, 8, 32], strides = [1, 1, 1]} : vector<4x11x35xf32> to vector<4x8x32xf32>
    %93 = vector.shape_cast %92 : vector<4x8x32xf32> to vector<4x256xf32>
    %94 = vector.extract_strided_slice %87 {offsets = [0, 0, 3], sizes = [4, 8, 32], strides = [1, 1, 1]} : vector<4x11x35xf32> to vector<4x8x32xf32>
    %95 = vector.shape_cast %94 : vector<4x8x32xf32> to vector<4x256xf32>
    %96 = vector.extract_strided_slice %87 {offsets = [0, 1, 0], sizes = [4, 8, 32], strides = [1, 1, 1]} : vector<4x11x35xf32> to vector<4x8x32xf32>
    %97 = vector.shape_cast %96 : vector<4x8x32xf32> to vector<4x256xf32>
    %98 = vector.extract_strided_slice %87 {offsets = [0, 1, 1], sizes = [4, 8, 32], strides = [1, 1, 1]} : vector<4x11x35xf32> to vector<4x8x32xf32>
    %99 = vector.shape_cast %98 : vector<4x8x32xf32> to vector<4x256xf32>
    %100 = vector.extract_strided_slice %87 {offsets = [0, 1, 2], sizes = [4, 8, 32], strides = [1, 1, 1]} : vector<4x11x35xf32> to vector<4x8x32xf32>
    %101 = vector.shape_cast %100 : vector<4x8x32xf32> to vector<4x256xf32>
    %102 = vector.extract_strided_slice %87 {offsets = [0, 1, 3], sizes = [4, 8, 32], strides = [1, 1, 1]} : vector<4x11x35xf32> to vector<4x8x32xf32>
    %103 = vector.shape_cast %102 : vector<4x8x32xf32> to vector<4x256xf32>
    %104 = vector.extract_strided_slice %87 {offsets = [0, 2, 0], sizes = [4, 8, 32], strides = [1, 1, 1]} : vector<4x11x35xf32> to vector<4x8x32xf32>
    %105 = vector.shape_cast %104 : vector<4x8x32xf32> to vector<4x256xf32>
    %106 = vector.extract_strided_slice %87 {offsets = [0, 2, 1], sizes = [4, 8, 32], strides = [1, 1, 1]} : vector<4x11x35xf32> to vector<4x8x32xf32>
    %107 = vector.shape_cast %106 : vector<4x8x32xf32> to vector<4x256xf32>
    %108 = vector.extract_strided_slice %87 {offsets = [0, 2, 2], sizes = [4, 8, 32], strides = [1, 1, 1]} : vector<4x11x35xf32> to vector<4x8x32xf32>
    %109 = vector.shape_cast %108 : vector<4x8x32xf32> to vector<4x256xf32>
    %110 = vector.extract_strided_slice %87 {offsets = [0, 2, 3], sizes = [4, 8, 32], strides = [1, 1, 1]} : vector<4x11x35xf32> to vector<4x8x32xf32>
    %111 = vector.shape_cast %110 : vector<4x8x32xf32> to vector<4x256xf32>
    %112 = vector.extract_strided_slice %87 {offsets = [0, 3, 0], sizes = [4, 8, 32], strides = [1, 1, 1]} : vector<4x11x35xf32> to vector<4x8x32xf32>
    %113 = vector.shape_cast %112 : vector<4x8x32xf32> to vector<4x256xf32>
    %114 = vector.extract_strided_slice %87 {offsets = [0, 3, 1], sizes = [4, 8, 32], strides = [1, 1, 1]} : vector<4x11x35xf32> to vector<4x8x32xf32>
    %115 = vector.shape_cast %114 : vector<4x8x32xf32> to vector<4x256xf32>
    %116 = vector.extract_strided_slice %87 {offsets = [0, 3, 2], sizes = [4, 8, 32], strides = [1, 1, 1]} : vector<4x11x35xf32> to vector<4x8x32xf32>
    %117 = vector.shape_cast %116 : vector<4x8x32xf32> to vector<4x256xf32>
    %118 = vector.extract_strided_slice %87 {offsets = [0, 3, 3], sizes = [4, 8, 32], strides = [1, 1, 1]} : vector<4x11x35xf32> to vector<4x8x32xf32>
    %119 = vector.shape_cast %118 : vector<4x8x32xf32> to vector<4x256xf32>
    %120 = tpu.concatenate %89, %91, %93, %95, %97, %99, %101, %103, %105, %107, %109, %111, %113, %115, %117, %119 in 0 : vector<4x256xf32>, vector<4x256xf32>, vector<4x256xf32>, vector<4x256xf32>, vector<4x256xf32>, vector<4x256xf32>, vector<4x256xf32>, vector<4x256xf32>, vector<4x256xf32>, vector<4x256xf32>, vector<4x256xf32>, vector<4x256xf32>, vector<4x256xf32>, vector<4x256xf32>, vector<4x256xf32>, vector<4x256xf32> -> vector<64x256xf32>
    %c0_23 = arith.constant 0 : index
    %c0_24 = arith.constant 0 : index
    %121 = vector.load %arg2[%c0_23, %c0_24] : memref<8x64xf32, #tpu.memory_space<vmem>>, vector<8x64xf32>
    %cst_25 = arith.constant dense<0.000000e+00> : vector<8x256xf32>
    %122 = tpu.matmul %121, %120, %cst_25 {dimension_numbers = #tpu.dot_dimension_numbers<[1], [0], [0], [1], [0, 0, 1, 1], [], []>} : vector<8x64xf32>, vector<64x256xf32>, vector<8x256xf32> -> vector<8x256xf32>
    %c0_26 = arith.constant 0 : index
    %c0_27 = arith.constant 0 : index
    %123 = vector.load %arg3[%c0_26, %c0_27] : memref<8x1xf32, #tpu.memory_space<vmem>>, vector<8x1xf32>
    %124 = vector.broadcast %123 : vector<8x1xf32> to vector<8x256xf32>
    %125 = arith.addf %122, %124 : vector<8x256xf32>
    %c0_28 = arith.constant 0 : index
    %c0_29 = arith.constant 0 : index
    %c512 = arith.constant 512 : index
    %126 = vector.load %arg4[%c0_28, %c0_29, %c512] : memref<1x8x1024xf32, #tpu.memory_space<vmem>>, vector<1x8x256xf32>
    %127 = vector.shape_cast %126 : vector<1x8x256xf32> to vector<8x256xf32>
    %128 = vector.shape_cast %125 : vector<8x256xf32> to vector<1x8x256xf32>
    tpu.vector_store %arg4[%c0_28, %c0_29, %c512], %128 {strides = array<i32>} : memref<1x8x1024xf32, #tpu.memory_space<vmem>>, vector<1x8x256xf32>,
    %c0_30 = arith.constant 0 : index
    %c0_31 = arith.constant 0 : index
    %c24 = arith.constant 24 : index
    %c0_32 = arith.constant 0 : index
    %129 = vector.load %arg1[%c0_30, %c0_31, %c24, %c0_32] : memref<1x4x35x35xf32, #tpu.memory_space<vmem>>, vector<1x4x11x35xf32>
    %130 = vector.shape_cast %129 : vector<1x4x11x35xf32> to vector<4x11x35xf32>
    %131 = vector.extract_strided_slice %130 {offsets = [0, 0, 0], sizes = [4, 8, 32], strides = [1, 1, 1]} : vector<4x11x35xf32> to vector<4x8x32xf32>
    %132 = vector.shape_cast %131 : vector<4x8x32xf32> to vector<4x256xf32>
    %133 = vector.extract_strided_slice %130 {offsets = [0, 0, 1], sizes = [4, 8, 32], strides = [1, 1, 1]} : vector<4x11x35xf32> to vector<4x8x32xf32>
    %134 = vector.shape_cast %133 : vector<4x8x32xf32> to vector<4x256xf32>
    %135 = vector.extract_strided_slice %130 {offsets = [0, 0, 2], sizes = [4, 8, 32], strides = [1, 1, 1]} : vector<4x11x35xf32> to vector<4x8x32xf32>
    %136 = vector.shape_cast %135 : vector<4x8x32xf32> to vector<4x256xf32>
    %137 = vector.extract_strided_slice %130 {offsets = [0, 0, 3], sizes = [4, 8, 32], strides = [1, 1, 1]} : vector<4x11x35xf32> to vector<4x8x32xf32>
    %138 = vector.shape_cast %137 : vector<4x8x32xf32> to vector<4x256xf32>
    %139 = vector.extract_strided_slice %130 {offsets = [0, 1, 0], sizes = [4, 8, 32], strides = [1, 1, 1]} : vector<4x11x35xf32> to vector<4x8x32xf32>
    %140 = vector.shape_cast %139 : vector<4x8x32xf32> to vector<4x256xf32>
    %141 = vector.extract_strided_slice %130 {offsets = [0, 1, 1], sizes = [4, 8, 32], strides = [1, 1, 1]} : vector<4x11x35xf32> to vector<4x8x32xf32>
    %142 = vector.shape_cast %141 : vector<4x8x32xf32> to vector<4x256xf32>
    %143 = vector.extract_strided_slice %130 {offsets = [0, 1, 2], sizes = [4, 8, 32], strides = [1, 1, 1]} : vector<4x11x35xf32> to vector<4x8x32xf32>
    %144 = vector.shape_cast %143 : vector<4x8x32xf32> to vector<4x256xf32>
    %145 = vector.extract_strided_slice %130 {offsets = [0, 1, 3], sizes = [4, 8, 32], strides = [1, 1, 1]} : vector<4x11x35xf32> to vector<4x8x32xf32>
    %146 = vector.shape_cast %145 : vector<4x8x32xf32> to vector<4x256xf32>
    %147 = vector.extract_strided_slice %130 {offsets = [0, 2, 0], sizes = [4, 8, 32], strides = [1, 1, 1]} : vector<4x11x35xf32> to vector<4x8x32xf32>
    %148 = vector.shape_cast %147 : vector<4x8x32xf32> to vector<4x256xf32>
    %149 = vector.extract_strided_slice %130 {offsets = [0, 2, 1], sizes = [4, 8, 32], strides = [1, 1, 1]} : vector<4x11x35xf32> to vector<4x8x32xf32>
    %150 = vector.shape_cast %149 : vector<4x8x32xf32> to vector<4x256xf32>
    %151 = vector.extract_strided_slice %130 {offsets = [0, 2, 2], sizes = [4, 8, 32], strides = [1, 1, 1]} : vector<4x11x35xf32> to vector<4x8x32xf32>
    %152 = vector.shape_cast %151 : vector<4x8x32xf32> to vector<4x256xf32>
    %153 = vector.extract_strided_slice %130 {offsets = [0, 2, 3], sizes = [4, 8, 32], strides = [1, 1, 1]} : vector<4x11x35xf32> to vector<4x8x32xf32>
    %154 = vector.shape_cast %153 : vector<4x8x32xf32> to vector<4x256xf32>
    %155 = vector.extract_strided_slice %130 {offsets = [0, 3, 0], sizes = [4, 8, 32], strides = [1, 1, 1]} : vector<4x11x35xf32> to vector<4x8x32xf32>
    %156 = vector.shape_cast %155 : vector<4x8x32xf32> to vector<4x256xf32>
    %157 = vector.extract_strided_slice %130 {offsets = [0, 3, 1], sizes = [4, 8, 32], strides = [1, 1, 1]} : vector<4x11x35xf32> to vector<4x8x32xf32>
    %158 = vector.shape_cast %157 : vector<4x8x32xf32> to vector<4x256xf32>
    %159 = vector.extract_strided_slice %130 {offsets = [0, 3, 2], sizes = [4, 8, 32], strides = [1, 1, 1]} : vector<4x11x35xf32> to vector<4x8x32xf32>
    %160 = vector.shape_cast %159 : vector<4x8x32xf32> to vector<4x256xf32>
    %161 = vector.extract_strided_slice %130 {offsets = [0, 3, 3], sizes = [4, 8, 32], strides = [1, 1, 1]} : vector<4x11x35xf32> to vector<4x8x32xf32>
    %162 = vector.shape_cast %161 : vector<4x8x32xf32> to vector<4x256xf32>
    %163 = tpu.concatenate %132, %134, %136, %138, %140, %142, %144, %146, %148, %150, %152, %154, %156, %158, %160, %162 in 0 : vector<4x256xf32>, vector<4x256xf32>, vector<4x256xf32>, vector<4x256xf32>, vector<4x256xf32>, vector<4x256xf32>, vector<4x256xf32>, vector<4x256xf32>, vector<4x256xf32>, vector<4x256xf32>, vector<4x256xf32>, vector<4x256xf32>, vector<4x256xf32>, vector<4x256xf32>, vector<4x256xf32>, vector<4x256xf32> -> vector<64x256xf32>
    %c0_33 = arith.constant 0 : index
    %c0_34 = arith.constant 0 : index
    %164 = vector.load %arg2[%c0_33, %c0_34] : memref<8x64xf32, #tpu.memory_space<vmem>>, vector<8x64xf32>
    %cst_35 = arith.constant dense<0.000000e+00> : vector<8x256xf32>
    %165 = tpu.matmul %164, %163, %cst_35 {dimension_numbers = #tpu.dot_dimension_numbers<[1], [0], [0], [1], [0, 0, 1, 1], [], []>} : vector<8x64xf32>, vector<64x256xf32>, vector<8x256xf32> -> vector<8x256xf32>
    %c0_36 = arith.constant 0 : index
    %c0_37 = arith.constant 0 : index
    %166 = vector.load %arg3[%c0_36, %c0_37] : memref<8x1xf32, #tpu.memory_space<vmem>>, vector<8x1xf32>
    %167 = vector.broadcast %166 : vector<8x1xf32> to vector<8x256xf32>
    %168 = arith.addf %165, %167 : vector<8x256xf32>
    %c0_38 = arith.constant 0 : index
    %c0_39 = arith.constant 0 : index
    %c768 = arith.constant 768 : index
    %169 = vector.load %arg4[%c0_38, %c0_39, %c768] : memref<1x8x1024xf32, #tpu.memory_space<vmem>>, vector<1x8x256xf32>
    %170 = vector.shape_cast %169 : vector<1x8x256xf32> to vector<8x256xf32>
    %171 = vector.shape_cast %168 : vector<8x256xf32> to vector<1x8x256xf32>
    tpu.vector_store %arg4[%c0_38, %c0_39, %c768], %171 {strides = array<i32>} : memref<1x8x1024xf32, #tpu.memory_space<vmem>>, vector<1x8x256xf32>,
    return
  }
  func.func @transform_0(%arg0: i32) -> (i32, i32, i32, i32) {
    %c0_i32 = arith.constant 0 : i32
    %c0_i32_0 = arith.constant 0 : i32
    %c0_i32_1 = arith.constant 0 : i32
    %c0_i32_2 = arith.constant 0 : i32
    return %arg0, %c0_i32, %c0_i32_0, %c0_i32_1 : i32, i32, i32, i32
  }
  func.func @transform_1(%arg0: i32) -> (i32, i32) {
    %c0_i32 = arith.constant 0 : i32
    %c0_i32_0 = arith.constant 0 : i32
    %c0_i32_1 = arith.constant 0 : i32
    return %c0_i32, %c0_i32_0 : i32, i32
  }
  func.func @transform_2(%arg0: i32) -> (i32, i32) {
    %c0_i32 = arith.constant 0 : i32
    %c0_i32_0 = arith.constant 0 : i32
    %c0_i32_1 = arith.constant 0 : i32
    return %c0_i32, %c0_i32_0 : i32, i32
  }
  func.func @transform_3(%arg0: i32) -> (i32, i32, i32) {
    %c0_i32 = arith.constant 0 : i32
    %c0_i32_0 = arith.constant 0 : i32
    %c0_i32_1 = arith.constant 0 : i32
    return %arg0, %c0_i32, %c0_i32_0 : i32, i32, i32
  }
}

</mosaic_0001>

<bundles_post_ra>
// kernel: conv_up_block_forward.1
= control target key start
LH: loop header
LB: loop body
LE: loop exit
PB: predicated region body
PF: predicated region fallthrough
CT: control target
= control target key end

     0   :  { %s8027_s12 = smov 0   ;;  %s12645_s0 = inlined_call_operand.vmem [shape: f32[2,4,35,35], index: 0, kind: input, shape index: {}]   ;;  %s12646_s1 = inlined_call_operand.vmem [shape: f32[8,64], index: 1, kind: input, shape index: {}]   ;;  %s12647_s2 = inlined_call_operand.vmem [shape: f32[8,1], index: 2, kind: input, shape index: {}]   ;;  %s12648_s3 = inlined_call_operand.vmem [shape: f32[2,8,1024], index: 3, kind: output, shape index: {}]  }
   0x1 LB: > { %s7925_s13 = sadd.s32 4294967295, %s7995_s12   ;;  %p7929_p0 = scmp.ge.s32.totalorder %s7995_s12, 1  ;;  %s7995_s12 = sphi %s8027_s12, %s13_s12  }
   0x2   : > { %p137_p1 = scmp.lt.s32.totalorder %s7995_s12, 3 }
   0x4   : > { %p138_p2 = pnand %p7929_p0, %p137_p1 }
   0x6   : > { %141 = sbr.rel (%p138_p2) target bundleno = 4999 (0x1387), region = 32 }
   0xb   : > { %p161_p3 = scmp.lt.s32.totalorder %s7925_s13, 1  ;;  %v184_v0 = vlaneseq  ;;  %v7997_v1 = vmov 1983009808   ;;  %v12649_v4 = vmov 0.0   ;;  %v7999_v6 = vmov 1934713408  }
   0xc   : > { %v182_v2 = vunpack.c.l.s4 %v7997_v1  ;;  %2092 = vmatprep.mubr.f32.mxu0 %v12649_v4  ;;  %4015 = vmatprep.mubr.f32.mxu1 %v12649_v4  ;;  %v214_v7 = vunpack.c.l.s4 %v7999_v6  ;;  %s8000_s18 = smov 127   ;;  %s8001_s19 = smov 64   ;;  %vm618_vm0 = vcmask 1046528   ;;  %vm1063_vm1 = vcmask 1045504  }
   0xd   : > { %s13365_s13 = smov (!%p161_p3, %s7925_s13), 1  ;;  %v185_v3 = vshrl.u32 %v184_v0, 7  ;;  %s8002_s20 = smov 96   ;;  %vm1508_vm2 = vcmask 1044480   ;;  %vm271_vm3 = vcmask 261120   ;;  %vm273_vm4 = vcmask 523264  }
   0xe   : > { %v183_v5 = vunpack.c.0.s8 %v182_v2  ;;  %s7940_s14 = smul.u32 160, %s13365_s13  ;;  %v215_v12 = vunpack.c.0.s8 %v214_v7  ;;  %s8003_s21 = smov 32   ;;  %vm275_vm5 = vcmask 785408   ;;  %vm2001_vm6 = vcmask 1043456  }
   0xf   : > { %s8004_s22 = smov 126   ;;  %s8005_s23 = smov 125  }
  0x10   : > { %s8043_s17 = scalar_lea.vmem %s12645_s0, %s7940_s14  ;;  %v8045_v8 = vsub.s32 %v183_v5, %v185_v3  ;;  %v8074_v21 = vsub.s32 %v215_v12, %v185_v3  ;;  %s7939_s28 = sshll.u32 %s13365_s13, 6 }
  0x11   : > { %v8048_v9 = vld [vmem:[%s8043_s17 + $0x28] sm:$0xff]  ;;  %v8051_v10 = vld [vmem:[%s8043_s17] sm:$0xff]  ;;  %v8054_v11 = vld [vmem:[%s8043_s17 + $0x78] sm:$0xff]  ;;  %s9252_s4 = scalar_lea.vmem %s12648_s3, %s7939_s28 }
  0x12   : > { %286 = vrot.lane.b32.xlu1 %v8048_v9, %s8000_s18  ;;  %284 = vrot.lane.b32.xlu0 %v8051_v10, %s8000_s18  ;;  %v8061_v13 = vld [vmem:[%s8043_s17 + $0x50] sm:$0xff]  ;;  %v195_v14 = vcombine.low %v8048_v9, %v8054_v11  ;;  %v196_v15 = vcombine.high %v8048_v9, %v8054_v11  ;;  %v8082_v27 = vld [vmem:[%s8043_s17 + $0x8] sm:$0x7]  ;;  %v619_v33 = vrot.slane %v8051_v10, 1  ;;  %v622_v35 = vrot.slane %v8048_v9, 1 }
  0x13   : > { %v179_v16 = vcombine.low %v8051_v10, %v8061_v13  ;;  %v180_v17 = vcombine.high %v8051_v10, %v8061_v13  ;;  %v8085_v28 = vld [vmem:[%s8043_s17 + $0x30] sm:$0x7]  ;;  %v8092_v31 = vld [vmem:[%s8043_s17 + $0x58] sm:$0x7]  ;;  %v8095_v32 = vld [vmem:[%s8043_s17 + $0x80] sm:$0x7] }
  0x14   : > { %v203_v18 = vrot.slane %v195_v14, %v8045_v8  ;;  %v210_v19 = vrot.slane %v196_v15, %v8045_v8  ;;  %v620_v34 = vrot.slane %v8082_v27, 1  ;;  %v623_v39 = vrot.slane %v8085_v28, 1 }
  0x15   : > { %v187_v20 = vrot.slane %v179_v16, %v8045_v8  ;;  %v194_v22 = vrot.slane %v180_v17, %v8045_v8  ;;  %v625_v40 = vrot.slane %v8061_v13, 1  ;;  %v626_v41 = vrot.slane %v8092_v31, 1 }
  0x16   : > { %290 = vrot.lane.b32.xlu1 %v8054_v11, %s8000_s18  ;;  %288 = vrot.lane.b32.xlu0 %v8061_v13, %s8000_s18  ;;  %v628_v42 = vrot.slane %v8054_v11, 1  ;;  %v629_v43 = vrot.slane %v8095_v32, 1  ;;  %v621_v46 = vsel %vm618_vm0, %v619_v33, %v620_v34  ;;  %v624_v47 = vsel %vm618_vm0, %v622_v35, %v623_v39 }
  0x17   : > { %v212_v23 = vcombine.high %v187_v20, %v203_v18  ;;  %v228_v24 = vcombine.high %v194_v22, %v210_v19  ;;  %v227_v25 = vcombine.low %v194_v22, %v210_v19  ;;  %v211_v26 = vcombine.low %v187_v20, %v203_v18 }
  0x18   : > { %v627_v48 = vsel %vm618_vm0, %v625_v40, %v626_v41  ;;  %v630_v49 = vsel %vm618_vm0, %v628_v42, %v629_v43 }
  0x19   : > { %v226_v29 = vrot.slane %v212_v23, %v8074_v21  ;;  %v8089_v30 = vrot.slane %v227_v25, %v8074_v21  ;;  %v242_v37 = vrot.slane %v228_v24, %v8074_v21  ;;  %v8104_v38 = vrot.slane %v211_v26, %v8074_v21 }
  0x1a   : > { %v635_v51 = vcombine.low %v621_v46, %v627_v48  ;;  %v651_v52 = vcombine.low %v624_v47, %v630_v49  ;;  %v636_v55 = vcombine.high %v621_v46, %v627_v48  ;;  %v652_v56 = vcombine.high %v624_v47, %v630_v49 }
  0x1b   : > { %252 = vrot.lane.b32.xlu0 %v226_v29, %s8001_s19  ;;  %v244_v36 = vcombine.high %v226_v29, %v12649_v4  ;;  %v245_v44 = vcombine.high %v8089_v30, %v12649_v4  ;;  %v243_v45 = vcombine.high %v8104_v38, %v12649_v4  ;;  %v246_v50 = vcombine.high %v242_v37, %v12649_v4 }
  0x1c   : > { %v643_v53 = vrot.slane %v635_v51, %v8045_v8  ;;  %v659_v54 = vrot.slane %v651_v52, %v8045_v8  ;;  %v650_v58 = vrot.slane %v636_v55, %v8045_v8  ;;  %v666_v59 = vrot.slane %v652_v56, %v8045_v8 }
  0x1d   : > { %256 = vrot.lane.b32.xlu1 %v244_v36, %s8002_s20 }
  0x1e   : > { %v667_v57 = vcombine.low %v643_v53, %v659_v54  ;;  %v668_v61 = vcombine.high %v643_v53, %v659_v54  ;;  %v683_v62 = vcombine.low %v650_v58, %v666_v59  ;;  %v684_v2 = vcombine.high %v650_v58, %v666_v59 }
  0x1f   : > { %264 = vrot.lane.b32.xlu0 %v242_v37, %s8001_s19 }
  0x20   : > { %v8140_v60 = vrot.slane %v667_v57, %v8074_v21  ;;  %v682_v0 = vrot.slane %v668_v61, %v8074_v21  ;;  %v8152_v1 = vrot.slane %v683_v62, %v8074_v21  ;;  %v698_v6 = vrot.slane %v684_v2, %v8074_v21 }
  0x21   : > { %260 = vrot.lane.b32.xlu1 %v245_v44, %s8003_s21 }
  0x22   : > { %v699_v63 = vcombine.high %v8140_v60, %v12649_v4  ;;  %v700_v3 = vcombine.high %v682_v0, %v12649_v4  ;;  %v701_v5 = vcombine.high %v8152_v1, %v12649_v4  ;;  %v702_v7 = vcombine.high %v698_v6, %v12649_v4 }
  0x23   : > { %248 = vrot.lane.b32.xlu0 %v243_v45, %s8003_s21 }
  0x25   : > { %268 = vrot.lane.b32.xlu1 %v246_v50, %s8002_s20 }
  0x27   : > { %394 = vrot.lane.b32.xlu0 %v8051_v10, %s8004_s22 }
  0x29   : > { %396 = vrot.lane.b32.xlu1 %v8048_v9, %s8004_s22 }
  0x2b   : > { %398 = vrot.lane.b32.xlu0 %v8061_v13, %s8004_s22 }
  0x2d   : > { %400 = vrot.lane.b32.xlu1 %v8054_v11, %s8004_s22 }
  0x2f   : > { %504 = vrot.lane.b32.xlu0 %v8051_v10, %s8005_s23 }
  0x31   : > { %506 = vrot.lane.b32.xlu1 %v8048_v9, %s8005_s23 }
  0x33   : > { %508 = vrot.lane.b32.xlu0 %v8061_v13, %s8005_s23 }
  0x35   : > { %510 = vrot.lane.b32.xlu1 %v8054_v11, %s8005_s23 }
  0x37   : > { %704 = vrot.lane.b32.xlu0 %v699_v63, %s8003_s21 }
  0x39   : > { %708 = vrot.lane.b32.xlu1 %v682_v0, %s8001_s19 }
  0x3b   : > { %712 = vrot.lane.b32.xlu0 %v700_v3, %s8002_s20 }
  0x3d   : > { %716 = vrot.lane.b32.xlu1 %v701_v5, %s8003_s21 }
  0x3f   : > { %720 = vrot.lane.b32.xlu0 %v698_v6, %s8001_s19 }
  0x41   : > { %724 = vrot.lane.b32.xlu1 %v702_v7, %s8002_s20 }
  0x43   : > { %733 = vrot.lane.b32.xlu0 %v621_v46, %s8000_s18 }
  0x45   : > { %735 = vrot.lane.b32.xlu1 %v624_v47, %s8000_s18 }
  0x47   : > { %737 = vrot.lane.b32.xlu0 %v627_v48, %s8000_s18 }
  0x49   : > { %739 = vrot.lane.b32.xlu1 %v630_v49, %s8000_s18 }
  0x4b   : > { %843 = vrot.lane.b32.xlu0 %v621_v46, %s8004_s22 }
  0x4d   : > { %845 = vrot.lane.b32.xlu1 %v624_v47, %s8004_s22 }
  0x4f   : > { %847 = vrot.lane.b32.xlu0 %v627_v48, %s8004_s22 }
  0x51   : > { %849 = vrot.lane.b32.xlu1 %v630_v49, %s8004_s22 }
  0x53   : > { %953 = vrot.lane.b32.xlu0 %v621_v46, %s8005_s23 }
  0x55   : > { %955 = vrot.lane.b32.xlu1 %v624_v47, %s8005_s23 }
  0x57   : > { %957 = vrot.lane.b32.xlu0 %v627_v48, %s8005_s23 }
  0x59   : > { %959 = vrot.lane.b32.xlu1 %v630_v49, %s8005_s23 }
  0x84   : > { %v287_v12 = vpop.permute.xlu1 %286  ;;  %v285_v14 = vpop.permute.xlu0 %284 }
  0x88   : > { %v291_v15 = vpop.permute.xlu1 %290  ;;  %v289_v16 = vpop.permute.xlu0 %288 }
  0x89   : > { %v312_v17 = vcombine.low %v287_v12, %v291_v15  ;;  %v313_v18 = vcombine.high %v287_v12, %v291_v15  ;;  %v296_v19 = vcombine.low %v285_v14, %v289_v16  ;;  %v297_v20 = vcombine.high %v285_v14, %v289_v16 }
  0x8b   : > { %v320_v22 = vrot.slane %v312_v17, %v8045_v8  ;;  %v327_v23 = vrot.slane %v313_v18, %v8045_v8  ;;  %v304_v24 = vrot.slane %v296_v19, %v8045_v8  ;;  %v311_v25 = vrot.slane %v297_v20, %v8045_v8 }
  0x8d   : > { %v8181_v26 = vpop.permute.xlu0 %252  ;;  %v329_v29 = vcombine.high %v304_v24, %v320_v22  ;;  %v345_v33 = vcombine.high %v311_v25, %v327_v23  ;;  %v328_v6 = vcombine.low %v304_v24, %v320_v22  ;;  %v344_v15 = vcombine.low %v311_v25, %v327_v23 }
  0x8e   : > { %12741 = vst [vmem:[#allocation2_spill] sm:$0xff] %v8181_v26 }
  0x8f   : > { %v8183_v34 = vpop.permute.xlu1 %256  ;;  %v343_v35 = vrot.slane %v329_v29, %v8074_v21  ;;  %v8187_v36 = vrot.slane %v345_v33, %v8074_v21  ;;  %v8222_v22 = vrot.slane %v328_v6, %v8074_v21  ;;  %v8228_v23 = vrot.slane %v344_v15, %v8074_v21 }
  0x90   : > { %12742 = vst [vmem:[#allocation3_spill] sm:$0xff] %v8183_v34 }
  0x91   : > { %v8189_v37 = vpop.permute.xlu0 %264  ;;  %369 = vrot.lane.b32.xlu1 %v343_v35, %s8001_s19  ;;  %381 = vrot.lane.b32.xlu0 %v8187_v36, %s8001_s19 }
  0x92   : > { %12743 = vst [vmem:[#allocation4_spill] sm:$0xff] %v8189_v37 }
  0x93   : > { %v8194_v39 = vpop.permute.xlu1 %260 }
  0x95   : > { %v8196_v40 = vpop.permute.xlu0 %248 }
  0x97   : > { %v8198_v41 = vpop.permute.xlu1 %268 }
  0x98   : > { %12744 = vst [vmem:[#allocation5_spill] sm:$0xff] %v8198_v41 }
  0x99   : > { %v395_v42 = vpop.permute.xlu0 %394 }
  0x9b   : > { %v397_v43 = vpop.permute.xlu1 %396 }
  0x9d   : > { %v399_v44 = vpop.permute.xlu0 %398 }
  0x9e   : > { %v406_v45 = vcombine.low %v395_v42, %v399_v44  ;;  %v407_v46 = vcombine.high %v395_v42, %v399_v44 }
  0x9f   : > { %v401_v47 = vpop.permute.xlu1 %400 }
  0xa0   : > { %v422_v48 = vcombine.low %v397_v43, %v401_v47  ;;  %v423_v49 = vcombine.high %v397_v43, %v401_v47  ;;  %v414_v51 = vrot.slane %v406_v45, %v8045_v8  ;;  %v421_v52 = vrot.slane %v407_v46, %v8045_v8 }
  0xa1   : > { %v505_v50 = vpop.permute.xlu0 %504  ;;  %v360_v43 = vcombine.high %v8222_v22, %v12649_v4  ;;  %v362_v46 = vcombine.high %v8228_v23, %v12649_v4 }
  0xa2   : > { %v430_v53 = vrot.slane %v422_v48, %v8045_v8  ;;  %v437_v54 = vrot.slane %v423_v49, %v8045_v8  ;;  %v361_v48 = vcombine.high %v343_v35, %v12649_v4 }
  0xa3   : > { %v507_v55 = vpop.permute.xlu1 %506 }
  0xa4   : > { %v455_v56 = vcombine.high %v421_v52, %v437_v54  ;;  %v439_v57 = vcombine.high %v414_v51, %v430_v53  ;;  %v438_v42 = vcombine.low %v414_v51, %v430_v53  ;;  %v454_v44 = vcombine.low %v421_v52, %v437_v54 }
  0xa5   : > { %v509_v58 = vpop.permute.xlu0 %508  ;;  %v363_v51 = vcombine.high %v8187_v36, %v12649_v4 }
  0xa6   : > { %v517_v59 = vcombine.high %v505_v50, %v509_v58  ;;  %v469_v61 = vrot.slane %v455_v56, %v8074_v21  ;;  %v453_v62 = vrot.slane %v439_v57, %v8074_v21  ;;  %v516_v63 = vcombine.low %v505_v50, %v509_v58 }
  0xa7   : > { %v511_v0 = vpop.permute.xlu1 %510  ;;  %v8245_v49 = vrot.slane %v438_v42, %v8074_v21  ;;  %v8250_v52 = vrot.slane %v454_v44, %v8074_v21 }
  0xa8   : > { %v532_v2 = vcombine.low %v507_v55, %v511_v0  ;;  %v533_v3 = vcombine.high %v507_v55, %v511_v0  ;;  %491 = vrot.lane.b32.xlu0 %v469_v61, %s8001_s19  ;;  %479 = vrot.lane.b32.xlu1 %v453_v62, %s8001_s19  ;;  %v531_v7 = vrot.slane %v517_v59, %v8045_v8 }
  0xa9   : > { %v8208_v5 = vpop.permute.xlu0 %704  ;;  %v524_v16 = vrot.slane %v516_v63, %v8045_v8  ;;  %12747 = vst [vmem:[#allocation8_spill] sm:$0xff] %v8245_v49  ;;  %v470_v55 = vcombine.high %v8245_v49, %v12649_v4  ;;  %v472_v57 = vcombine.high %v8250_v52, %v12649_v4  ;;  %v471_v59 = vcombine.high %v453_v62, %v12649_v4 }
  0xaa   : > { %v540_v12 = vrot.slane %v532_v2, %v8045_v8  ;;  %v547_v14 = vrot.slane %v533_v3, %v8045_v8  ;;  %v473_v3 = vcombine.high %v469_v61, %v12649_v4 }
  0xab   : > { %v8214_v17 = vpop.permute.xlu1 %708 }
  0xac   : > { %v565_v18 = vcombine.high %v531_v7, %v547_v14  ;;  %v549_v20 = vcombine.high %v524_v16, %v540_v12  ;;  %v548_v54 = vcombine.low %v524_v16, %v540_v12  ;;  %v564_v35 = vcombine.low %v531_v7, %v547_v14 }
  0xad   : > { %v8216_v19 = vpop.permute.xlu0 %712 }
  0xae   : > { %12745 = vst [vmem:[#allocation6_spill] sm:$0xff] %v8216_v19  ;;  %v8219_v29 = vrot.slane %v565_v18, %v8074_v21  ;;  %v563_v33 = vrot.slane %v549_v20, %v8074_v21  ;;  %v8262_v63 = vrot.slane %v548_v54, %v8074_v21  ;;  %v8266_v6 = vrot.slane %v564_v35, %v8074_v21 }
  0xaf   : > { %v8224_v24 = vpop.permute.xlu1 %716 }
  0xb0   : > { %601 = vrot.lane.b32.xlu0 %v8219_v29, %s8001_s19  ;;  %589 = vrot.lane.b32.xlu1 %v563_v33, %s8001_s19  ;;  %v580_v62 = vcombine.high %v8262_v63, %v12649_v4  ;;  %v582_v61 = vcombine.high %v8266_v6, %v12649_v4  ;;  %v583_v35 = vcombine.high %v8219_v29, %v12649_v4 }
  0xb1   : > { %v8233_v25 = vpop.permute.xlu0 %720 }
  0xb3   : > { %v8237_v45 = vpop.permute.xlu1 %724 }
  0xb4   : > { %12746 = vst [vmem:[#allocation7_spill] sm:$0xff] %v8237_v45  ;;  %365 = vrot.lane.b32.xlu0 %v360_v43, %s8003_s21  ;;  %377 = vrot.lane.b32.xlu1 %v362_v46, %s8003_s21 }
  0xb5   : > { %v734_v47 = vpop.permute.xlu0 %733 }
  0xb7   : > { %v736_v50 = vpop.permute.xlu1 %735 }
  0xb8   : > { %373 = vrot.lane.b32.xlu0 %v361_v48, %s8002_s20  ;;  %385 = vrot.lane.b32.xlu1 %v363_v51, %s8002_s20  ;;  %v581_v51 = vcombine.high %v563_v33, %v12649_v4 }
  0xb9   : > { %v738_v53 = vpop.permute.xlu0 %737 }
  0xba   : > { %v746_v7 = vcombine.high %v734_v47, %v738_v53  ;;  %v745_v12 = vcombine.low %v734_v47, %v738_v53 }
  0xbb   : > { %v740_v56 = vpop.permute.xlu1 %739 }
  0xbc   : > { %475 = vrot.lane.b32.xlu0 %v470_v55, %s8003_s21  ;;  %487 = vrot.lane.b32.xlu1 %v472_v57, %s8003_s21  ;;  %v762_v58 = vcombine.high %v736_v50, %v740_v56  ;;  %v761_v0 = vcombine.low %v736_v50, %v740_v56  ;;  %v760_v20 = vrot.slane %v746_v7, %v8045_v8 }
  0xbd   : > { %v844_v36 = vpop.permute.xlu0 %843  ;;  %v753_v46 = vrot.slane %v745_v12, %v8045_v8 }
  0xbe   : > { %v776_v15 = vrot.slane %v762_v58, %v8045_v8  ;;  %v769_v16 = vrot.slane %v761_v0, %v8045_v8 }
  0xbf   : > { %v846_v2 = vpop.permute.xlu1 %845 }
  0xc0   : > { %483 = vrot.lane.b32.xlu0 %v471_v59, %s8002_s20  ;;  %495 = vrot.lane.b32.xlu1 %v473_v3, %s8002_s20  ;;  %v794_v53 = vcombine.high %v760_v20, %v776_v15  ;;  %v778_v56 = vcombine.high %v753_v46, %v769_v16  ;;  %v777_v59 = vcombine.low %v753_v46, %v769_v16 }
  0xc1   : > { %v848_v14 = vpop.permute.xlu0 %847 }
  0xc2   : > { %v856_v42 = vcombine.high %v844_v36, %v848_v14  ;;  %v855_v47 = vcombine.low %v844_v36, %v848_v14  ;;  %v808_v0 = vrot.slane %v794_v53, %v8074_v21  ;;  %v792_v29 = vrot.slane %v778_v56, %v8074_v21 }
  0xc3   : > { %v850_v18 = vpop.permute.xlu1 %849  ;;  %v1064_v53 = vrot.slane %v8051_v10, 2  ;;  %v1071_v56 = vrot.slane %v8092_v31, 2 }
  0xc4   : > { %v871_v43 = vcombine.low %v846_v2, %v850_v18  ;;  %v872_v44 = vcombine.high %v846_v2, %v850_v18  ;;  %585 = vrot.lane.b32.xlu0 %v580_v62, %s8003_s21  ;;  %597 = vrot.lane.b32.xlu1 %v582_v61, %s8003_s21  ;;  %v870_v57 = vrot.slane %v856_v42, %v8045_v8 }
  0xc5   : > { %v8280_v48 = vpop.permute.xlu0 %953  ;;  %v863_v36 = vrot.slane %v855_v47, %v8045_v8  ;;  %v8303_v18 = vrot.slane %v777_v59, %v8074_v21  ;;  %v793_v61 = vcombine.low %v760_v20, %v776_v15  ;;  %v1065_v15 = vrot.slane %v8082_v27, 2 }
  0xc6   : > { %v8283_v50 = vrot.slane %v872_v44, %v8045_v8  ;;  %v879_v54 = vrot.slane %v871_v43, %v8045_v8  ;;  %v1067_v20 = vrot.slane %v8048_v9, 2  ;;  %v1074_v59 = vrot.slane %v8095_v32, 2 }
  0xc7   : > { %v956_v55 = vpop.permute.xlu1 %955  ;;  %v809_v46 = vcombine.high %v8303_v18, %v12649_v4 }
  0xc8   : > { %593 = vrot.lane.b32.xlu0 %v581_v51, %s8002_s20  ;;  %605 = vrot.lane.b32.xlu1 %v583_v35, %s8002_s20  ;;  %v904_v2 = vcombine.high %v870_v57, %v8283_v50  ;;  %v888_v7 = vcombine.high %v863_v36, %v879_v54  ;;  %v887_v44 = vcombine.low %v863_v36, %v879_v54  ;;  %v1068_v35 = vrot.slane %v8085_v28, 2 }
  0xc9   : > { %v958_v58 = vpop.permute.xlu0 %957  ;;  %v8312_v51 = vrot.slane %v793_v61, %v8074_v21  ;;  %v1070_v54 = vrot.slane %v8061_v13, 2  ;;  %v1073_v36 = vrot.slane %v8054_v11, 2 }
  0xca   : > { %v965_v33 = vcombine.low %v8280_v48, %v958_v58  ;;  %v918_v16 = vrot.slane %v904_v2, %v8074_v21  ;;  %v902_v42 = vrot.slane %v888_v7, %v8074_v21  ;;  %v8326_v2 = vrot.slane %v887_v44, %v8074_v21 }
  0xcb   : > { %v960_v3 = vpop.permute.xlu1 %959  ;;  %v903_v7 = vcombine.low %v870_v57, %v8283_v50  ;;  %v811_v61 = vcombine.high %v8312_v51, %v12649_v4  ;;  %v8341_v44 = vsel %vm1063_vm1, %v1070_v54, %v1071_v56  ;;  %v8344_v50 = vsel %vm1063_vm1, %v1073_v36, %v1074_v59 }
  0xcc   : > { %v981_v12 = vcombine.low %v956_v55, %v960_v3  ;;  %830 = vrot.lane.b32.xlu0 %v808_v0, %s8001_s19  ;;  %818 = vrot.lane.b32.xlu1 %v792_v29, %s8001_s19  ;;  %v973_v14 = vrot.slane %v965_v33, %v8045_v8  ;;  %v810_v33 = vcombine.high %v792_v29, %v12649_v4 }
  0xcd   : > { %12748 = vst [vmem:[#allocation9_spill] sm:$0xff] %v8326_v2  ;;  %v8338_v29 = vsel %vm1063_vm1, %v1067_v20, %v1068_v35  ;;  %v919_v57 = vcombine.high %v8326_v2, %v12649_v4 }
  0xce   : > { %v989_v62 = vrot.slane %v981_v12, %v8045_v8  ;;  %v982_v12 = vcombine.high %v956_v55, %v960_v3 }
  0xd0   : > { %940 = vrot.lane.b32.xlu0 %v918_v16, %s8001_s19  ;;  %v998_v43 = vcombine.high %v973_v14, %v989_v62  ;;  %928 = vrot.lane.b32.xlu1 %v902_v42, %s8001_s19  ;;  %v997_v55 = vcombine.low %v973_v14, %v989_v62  ;;  %v996_v3 = vrot.slane %v982_v12, %v8045_v8 }
  0xd1   : > { %v920_v62 = vcombine.high %v902_v42, %v12649_v4  ;;  %v1097_v42 = vcombine.high %v8338_v29, %v8344_v50 }
  0xd2   : > { %v1012_v47 = vrot.slane %v998_v43, %v8074_v21  ;;  %v8333_v43 = vsel %vm1063_vm1, %v1064_v53, %v1065_v15  ;;  %v812_v53 = vcombine.high %v808_v0, %v12649_v4  ;;  %v1096_v15 = vcombine.low %v8338_v29, %v8344_v50 }
  0xd3   : > { %v8362_v20 = vrot.slane %v997_v55, %v8074_v21  ;;  %v1081_v36 = vcombine.high %v8333_v43, %v8341_v44  ;;  %v1111_v55 = vrot.slane %v1097_v42, %v8045_v8 }
  0xd4   : > { %814 = vrot.lane.b32.xlu0 %v809_v46, %s8003_s21  ;;  %1038 = vrot.lane.b32.xlu1 %v1012_v47, %s8001_s19  ;;  %v966_v46 = vcombine.high %v8280_v48, %v958_v58  ;;  %v8351_v48 = vrot.slane %v903_v7, %v8074_v21  ;;  %v1080_v58 = vcombine.low %v8333_v43, %v8341_v44 }
  0xd5   : > { %12750 = vst [vmem:[#allocation11_spill] sm:$0xff] %v8362_v20  ;;  %v1104_v56 = vrot.slane %v1096_v15, %v8045_v8  ;;  %v1029_v59 = vcombine.high %v8362_v20, %v12649_v4  ;;  %v922_v7 = vcombine.high %v918_v16, %v12649_v4 }
  0xd6   : > { %12749 = vst [vmem:[#allocation10_spill] sm:$0xff] %v8351_v48  ;;  %v980_v14 = vrot.slane %v966_v46, %v8045_v8  ;;  %v921_v35 = vcombine.high %v8351_v48, %v12649_v4  ;;  %v1088_v54 = vrot.slane %v1080_v58, %v8045_v8  ;;  %v1095_v46 = vrot.slane %v1081_v36, %v8045_v8 }
  0xd8   : > { %822 = vrot.lane.b32.xlu0 %v810_v33, %s8002_s20  ;;  %826 = vrot.lane.b32.xlu1 %v811_v61, %s8003_s21  ;;  %v1013_v0 = vcombine.low %v980_v14, %v996_v3  ;;  %v1014_v33 = vcombine.high %v980_v14, %v996_v3  ;;  %v1112_v61 = vcombine.low %v1088_v54, %v1104_v56 }
  0xd9   : > { %v1113_v58 = vcombine.high %v1088_v54, %v1104_v56  ;;  %v1128_v15 = vcombine.low %v1095_v46, %v1111_v55 }
  0xda   : > { %v8378_v12 = vrot.slane %v1013_v0, %v8074_v21  ;;  %v1028_v3 = vrot.slane %v1014_v33, %v8074_v21  ;;  %v8390_v16 = vrot.slane %v1112_v61, %v8074_v21 }
  0xdb   : > { %v8400_v0 = vrot.slane %v1128_v15, %v8074_v21 }
  0xdc   : > { %924 = vrot.lane.b32.xlu0 %v919_v57, %s8003_s21  ;;  %834 = vrot.lane.b32.xlu1 %v812_v53, %s8002_s20  ;;  %12751 = vst [vmem:[#allocation12_spill] sm:$0xff] %v8378_v12  ;;  %v1030_v57 = vcombine.high %v1012_v47, %v12649_v4  ;;  %v1031_v53 = vcombine.high %v8378_v12, %v12649_v4  ;;  %12752 = vst [vmem:[#allocation13_spill] sm:$0xff] %v8390_v16 }
  0xdd   : > { %v1032_v14 = vcombine.high %v1028_v3, %v12649_v4  ;;  %v1144_v47 = vcombine.high %v8390_v16, %v12649_v4  ;;  %12753 = vst [vmem:[#allocation14_spill] sm:$0xff] %v8400_v0  ;;  %v1146_v56 = vcombine.high %v8400_v0, %v12649_v4 }
  0xe0   : > { %932 = vrot.lane.b32.xlu0 %v920_v62, %s8002_s20  ;;  %936 = vrot.lane.b32.xlu1 %v921_v35, %s8003_s21  ;;  %v1127_v62 = vrot.slane %v1113_v58, %v8074_v21  ;;  %v1129_v35 = vcombine.high %v1095_v46, %v1111_v55 }
  0xe2   : > { %v1145_v54 = vcombine.high %v1127_v62, %v12649_v4  ;;  %v1143_v36 = vrot.slane %v1129_v35, %v8074_v21 }
  0xe4   : > { %1034 = vrot.lane.b32.xlu0 %v1029_v59, %s8003_s21  ;;  %944 = vrot.lane.b32.xlu1 %v922_v7, %s8002_s20  ;;  %v1147_v42 = vcombine.high %v1143_v36, %v12649_v4 }
  0xe8   : > { %1042 = vrot.lane.b32.xlu0 %v1030_v57, %s8002_s20  ;;  %1046 = vrot.lane.b32.xlu1 %v1031_v53, %s8003_s21 }
  0xec   : > { %1050 = vrot.lane.b32.xlu0 %v1028_v3, %s8001_s19  ;;  %1054 = vrot.lane.b32.xlu1 %v1032_v14, %s8002_s20 }
  0xf0   : > { %1149 = vrot.lane.b32.xlu0 %v1144_v47, %s8003_s21  ;;  %1153 = vrot.lane.b32.xlu1 %v1127_v62, %s8001_s19 }
  0xf4   : > { %1157 = vrot.lane.b32.xlu0 %v1145_v54, %s8002_s20  ;;  %1161 = vrot.lane.b32.xlu1 %v1146_v56, %s8003_s21 }
  0xf8   : > { %1165 = vrot.lane.b32.xlu0 %v1143_v36, %s8001_s19  ;;  %1169 = vrot.lane.b32.xlu1 %v1147_v42, %s8002_s20 }
  0xfc   : > { %1178 = vrot.lane.b32.xlu0 %v8333_v43, %s8000_s18  ;;  %1180 = vrot.lane.b32.xlu1 %v8338_v29, %s8000_s18 }
 0x100   : > { %1182 = vrot.lane.b32.xlu0 %v8341_v44, %s8000_s18  ;;  %1184 = vrot.lane.b32.xlu1 %v8344_v50, %s8000_s18 }
 0x103   : > { %v8421_v59 = vpop.permute.xlu0 %381  ;;  %v8423_v33 = vpop.permute.xlu1 %369 }
 0x11a   : > { %v8425_v7 = vpop.permute.xlu0 %491  ;;  %v8427_v61 = vpop.permute.xlu1 %479 }
 0x11b   : > { %12754 = vst [vmem:[#allocation15_spill] sm:$0xff] %v8425_v7  ;;  %12755 = vst [vmem:[#allocation16_spill] sm:$0xff] %v8427_v61 }
 0x122   : > { %v8429_v46 = vpop.permute.xlu0 %601  ;;  %v8431_v55 = vpop.permute.xlu1 %589 }
 0x126   : > { %v8433_v57 = vpop.permute.xlu0 %365  ;;  %v8435_v53 = vpop.permute.xlu1 %377 }
 0x12a   : > { %v8437_v3 = vpop.permute.xlu0 %373  ;;  %v8439_v58 = vpop.permute.xlu1 %385 }
 0x12e   : > { %v8441_v15 = vpop.permute.xlu0 %475  ;;  %v8443_v14 = vpop.permute.xlu1 %487 }
 0x12f   : > { %12756 = vst [vmem:[#allocation17_spill] sm:$0xff] %v8441_v15 }
 0x132   : > { %v8445_v47 = vpop.permute.xlu0 %483  ;;  %v8447_v62 = vpop.permute.xlu1 %495 }
 0x133   : > { %12757 = vst [vmem:[#allocation18_spill] sm:$0xff] %v8445_v47  ;;  %12758 = vst [vmem:[#allocation19_spill] sm:$0xff] %v8447_v62 }
 0x136   : > { %v8449_v35 = vpop.permute.xlu0 %585  ;;  %v8451_v54 = vpop.permute.xlu1 %597 }
 0x13a   : > { %v8453_v56 = vpop.permute.xlu0 %593  ;;  %v8455_v36 = vpop.permute.xlu1 %605 }
 0x13b   : > { %12759 = vst [vmem:[#allocation20_spill] sm:$0xff] %v8453_v56  ;;  %12760 = vst [vmem:[#allocation21_spill] sm:$0xff] %v8455_v36 }
 0x13e   : > { %v8457_v42 = vpop.permute.xlu0 %830  ;;  %v8459_v4 = vpop.permute.xlu1 %818 }
 0x13f   : > { %12761 = vst [vmem:[#allocation22_spill] sm:$0xff] %v8457_v42  ;;  %12762 = vst [vmem:[#allocation23_spill] sm:$0xff] %v8459_v4 }
 0x142   : > { %v8461_v34 = vpop.permute.xlu0 %940  ;;  %v8463_v41 = vpop.permute.xlu1 %928 }
 0x143   : > { %12763 = vst [vmem:[#allocation24_spill] sm:$0xff] %v8461_v34  ;;  %12764 = vst [vmem:[#allocation25_spill] sm:$0xff] %v8463_v41 }
 0x146   : > { %v8465_v37 = vpop.permute.xlu0 %814  ;;  %v8467_v47 = vpop.permute.xlu1 %1038 }
 0x147   : > { %12765 = vst [vmem:[#allocation26_spill] sm:$0xff] %v8467_v47 }
 0x14a   : > { %v8469_v61 = vpop.permute.xlu0 %822  ;;  %v8471_v62 = vpop.permute.xlu1 %826 }
 0x14b   : > { %12766 = vst [vmem:[#allocation27_spill] sm:$0xff] %v8469_v61 }
 0x14e   : > { %v8473_v7 = vpop.permute.xlu0 %924  ;;  %v8475_v19 = vpop.permute.xlu1 %834 }
 0x14f   : > { %12767 = vst [vmem:[#allocation28_spill] sm:$0xff] %v8473_v7  ;;  %12768 = vst [vmem:[#allocation29_spill] sm:$0xff] %v8475_v19 }
 0x152   : > { %v8477_v45 = vpop.permute.xlu0 %932  ;;  %v8479_v26 = vpop.permute.xlu1 %936 }
 0x153   : > { %12769 = vst [vmem:[#allocation30_spill] sm:$0xff] %v8477_v45  ;;  %12770 = vst [vmem:[#allocation31_spill] sm:$0xff] %v8479_v26 }
 0x156   : > { %v8481_v49 = vpop.permute.xlu0 %1034  ;;  %v8483_v15 = vpop.permute.xlu1 %944 }
 0x157   : > { %12771 = vst [vmem:[#allocation32_spill] sm:$0xff] %v8483_v15 }
 0x15a   : > { %v8485_v41 = vpop.permute.xlu0 %1042  ;;  %v8487_v34 = vpop.permute.xlu1 %1046 }
 0x15b   : > { %12772 = vst [vmem:[#allocation33_spill] sm:$0xff] %v8485_v41  ;;  %12773 = vst [vmem:[#allocation34_spill] sm:$0xff] %v8487_v34 }
 0x15e   : > { %v8489_v2 = vpop.permute.xlu0 %1050  ;;  %v8491_v0 = vpop.permute.xlu1 %1054 }
 0x15f   : > { %12774 = vst [vmem:[#allocation35_spill] sm:$0xff] %v8489_v2  ;;  %12775 = vst [vmem:[#allocation36_spill] sm:$0xff] %v8491_v0 }
 0x162   : > { %v8493_v16 = vpop.permute.xlu0 %1149  ;;  %v8495_v7 = vpop.permute.xlu1 %1153 }
 0x163   : > { %12776 = vst [vmem:[#allocation37_spill] sm:$0xff] %v8493_v16  ;;  %12777 = vst [vmem:[#allocation38_spill] sm:$0xff] %v8495_v7 }
 0x166   : > { %v8497_v47 = vpop.permute.xlu0 %1157  ;;  %v8499_v45 = vpop.permute.xlu1 %1161 }
 0x167   : > { %12778 = vst [vmem:[#allocation39_spill] sm:$0xff] %v8497_v47  ;;  %12779 = vst [vmem:[#allocation40_spill] sm:$0xff] %v8499_v45 }
 0x16a   : > { %v8501_v48 = vpop.permute.xlu0 %1165  ;;  %v8503_v26 = vpop.permute.xlu1 %1169 }
 0x16b   : > { %12780 = vst [vmem:[#allocation41_spill] sm:$0xff] %v8501_v48  ;;  %12781 = vst [vmem:[#allocation42_spill] sm:$0xff] %v8503_v26 }
 0x16e   : > { %v1179_v15 = vpop.permute.xlu0 %1178  ;;  %v1181_v41 = vpop.permute.xlu1 %1180 }
 0x172   : > { %v1183_v19 = vpop.permute.xlu0 %1182  ;;  %v1185_v42 = vpop.permute.xlu1 %1184 }
 0x173   : > { %v1190_v61 = vcombine.low %v1179_v15, %v1183_v19  ;;  %v1191_v2 = vcombine.high %v1179_v15, %v1183_v19  ;;  %v1206_v12 = vcombine.low %v1181_v41, %v1185_v42  ;;  %v1207_v0 = vcombine.high %v1181_v41, %v1185_v42 }
 0x174   : > { %v12784_v41 = vmov 0.0  }
 0x175   : > { %v1198_v16 = vrot.slane %v1190_v61, %v8045_v8  ;;  %v1205_v7 = vrot.slane %v1191_v2, %v8045_v8  ;;  %v1214_v47 = vrot.slane %v1206_v12, %v8045_v8  ;;  %v1221_v45 = vrot.slane %v1207_v0, %v8045_v8 }
 0x177   : > { %v1222_v34 = vcombine.low %v1198_v16, %v1214_v47  ;;  %v1238_v48 = vcombine.low %v1205_v7, %v1221_v45  ;;  %v1223_v4 = vcombine.high %v1198_v16, %v1214_v47  ;;  %v1239_v26 = vcombine.high %v1205_v7, %v1221_v45 }
 0x179   : > { %v1237_v56 = vrot.slane %v1223_v4, %v8074_v21  ;;  %v8511_v36 = vrot.slane %v1222_v34, %v8074_v21  ;;  %v8514_v19 = vrot.slane %v1238_v48, %v8074_v21  ;;  %v1253_v45 = vrot.slane %v1239_v26, %v8074_v21 }
 0x17b   : > { %12782 = vst [vmem:[#allocation43_spill] sm:$0xff] %v8511_v36  ;;  %12783 = vst [vmem:[#allocation44_spill] sm:$0xff] %v8514_v19  ;;  %1263 = vrot.lane.b32.xlu1 %v1237_v56, %s8001_s19  ;;  %v1254_v2 = vcombine.high %v8511_v36, %v12784_v41  ;;  %v1256_v12 = vcombine.high %v8514_v19, %v12784_v41  ;;  %v1255_v4 = vcombine.high %v1237_v56, %v12784_v41 }
 0x17c   : > { %v1257_v34 = vcombine.high %v1253_v45, %v12784_v41 }
 0x17d   : > { %1259 = vrot.lane.b32.xlu0 %v1254_v2, %s8003_s21 }
 0x17f   : > { %1271 = vrot.lane.b32.xlu1 %v1256_v12, %s8003_s21 }
 0x181   : > { %1267 = vrot.lane.b32.xlu0 %v1255_v4, %s8002_s20 }
 0x183   : > { %1279 = vrot.lane.b32.xlu1 %v1257_v34, %s8002_s20 }
 0x185   : > { %1275 = vrot.lane.b32.xlu0 %v1253_v45, %s8001_s19 }
 0x187   : > { %1290 = vrot.lane.b32.xlu1 %v8338_v29, %s8004_s22 }
 0x189   : > { %1288 = vrot.lane.b32.xlu0 %v8333_v43, %s8004_s22 }
 0x18b   : > { %1294 = vrot.lane.b32.xlu1 %v8344_v50, %s8004_s22 }
 0x18d   : > { %1292 = vrot.lane.b32.xlu0 %v8341_v44, %s8004_s22 }
 0x1ed   : > { %v8537_v26 = vpop.permute.xlu1 %1263 }
 0x1ee   : > { %12785 = vst [vmem:[#allocation45_spill] sm:$0xff] %v8537_v26 }
 0x1ef   : > { %v8539_v48 = vpop.permute.xlu0 %1259 }
 0x1f0   : > { %12786 = vst [vmem:[#allocation46_spill] sm:$0xff] %v8539_v48 }
 0x1f1   : > { %v8541_v16 = vpop.permute.xlu1 %1271 }
 0x1f2   : > { %12787 = vst [vmem:[#allocation47_spill] sm:$0xff] %v8541_v16 }
 0x1f3   : > { %v8543_v0 = vpop.permute.xlu0 %1267 }
 0x1f4   : > { %12788 = vst [vmem:[#allocation48_spill] sm:$0xff] %v8543_v0 }
 0x1f5   : > { %v8545_v7 = vpop.permute.xlu1 %1279 }
 0x1f6   : > { %12789 = vst [vmem:[#allocation49_spill] sm:$0xff] %v8545_v7 }
 0x1f7   : > { %v8547_v61 = vpop.permute.xlu0 %1275 }
 0x1f8   : > { %12790 = vst [vmem:[#allocation50_spill] sm:$0xff] %v8547_v61 }
 0x1f9   : > { %v1291_v15 = vpop.permute.xlu1 %1290 }
 0x1fb   : > { %v1289_v47 = vpop.permute.xlu0 %1288 }
 0x1fd   : > { %v1295_v56 = vpop.permute.xlu1 %1294 }
 0x1fe   : > { %v1316_v42 = vcombine.low %v1291_v15, %v1295_v56  ;;  %v1317_v2 = vcombine.high %v1291_v15, %v1295_v56 }
 0x1ff   : > { %v1293_v12 = vpop.permute.xlu0 %1292 }
 0x200   : > { %v1300_v45 = vcombine.low %v1289_v47, %v1293_v12  ;;  %v1301_v4 = vcombine.high %v1289_v47, %v1293_v12  ;;  %v1324_v34 = vrot.slane %v1316_v42, %v8045_v8  ;;  %v1331_v26 = vrot.slane %v1317_v2, %v8045_v8 }
 0x201   : > { %v1513_v2 = vrot.slane %v8085_v28, 3  ;;  %v1515_v12 = vrot.slane %v8061_v13, 3 }
 0x202   : > { %v1308_v19 = vrot.slane %v1300_v45, %v8045_v8  ;;  %v1315_v0 = vrot.slane %v1301_v4, %v8045_v8  ;;  %v1516_v45 = vrot.slane %v8092_v31, 3  ;;  %v1518_v4 = vrot.slane %v8054_v11, 3 }
 0x204   : > { %v1332_v16 = vcombine.low %v1308_v19, %v1324_v34  ;;  %v1348_v7 = vcombine.low %v1315_v0, %v1331_v26  ;;  %v1333_v36 = vcombine.high %v1308_v19, %v1324_v34  ;;  %v1349_v61 = vcombine.high %v1315_v0, %v1331_v26 }
 0x205   : > { %v1519_v34 = vrot.slane %v8095_v32, 3  ;;  %v8608_v28 = vsel %vm1508_vm2, %v1515_v12, %v1516_v45 }
 0x206   : > { %v1347_v48 = vrot.slane %v1333_v36, %v8074_v21  ;;  %v8555_v20 = vrot.slane %v1332_v16, %v8074_v21  ;;  %v8558_v15 = vrot.slane %v1348_v7, %v8074_v21  ;;  %v1363_v19 = vrot.slane %v1349_v61, %v8074_v21 }
 0x207   : > { %v8611_v13 = vsel %vm1508_vm2, %v1518_v4, %v1519_v34 }
 0x208   : > { %12791 = vst [vmem:[#allocation51_spill] sm:$0xff] %v8555_v20  ;;  %12792 = vst [vmem:[#allocation52_spill] sm:$0xff] %v8558_v15  ;;  %1373 = vrot.lane.b32.xlu1 %v1347_v48, %s8001_s19  ;;  %v1364_v47 = vcombine.high %v8555_v20, %v12784_v41  ;;  %v1366_v56 = vcombine.high %v8558_v15, %v12784_v41  ;;  %v1365_v36 = vcombine.high %v1347_v48, %v12784_v41 }
 0x209   : > { %v1367_v26 = vcombine.high %v1363_v19, %v12784_v41 }
 0x20a   : > { %1369 = vrot.lane.b32.xlu0 %v1364_v47, %s8003_s21 }
 0x20c   : > { %1381 = vrot.lane.b32.xlu1 %v1366_v56, %s8003_s21 }
 0x20e   : > { %1377 = vrot.lane.b32.xlu0 %v1365_v36, %s8002_s20 }
 0x210   : > { %1389 = vrot.lane.b32.xlu1 %v1367_v26, %s8002_s20 }
 0x212   : > { %1385 = vrot.lane.b32.xlu0 %v1363_v19, %s8001_s19 }
 0x214   : > { %1400 = vrot.lane.b32.xlu1 %v8338_v29, %s8005_s23 }
 0x216   : > { %1398 = vrot.lane.b32.xlu0 %v8333_v43, %s8005_s23  ;;  %v1509_v43 = vrot.slane %v8051_v10, 3 }
 0x218   : > { %1404 = vrot.lane.b32.xlu1 %v8344_v50, %s8005_s23  ;;  %v1510_v50 = vrot.slane %v8082_v27, 3 }
 0x21a   : > { %1402 = vrot.lane.b32.xlu0 %v8341_v44, %s8005_s23  ;;  %v1512_v44 = vrot.slane %v8048_v9, 3  ;;  %v8602_v10 = vsel %vm1508_vm2, %v1509_v43, %v1510_v50 }
 0x21b   : > { %v1525_v32 = vcombine.low %v8602_v10, %v8608_v28 }
 0x21c   : > { %v8605_v19 = vsel %vm1508_vm2, %v1512_v44, %v1513_v2  ;;  %v1526_v2 = vcombine.high %v8602_v10, %v8608_v28 }
 0x21d   : > { %v1541_v26 = vcombine.low %v8605_v19, %v8611_v13  ;;  %v1542_v34 = vcombine.high %v8605_v19, %v8611_v13 }
 0x27a   : > { %v8581_v48 = vpop.permute.xlu1 %1373 }
 0x27b   : > { %12793 = vst [vmem:[#allocation53_spill] sm:$0xff] %v8581_v48 }
 0x27c   : > { %v8583_v16 = vpop.permute.xlu0 %1369 }
 0x27d   : > { %12794 = vst [vmem:[#allocation54_spill] sm:$0xff] %v8583_v16 }
 0x27e   : > { %v8585_v0 = vpop.permute.xlu1 %1381 }
 0x27f   : > { %12795 = vst [vmem:[#allocation55_spill] sm:$0xff] %v8585_v0 }
 0x280   : > { %v8587_v7 = vpop.permute.xlu0 %1377 }
 0x281   : > { %12796 = vst [vmem:[#allocation56_spill] sm:$0xff] %v8587_v7 }
 0x282   : > { %v8589_v61 = vpop.permute.xlu1 %1389 }
 0x283   : > { %12797 = vst [vmem:[#allocation57_spill] sm:$0xff] %v8589_v61 }
 0x284   : > { %v8591_v29 = vpop.permute.xlu0 %1385 }
 0x285   : > { %12798 = vst [vmem:[#allocation58_spill] sm:$0xff] %v8591_v29 }
 0x286   : > { %v1401_v42 = vpop.permute.xlu1 %1400 }
 0x288   : > { %v1399_v47 = vpop.permute.xlu0 %1398 }
 0x28a   : > { %v1405_v56 = vpop.permute.xlu1 %1404 }
 0x28b   : > { %v1426_v27 = vcombine.low %v1401_v42, %v1405_v56  ;;  %v1427_v9 = vcombine.high %v1401_v42, %v1405_v56  ;;  %v1549_v56 = vrot.slane %v1541_v26, %v8045_v8 }
 0x28c   : > { %v1403_v31 = vpop.permute.xlu0 %1402 }
 0x28d   : > { %v1410_v11 = vcombine.low %v1399_v47, %v1403_v31  ;;  %v1411_v36 = vcombine.high %v1399_v47, %v1403_v31  ;;  %v1434_v43 = vrot.slane %v1426_v27, %v8045_v8  ;;  %v1441_v50 = vrot.slane %v1427_v9, %v8045_v8 }
 0x28e   : > { %v1533_v47 = vrot.slane %v1525_v32, %v8045_v8  ;;  %v1556_v32 = vrot.slane %v1542_v34, %v8045_v8 }
 0x28f   : > { %v1418_v42 = vrot.slane %v1410_v11, %v8045_v8  ;;  %v1425_v44 = vrot.slane %v1411_v36, %v8045_v8 }
 0x291   : > { %v1442_v12 = vcombine.low %v1418_v42, %v1434_v43  ;;  %v1443_v45 = vcombine.high %v1418_v42, %v1434_v43  ;;  %v1458_v4 = vcombine.low %v1425_v44, %v1441_v50  ;;  %v1459_v27 = vcombine.high %v1425_v44, %v1441_v50 }
 0x292   : > { %v1540_v43 = vrot.slane %v1526_v2, %v8045_v8  ;;  %v1557_v42 = vcombine.low %v1533_v47, %v1549_v56 }
 0x293   : > { %v1457_v9 = vrot.slane %v1443_v45, %v8074_v21  ;;  %v8629_v31 = vrot.slane %v1442_v12, %v8074_v21  ;;  %v8632_v11 = vrot.slane %v1458_v4, %v8074_v21  ;;  %v1473_v50 = vrot.slane %v1459_v27, %v8074_v21 }
 0x294   : > { %v1558_v12 = vcombine.high %v1533_v47, %v1549_v56  ;;  %v1573_v45 = vcombine.low %v1540_v43, %v1556_v32  ;;  %v8648_v4 = vrot.slane %v1557_v42, %v8074_v21 }
 0x295   : > { %12799 = vst [vmem:[#allocation59_spill] sm:$0xff] %v8632_v11  ;;  %1483 = vrot.lane.b32.xlu1 %v1457_v9, %s8001_s19  ;;  %v1474_v36 = vcombine.high %v8629_v31, %v12784_v41  ;;  %v1476_v26 = vcombine.high %v8632_v11, %v12784_v41  ;;  %v1475_v44 = vcombine.high %v1457_v9, %v12784_v41 }
 0x296   : > { %v1477_v2 = vcombine.high %v1473_v50, %v12784_v41  ;;  %12800 = vst [vmem:[#allocation60_spill] sm:$0xff] %v8648_v4  ;;  %v1572_v34 = vrot.slane %v1558_v12, %v8074_v21  ;;  %v8653_v27 = vrot.slane %v1573_v45, %v8074_v21  ;;  %v1589_v47 = vcombine.high %v8648_v4, %v12784_v41 }
 0x297   : > { %1479 = vrot.lane.b32.xlu0 %v1474_v36, %s8003_s21  ;;  %v1574_v36 = vcombine.high %v1540_v43, %v1556_v32 }
 0x298   : > { %12801 = vst [vmem:[#allocation61_spill] sm:$0xff] %v8653_v27  ;;  %v1591_v56 = vcombine.high %v8653_v27, %v12784_v41 }
 0x299   : > { %1491 = vrot.lane.b32.xlu1 %v1476_v26, %s8003_s21  ;;  %v1588_v9 = vrot.slane %v1574_v36, %v8074_v21  ;;  %v1590_v26 = vcombine.high %v1572_v34, %v12784_v41 }
 0x29b   : > { %1487 = vrot.lane.b32.xlu0 %v1475_v44, %s8002_s20  ;;  %v1592_v43 = vcombine.high %v1588_v9, %v12784_v41 }
 0x29d   : > { %1499 = vrot.lane.b32.xlu1 %v1477_v2, %s8002_s20 }
 0x29f   : > { %1495 = vrot.lane.b32.xlu0 %v1473_v50, %s8001_s19 }
 0x2a1   : > { %1598 = vrot.lane.b32.xlu1 %v1572_v34, %s8001_s19 }
 0x2a3   : > { %1594 = vrot.lane.b32.xlu0 %v1589_v47, %s8003_s21 }
 0x2a5   : > { %1606 = vrot.lane.b32.xlu1 %v1591_v56, %s8003_s21 }
 0x2a7   : > { %1602 = vrot.lane.b32.xlu0 %v1590_v26, %s8002_s20 }
 0x2a9   : > { %1614 = vrot.lane.b32.xlu1 %v1592_v43, %s8002_s20 }
 0x2ab   : > { %1610 = vrot.lane.b32.xlu0 %v1588_v9, %s8001_s19 }
 0x2ad   : > { %1625 = vrot.lane.b32.xlu1 %v8605_v19, %s8000_s18 }
 0x2af   : > { %1623 = vrot.lane.b32.xlu0 %v8602_v10, %s8000_s18 }
 0x2b1   : > { %1629 = vrot.lane.b32.xlu1 %v8611_v13, %s8000_s18 }
 0x2b3   : > { %1627 = vrot.lane.b32.xlu0 %v8608_v28, %s8000_s18 }
 0x307   : > { %v8677_v32 = vpop.permute.xlu1 %1483 }
 0x308   : > { %12802 = vst [vmem:[#allocation62_spill] sm:$0xff] %v8677_v32 }
 0x309   : > { %v8679_v50 = vpop.permute.xlu0 %1479 }
 0x30b   : > { %v8681_v42 = vpop.permute.xlu1 %1491 }
 0x30d   : > { %v8683_v44 = vpop.permute.xlu0 %1487 }
 0x30e   : > { %12803 = vst [vmem:[#allocation63_spill] sm:$0xff] %v8683_v44 }
 0x30f   : > { %v8685_v12 = vpop.permute.xlu1 %1499 }
 0x310   : > { %12804 = vst [vmem:[#allocation64_spill] sm:$0xff] %v8685_v12 }
 0x311   : > { %v8687_v45 = vpop.permute.xlu0 %1495 }
 0x312   : > { %12805 = vst [vmem:[#allocation65_spill] sm:$0xff] %v8687_v45 }
 0x313   : > { %v8689_v2 = vpop.permute.xlu1 %1598 }
 0x314   : > { %12806 = vst [vmem:[#allocation66_spill] sm:$0xff] %v8689_v2 }
 0x315   : > { %v8691_v34 = vpop.permute.xlu0 %1594 }
 0x316   : > { %12807 = vst [vmem:[#allocation67_spill] sm:$0xff] %v8691_v34 }
 0x317   : > { %v8693_v36 = vpop.permute.xlu1 %1606 }
 0x318   : > { %12808 = vst [vmem:[#allocation68_spill] sm:$0xff] %v8693_v36 }
 0x319   : > { %v8695_v47 = vpop.permute.xlu0 %1602 }
 0x31a   : > { %12809 = vst [vmem:[#allocation69_spill] sm:$0xff] %v8695_v47 }
 0x31b   : > { %v8697_v56 = vpop.permute.xlu1 %1614 }
 0x31c   : > { %12810 = vst [vmem:[#allocation70_spill] sm:$0xff] %v8697_v56 }
 0x31d   : > { %v8699_v9 = vpop.permute.xlu0 %1610 }
 0x31e   : > { %12811 = vst [vmem:[#allocation71_spill] sm:$0xff] %v8699_v9 }
 0x31f   : > { %v1626_v26 = vpop.permute.xlu1 %1625 }
 0x321   : > { %v1624_v43 = vpop.permute.xlu0 %1623 }
 0x323   : > { %v1630_v7 = vpop.permute.xlu1 %1629 }
 0x324   : > { %v1651_v61 = vcombine.low %v1626_v26, %v1630_v7  ;;  %v1652_v48 = vcombine.high %v1626_v26, %v1630_v7 }
 0x325   : > { %v1628_v29 = vpop.permute.xlu0 %1627 }
 0x326   : > { %v1635_v15 = vcombine.low %v1624_v43, %v1628_v29  ;;  %v1636_v0 = vcombine.high %v1624_v43, %v1628_v29  ;;  %v1659_v2 = vrot.slane %v1651_v61, %v8045_v8  ;;  %v1666_v4 = vrot.slane %v1652_v48, %v8045_v8 }
 0x328   : > { %v1643_v34 = vrot.slane %v1635_v15, %v8045_v8  ;;  %v1650_v47 = vrot.slane %v1636_v0, %v8045_v8 }
 0x32a   : > { %v1667_v27 = vcombine.low %v1643_v34, %v1659_v2  ;;  %v1668_v56 = vcombine.high %v1643_v34, %v1659_v2  ;;  %v1683_v36 = vcombine.low %v1650_v47, %v1666_v4  ;;  %v1684_v9 = vcombine.high %v1650_v47, %v1666_v4 }
 0x32c   : > { %v1682_v12 = vrot.slane %v1668_v56, %v8074_v21  ;;  %v8707_v45 = vrot.slane %v1667_v27, %v8074_v21  ;;  %v8710_v7 = vrot.slane %v1683_v36, %v8074_v21  ;;  %v1698_v0 = vrot.slane %v1684_v9, %v8074_v21 }
 0x32e   : > { %1708 = vrot.lane.b32.xlu1 %v1682_v12, %s8001_s19  ;;  %v1699_v48 = vcombine.high %v8707_v45, %v12784_v41  ;;  %v1701_v15 = vcombine.high %v8710_v7, %v12784_v41  ;;  %v1700_v61 = vcombine.high %v1682_v12, %v12784_v41  ;;  %v1702_v29 = vcombine.high %v1698_v0, %v12784_v41 }
 0x330   : > { %1704 = vrot.lane.b32.xlu0 %v1699_v48, %s8003_s21 }
 0x332   : > { %1716 = vrot.lane.b32.xlu1 %v1701_v15, %s8003_s21 }
 0x334   : > { %1712 = vrot.lane.b32.xlu0 %v1700_v61, %s8002_s20 }
 0x336   : > { %1724 = vrot.lane.b32.xlu1 %v1702_v29, %s8002_s20 }
 0x338   : > { %1720 = vrot.lane.b32.xlu0 %v1698_v0, %s8001_s19 }
 0x33a   : > { %1735 = vrot.lane.b32.xlu1 %v8605_v19, %s8004_s22 }
 0x33c   : > { %1733 = vrot.lane.b32.xlu0 %v8602_v10, %s8004_s22 }
 0x33e   : > { %1739 = vrot.lane.b32.xlu1 %v8611_v13, %s8004_s22 }
 0x340   : > { %1737 = vrot.lane.b32.xlu0 %v8608_v28, %s8004_s22 }
 0x3a0   : > { %v8733_v4 = vpop.permute.xlu1 %1708 }
 0x3a1   : > { %12812 = vst [vmem:[#allocation72_spill] sm:$0xff] %v8733_v4 }
 0x3a2   : > { %v8735_v27 = vpop.permute.xlu0 %1704 }
 0x3a4   : > { %v8737_v12 = vpop.permute.xlu1 %1716 }
 0x3a6   : > { %v8739_v2 = vpop.permute.xlu0 %1712 }
 0x3a7   : > { %12813 = vst [vmem:[#allocation73_spill] sm:$0xff] %v8739_v2 }
 0x3a8   : > { %v8741_v34 = vpop.permute.xlu1 %1724 }
 0x3a9   : > { %12814 = vst [vmem:[#allocation74_spill] sm:$0xff] %v8741_v34 }
 0x3aa   : > { %v8743_v36 = vpop.permute.xlu0 %1720 }
 0x3ac   : > { %v1736_v47 = vpop.permute.xlu1 %1735 }
 0x3ae   : > { %v1734_v56 = vpop.permute.xlu0 %1733 }
 0x3b0   : > { %v1740_v9 = vpop.permute.xlu1 %1739 }
 0x3b1   : > { %v1761_v26 = vcombine.low %v1736_v47, %v1740_v9  ;;  %v1762_v43 = vcombine.high %v1736_v47, %v1740_v9 }
 0x3b2   : > { %v1738_v48 = vpop.permute.xlu0 %1737 }
 0x3b3   : > { %v1745_v15 = vcombine.low %v1734_v56, %v1738_v48  ;;  %v1746_v0 = vcombine.high %v1734_v56, %v1738_v48  ;;  %v1769_v61 = vrot.slane %v1761_v26, %v8045_v8  ;;  %v1776_v29 = vrot.slane %v1762_v43, %v8045_v8  ;;  %v8790_v48 = vld [vmem:[%s8043_s17 + $0x8] sm:$0xff] }
 0x3b5   : > { %v1753_v4 = vrot.slane %v1745_v15, %v8045_v8  ;;  %v1760_v2 = vrot.slane %v1746_v0, %v8045_v8  ;;  %v8796_v0 = vld [vmem:[%s8043_s17 + $0x30] sm:$0xff] }
 0x3b7   : > { %v1777_v44 = vcombine.low %v1753_v4, %v1769_v61  ;;  %v1778_v34 = vcombine.high %v1753_v4, %v1769_v61  ;;  %v1793_v20 = vcombine.low %v1760_v2, %v1776_v29  ;;  %v1794_v16 = vcombine.high %v1760_v2, %v1776_v29  ;;  %v8799_v61 = vld [vmem:[%s8043_s17 + $0x80] sm:$0xff] }
 0x3b9   : > { %v1792_v32 = vrot.slane %v1778_v34, %v8074_v21  ;;  %v8751_v11 = vrot.slane %v1777_v44, %v8074_v21  ;;  %v8754_v47 = vrot.slane %v1793_v20, %v8074_v21  ;;  %v1808_v2 = vrot.slane %v1794_v16, %v8074_v21 }
 0x3ba   : > { %v8006_v16 = vmov 0  }
 0x3bb   : > { %12815 = vst [vmem:[#allocation75_spill] sm:$0xff] %v8751_v11  ;;  %12816 = vst [vmem:[#allocation76_spill] sm:$0xff] %v8754_v47  ;;  %1818 = vrot.lane.b32.xlu1 %v1792_v32, %s8001_s19  ;;  %v1809_v56 = vcombine.high %v8751_v11, %v12784_v41  ;;  %v1811_v4 = vcombine.high %v8754_v47, %v12784_v41  ;;  %v1810_v44 = vcombine.high %v1792_v32, %v12784_v41 }
 0x3bc   : > { %v1812_v20 = vcombine.high %v1808_v2, %v12784_v41  ;;  %7959 = vset.pattern.permute.xlu0 %v8006_v16  ;;  %7960 = vset.pattern.permute.xlu1 %v8006_v16  ;;  %v2125_v16 = vcombine.low %v8796_v0, %v8799_v61 }
 0x3bd   : > { %1814 = vrot.lane.b32.xlu0 %v1809_v56, %s8003_s21 }
 0x3be   : > { %v2133_v47 = vrot.slane %v2125_v16, %v8045_v8 }
 0x3bf   : > { %1826 = vrot.lane.b32.xlu1 %v1811_v4, %s8003_s21 }
 0x3c1   : > { %1822 = vrot.lane.b32.xlu0 %v1810_v44, %s8002_s20 }
 0x3c3   : > { %1834 = vrot.lane.b32.xlu1 %v1812_v20, %s8002_s20 }
 0x3c5   : > { %1830 = vrot.lane.b32.xlu0 %v1808_v2, %s8001_s19 }
 0x3c7   : > { %1845 = vrot.lane.b32.xlu1 %v8605_v19, %s8005_s23 }
 0x3c9   : > { %1843 = vrot.lane.b32.xlu0 %v8602_v10, %s8005_s23 }
 0x3cb   : > { %1849 = vrot.lane.b32.xlu1 %v8611_v13, %s8005_s23 }
 0x3cd   : > { %1847 = vrot.lane.b32.xlu0 %v8608_v28, %s8005_s23  ;;  %v8793_v28 = vld [vmem:[%s8043_s17 + $0x58] sm:$0xff] }
 0x3ce   : > { %v2109_v2 = vcombine.low %v8790_v48, %v8793_v28 }
 0x3d0   : > { %v2117_v11 = vrot.slane %v2109_v2, %v8045_v8 }
 0x3d2   : > { %v2141_v2 = vcombine.low %v2117_v11, %v2133_v47 }
 0x42d   : > { %v8777_v32 = vpop.permute.xlu1 %1818 }
 0x42e   : > { %12817 = vst [vmem:[#allocation77_spill] sm:$0xff] %v8777_v32 }
 0x42f   : > { %v8779_v34 = vpop.permute.xlu0 %1814 }
 0x430   : > { %12818 = vst [vmem:[#allocation78_spill] sm:$0xff] %v8779_v34 }
 0x431   : > { %v8781_v19 = vpop.permute.xlu1 %1826 }
 0x432   : > { %12819 = vst [vmem:[#allocation79_spill] sm:$0xff] %v8781_v19 }
 0x433   : > { %v8783_v9 = vpop.permute.xlu0 %1822 }
 0x434   : > { %12820 = vst [vmem:[#allocation80_spill] sm:$0xff] %v8783_v9 }
 0x435   : > { %v8785_v10 = vpop.permute.xlu1 %1834 }
 0x436   : > { %12821 = vst [vmem:[#allocation81_spill] sm:$0xff] %v8785_v10 }
 0x437   : > { %v8787_v26 = vpop.permute.xlu0 %1830 }
 0x438   : > { %12822 = vst [vmem:[#allocation82_spill] sm:$0xff] %v8787_v26 }
 0x439   : > { %v1846_v13 = vpop.permute.xlu1 %1845 }
 0x43b   : > { %v1844_v43 = vpop.permute.xlu0 %1843 }
 0x43d   : > { %v1850_v15 = vpop.permute.xlu1 %1849 }
 0x43e   : > { %v1871_v29 = vcombine.low %v1846_v13, %v1850_v15  ;;  %v1872_v56 = vcombine.high %v1846_v13, %v1850_v15 }
 0x43f   : > { %v1848_v4 = vpop.permute.xlu0 %1847 }
 0x440   : > { %v1855_v44 = vcombine.low %v1844_v43, %v1848_v4  ;;  %v1856_v20 = vcombine.high %v1844_v43, %v1848_v4  ;;  %v1879_v9 = vrot.slane %v1871_v29, %v8045_v8  ;;  %v1886_v10 = vrot.slane %v1872_v56, %v8045_v8 }
 0x442   : > { %v1863_v32 = vrot.slane %v1855_v44, %v8045_v8  ;;  %v1870_v26 = vrot.slane %v1856_v20, %v8045_v8  ;;  %v8832_v44 = vrot.slane %v2141_v2, %v8074_v21 }
 0x444   : > { %v1887_v13 = vcombine.low %v1863_v32, %v1879_v9  ;;  %v1888_v15 = vcombine.high %v1863_v32, %v1879_v9  ;;  %v1903_v34 = vcombine.low %v1870_v26, %v1886_v10  ;;  %v1904_v19 = vcombine.high %v1870_v26, %v1886_v10 }
 0x445   : > { %v2110_v32 = vcombine.high %v8790_v48, %v8793_v28  ;;  %v2126_v9 = vcombine.high %v8796_v0, %v8799_v61 }
 0x446   : > { %v1902_v43 = vrot.slane %v1888_v15, %v8074_v21  ;;  %v8813_v4 = vrot.slane %v1887_v13, %v8074_v21  ;;  %v8816_v29 = vrot.slane %v1903_v34, %v8074_v21  ;;  %v1918_v34 = vrot.slane %v1904_v19, %v8074_v21 }
 0x447   : > { %v2124_v20 = vrot.slane %v2110_v32, %v8045_v8  ;;  %v2140_v16 = vrot.slane %v2126_v9, %v8045_v8  ;;  %v2173_v19 = vcombine.high %v8832_v44, %v12784_v41  ;;  %v2142_v15 = vcombine.high %v2117_v11, %v2133_v47 }
 0x448   : > { %1928 = vrot.lane.b32.xlu1 %v1902_v43, %s8001_s19  ;;  %v1919_v56 = vcombine.high %v8813_v4, %v12784_v41  ;;  %v1921_v10 = vcombine.high %v8816_v29, %v12784_v41  ;;  %v1920_v26 = vcombine.high %v1902_v43, %v12784_v41  ;;  %v1922_v13 = vcombine.high %v1918_v34, %v12784_v41  ;;  %v2019_v43 = vld [vmem:[%s12647_s2] sm:$0xff] }
 0x449   : > { %v2156_v2 = vrot.slane %v2142_v15, %v8074_v21  ;;  %v2158_v9 = vcombine.high %v2124_v20, %v2140_v16  ;;  %v12831_v15 = vld [vmem:[#allocation35_spill] sm:$0xff] }
 0x44a   : > { %1924 = vrot.lane.b32.xlu0 %v1919_v56, %s8003_s21  ;;  %v2157_v56 = vcombine.low %v2124_v20, %v2140_v16  ;;  %v391_v20 = vsel %vm271_vm3, %v8228_v23, %v8435_v53  ;;  %v388_v16 = vsel %vm271_vm3, %v8222_v22, %v8433_v57  ;;  %v608_v22 = vsel %vm271_vm3, %v8262_v63, %v8449_v35 }
 0x44b   : > { %v2172_v47 = vrot.slane %v2158_v9, %v8074_v21  ;;  %v840_v23 = vsel %vm271_vm3, %v8312_v51, %v8471_v62  ;;  %v12825_v51 = vld [vmem:[#allocation20_spill] sm:$0xff]  ;;  %v12829_v62 = vld [vmem:[#allocation27_spill] sm:$0xff] }
 0x44c   : > { %1936 = vrot.lane.b32.xlu1 %v1921_v10, %s8003_s21  ;;  %v8848_v32 = vrot.slane %v2157_v56, %v8074_v21  ;;  %v2174_v10 = vcombine.high %v2156_v2, %v12784_v41 }
 0x44e   : > { %1932 = vrot.lane.b32.xlu0 %v1920_v26, %s8002_s20  ;;  %v2175_v11 = vcombine.high %v8848_v32, %v12784_v41  ;;  %v727_v26 = vsel %vm271_vm3, %v8140_v60, %v8208_v5  ;;  %v8888_v60 = vsel %vm271_vm3, %v8104_v38, %v8196_v40  ;;  %v611_v5 = vsel %vm271_vm3, %v8266_v6, %v8451_v54 }
 0x44f   : > { %v837_v38 = vsel %vm271_vm3, %v8303_v18, %v8465_v37  ;;  %v8925_v37 = vsel %vm271_vm3, %v8250_v52, %v8443_v14  ;;  %v609_v6 = vsel %vm273_vm4, %v608_v22, %v8431_v55  ;;  %v12823_v18 = vld [vmem:[#allocation11_spill] sm:$0xff] }
 0x450   : > { %1944 = vrot.lane.b32.xlu1 %v1922_v13, %s8002_s20  ;;  %v730_v13 = vsel %vm271_vm3, %v8152_v1, %v8224_v24  ;;  %v8898_v1 = vsel %vm273_vm4, %v727_v26, %v8214_v17  ;;  %v8940_v53 = vsel %vm275_vm5, %v609_v6, %v12825_v51  ;;  %v12826_v52 = vld [vmem:[#allocation23_spill] sm:$0xff]  ;;  %v1502_v6 = vsel %vm271_vm3, %v8629_v31, %v8679_v50  ;;  %v12843_v51 = vld [vmem:[#allocation37_spill] sm:$0xff]  ;;  %v12846_v50 = vld [vmem:[#allocation40_spill] sm:$0xff] }
 0x451   : > { %v8909_v40 = vsel %vm273_vm4, %v730_v13, %v8233_v25  ;;  %v612_v25 = vsel %vm273_vm4, %v611_v5, %v8429_v46  ;;  %v12828_v46 = vld [vmem:[#allocation12_spill] sm:$0xff]  ;;  %v12838_v13 = vld [vmem:[#allocation47_spill] sm:$0xff] }
 0x452   : > { %1940 = vrot.lane.b32.xlu0 %v1918_v34, %s8001_s19  ;;  %v2176_v34 = vcombine.high %v2172_v47, %v12784_v41  ;;  %v12839_v5 = vld [vmem:[#allocation44_spill] sm:$0xff] }
 0x453   : > { %v1285_v22 = vsel %vm271_vm3, %v12839_v5, %v12838_v13 }
 0x454   : > { %2178 = vrot.lane.b32.xlu1 %v2173_v19, %s8003_s21  ;;  %v8883_v19 = vsel %vm271_vm3, %v8089_v30, %v8194_v39  ;;  %v392_v30 = vsel %vm273_vm4, %v391_v20, %v8421_v59  ;;  %v389_v39 = vsel %vm273_vm4, %v388_v16, %v8423_v33  ;;  %v1057_v59 = vsel %vm271_vm3, %v12823_v18, %v8481_v49  ;;  %v12824_v33 = vld [vmem:[#allocation21_spill] sm:$0xff]  ;;  %v12830_v49 = vld [vmem:[#allocation22_spill] sm:$0xff] }
 0x455   : > { %v8913_v24 = vsel %vm275_vm5, %v392_v30, %v8439_v58  ;;  %v8917_v17 = vsel %vm275_vm5, %v389_v39, %v8437_v3  ;;  %v8936_v57 = vsel %vm275_vm5, %v612_v25, %v12824_v33  ;;  %v838_v3 = vsel %vm273_vm4, %v837_v38, %v12826_v52  ;;  %v12827_v58 = vld [vmem:[#allocation34_spill] sm:$0xff]  ;;  %v12840_v39 = vld [vmem:[#allocation33_spill] sm:$0xff] }
 0x456   : > { %2022 = vperm.xlu0 %7959, %v2019_v43   ;;  %v1060_v14 = vsel %vm271_vm3, %v12828_v46, %v12827_v58  ;;  %v8949_v35 = vsel %vm275_vm5, %v838_v3, %v12829_v62  ;;  %v841_v54 = vsel %vm273_vm4, %v840_v23, %v12830_v49  ;;  %v12832_v43 = vld [vmem:[#allocation46_spill] sm:$0xff]  ;;  %v12844_v52 = vld [vmem:[#allocation13_spill] sm:$0xff]  ;;  %v12848_v62 = vld [vmem:[#allocation48_spill] sm:$0xff] }
 0x457   : > { %v1061_v56 = vsel %vm273_vm4, %v1060_v14, %v12831_v15  ;;  %v12837_v20 = vld [vmem:[#allocation26_spill] sm:$0xff]  ;;  %v8990_v3 = vsel %vm271_vm3, %v12844_v52, %v12843_v51  ;;  %v12845_v58 = vld [vmem:[#allocation45_spill] sm:$0xff]  ;;  %v1730_v14 = vsel %vm271_vm3, %v8710_v7, %v8737_v12  ;;  %v12850_v12 = vld [vmem:[#allocation59_spill] sm:$0xff] }
 0x458   : > { %2182 = vrot.lane.b32.xlu1 %v2156_v2, %s8001_s19  ;;  %v12833_v2 = vld [vmem:[#allocation43_spill] sm:$0xff]  ;;  %v1058_v16 = vsel %vm273_vm4, %v1057_v59, %v12837_v20  ;;  %v12841_v23 = vld [vmem:[#allocation50_spill] sm:$0xff]  ;;  %v12842_v59 = vld [vmem:[#allocation36_spill] sm:$0xff]  ;;  %v1731_v15 = vsel %vm273_vm4, %v1730_v14, %v8743_v36 }
 0x459   : > { %v1282_v9 = vsel %vm271_vm3, %v12833_v2, %v12832_v43  ;;  %v8974_v38 = vsel %vm275_vm5, %v1058_v16, %v12840_v39  ;;  %v1286_v25 = vsel %vm273_vm4, %v1285_v22, %v12841_v23  ;;  %v8985_v33 = vsel %vm275_vm5, %v1061_v56, %v12842_v59  ;;  %v12849_v56 = vld [vmem:[#allocation49_spill] sm:$0xff]  ;;  %v12851_v2 = vld [vmem:[#allocation62_spill] sm:$0xff]  ;;  %v12853_v20 = vld [vmem:[#allocation51_spill] sm:$0xff] }
 0x45a   : > { %2186 = vrot.lane.b32.xlu0 %v2174_v10, %s8002_s20  ;;  %v12834_v10 = vld [vmem:[#allocation29_spill] sm:$0xff]  ;;  %v1283_v46 = vsel %vm273_vm4, %v1282_v9, %v12845_v58  ;;  %v9011_v7 = vsel %vm275_vm5, %v1286_v25, %v12849_v56  ;;  %v1505_v43 = vsel %vm271_vm3, %v12850_v12, %v8681_v42  ;;  %v1503_v9 = vsel %vm273_vm4, %v1502_v6, %v12851_v2  ;;  %v12856_v22 = vld [vmem:[#allocation72_spill] sm:$0xff]  ;;  %v12857_v39 = vld [vmem:[#allocation74_spill] sm:$0xff] }
 0x45b   : > { %v9002_v49 = vsel %vm275_vm5, %v1283_v46, %v12848_v62  ;;  %v12855_v16 = vld [vmem:[#allocation65_spill] sm:$0xff]  ;;  %v1732_v23 = vsel %vm275_vm5, %v1731_v15, %v12857_v39  ;;  %v12859_v25 = vld [vmem:[#allocation76_spill] sm:$0xff]  ;;  %v12861_v58 = vld [vmem:[#allocation78_spill] sm:$0xff] }
 0x45c   : > { %2190 = vrot.lane.b32.xlu1 %v2175_v11, %s8003_s21  ;;  %v8960_v11 = vsel %vm275_vm5, %v841_v54, %v12834_v10  ;;  %v1727_v54 = vsel %vm271_vm3, %v8707_v45, %v8735_v27  ;;  %v12854_v27 = vld [vmem:[#allocation63_spill] sm:$0xff]  ;;  %v1506_v13 = vsel %vm273_vm4, %v1505_v43, %v12855_v16  ;;  %v12860_v51 = vld [vmem:[#allocation73_spill] sm:$0xff]  ;;  %v12864_v62 = vld [vmem:[#allocation64_spill] sm:$0xff] }
 0x45d   : > { %v1504_v36 = vsel %vm275_vm5, %v1503_v9, %v12854_v27  ;;  %v1728_v42 = vsel %vm273_vm4, %v1727_v54, %v12856_v22  ;;  %v12862_v46 = vld [vmem:[#allocation75_spill] sm:$0xff]  ;;  %v1507_v54 = vsel %vm275_vm5, %v1506_v13, %v12864_v62  ;;  %v12865_v15 = vld [vmem:[#allocation68_spill] sm:$0xff]  ;;  %v12866_v56 = vld [vmem:[#allocation61_spill] sm:$0xff]  ;;  %v1992_v27 = vrot.slane %v1732_v23, 4 }
 0x45e   : > { %2194 = vrot.lane.b32.xlu0 %v2172_v47, %s8001_s19  ;;  %v12835_v47 = vld [vmem:[#allocation31_spill] sm:$0xff]  ;;  %v1729_v52 = vsel %vm275_vm5, %v1728_v42, %v12860_v51  ;;  %v1837_v14 = vsel %vm271_vm3, %v12862_v46, %v12861_v58  ;;  %v12868_v9 = vld [vmem:[#allocation60_spill] sm:$0xff]  ;;  %v1985_v46 = vrot.slane %v1504_v36, 4 }
 0x45f   : > { %v12867_v2 = vld [vmem:[#allocation67_spill] sm:$0xff]  ;;  %v12871_v13 = vld [vmem:[#allocation52_spill] sm:$0xff]  ;;  %v1991_v39 = vrot.slane %v1729_v52, 4 }
 0x460   : > { %2198 = vrot.lane.b32.xlu1 %v2176_v34, %s8002_s20  ;;  %v12836_v34 = vld [vmem:[#allocation10_spill] sm:$0xff]  ;;  %v12870_v22 = vld [vmem:[#allocation55_spill] sm:$0xff]  ;;  %v12875_v51 = vld [vmem:[#allocation80_spill] sm:$0xff] }
 0x461   : > { %v8965_v26 = vsel %vm271_vm3, %v12836_v34, %v12835_v47  ;;  %v12852_v34 = vld [vmem:[#allocation54_spill] sm:$0xff]  ;;  %v1395_v42 = vsel %vm271_vm3, %v12871_v13, %v12870_v22  ;;  %v1974_v22 = vrot.slane %v8985_v33, 4  ;;  %v12885_v13 = vld [vmem:[#allocation56_spill] sm:$0xff]  ;;  %v1968_v33 = vrot.slane %v8960_v11, 4 }
 0x462   : > { %2211 = vrot.lane.b32.xlu0 %v8790_v48, %s8000_s18  ;;  %v1392_v45 = vsel %vm271_vm3, %v12853_v20, %v12852_v34  ;;  %v12869_v34 = vld [vmem:[#allocation71_spill] sm:$0xff] }
 0x464   : > { %2213 = vrot.lane.b32.xlu1 %v8796_v0, %s8000_s18 }
 0x466   : > { %2215 = vrot.lane.b32.xlu0 %v8793_v28, %s8000_s18 }
 0x468   : > { %2217 = vrot.lane.b32.xlu1 %v8799_v61, %s8000_s18 }
 0x4ba   : > { %v1929_v63 = vpop.permute.xlu1 %1928 }
 0x4bc   : > { %v1925_v55 = vpop.permute.xlu0 %1924 }
 0x4bd   : > { %v1947_v18 = vsel %vm271_vm3, %v8813_v4, %v1925_v55  ;;  %v12847_v4 = vld [vmem:[#allocation14_spill] sm:$0xff] }
 0x4be   : > { %v1937_v30 = vpop.permute.xlu1 %1936  ;;  %v1175_v55 = vsel %vm271_vm3, %v12847_v4, %v12846_v50  ;;  %v1948_v10 = vsel %vm273_vm4, %v1947_v18, %v1929_v63  ;;  %v12858_v63 = vld [vmem:[#allocation79_spill] sm:$0xff] }
 0x4bf   : > { %v1840_v6 = vsel %vm271_vm3, %v12859_v25, %v12858_v63  ;;  %v1950_v18 = vsel %vm271_vm3, %v8816_v29, %v1937_v30  ;;  %v1620_v29 = vsel %vm271_vm3, %v12866_v56, %v12865_v15  ;;  %v12872_v63 = vld [vmem:[#allocation77_spill] sm:$0xff]  ;;  %v1980_v56 = vrot.slane %v9011_v7, 4 }
 0x4c0   : > { %v1933_v31 = vpop.permute.xlu0 %1932  ;;  %v1621_v20 = vsel %vm273_vm4, %v1620_v29, %v12869_v34  ;;  %v12879_v15 = vld [vmem:[#allocation41_spill] sm:$0xff] }
 0x4c1   : > { %v1949_v5 = vsel %vm275_vm5, %v1948_v10, %v1933_v31  ;;  %v12863_v31 = vld [vmem:[#allocation82_spill] sm:$0xff]  ;;  %v1617_v10 = vsel %vm271_vm3, %v12868_v9, %v12867_v2  ;;  %v12880_v29 = vld [vmem:[#allocation69_spill] sm:$0xff]  ;;  %v1979_v2 = vrot.slane %v9002_v49, 4 }
 0x4c2   : > { %v1945_v47 = vpop.permute.xlu1 %1944  ;;  %v1841_v50 = vsel %vm273_vm4, %v1840_v6, %v12863_v31  ;;  %v1997_v30 = vrot.slane %v1949_v5, 4  ;;  %v1838_v5 = vsel %vm273_vm4, %v1837_v14, %v12872_v63  ;;  %v12874_v6 = vld [vmem:[#allocation58_spill] sm:$0xff]  ;;  %v12881_v9 = vld [vmem:[#allocation53_spill] sm:$0xff] }
 0x4c3   : > { %v1839_v58 = vsel %vm275_vm5, %v1838_v5, %v12875_v51  ;;  %v12876_v31 = vld [vmem:[#allocation66_spill] sm:$0xff]  ;;  %v12882_v34 = vld [vmem:[#allocation57_spill] sm:$0xff]  ;;  %v1967_v51 = vrot.slane %v8949_v35, 4 }
 0x4c4   : > { %v1941_v59 = vpop.permute.xlu0 %1940  ;;  %v2016_v52 = vsel %vm2001_vm6, %v1839_v58, %v1997_v30  ;;  %v12877_v14 = vld [vmem:[#allocation70_spill] sm:$0xff]  ;;  %v1393_v30 = vsel %vm273_vm4, %v1392_v45, %v12881_v9  ;;  %v1973_v45 = vrot.slane %v8974_v38, 4  ;;  %v12890_v58 = vld [vmem:[#allocation25_spill] sm:$0xff] }
 0x4c5   : > { %v1951_v4 = vsel %vm273_vm4, %v1950_v18, %v1941_v59  ;;  %v1396_v18 = vsel %vm273_vm4, %v1395_v42, %v12874_v6  ;;  %v1986_v59 = vrot.slane %v1507_v54, 4  ;;  %v1622_v62 = vsel %vm275_vm5, %v1621_v20, %v12877_v14  ;;  %v12886_v42 = vld [vmem:[#allocation38_spill] sm:$0xff]  ;;  %v12888_v6 = vld [vmem:[#allocation24_spill] sm:$0xff] }
 0x4c6   : > { %v1952_v12 = vsel %vm275_vm5, %v1951_v4, %v1945_v47  ;;  %v9050_v43 = vpop.permute.xlu1 %2178  ;;  %v12873_v47 = vld [vmem:[#allocation81_spill] sm:$0xff]  ;;  %v1618_v4 = vsel %vm273_vm4, %v1617_v10, %v12876_v31  ;;  %v1176_v54 = vsel %vm273_vm4, %v1175_v55, %v12879_v15  ;;  %v2015_v36 = vsel %vm2001_vm6, %v1622_v62, %v1992_v27  ;;  %v12883_v55 = vld [vmem:[#allocation28_spill] sm:$0xff]  ;;  %v12887_v5 = vld [vmem:[#allocation42_spill] sm:$0xff] }
 0x4c7   : > { %v1998_v16 = vrot.slane %v1952_v12, 4  ;;  %v1842_v25 = vsel %vm275_vm5, %v1841_v50, %v12873_v47  ;;  %v1619_v12 = vsel %vm275_vm5, %v1618_v4, %v12880_v29  ;;  %v1397_v20 = vsel %vm275_vm5, %v1396_v18, %v12882_v34  ;;  %v12892_v4 = vld [vmem:[#allocation17_spill] sm:$0xff]  ;;  %v12894_v62 = vld [vmem:[#allocation30_spill] sm:$0xff] }
 0x4c8   : > { %v2014_v10 = vsel %vm2001_vm6, %v1619_v12, %v1991_v39  ;;  %v1394_v27 = vsel %vm275_vm5, %v1393_v30, %v12885_v13  ;;  %v2013_v49 = vsel %vm2001_vm6, %v1397_v20, %v1986_v59  ;;  %v1173_v39 = vsel %vm273_vm4, %v8990_v3, %v12886_v42  ;;  %v12889_v59 = vld [vmem:[#allocation39_spill] sm:$0xff]  ;;  %v12898_v30 = vld [vmem:[#allocation6_spill] sm:$0xff]  ;;  %v12902_v13 = vld [vmem:[#allocation4_spill] sm:$0xff] }
 0x4c9   : > { %v2017_v23 = vsel %vm2001_vm6, %v1842_v25, %v1998_v16  ;;  %v12884_v16 = vld [vmem:[#allocation9_spill] sm:$0xff]  ;;  %v2012_v63 = vsel %vm2001_vm6, %v1394_v27, %v1985_v46  ;;  %v1177_v47 = vsel %vm275_vm5, %v1176_v54, %v12887_v5  ;;  %v951_v18 = vsel %vm273_vm4, %v8965_v26, %v12888_v6  ;;  %v12891_v46 = vld [vmem:[#allocation32_spill] sm:$0xff]  ;;  %v12896_v12 = vld [vmem:[#allocation7_spill] sm:$0xff] }
 0x4ca   : > { %2044 = vmatprep.subr.mxu0 %v2017_v23  ;;  %v9074_v50 = vpop.permute.xlu1 %2182  ;;  %v947_v7 = vsel %vm271_vm3, %v12884_v16, %v12883_v55  ;;  %v1174_v38 = vsel %vm275_vm5, %v1173_v39, %v12889_v59  ;;  %v2011_v3 = vsel %vm2001_vm6, %v1177_v47, %v1980_v56  ;;  %v952_v31 = vsel %vm275_vm5, %v951_v18, %v12891_v46  ;;  %v12895_v56 = vld [vmem:[#allocation2_spill] sm:$0xff]  ;;  %v12899_v20 = vld [vmem:[#allocation15_spill] sm:$0xff] }
 0x4cb   : > { %12878 = vst [vmem:[#allocation11_spill] sm:$0xff] %v9074_v50  ;;  %2045 = vmatpush1.msra.mxu0 %v2016_v52  ;;  %v948_v23 = vsel %vm273_vm4, %v947_v7, %v12890_v58  ;;  %v2010_v11 = vsel %vm2001_vm6, %v1174_v38, %v1979_v2  ;;  %v12893_v52 = vld [vmem:[#allocation8_spill] sm:$0xff]  ;;  %v1962_v14 = vrot.slane %v8936_v57, 4  ;;  %v2009_v54 = vsel %vm2001_vm6, %v952_v31, %v1974_v22  ;;  %v12900_v55 = vld [vmem:[#allocation19_spill] sm:$0xff]  ;;  %v12903_v27 = vld [vmem:[#allocation18_spill] sm:$0xff] }
 0x4cc   : > { %2046 = vmatprep.subr.mxu0 %v2015_v36  ;;  %v498_v26 = vsel %vm271_vm3, %v12893_v52, %v12892_v4  ;;  %v949_v15 = vsel %vm275_vm5, %v948_v23, %v12894_v62  ;;  %v274_v29 = vsel %vm273_vm4, %v8888_v60, %v12895_v56  ;;  %v732_v36 = vsel %vm275_vm5, %v8909_v40, %v12896_v12  ;;  %v12901_v7 = vld [vmem:[#allocation16_spill] sm:$0xff]  ;;  %v12906_v47 = vld [vmem:[#allocation3_spill] sm:$0xff] }
 0x4cd   : > { %2047 = vmatpush1.msra.mxu0 %v2014_v10  ;;  %v1961_v2 = vrot.slane %v8940_v53, 4  ;;  %v2008_v57 = vsel %vm2001_vm6, %v949_v15, %v1973_v45  ;;  %v729_v10 = vsel %vm275_vm5, %v8898_v1, %v12898_v30  ;;  %v1956_v34 = vrot.slane %v8913_v24, 4  ;;  %v12905_v45 = vld [vmem:[#allocation5_spill] sm:$0xff] }
 0x4ce   : > { %2048 = vmatprep.subr.mxu0 %v2013_v49  ;;  %v9102_v25 = vpop.permute.xlu1 %2190  ;;  %v502_v60 = vsel %vm273_vm4, %v8925_v37, %v12899_v20  ;;  %v2007_v40 = vsel %vm2001_vm6, %v732_v36, %v1968_v33  ;;  %v1955_v53 = vrot.slane %v8917_v17, 4  ;;  %v499_v22 = vsel %vm273_vm4, %v498_v26, %v12901_v7  ;;  %v2018_v33 = vld [vmem:[%s12646_s1] sm:$0xff] }
 0x4cf   : > { %2049 = vmatpush1.msra.mxu0 %v2012_v63  ;;  %v503_v16 = vsel %vm275_vm5, %v502_v60, %v12900_v55  ;;  %v2006_v1 = vsel %vm2001_vm6, %v729_v10, %v1967_v51  ;;  %v278_v24 = vsel %vm273_vm4, %v8883_v19, %v12902_v13  ;;  %v500_v37 = vsel %vm275_vm5, %v499_v22, %v12903_v27 }
 0x4d0   : > { %2050 = vmatprep.subr.mxu0 %v2011_v3  ;;  %v2005_v17 = vsel %vm2001_vm6, %v503_v16, %v1962_v14  ;;  %v279_v42 = vsel %vm275_vm5, %v278_v24, %v12905_v45  ;;  %v2004_v39 = vsel %vm2001_vm6, %v500_v37, %v1961_v2  ;;  %v276_v19 = vsel %vm275_vm5, %v274_v29, %v12906_v47 }
 0x4d1   : > { %2051 = vmatpush1.msra.mxu0 %v2010_v11  ;;  %v9123_v35 = vpop.permute.xlu0 %2022  ;;  %v2003_v63 = vsel %vm2001_vm6, %v279_v42, %v1956_v34  ;;  %v2002_v6 = vsel %vm2001_vm6, %v276_v19, %v1955_v53 }
 0x4d2   : > { %2052 = vmatprep.subr.mxu0 %v2009_v54  ;;  %v9134_v9 = vpop.permute.xlu1 %2198 }
 0x4d3   : > { %12897 = vst [vmem:[#allocation21_spill] sm:$0xff] %v9134_v9  ;;  %2053 = vmatpush1.msra.mxu0 %v2008_v57 }
 0x4d4   : > { %2054 = vmatprep.subr.mxu0 %v2007_v40 }
 0x4d5   : > { %2055 = vmatpush1.msra.mxu0 %v2006_v1  ;;  %v9155_v49 = vpop.permute.xlu0 %2186 }
 0x4d6   : > { %12904 = vst [vmem:[#allocation20_spill] sm:$0xff] %v9155_v49  ;;  %2056 = vmatprep.subr.mxu0 %v2005_v17  ;;  %v2214_v5 = vpop.permute.xlu1 %2213 }
 0x4d7   : > { %2057 = vmatpush1.msra.mxu0 %v2004_v39 }
 0x4d8   : > { %2058 = vmatprep.subr.mxu0 %v2003_v63 }
 0x4d9   : > { %2059 = vmatpush1.msra.mxu0 %v2002_v6  ;;  %v9168_v18 = vpop.permute.xlu0 %2194 }
 0x4da   : > { %12907 = vst [vmem:[#allocation23_spill] sm:$0xff] %v9168_v18  ;;  %7933 = vmatmul.mubr.msk.f32.vlgmr.msra.gmra.mxu0 %vm273_vm4, %v2018_v33  ;;  %v2218_v59 = vpop.permute.xlu1 %2217 }
 0x4db   : > { %5938 = vmatprep.mubr.f32.mxu0 %v12784_v41  ;;  %v2239_v3 = vcombine.low %v2214_v5, %v2218_v59  ;;  %v2240_v51 = vcombine.high %v2214_v5, %v2218_v59 }
 0x4dd   : > { %v2212_v38 = vpop.permute.xlu0 %2211  ;;  %v2247_v31 = vrot.slane %v2239_v3, %v8045_v8  ;;  %v2254_v11 = vrot.slane %v2240_v51, %v8045_v8 }
 0x4e1   : > { %v2216_v58 = vpop.permute.xlu0 %2215 }
 0x4e2   : > { %v2223_v23 = vcombine.low %v2212_v38, %v2216_v58  ;;  %v2224_v46 = vcombine.high %v2212_v38, %v2216_v58 }
 0x4e4   : > { %v2231_v4 = vrot.slane %v2223_v23, %v8045_v8  ;;  %v2238_v52 = vrot.slane %v2224_v46, %v8045_v8 }
 0x4e6   : > { %v2255_v26 = vcombine.low %v2231_v4, %v2247_v31  ;;  %v2256_v14 = vcombine.high %v2231_v4, %v2247_v31  ;;  %v2271_v62 = vcombine.low %v2238_v52, %v2254_v11  ;;  %v2272_v15 = vcombine.high %v2238_v52, %v2254_v11 }
 0x4e8   : > { %v2270_v54 = vrot.slane %v2256_v14, %v8074_v21  ;;  %v9178_v56 = vrot.slane %v2255_v26, %v8074_v21  ;;  %v9181_v29 = vrot.slane %v2271_v62, %v8074_v21  ;;  %v2286_v2 = vrot.slane %v2272_v15, %v8074_v21  ;;  %v9269_v15 = vld [vmem:[%s8043_s17 + $0x10] sm:$0x7] }
 0x4ea   : > { %2296 = vrot.lane.b32.xlu1 %v2270_v54, %s8001_s19  ;;  %v2287_v12 = vcombine.high %v9178_v56, %v12784_v41  ;;  %v2289_v36 = vcombine.high %v9181_v29, %v12784_v41  ;;  %v2288_v57 = vcombine.high %v2270_v54, %v12784_v41  ;;  %v2290_v30 = vcombine.high %v2286_v2, %v12784_v41  ;;  %v9272_v54 = vld [vmem:[%s8043_s17 + $0x38] sm:$0x7] }
 0x4ec   : > { %2292 = vrot.lane.b32.xlu0 %v2287_v12, %s8003_s21 }
 0x4ee   : > { %2304 = vrot.lane.b32.xlu1 %v2289_v36, %s8003_s21  ;;  %v9277_v36 = vld [vmem:[%s8043_s17 + $0x60] sm:$0x7] }
 0x4f0   : > { %2300 = vrot.lane.b32.xlu0 %v2288_v57, %s8002_s20  ;;  %v2545_v57 = vrot.slane %v8790_v48, 1 }
 0x4f2   : > { %2312 = vrot.lane.b32.xlu1 %v2290_v30, %s8002_s20  ;;  %v2546_v30 = vrot.slane %v9269_v15, 1 }
 0x4f4   : > { %2308 = vrot.lane.b32.xlu0 %v2286_v2, %s8001_s19 }
 0x4f6   : > { %2323 = vrot.lane.b32.xlu1 %v8796_v0, %s8004_s22 }
 0x4f8   : > { %2321 = vrot.lane.b32.xlu0 %v8790_v48, %s8004_s22 }
 0x4fa   : > { %2327 = vrot.lane.b32.xlu1 %v8799_v61, %s8004_s22 }
 0x4fc   : > { %2325 = vrot.lane.b32.xlu0 %v8793_v28, %s8004_s22 }
 0x55c   : > { %v9204_v10 = vpop.permute.xlu1 %2296 }
 0x55e   : > { %v9206_v34 = vpop.permute.xlu0 %2292 }
 0x560   : > { %v9208_v20 = vpop.permute.xlu1 %2304 }
 0x562   : > { %v9210_v60 = vpop.permute.xlu0 %2300 }
 0x564   : > { %v9212_v40 = vpop.permute.xlu1 %2312 }
 0x566   : > { %v9214_v53 = vpop.permute.xlu0 %2308 }
 0x568   : > { %v2324_v55 = vpop.permute.xlu1 %2323 }
 0x56a   : > { %v2322_v16 = vpop.permute.xlu0 %2321 }
 0x56c   : > { %v2328_v7 = vpop.permute.xlu1 %2327 }
 0x56d   : > { %v2349_v22 = vcombine.low %v2324_v55, %v2328_v7  ;;  %v2350_v1 = vcombine.high %v2324_v55, %v2328_v7  ;;  %v2548_v55 = vrot.slane %v8796_v0, 1  ;;  %v2551_v7 = vrot.slane %v8793_v28, 1 }
 0x56e   : > { %v2326_v13 = vpop.permute.xlu0 %2325 }
 0x56f   : > { %v2333_v24 = vcombine.low %v2322_v16, %v2326_v13  ;;  %v2334_v27 = vcombine.high %v2322_v16, %v2326_v13  ;;  %v2357_v37 = vrot.slane %v2349_v22, %v8045_v8  ;;  %v2364_v17 = vrot.slane %v2350_v1, %v8045_v8 }
 0x570   : > { %v2549_v16 = vrot.slane %v9272_v54, 1  ;;  %v2552_v22 = vrot.slane %v9277_v36, 1  ;;  %v2554_v1 = vrot.slane %v8799_v61, 1 }
 0x571   : > { %v2341_v45 = vrot.slane %v2333_v24, %v8045_v8  ;;  %v2348_v42 = vrot.slane %v2334_v27, %v8045_v8 }
 0x573   : > { %v2365_v39 = vcombine.low %v2341_v45, %v2357_v37  ;;  %v2366_v63 = vcombine.high %v2341_v45, %v2357_v37  ;;  %v2381_v5 = vcombine.low %v2348_v42, %v2364_v17  ;;  %v2382_v47 = vcombine.high %v2348_v42, %v2364_v17 }
 0x574   : > { %v9291_v37 = vsel %vm618_vm0, %v2545_v57, %v2546_v30  ;;  %v9294_v17 = vsel %vm618_vm0, %v2548_v55, %v2549_v16 }
 0x575   : > { %v2380_v19 = vrot.slane %v2366_v63, %v8074_v21  ;;  %v9222_v33 = vrot.slane %v2365_v39, %v8074_v21  ;;  %v9225_v6 = vrot.slane %v2381_v5, %v8074_v21  ;;  %v2396_v3 = vrot.slane %v2382_v47, %v8074_v21 }
 0x576   : > { %v9297_v39 = vsel %vm618_vm0, %v2551_v7, %v2552_v22 }
 0x577   : > { %2406 = vrot.lane.b32.xlu1 %v2380_v19, %s8001_s19  ;;  %v2397_v59 = vcombine.high %v9222_v33, %v12784_v41  ;;  %v2399_v38 = vcombine.high %v9225_v6, %v12784_v41  ;;  %v2398_v51 = vcombine.high %v2380_v19, %v12784_v41  ;;  %v2400_v58 = vcombine.high %v2396_v3, %v12784_v41 }
 0x579   : > { %2402 = vrot.lane.b32.xlu0 %v2397_v59, %s8003_s21  ;;  %v2561_v59 = vcombine.low %v9291_v37, %v9297_v39 }
 0x57b   : > { %2414 = vrot.lane.b32.xlu1 %v2399_v38, %s8003_s21  ;;  %v2569_v30 = vrot.slane %v2561_v59, %v8045_v8 }
 0x57d   : > { %2410 = vrot.lane.b32.xlu0 %v2398_v51, %s8002_s20 }
 0x57f   : > { %2422 = vrot.lane.b32.xlu1 %v2400_v58, %s8002_s20 }
 0x581   : > { %2418 = vrot.lane.b32.xlu0 %v2396_v3, %s8001_s19 }
 0x583   : > { %2433 = vrot.lane.b32.xlu1 %v8796_v0, %s8005_s23 }
 0x585   : > { %2431 = vrot.lane.b32.xlu0 %v8790_v48, %s8005_s23 }
 0x587   : > { %2437 = vrot.lane.b32.xlu1 %v8799_v61, %s8005_s23 }
 0x589   : > { %2435 = vrot.lane.b32.xlu0 %v8793_v28, %s8005_s23 }
 0x59a   : > { %v2094_v23 = vpop.f32.mrf.mxu0 }
 0x59b   : > { %v2095_v46 = vadd.f32 %v2094_v23, %v9123_v35 }
 0x59c   : > { %v2096_v31 = vpop.f32.mrf.mxu0 }
 0x59d   : > { %2099 = vst [vmem:[%s9252_s4] sm:$0xff] %v2095_v46  ;;  %v2097_v11 = vadd.f32 %v2096_v31, %v9123_v35  ;;  %v9280_v35 = vld [vmem:[%s8043_s17 + $0x88] sm:$0x7]  ;;  %v2562_v46 = vcombine.high %v9291_v37, %v9297_v39 }
 0x59e   : > { %v2555_v13 = vrot.slane %v9280_v35, 1 }
 0x59f   : > { %2100 = vst [vmem:[%s9252_s4 + $0x8] sm:$0xff] %v2097_v11 }
 0x5a0   : > { %v9300_v63 = vsel %vm618_vm0, %v2554_v1, %v2555_v13 }
 0x5a1   : > { %v2577_v38 = vcombine.low %v9294_v17, %v9300_v63  ;;  %v2578_v57 = vcombine.high %v9294_v17, %v9300_v63 }
 0x5a3   : > { %v2585_v55 = vrot.slane %v2577_v38, %v8045_v8 }
 0x5e9   : > { %v9258_v4 = vpop.permute.xlu1 %2406 }
 0x5ea   : > { %12908 = vst [vmem:[#allocation34_spill] sm:$0xff] %v9258_v4 }
 0x5eb   : > { %v9260_v52 = vpop.permute.xlu0 %2402 }
 0x5ed   : > { %v9262_v26 = vpop.permute.xlu1 %2414 }
 0x5ef   : > { %v9264_v14 = vpop.permute.xlu0 %2410 }
 0x5f0   : > { %12909 = vst [vmem:[#allocation12_spill] sm:$0xff] %v9264_v14 }
 0x5f1   : > { %v9266_v62 = vpop.permute.xlu1 %2422 }
 0x5f2   : > { %12910 = vst [vmem:[#allocation27_spill] sm:$0xff] %v9266_v62 }
 0x5f3   : > { %v9274_v12 = vpop.permute.xlu0 %2418 }
 0x5f4   : > { %12911 = vst [vmem:[#allocation22_spill] sm:$0xff] %v9274_v12 }
 0x5f5   : > { %v2434_v2 = vpop.permute.xlu1 %2433 }
 0x5f7   : > { %v2432_v24 = vpop.permute.xlu0 %2431 }
 0x5f9   : > { %v2438_v27 = vpop.permute.xlu1 %2437 }
 0x5fa   : > { %v2459_v45 = vcombine.low %v2434_v2, %v2438_v27  ;;  %v2460_v42 = vcombine.high %v2434_v2, %v2438_v27  ;;  %v2592_v27 = vrot.slane %v2578_v57, %v8045_v8 }
 0x5fb   : > { %v2436_v5 = vpop.permute.xlu0 %2435 }
 0x5fc   : > { %v2443_v47 = vcombine.low %v2432_v24, %v2436_v5  ;;  %v2444_v19 = vcombine.high %v2432_v24, %v2436_v5  ;;  %v2467_v3 = vrot.slane %v2459_v45, %v8045_v8  ;;  %v2474_v51 = vrot.slane %v2460_v42, %v8045_v8 }
 0x5fd   : > { %v2576_v24 = vrot.slane %v2562_v46, %v8045_v8  ;;  %v2593_v5 = vcombine.low %v2569_v30, %v2585_v55 }
 0x5fe   : > { %v2451_v58 = vrot.slane %v2443_v47, %v8045_v8  ;;  %v2458_v23 = vrot.slane %v2444_v19, %v8045_v8  ;;  %v2594_v19 = vcombine.high %v2569_v30, %v2585_v55 }
 0x5ff   : > { %v2609_v59 = vcombine.low %v2576_v24, %v2592_v27 }
 0x600   : > { %v2475_v31 = vcombine.low %v2451_v58, %v2467_v3  ;;  %v2476_v11 = vcombine.high %v2451_v58, %v2467_v3  ;;  %v2491_v2 = vcombine.low %v2458_v23, %v2474_v51  ;;  %v2492_v16 = vcombine.high %v2458_v23, %v2474_v51 }
 0x601   : > { %v9337_v3 = vrot.slane %v2593_v5, %v8074_v21  ;;  %v2608_v51 = vrot.slane %v2594_v19, %v8074_v21  ;;  %v9342_v58 = vrot.slane %v2609_v59, %v8074_v21  ;;  %v2610_v23 = vcombine.high %v2576_v24, %v2592_v27 }
 0x602   : > { %v2490_v7 = vrot.slane %v2476_v11, %v8074_v21  ;;  %v9318_v22 = vrot.slane %v2475_v31, %v8074_v21  ;;  %v9321_v1 = vrot.slane %v2491_v2, %v8074_v21  ;;  %v2506_v42 = vrot.slane %v2492_v16, %v8074_v21 }
 0x603   : > { %12912 = vst [vmem:[#allocation35_spill] sm:$0xff] %v9342_v58  ;;  %v2625_v46 = vcombine.high %v9337_v3, %v12784_v41  ;;  %v2627_v31 = vcombine.high %v9342_v58, %v12784_v41  ;;  %v2624_v11 = vrot.slane %v2610_v23, %v8074_v21  ;;  %v2626_v2 = vcombine.high %v2608_v51, %v12784_v41 }
 0x604   : > { %2516 = vrot.lane.b32.xlu1 %v2490_v7, %s8001_s19  ;;  %v2507_v13 = vcombine.high %v9318_v22, %v12784_v41  ;;  %v2509_v45 = vcombine.high %v9321_v1, %v12784_v41  ;;  %v2508_v47 = vcombine.high %v2490_v7, %v12784_v41  ;;  %v2510_v38 = vcombine.high %v2506_v42, %v12784_v41 }
 0x605   : > { %v2628_v57 = vcombine.high %v2624_v11, %v12784_v41 }
 0x606   : > { %2512 = vrot.lane.b32.xlu0 %v2507_v13, %s8003_s21 }
 0x608   : > { %2524 = vrot.lane.b32.xlu1 %v2509_v45, %s8003_s21 }
 0x60a   : > { %2520 = vrot.lane.b32.xlu0 %v2508_v47, %s8002_s20 }
 0x60c   : > { %2532 = vrot.lane.b32.xlu1 %v2510_v38, %s8002_s20 }
 0x60e   : > { %2528 = vrot.lane.b32.xlu0 %v2506_v42, %s8001_s19 }
 0x610   : > { %2634 = vrot.lane.b32.xlu1 %v2608_v51, %s8001_s19 }
 0x612   : > { %2630 = vrot.lane.b32.xlu0 %v2625_v46, %s8003_s21 }
 0x614   : > { %2642 = vrot.lane.b32.xlu1 %v2627_v31, %s8003_s21 }
 0x616   : > { %2638 = vrot.lane.b32.xlu0 %v2626_v2, %s8002_s20 }
 0x618   : > { %2650 = vrot.lane.b32.xlu1 %v2628_v57, %s8002_s20 }
 0x61a   : > { %2646 = vrot.lane.b32.xlu0 %v2624_v11, %s8001_s19 }
 0x61c   : > { %2661 = vrot.lane.b32.xlu1 %v9294_v17, %s8000_s18 }
 0x61e   : > { %2659 = vrot.lane.b32.xlu0 %v9291_v37, %s8000_s18 }
 0x620   : > { %2665 = vrot.lane.b32.xlu1 %v9300_v63, %s8000_s18 }
 0x622   : > { %2663 = vrot.lane.b32.xlu0 %v9297_v39, %s8000_s18 }
 0x676   : > { %v9366_v30 = vpop.permute.xlu1 %2516 }
 0x678   : > { %v9368_v55 = vpop.permute.xlu0 %2512 }
 0x67a   : > { %v9370_v16 = vpop.permute.xlu1 %2524 }
 0x67c   : > { %v9372_v7 = vpop.permute.xlu0 %2520 }
 0x67e   : > { %v9374_v13 = vpop.permute.xlu1 %2532 }
 0x680   : > { %v9376_v24 = vpop.permute.xlu0 %2528 }
 0x682   : > { %v9378_v27 = vpop.permute.xlu1 %2634 }
 0x683   : > { %12913 = vst [vmem:[#allocation46_spill] sm:$0xff] %v9378_v27 }
 0x684   : > { %v9380_v45 = vpop.permute.xlu0 %2630 }
 0x686   : > { %v9382_v42 = vpop.permute.xlu1 %2642 }
 0x687   : > { %12914 = vst [vmem:[#allocation43_spill] sm:$0xff] %v9382_v42 }
 0x688   : > { %v9384_v5 = vpop.permute.xlu0 %2638 }
 0x689   : > { %12915 = vst [vmem:[#allocation29_spill] sm:$0xff] %v9384_v5 }
 0x68a   : > { %v9386_v47 = vpop.permute.xlu1 %2650 }
 0x68b   : > { %12916 = vst [vmem:[#allocation31_spill] sm:$0xff] %v9386_v47 }
 0x68c   : > { %v9388_v19 = vpop.permute.xlu0 %2646 }
 0x68d   : > { %12917 = vst [vmem:[#allocation10_spill] sm:$0xff] %v9388_v19 }
 0x68e   : > { %v2662_v59 = vpop.permute.xlu1 %2661 }
 0x690   : > { %v2660_v38 = vpop.permute.xlu0 %2659 }
 0x692   : > { %v2666_v51 = vpop.permute.xlu1 %2665 }
 0x693   : > { %v2687_v23 = vcombine.low %v2662_v59, %v2666_v51  ;;  %v2688_v46 = vcombine.high %v2662_v59, %v2666_v51 }
 0x694   : > { %v2664_v31 = vpop.permute.xlu0 %2663 }
 0x695   : > { %v2671_v11 = vcombine.low %v2660_v38, %v2664_v31  ;;  %v2672_v2 = vcombine.high %v2660_v38, %v2664_v31  ;;  %v2695_v57 = vrot.slane %v2687_v23, %v8045_v8  ;;  %v2702_v49 = vrot.slane %v2688_v46, %v8045_v8 }
 0x697   : > { %v2679_v9 = vrot.slane %v2671_v11, %v8045_v8  ;;  %v2686_v50 = vrot.slane %v2672_v2, %v8045_v8 }
 0x699   : > { %v2703_v14 = vcombine.low %v2679_v9, %v2695_v57  ;;  %v2704_v62 = vcombine.high %v2679_v9, %v2695_v57  ;;  %v2719_v4 = vcombine.low %v2686_v50, %v2702_v49  ;;  %v2720_v5 = vcombine.high %v2686_v50, %v2702_v49 }
 0x69b   : > { %v2718_v18 = vrot.slane %v2704_v62, %v8074_v21  ;;  %v9396_v47 = vrot.slane %v2703_v14, %v8074_v21  ;;  %v9399_v59 = vrot.slane %v2719_v4, %v8074_v21  ;;  %v2734_v50 = vrot.slane %v2720_v5, %v8074_v21 }
 0x69d   : > { %2744 = vrot.lane.b32.xlu1 %v2718_v18, %s8001_s19  ;;  %v2735_v38 = vcombine.high %v9396_v47, %v12784_v41  ;;  %v2737_v9 = vcombine.high %v9399_v59, %v12784_v41  ;;  %v2736_v49 = vcombine.high %v2718_v18, %v12784_v41  ;;  %v2738_v4 = vcombine.high %v2734_v50, %v12784_v41 }
 0x69f   : > { %2740 = vrot.lane.b32.xlu0 %v2735_v38, %s8003_s21 }
 0x6a1   : > { %2752 = vrot.lane.b32.xlu1 %v2737_v9, %s8003_s21 }
 0x6a3   : > { %2748 = vrot.lane.b32.xlu0 %v2736_v49, %s8002_s20 }
 0x6a5   : > { %2760 = vrot.lane.b32.xlu1 %v2738_v4, %s8002_s20 }
 0x6a7   : > { %2756 = vrot.lane.b32.xlu0 %v2734_v50, %s8001_s19 }
 0x6a9   : > { %2771 = vrot.lane.b32.xlu1 %v9294_v17, %s8004_s22 }
 0x6ab   : > { %2769 = vrot.lane.b32.xlu0 %v9291_v37, %s8004_s22 }
 0x6ad   : > { %2775 = vrot.lane.b32.xlu1 %v9300_v63, %s8004_s22 }
 0x6af   : > { %2773 = vrot.lane.b32.xlu0 %v9297_v39, %s8004_s22 }
 0x70f   : > { %v9422_v18 = vpop.permute.xlu1 %2744 }
 0x710   : > { %12918 = vst [vmem:[#allocation26_spill] sm:$0xff] %v9422_v18 }
 0x711   : > { %v9424_v14 = vpop.permute.xlu0 %2740 }
 0x713   : > { %v9426_v62 = vpop.permute.xlu1 %2752 }
 0x715   : > { %v9428_v5 = vpop.permute.xlu0 %2748 }
 0x716   : > { %12919 = vst [vmem:[#allocation47_spill] sm:$0xff] %v9428_v5 }
 0x717   : > { %v9430_v51 = vpop.permute.xlu1 %2760 }
 0x718   : > { %12920 = vst [vmem:[#allocation44_spill] sm:$0xff] %v9430_v51 }
 0x719   : > { %v9432_v23 = vpop.permute.xlu0 %2756 }
 0x71b   : > { %v2772_v46 = vpop.permute.xlu1 %2771 }
 0x71d   : > { %v2770_v31 = vpop.permute.xlu0 %2769 }
 0x71f   : > { %v2776_v11 = vpop.permute.xlu1 %2775 }
 0x720   : > { %v2797_v2 = vcombine.low %v2772_v46, %v2776_v11  ;;  %v2798_v57 = vcombine.high %v2772_v46, %v2776_v11 }
 0x721   : > { %v2774_v38 = vpop.permute.xlu0 %2773 }
 0x722   : > { %v2781_v9 = vcombine.low %v2770_v31, %v2774_v38  ;;  %v2782_v50 = vcombine.high %v2770_v31, %v2774_v38  ;;  %v2805_v49 = vrot.slane %v2797_v2, %v8045_v8  ;;  %v2812_v4 = vrot.slane %v2798_v57, %v8045_v8 }
 0x723   : > { %v2992_v38 = vrot.slane %v8796_v0, 2 }
 0x724   : > { %v2789_v27 = vrot.slane %v2781_v9, %v8045_v8  ;;  %v2796_v12 = vrot.slane %v2782_v50, %v8045_v8  ;;  %v2995_v9 = vrot.slane %v8793_v28, 2  ;;  %v2996_v50 = vrot.slane %v9277_v36, 2 }
 0x726   : > { %v2813_v19 = vcombine.low %v2789_v27, %v2805_v49  ;;  %v2814_v51 = vcombine.high %v2789_v27, %v2805_v49  ;;  %v2829_v5 = vcombine.low %v2796_v12, %v2812_v4  ;;  %v2830_v18 = vcombine.high %v2796_v12, %v2812_v4 }
 0x727   : > { %v2998_v49 = vrot.slane %v8799_v61, 2  ;;  %v2999_v4 = vrot.slane %v9280_v35, 2 }
 0x728   : > { %v2828_v58 = vrot.slane %v2814_v51, %v8074_v21  ;;  %v9440_v42 = vrot.slane %v2813_v19, %v8074_v21  ;;  %v9443_v46 = vrot.slane %v2829_v5, %v8074_v21  ;;  %v2844_v12 = vrot.slane %v2830_v18, %v8074_v21 }
 0x729   : > { %v9496_v28 = vsel %vm1063_vm1, %v2998_v49, %v2999_v4 }
 0x72a   : > { %12921 = vst [vmem:[#allocation33_spill] sm:$0xff] %v9440_v42  ;;  %12922 = vst [vmem:[#allocation50_spill] sm:$0xff] %v9443_v46  ;;  %2854 = vrot.lane.b32.xlu1 %v2828_v58, %s8001_s19  ;;  %v2845_v31 = vcombine.high %v9440_v42, %v12784_v41  ;;  %v2847_v27 = vcombine.high %v9443_v46, %v12784_v41  ;;  %v2846_v19 = vcombine.high %v2828_v58, %v12784_v41 }
 0x72b   : > { %v2848_v5 = vcombine.high %v2844_v12, %v12784_v41 }
 0x72c   : > { %2850 = vrot.lane.b32.xlu0 %v2845_v31, %s8003_s21 }
 0x72e   : > { %2862 = vrot.lane.b32.xlu1 %v2847_v27, %s8003_s21 }
 0x730   : > { %2858 = vrot.lane.b32.xlu0 %v2846_v19, %s8002_s20 }
 0x732   : > { %2870 = vrot.lane.b32.xlu1 %v2848_v5, %s8002_s20  ;;  %v9493_v5 = vsel %vm1063_vm1, %v2995_v9, %v2996_v50 }
 0x734   : > { %2866 = vrot.lane.b32.xlu0 %v2844_v12, %s8001_s19 }
 0x736   : > { %2881 = vrot.lane.b32.xlu1 %v9294_v17, %s8005_s23 }
 0x738   : > { %2879 = vrot.lane.b32.xlu0 %v9291_v37, %s8005_s23  ;;  %v2989_v37 = vrot.slane %v8790_v48, 2 }
 0x73a   : > { %2885 = vrot.lane.b32.xlu1 %v9300_v63, %s8005_s23  ;;  %v2990_v63 = vrot.slane %v9269_v15, 2 }
 0x73c   : > { %2883 = vrot.lane.b32.xlu0 %v9297_v39, %s8005_s23  ;;  %v2993_v39 = vrot.slane %v9272_v54, 2  ;;  %v9487_v12 = vsel %vm1063_vm1, %v2989_v37, %v2990_v63 }
 0x73d   : > { %v3006_v9 = vcombine.high %v9487_v12, %v9493_v5 }
 0x73e   : > { %v9490_v48 = vsel %vm1063_vm1, %v2992_v38, %v2993_v39 }
 0x73f   : > { %v3021_v37 = vcombine.low %v9490_v48, %v9496_v28  ;;  %v3022_v4 = vcombine.high %v9490_v48, %v9496_v28 }
 0x79c   : > { %v9466_v58 = vpop.permute.xlu1 %2854 }
 0x79d   : > { %12923 = vst [vmem:[#allocation36_spill] sm:$0xff] %v9466_v58  ;;  %v3005_v58 = vcombine.low %v9487_v12, %v9493_v5 }
 0x79e   : > { %v9468_v18 = vpop.permute.xlu0 %2850 }
 0x79f   : > { %12924 = vst [vmem:[#allocation37_spill] sm:$0xff] %v9468_v18 }
 0x7a0   : > { %v9470_v51 = vpop.permute.xlu1 %2862 }
 0x7a1   : > { %12925 = vst [vmem:[#allocation13_spill] sm:$0xff] %v9470_v51 }
 0x7a2   : > { %v9472_v11 = vpop.permute.xlu0 %2858 }
 0x7a3   : > { %12926 = vst [vmem:[#allocation45_spill] sm:$0xff] %v9472_v11 }
 0x7a4   : > { %v9474_v2 = vpop.permute.xlu1 %2870 }
 0x7a5   : > { %12927 = vst [vmem:[#allocation40_spill] sm:$0xff] %v9474_v2 }
 0x7a6   : > { %v9476_v17 = vpop.permute.xlu0 %2866 }
 0x7a7   : > { %12928 = vst [vmem:[#allocation14_spill] sm:$0xff] %v9476_v17 }
 0x7a8   : > { %v2882_v57 = vpop.permute.xlu1 %2881 }
 0x7aa   : > { %v2880_v31 = vpop.permute.xlu0 %2879 }
 0x7ac   : > { %v2886_v27 = vpop.permute.xlu1 %2885 }
 0x7ad   : > { %v2907_v19 = vcombine.low %v2882_v57, %v2886_v27  ;;  %v2908_v0 = vcombine.high %v2882_v57, %v2886_v27  ;;  %v3029_v27 = vrot.slane %v3021_v37, %v8045_v8 }
 0x7ae   : > { %v2884_v11 = vpop.permute.xlu0 %2883 }
 0x7af   : > { %v2891_v61 = vcombine.low %v2880_v31, %v2884_v11  ;;  %v2892_v2 = vcombine.high %v2880_v31, %v2884_v11  ;;  %v2915_v63 = vrot.slane %v2907_v19, %v8045_v8  ;;  %v2922_v38 = vrot.slane %v2908_v0, %v8045_v8 }
 0x7b0   : > { %v3013_v31 = vrot.slane %v3005_v58, %v8045_v8  ;;  %v3036_v58 = vrot.slane %v3022_v4, %v8045_v8 }
 0x7b1   : > { %v2899_v57 = vrot.slane %v2891_v61, %v8045_v8  ;;  %v2906_v39 = vrot.slane %v2892_v2, %v8045_v8 }
 0x7b3   : > { %v2923_v50 = vcombine.low %v2899_v57, %v2915_v63  ;;  %v2924_v49 = vcombine.high %v2899_v57, %v2915_v63  ;;  %v2939_v11 = vcombine.low %v2906_v39, %v2922_v38  ;;  %v2940_v19 = vcombine.high %v2906_v39, %v2922_v38 }
 0x7b4   : > { %v3020_v57 = vrot.slane %v3006_v9, %v8045_v8  ;;  %v3037_v39 = vcombine.low %v3013_v31, %v3029_v27 }
 0x7b5   : > { %v2938_v0 = vrot.slane %v2924_v49, %v8074_v21  ;;  %v9514_v61 = vrot.slane %v2923_v50, %v8074_v21  ;;  %v9517_v2 = vrot.slane %v2939_v11, %v8074_v21  ;;  %v2954_v38 = vrot.slane %v2940_v19, %v8074_v21 }
 0x7b6   : > { %v3038_v49 = vcombine.high %v3013_v31, %v3029_v27  ;;  %v3053_v11 = vcombine.low %v3020_v57, %v3036_v58  ;;  %v9533_v4 = vrot.slane %v3037_v39, %v8074_v21  ;;  %v3054_v17 = vcombine.high %v3020_v57, %v3036_v58 }
 0x7b7   : > { %2964 = vrot.lane.b32.xlu1 %v2938_v0, %s8001_s19  ;;  %v2955_v63 = vcombine.high %v9514_v61, %v12784_v41  ;;  %v2957_v37 = vcombine.high %v9517_v2, %v12784_v41  ;;  %v2956_v50 = vcombine.high %v2938_v0, %v12784_v41  ;;  %v2958_v9 = vcombine.high %v2954_v38, %v12784_v41 }
 0x7b8   : > { %12929 = vst [vmem:[#allocation48_spill] sm:$0xff] %v9533_v4  ;;  %v9538_v19 = vrot.slane %v3053_v11, %v8074_v21  ;;  %v3069_v31 = vcombine.high %v9533_v4, %v12784_v41  ;;  %v3068_v0 = vrot.slane %v3054_v17, %v8074_v21 }
 0x7b9   : > { %2960 = vrot.lane.b32.xlu0 %v2955_v63, %s8003_s21  ;;  %v3052_v63 = vrot.slane %v3038_v49, %v8074_v21 }
 0x7ba   : > { %12930 = vst [vmem:[#allocation49_spill] sm:$0xff] %v9538_v19  ;;  %v3071_v27 = vcombine.high %v9538_v19, %v12784_v41  ;;  %v3072_v57 = vcombine.high %v3068_v0, %v12784_v41 }
 0x7bb   : > { %2972 = vrot.lane.b32.xlu1 %v2957_v37, %s8003_s21  ;;  %v3070_v37 = vcombine.high %v3052_v63, %v12784_v41 }
 0x7bd   : > { %2968 = vrot.lane.b32.xlu0 %v2956_v50, %s8002_s20 }
 0x7bf   : > { %2980 = vrot.lane.b32.xlu1 %v2958_v9, %s8002_s20 }
 0x7c1   : > { %2976 = vrot.lane.b32.xlu0 %v2954_v38, %s8001_s19 }
 0x7c3   : > { %3078 = vrot.lane.b32.xlu1 %v3052_v63, %s8001_s19 }
 0x7c5   : > { %3074 = vrot.lane.b32.xlu0 %v3069_v31, %s8003_s21 }
 0x7c7   : > { %3086 = vrot.lane.b32.xlu1 %v3071_v27, %s8003_s21 }
 0x7c9   : > { %3082 = vrot.lane.b32.xlu0 %v3070_v37, %s8002_s20 }
 0x7cb   : > { %3094 = vrot.lane.b32.xlu1 %v3072_v57, %s8002_s20 }
 0x7cd   : > { %3090 = vrot.lane.b32.xlu0 %v3068_v0, %s8001_s19 }
 0x7cf   : > { %3105 = vrot.lane.b32.xlu1 %v9490_v48, %s8000_s18 }
 0x7d1   : > { %3103 = vrot.lane.b32.xlu0 %v9487_v12, %s8000_s18 }
 0x7d3   : > { %3109 = vrot.lane.b32.xlu1 %v9496_v28, %s8000_s18 }
 0x7d5   : > { %3107 = vrot.lane.b32.xlu0 %v9493_v5, %s8000_s18 }
 0x829   : > { %v9562_v17 = vpop.permute.xlu1 %2964 }
 0x82a   : > { %12931 = vst [vmem:[#allocation59_spill] sm:$0xff] %v9562_v17 }
 0x82b   : > { %v9564_v58 = vpop.permute.xlu0 %2960 }
 0x82d   : > { %v9566_v38 = vpop.permute.xlu1 %2972 }
 0x82f   : > { %v9568_v39 = vpop.permute.xlu0 %2968 }
 0x830   : > { %12932 = vst [vmem:[#allocation62_spill] sm:$0xff] %v9568_v39 }
 0x831   : > { %v9570_v50 = vpop.permute.xlu1 %2980 }
 0x832   : > { %12933 = vst [vmem:[#allocation54_spill] sm:$0xff] %v9570_v50 }
 0x833   : > { %v9572_v49 = vpop.permute.xlu0 %2976 }
 0x834   : > { %12934 = vst [vmem:[#allocation51_spill] sm:$0xff] %v9572_v49 }
 0x835   : > { %v9574_v11 = vpop.permute.xlu1 %3078 }
 0x836   : > { %12935 = vst [vmem:[#allocation63_spill] sm:$0xff] %v9574_v11 }
 0x837   : > { %v9576_v9 = vpop.permute.xlu0 %3074 }
 0x838   : > { %12936 = vst [vmem:[#allocation65_spill] sm:$0xff] %v9576_v9 }
 0x839   : > { %v9578_v63 = vpop.permute.xlu1 %3086 }
 0x83a   : > { %12937 = vst [vmem:[#allocation72_spill] sm:$0xff] %v9578_v63 }
 0x83b   : > { %v9580_v31 = vpop.permute.xlu0 %3082 }
 0x83c   : > { %12938 = vst [vmem:[#allocation74_spill] sm:$0xff] %v9580_v31 }
 0x83d   : > { %v9582_v27 = vpop.permute.xlu1 %3094 }
 0x83e   : > { %12939 = vst [vmem:[#allocation79_spill] sm:$0xff] %v9582_v27 }
 0x83f   : > { %v9584_v0 = vpop.permute.xlu0 %3090 }
 0x840   : > { %12940 = vst [vmem:[#allocation76_spill] sm:$0xff] %v9584_v0 }
 0x841   : > { %v3106_v37 = vpop.permute.xlu1 %3105 }
 0x843   : > { %v3104_v57 = vpop.permute.xlu0 %3103 }
 0x845   : > { %v3110_v19 = vpop.permute.xlu1 %3109 }
 0x846   : > { %v3131_v4 = vcombine.low %v3106_v37, %v3110_v19  ;;  %v3132_v39 = vcombine.high %v3106_v37, %v3110_v19 }
 0x847   : > { %v3108_v50 = vpop.permute.xlu0 %3107 }
 0x848   : > { %v3115_v17 = vcombine.low %v3104_v57, %v3108_v50  ;;  %v3116_v46 = vcombine.high %v3104_v57, %v3108_v50  ;;  %v3139_v11 = vrot.slane %v3131_v4, %v8045_v8  ;;  %v3146_v9 = vrot.slane %v3132_v39, %v8045_v8 }
 0x84a   : > { %v3123_v63 = vrot.slane %v3115_v17, %v8045_v8  ;;  %v3130_v31 = vrot.slane %v3116_v46, %v8045_v8 }
 0x84c   : > { %v3147_v51 = vcombine.low %v3123_v63, %v3139_v11  ;;  %v3148_v27 = vcombine.high %v3123_v63, %v3139_v11  ;;  %v3163_v42 = vcombine.low %v3130_v31, %v3146_v9  ;;  %v3164_v0 = vcombine.high %v3130_v31, %v3146_v9 }
 0x84e   : > { %v3162_v18 = vrot.slane %v3148_v27, %v8074_v21  ;;  %v9592_v49 = vrot.slane %v3147_v51, %v8074_v21  ;;  %v9595_v19 = vrot.slane %v3163_v42, %v8074_v21  ;;  %v3178_v17 = vrot.slane %v3164_v0, %v8074_v21 }
 0x850   : > { %12941 = vst [vmem:[#allocation73_spill] sm:$0xff] %v9592_v49  ;;  %12942 = vst [vmem:[#allocation78_spill] sm:$0xff] %v9595_v19  ;;  %3188 = vrot.lane.b32.xlu1 %v3162_v18, %s8001_s19  ;;  %v3179_v4 = vcombine.high %v9592_v49, %v12784_v41  ;;  %v3181_v46 = vcombine.high %v9595_v19, %v12784_v41  ;;  %v3180_v51 = vcombine.high %v3162_v18, %v12784_v41 }
 0x851   : > { %v3182_v42 = vcombine.high %v3178_v17, %v12784_v41 }
 0x852   : > { %3184 = vrot.lane.b32.xlu0 %v3179_v4, %s8003_s21 }
 0x854   : > { %3196 = vrot.lane.b32.xlu1 %v3181_v46, %s8003_s21 }
 0x856   : > { %3192 = vrot.lane.b32.xlu0 %v3180_v51, %s8002_s20 }
 0x858   : > { %3204 = vrot.lane.b32.xlu1 %v3182_v42, %s8002_s20 }
 0x85a   : > { %3200 = vrot.lane.b32.xlu0 %v3178_v17, %s8001_s19 }
 0x85c   : > { %3215 = vrot.lane.b32.xlu1 %v9490_v48, %s8004_s22 }
 0x85e   : > { %3213 = vrot.lane.b32.xlu0 %v9487_v12, %s8004_s22 }
 0x860   : > { %3219 = vrot.lane.b32.xlu1 %v9496_v28, %s8004_s22 }
 0x862   : > { %3217 = vrot.lane.b32.xlu0 %v9493_v5, %s8004_s22 }
 0x8c2   : > { %v9618_v18 = vpop.permute.xlu1 %3188 }
 0x8c3   : > { %12943 = vst [vmem:[#allocation75_spill] sm:$0xff] %v9618_v18 }
 0x8c4   : > { %v9620_v39 = vpop.permute.xlu0 %3184 }
 0x8c5   : > { %12944 = vst [vmem:[#allocation82_spill] sm:$0xff] %v9620_v39 }
 0x8c6   : > { %v9622_v50 = vpop.permute.xlu1 %3196 }
 0x8c7   : > { %12945 = vst [vmem:[#allocation64_spill] sm:$0xff] %v9622_v50 }
 0x8c8   : > { %v9624_v11 = vpop.permute.xlu0 %3192 }
 0x8c9   : > { %12946 = vst [vmem:[#allocation68_spill] sm:$0xff] %v9624_v11 }
 0x8ca   : > { %v9626_v9 = vpop.permute.xlu1 %3204 }
 0x8cb   : > { %12947 = vst [vmem:[#allocation61_spill] sm:$0xff] %v9626_v9 }
 0x8cc   : > { %v9628_v63 = vpop.permute.xlu0 %3200 }
 0x8cd   : > { %12948 = vst [vmem:[#allocation67_spill] sm:$0xff] %v9628_v63 }
 0x8ce   : > { %v3216_v31 = vpop.permute.xlu1 %3215 }
 0x8d0   : > { %v3214_v27 = vpop.permute.xlu0 %3213 }
 0x8d2   : > { %v3220_v0 = vpop.permute.xlu1 %3219 }
 0x8d3   : > { %v3241_v37 = vcombine.low %v3216_v31, %v3220_v0  ;;  %v3242_v57 = vcombine.high %v3216_v31, %v3220_v0 }
 0x8d4   : > { %v3218_v4 = vpop.permute.xlu0 %3217 }
 0x8d5   : > { %v3225_v46 = vcombine.low %v3214_v27, %v3218_v4  ;;  %v3226_v17 = vcombine.high %v3214_v27, %v3218_v4  ;;  %v3249_v51 = vrot.slane %v3241_v37, %v8045_v8  ;;  %v3256_v42 = vrot.slane %v3242_v57, %v8045_v8  ;;  %v7977_v57 = vld [vmem:[%s8043_s17 + $0x8] sm:$0xff] }
 0x8d6   : > { %v3433_v4 = vrot.slane %v7977_v57, 3 }
 0x8d7   : > { %v3233_v18 = vrot.slane %v3225_v46, %v8045_v8  ;;  %v3240_v11 = vrot.slane %v3226_v17, %v8045_v8  ;;  %v7978_v46 = vld [vmem:[%s8043_s17 + $0x30] sm:$0xff]  ;;  %v3437_v17 = vrot.slane %v9272_v54, 3 }
 0x8d9   : > { %v3257_v19 = vcombine.low %v3233_v18, %v3249_v51  ;;  %v3258_v9 = vcombine.high %v3233_v18, %v3249_v51  ;;  %v3273_v50 = vcombine.low %v3240_v11, %v3256_v42  ;;  %v3274_v63 = vcombine.high %v3240_v11, %v3256_v42  ;;  %v7979_v51 = vld [vmem:[%s8043_s17 + $0x58] sm:$0xff] }
 0x8da   : > { %v3439_v42 = vrot.slane %v7979_v51, 3 }
 0x8db   : > { %v3272_v49 = vrot.slane %v3258_v9, %v8074_v21  ;;  %v9636_v39 = vrot.slane %v3257_v19, %v8074_v21  ;;  %v9639_v31 = vrot.slane %v3273_v50, %v8074_v21  ;;  %v3288_v11 = vrot.slane %v3274_v63, %v8074_v21 }
 0x8dd   : > { %12949 = vst [vmem:[#allocation60_spill] sm:$0xff] %v9636_v39  ;;  %12950 = vst [vmem:[#allocation71_spill] sm:$0xff] %v9639_v31  ;;  %3298 = vrot.lane.b32.xlu1 %v3272_v49, %s8001_s19  ;;  %v3289_v27 = vcombine.high %v9636_v39, %v12784_v41  ;;  %v3291_v18 = vcombine.high %v9639_v31, %v12784_v41  ;;  %v3290_v19 = vcombine.high %v3272_v49, %v12784_v41 }
 0x8de   : > { %v3292_v50 = vcombine.high %v3288_v11, %v12784_v41 }
 0x8df   : > { %3294 = vrot.lane.b32.xlu0 %v3289_v27, %s8003_s21  ;;  %v3440_v27 = vrot.slane %v9277_v36, 3 }
 0x8e1   : > { %3306 = vrot.lane.b32.xlu1 %v3291_v18, %s8003_s21  ;;  %v7980_v18 = vld [vmem:[%s8043_s17 + $0x80] sm:$0xff]  ;;  %v9689_v54 = vsel %vm1508_vm2, %v3439_v42, %v3440_v27 }
 0x8e3   : > { %3302 = vrot.lane.b32.xlu0 %v3290_v19, %s8002_s20  ;;  %v3443_v19 = vrot.slane %v9280_v35, 3 }
 0x8e5   : > { %3314 = vrot.lane.b32.xlu1 %v3292_v50, %s8002_s20 }
 0x8e7   : > { %3310 = vrot.lane.b32.xlu0 %v3288_v11, %s8001_s19  ;;  %v3442_v11 = vrot.slane %v7980_v18, 3 }
 0x8e9   : > { %3325 = vrot.lane.b32.xlu1 %v9490_v48, %s8005_s23  ;;  %v9692_v51 = vsel %vm1508_vm2, %v3442_v11, %v3443_v19 }
 0x8eb   : > { %3323 = vrot.lane.b32.xlu0 %v9487_v12, %s8005_s23 }
 0x8ed   : > { %3329 = vrot.lane.b32.xlu1 %v9496_v28, %s8005_s23  ;;  %v3434_v28 = vrot.slane %v9269_v15, 3 }
 0x8ef   : > { %3327 = vrot.lane.b32.xlu0 %v9493_v5, %s8005_s23  ;;  %v3436_v5 = vrot.slane %v7978_v46, 3 }
 0x8f1   : > { %v9686_v57 = vsel %vm1508_vm2, %v3436_v5, %v3437_v17 }
 0x8f2   : > { %v3466_v19 = vcombine.high %v9686_v57, %v9692_v51 }
 0x94f   : > { %v9662_v49 = vpop.permute.xlu1 %3298 }
 0x950   : > { %12951 = vst [vmem:[#allocation55_spill] sm:$0xff] %v9662_v49 }
 0x951   : > { %v9664_v9 = vpop.permute.xlu0 %3294 }
 0x952   : > { %12952 = vst [vmem:[#allocation52_spill] sm:$0xff] %v9664_v9 }
 0x953   : > { %v9666_v63 = vpop.permute.xlu1 %3306 }
 0x954   : > { %12953 = vst [vmem:[#allocation77_spill] sm:$0xff] %v9666_v63 }
 0x955   : > { %v9668_v0 = vpop.permute.xlu0 %3302 }
 0x956   : > { %12954 = vst [vmem:[#allocation81_spill] sm:$0xff] %v9668_v0 }
 0x957   : > { %v9670_v48 = vpop.permute.xlu1 %3314 }
 0x958   : > { %12955 = vst [vmem:[#allocation58_spill] sm:$0xff] %v9670_v48  ;;  %v9683_v48 = vsel %vm1508_vm2, %v3433_v4, %v3434_v28  ;;  %v3465_v4 = vcombine.low %v9686_v57, %v9692_v51 }
 0x959   : > { %v9672_v37 = vpop.permute.xlu0 %3310  ;;  %v3449_v35 = vcombine.low %v9683_v48, %v9689_v54  ;;  %v3450_v17 = vcombine.high %v9683_v48, %v9689_v54 }
 0x95a   : > { %12956 = vst [vmem:[#allocation80_spill] sm:$0xff] %v9672_v37 }
 0x95b   : > { %v3326_v12 = vpop.permute.xlu1 %3325 }
 0x95d   : > { %v3324_v50 = vpop.permute.xlu0 %3323 }
 0x95f   : > { %v3330_v0 = vpop.permute.xlu1 %3329 }
 0x960   : > { %v3351_v15 = vcombine.low %v3326_v12, %v3330_v0  ;;  %v3352_v46 = vcombine.high %v3326_v12, %v3330_v0 }
 0x961   : > { %v3328_v36 = vpop.permute.xlu0 %3327 }
 0x962   : > { %v3335_v18 = vcombine.low %v3324_v50, %v3328_v36  ;;  %v3336_v49 = vcombine.high %v3324_v50, %v3328_v36  ;;  %v3359_v28 = vrot.slane %v3351_v15, %v8045_v8  ;;  %v3366_v5 = vrot.slane %v3352_v46, %v8045_v8 }
 0x963   : > { %v3457_v50 = vrot.slane %v3449_v35, %v8045_v8  ;;  %v3473_v36 = vrot.slane %v3465_v4, %v8045_v8  ;;  %v3480_v35 = vrot.slane %v3466_v19, %v8045_v8 }
 0x964   : > { %v3343_v0 = vrot.slane %v3335_v18, %v8045_v8  ;;  %v3350_v12 = vrot.slane %v3336_v49, %v8045_v8 }
 0x966   : > { %v3367_v42 = vcombine.low %v3343_v0, %v3359_v28  ;;  %v3368_v27 = vcombine.high %v3343_v0, %v3359_v28  ;;  %v3383_v11 = vcombine.low %v3350_v12, %v3366_v5  ;;  %v3384_v15 = vcombine.high %v3350_v12, %v3366_v5 }
 0x967   : > { %v3464_v0 = vrot.slane %v3450_v17, %v8045_v8  ;;  %v3481_v12 = vcombine.low %v3457_v50, %v3473_v36 }
 0x968   : > { %v3382_v46 = vrot.slane %v3368_v27, %v8074_v21  ;;  %v9710_v18 = vrot.slane %v3367_v42, %v8074_v21  ;;  %v9713_v49 = vrot.slane %v3383_v11, %v8074_v21  ;;  %v3398_v5 = vrot.slane %v3384_v15, %v8074_v21 }
 0x969   : > { %v3482_v27 = vcombine.high %v3457_v50, %v3473_v36  ;;  %v3497_v11 = vcombine.low %v3464_v0, %v3480_v35  ;;  %v9729_v19 = vrot.slane %v3481_v12, %v8074_v21  ;;  %v3498_v37 = vcombine.high %v3464_v0, %v3480_v35 }
 0x96a   : > { %12957 = vst [vmem:[#allocation66_spill] sm:$0xff] %v9713_v49  ;;  %3408 = vrot.lane.b32.xlu1 %v3382_v46, %s8001_s19  ;;  %v3399_v28 = vcombine.high %v9710_v18, %v12784_v41  ;;  %v3401_v4 = vcombine.high %v9713_v49, %v12784_v41  ;;  %v3400_v42 = vcombine.high %v3382_v46, %v12784_v41 }
 0x96b   : > { %v3402_v17 = vcombine.high %v3398_v5, %v12784_v41  ;;  %12958 = vst [vmem:[#allocation70_spill] sm:$0xff] %v9729_v19  ;;  %v9734_v15 = vrot.slane %v3497_v11, %v8074_v21  ;;  %v3513_v50 = vcombine.high %v9729_v19, %v12784_v41  ;;  %v3512_v46 = vrot.slane %v3498_v37, %v8074_v21 }
 0x96c   : > { %3404 = vrot.lane.b32.xlu0 %v3399_v28, %s8003_s21  ;;  %v3496_v28 = vrot.slane %v3482_v27, %v8074_v21 }
 0x96d   : > { %12959 = vst [vmem:[#allocation41_spill] sm:$0xff] %v9734_v15  ;;  %v3515_v36 = vcombine.high %v9734_v15, %v12784_v41  ;;  %v3516_v0 = vcombine.high %v3512_v46, %v12784_v41 }
 0x96e   : > { %3416 = vrot.lane.b32.xlu1 %v3401_v4, %s8003_s21  ;;  %v3514_v4 = vcombine.high %v3496_v28, %v12784_v41 }
 0x970   : > { %3412 = vrot.lane.b32.xlu0 %v3400_v42, %s8002_s20 }
 0x972   : > { %3424 = vrot.lane.b32.xlu1 %v3402_v17, %s8002_s20 }
 0x974   : > { %3420 = vrot.lane.b32.xlu0 %v3398_v5, %s8001_s19 }
 0x976   : > { %3522 = vrot.lane.b32.xlu1 %v3496_v28, %s8001_s19 }
 0x978   : > { %3518 = vrot.lane.b32.xlu0 %v3513_v50, %s8003_s21 }
 0x97a   : > { %3530 = vrot.lane.b32.xlu1 %v3515_v36, %s8003_s21 }
 0x97c   : > { %3526 = vrot.lane.b32.xlu0 %v3514_v4, %s8002_s20 }
 0x97e   : > { %3538 = vrot.lane.b32.xlu1 %v3516_v0, %s8002_s20 }
 0x980   : > { %3534 = vrot.lane.b32.xlu0 %v3512_v46, %s8001_s19 }
 0x982   : > { %3549 = vrot.lane.b32.xlu1 %v9686_v57, %s8000_s18 }
 0x984   : > { %3547 = vrot.lane.b32.xlu0 %v9683_v48, %s8000_s18 }
 0x986   : > { %3553 = vrot.lane.b32.xlu1 %v9692_v51, %s8000_s18 }
 0x988   : > { %3551 = vrot.lane.b32.xlu0 %v9689_v54, %s8000_s18 }
 0x9dc   : > { %v9758_v37 = vpop.permute.xlu1 %3408 }
 0x9dd   : > { %12960 = vst [vmem:[#allocation69_spill] sm:$0xff] %v9758_v37 }
 0x9de   : > { %v9760_v35 = vpop.permute.xlu0 %3404 }
 0x9e0   : > { %v9762_v5 = vpop.permute.xlu1 %3416 }
 0x9e1   : > { %12961 = vst [vmem:[#allocation53_spill] sm:$0xff] %v9762_v5 }
 0x9e2   : > { %v9764_v12 = vpop.permute.xlu0 %3412 }
 0x9e3   : > { %12962 = vst [vmem:[#allocation57_spill] sm:$0xff] %v9764_v12 }
 0x9e4   : > { %v9766_v42 = vpop.permute.xlu1 %3424 }
 0x9e5   : > { %12963 = vst [vmem:[#allocation28_spill] sm:$0xff] %v9766_v42 }
 0x9e6   : > { %v9768_v27 = vpop.permute.xlu0 %3420 }
 0x9e7   : > { %12964 = vst [vmem:[#allocation9_spill] sm:$0xff] %v9768_v27 }
 0x9e8   : > { %v9770_v11 = vpop.permute.xlu1 %3522 }
 0x9e9   : > { %12965 = vst [vmem:[#allocation56_spill] sm:$0xff] %v9770_v11 }
 0x9ea   : > { %v9772_v17 = vpop.permute.xlu0 %3518 }
 0x9eb   : > { %12966 = vst [vmem:[#allocation38_spill] sm:$0xff] %v9772_v17 }
 0x9ec   : > { %v9774_v28 = vpop.permute.xlu1 %3530 }
 0x9ed   : > { %12967 = vst [vmem:[#allocation42_spill] sm:$0xff] %v9774_v28 }
 0x9ee   : > { %v9776_v50 = vpop.permute.xlu0 %3526 }
 0x9ef   : > { %12968 = vst [vmem:[#allocation24_spill] sm:$0xff] %v9776_v50 }
 0x9f0   : > { %v9778_v36 = vpop.permute.xlu1 %3538 }
 0x9f1   : > { %12969 = vst [vmem:[#allocation39_spill] sm:$0xff] %v9778_v36 }
 0x9f2   : > { %v9780_v46 = vpop.permute.xlu0 %3534 }
 0x9f3   : > { %12970 = vst [vmem:[#allocation25_spill] sm:$0xff] %v9780_v46 }
 0x9f4   : > { %v3550_v4 = vpop.permute.xlu1 %3549 }
 0x9f6   : > { %v3548_v0 = vpop.permute.xlu0 %3547 }
 0x9f8   : > { %v3554_v31 = vpop.permute.xlu1 %3553 }
 0x9f9   : > { %v3575_v63 = vcombine.low %v3550_v4, %v3554_v31  ;;  %v3576_v19 = vcombine.high %v3550_v4, %v3554_v31 }
 0x9fa   : > { %v3552_v15 = vpop.permute.xlu0 %3551 }
 0x9fb   : > { %v3559_v42 = vcombine.low %v3548_v0, %v3552_v15  ;;  %v3560_v27 = vcombine.high %v3548_v0, %v3552_v15  ;;  %v3583_v11 = vrot.slane %v3575_v63, %v8045_v8  ;;  %v3590_v17 = vrot.slane %v3576_v19, %v8045_v8 }
 0x9fd   : > { %v3567_v28 = vrot.slane %v3559_v42, %v8045_v8  ;;  %v3574_v50 = vrot.slane %v3560_v27, %v8045_v8 }
 0x9ff   : > { %v3591_v12 = vcombine.low %v3567_v28, %v3583_v11  ;;  %v3592_v36 = vcombine.high %v3567_v28, %v3583_v11  ;;  %v3607_v39 = vcombine.low %v3574_v50, %v3590_v17  ;;  %v3608_v46 = vcombine.high %v3574_v50, %v3590_v17 }
 0xa01   : > { %v3606_v9 = vrot.slane %v3592_v36, %v8074_v21  ;;  %v9788_v37 = vrot.slane %v3591_v12, %v8074_v21  ;;  %v9791_v31 = vrot.slane %v3607_v39, %v8074_v21  ;;  %v3622_v15 = vrot.slane %v3608_v46, %v8074_v21 }
 0xa03   : > { %12971 = vst [vmem:[#allocation32_spill] sm:$0xff] %v9788_v37  ;;  %3632 = vrot.lane.b32.xlu1 %v3606_v9, %s8001_s19  ;;  %v3623_v63 = vcombine.high %v9788_v37, %v12784_v41  ;;  %v3625_v19 = vcombine.high %v9791_v31, %v12784_v41  ;;  %v3624_v12 = vcombine.high %v3606_v9, %v12784_v41 }
 0xa04   : > { %v3626_v39 = vcombine.high %v3622_v15, %v12784_v41 }
 0xa05   : > { %3628 = vrot.lane.b32.xlu0 %v3623_v63, %s8003_s21 }
 0xa07   : > { %3640 = vrot.lane.b32.xlu1 %v3625_v19, %s8003_s21 }
 0xa09   : > { %3636 = vrot.lane.b32.xlu0 %v3624_v12, %s8002_s20 }
 0xa0b   : > { %3648 = vrot.lane.b32.xlu1 %v3626_v39, %s8002_s20 }
 0xa0d   : > { %3644 = vrot.lane.b32.xlu0 %v3622_v15, %s8001_s19 }
 0xa0f   : > { %3659 = vrot.lane.b32.xlu1 %v9686_v57, %s8004_s22 }
 0xa11   : > { %3657 = vrot.lane.b32.xlu0 %v9683_v48, %s8004_s22 }
 0xa13   : > { %3663 = vrot.lane.b32.xlu1 %v9692_v51, %s8004_s22 }
 0xa15   : > { %3661 = vrot.lane.b32.xlu0 %v9689_v54, %s8004_s22 }
 0xa75   : > { %v9814_v9 = vpop.permute.xlu1 %3632 }
 0xa76   : > { %12972 = vst [vmem:[#allocation17_spill] sm:$0xff] %v9814_v9 }
 0xa77   : > { %v9816_v42 = vpop.permute.xlu0 %3628 }
 0xa78   : > { %12973 = vst [vmem:[#allocation8_spill] sm:$0xff] %v9816_v42 }
 0xa79   : > { %v9818_v27 = vpop.permute.xlu1 %3640 }
 0xa7b   : > { %v9820_v11 = vpop.permute.xlu0 %3636 }
 0xa7c   : > { %12974 = vst [vmem:[#allocation30_spill] sm:$0xff] %v9820_v11 }
 0xa7d   : > { %v9822_v17 = vpop.permute.xlu1 %3648 }
 0xa7e   : > { %12975 = vst [vmem:[#allocation2_spill] sm:$0xff] %v9822_v17 }
 0xa7f   : > { %v9824_v28 = vpop.permute.xlu0 %3644 }
 0xa80   : > { %12976 = vst [vmem:[#allocation7_spill] sm:$0xff] %v9824_v28 }
 0xa81   : > { %v3660_v50 = vpop.permute.xlu1 %3659 }
 0xa83   : > { %v3658_v36 = vpop.permute.xlu0 %3657 }
 0xa85   : > { %v3664_v46 = vpop.permute.xlu1 %3663 }
 0xa86   : > { %v3685_v4 = vcombine.low %v3660_v50, %v3664_v46  ;;  %v3686_v0 = vcombine.high %v3660_v50, %v3664_v46 }
 0xa87   : > { %v3662_v63 = vpop.permute.xlu0 %3661 }
 0xa88   : > { %v3669_v19 = vcombine.low %v3658_v36, %v3662_v63  ;;  %v3670_v15 = vcombine.high %v3658_v36, %v3662_v63  ;;  %v3693_v12 = vrot.slane %v3685_v4, %v8045_v8  ;;  %v3700_v39 = vrot.slane %v3686_v0, %v8045_v8  ;;  %v9871_v63 = vld [vmem:[%s8043_s17 + $0x10] sm:$0xff] }
 0xa8a   : > { %v3677_v9 = vrot.slane %v3669_v19, %v8045_v8  ;;  %v3684_v11 = vrot.slane %v3670_v15, %v8045_v8  ;;  %v9880_v15 = vld [vmem:[%s8043_s17 + $0x88] sm:$0xff] }
 0xa8c   : > { %v3701_v49 = vcombine.low %v3677_v9, %v3693_v12  ;;  %v3702_v17 = vcombine.high %v3677_v9, %v3693_v12  ;;  %v3717_v5 = vcombine.low %v3684_v11, %v3700_v39  ;;  %v3718_v28 = vcombine.high %v3684_v11, %v3700_v39 }
 0xa8e   : > { %v3716_v37 = vrot.slane %v3702_v17, %v8074_v21  ;;  %v9832_v42 = vrot.slane %v3701_v49, %v8074_v21  ;;  %v9835_v50 = vrot.slane %v3717_v5, %v8074_v21  ;;  %v3732_v11 = vrot.slane %v3718_v28, %v8074_v21 }
 0xa90   : > { %12977 = vst [vmem:[#allocation6_spill] sm:$0xff] %v9832_v42  ;;  %12978 = vst [vmem:[#allocation15_spill] sm:$0xff] %v9835_v50  ;;  %3742 = vrot.lane.b32.xlu1 %v3716_v37, %s8001_s19  ;;  %v3733_v36 = vcombine.high %v9832_v42, %v12784_v41  ;;  %v3735_v9 = vcombine.high %v9835_v50, %v12784_v41  ;;  %v3734_v49 = vcombine.high %v3716_v37, %v12784_v41 }
 0xa91   : > { %v3736_v5 = vcombine.high %v3732_v11, %v12784_v41 }
 0xa92   : > { %3738 = vrot.lane.b32.xlu0 %v3733_v36, %s8003_s21 }
 0xa94   : > { %3750 = vrot.lane.b32.xlu1 %v3735_v9, %s8003_s21 }
 0xa96   : > { %3746 = vrot.lane.b32.xlu0 %v3734_v49, %s8002_s20 }
 0xa98   : > { %3758 = vrot.lane.b32.xlu1 %v3736_v5, %s8002_s20 }
 0xa9a   : > { %3754 = vrot.lane.b32.xlu0 %v3732_v11, %s8001_s19 }
 0xa9c   : > { %3769 = vrot.lane.b32.xlu1 %v9686_v57, %s8005_s23 }
 0xa9e   : > { %3767 = vrot.lane.b32.xlu0 %v9683_v48, %s8005_s23 }
 0xaa0   : > { %3773 = vrot.lane.b32.xlu1 %v9692_v51, %s8005_s23  ;;  %v9874_v51 = vld [vmem:[%s8043_s17 + $0x60] sm:$0xff] }
 0xaa1   : > { %v4032_v9 = vcombine.low %v9871_v63, %v9874_v51 }
 0xaa2   : > { %3771 = vrot.lane.b32.xlu0 %v9689_v54, %s8005_s23  ;;  %v9877_v54 = vld [vmem:[%s8043_s17 + $0x38] sm:$0xff] }
 0xaa3   : > { %v4048_v5 = vcombine.low %v9877_v54, %v9880_v15  ;;  %v4040_v42 = vrot.slane %v4032_v9, %v8045_v8 }
 0xaa5   : > { %v4056_v50 = vrot.slane %v4048_v5, %v8045_v8 }
 0xaa7   : > { %v4064_v9 = vcombine.low %v4040_v42, %v4056_v50 }
 0xb02   : > { %v9858_v37 = vpop.permute.xlu1 %3742 }
 0xb03   : > { %12979 = vst [vmem:[#allocation19_spill] sm:$0xff] %v9858_v37 }
 0xb04   : > { %v9860_v17 = vpop.permute.xlu0 %3738 }
 0xb05   : > { %12980 = vst [vmem:[#allocation16_spill] sm:$0xff] %v9860_v17 }
 0xb06   : > { %v9862_v28 = vpop.permute.xlu1 %3750 }
 0xb07   : > { %12981 = vst [vmem:[#allocation4_spill] sm:$0xff] %v9862_v28 }
 0xb08   : > { %v9864_v46 = vpop.permute.xlu0 %3746 }
 0xb09   : > { %12982 = vst [vmem:[#allocation18_spill] sm:$0xff] %v9864_v46 }
 0xb0a   : > { %v9866_v4 = vpop.permute.xlu1 %3758 }
 0xb0b   : > { %12983 = vst [vmem:[#allocation5_spill] sm:$0xff] %v9866_v4 }
 0xb0c   : > { %v9868_v57 = vpop.permute.xlu0 %3754 }
 0xb0d   : > { %12984 = vst [vmem:[#allocation3_spill] sm:$0xff] %v9868_v57 }
 0xb0e   : > { %v3770_v0 = vpop.permute.xlu1 %3769 }
 0xb10   : > { %v3768_v48 = vpop.permute.xlu0 %3767 }
 0xb12   : > { %v3774_v19 = vpop.permute.xlu1 %3773 }
 0xb13   : > { %v3795_v12 = vcombine.low %v3770_v0, %v3774_v19  ;;  %v3796_v39 = vcombine.high %v3770_v0, %v3774_v19 }
 0xb14   : > { %v3772_v36 = vpop.permute.xlu0 %3771 }
 0xb15   : > { %v3779_v11 = vcombine.low %v3768_v48, %v3772_v36  ;;  %v3780_v49 = vcombine.high %v3768_v48, %v3772_v36  ;;  %v3803_v46 = vrot.slane %v3795_v12, %v8045_v8  ;;  %v3810_v4 = vrot.slane %v3796_v39, %v8045_v8 }
 0xb17   : > { %v3787_v37 = vrot.slane %v3779_v11, %v8045_v8  ;;  %v3794_v57 = vrot.slane %v3780_v49, %v8045_v8  ;;  %v9913_v11 = vrot.slane %v4064_v9, %v8074_v21  ;;  %v4065_v49 = vcombine.high %v4040_v42, %v4056_v50  ;;  %v3942_v42 = vld [vmem:[%s12647_s2] sm:$0xff] }
 0xb19   : > { %v3811_v0 = vcombine.low %v3787_v37, %v3803_v46  ;;  %v3812_v19 = vcombine.high %v3787_v37, %v3803_v46  ;;  %v3827_v17 = vcombine.low %v3794_v57, %v3810_v4  ;;  %v3828_v28 = vcombine.high %v3794_v57, %v3810_v4 }
 0xb1a   : > { %v4033_v4 = vcombine.high %v9871_v63, %v9874_v51 }
 0xb1b   : > { %v3826_v48 = vrot.slane %v3812_v19, %v8074_v21  ;;  %v9894_v36 = vrot.slane %v3811_v0, %v8074_v21  ;;  %v9897_v12 = vrot.slane %v3827_v17, %v8074_v21  ;;  %v3842_v46 = vrot.slane %v3828_v28, %v8074_v21 }
 0xb1c   : > { %v4049_v17 = vcombine.high %v9877_v54, %v9880_v15  ;;  %v4047_v28 = vrot.slane %v4033_v4, %v8045_v8  ;;  %v4096_v19 = vcombine.high %v9913_v11, %v12784_v41 }
 0xb1d   : > { %3852 = vrot.lane.b32.xlu1 %v3826_v48, %s8001_s19  ;;  %v3843_v39 = vcombine.high %v9894_v36, %v12784_v41  ;;  %v3845_v37 = vcombine.high %v9897_v12, %v12784_v41  ;;  %v3844_v57 = vcombine.high %v3826_v48, %v12784_v41  ;;  %v3846_v5 = vcombine.high %v3842_v46, %v12784_v41 }
 0xb1e   : > { %v4063_v0 = vrot.slane %v4049_v17, %v8045_v8 }
 0xb1f   : > { %3848 = vrot.lane.b32.xlu0 %v3843_v39, %s8003_s21  ;;  %v4079_v39 = vrot.slane %v4065_v49, %v8074_v21  ;;  %v2318_v49 = vsel %vm271_vm3, %v9181_v29, %v9208_v20 }
 0xb20   : > { %v4080_v48 = vcombine.low %v4047_v28, %v4063_v0  ;;  %v4081_v9 = vcombine.high %v4047_v28, %v4063_v0  ;;  %v2535_v28 = vsel %vm271_vm3, %v9318_v22, %v9368_v55  ;;  %v2538_v0 = vsel %vm271_vm3, %v9321_v1, %v9370_v16  ;;  %v12987_v55 = vld [vmem:[#allocation26_spill] sm:$0xff] }
 0xb21   : > { %3860 = vrot.lane.b32.xlu1 %v3845_v37, %s8003_s21  ;;  %v4097_v50 = vcombine.high %v4079_v39, %v12784_v41  ;;  %v2539_v29 = vsel %vm273_vm4, %v2538_v0, %v9376_v24  ;;  %v10003_v22 = vsel %vm271_vm3, %v9225_v6, %v9262_v26  ;;  %v10019_v1 = vsel %vm271_vm3, %v9337_v3, %v9380_v45  ;;  %v12986_v6 = vld [vmem:[#allocation35_spill] sm:$0xff] }
 0xb22   : > { %v9930_v37 = vrot.slane %v4080_v48, %v8074_v21  ;;  %v4095_v4 = vrot.slane %v4081_v9, %v8074_v21  ;;  %v12988_v24 = vld [vmem:[#allocation47_spill] sm:$0xff]  ;;  %v12996_v48 = vld [vmem:[#allocation50_spill] sm:$0xff]  ;;  %v3427_v0 = vsel %vm271_vm3, %v9710_v18, %v9760_v35  ;;  %v3654_v18 = vsel %vm271_vm3, %v9791_v31, %v9818_v27  ;;  %v13013_v31 = vld [vmem:[#allocation53_spill] sm:$0xff] }
 0xb23   : > { %3856 = vrot.lane.b32.xlu0 %v3844_v57, %s8002_s20  ;;  %v2315_v57 = vsel %vm271_vm3, %v9178_v56, %v9206_v34  ;;  %v9975_v34 = vsel %vm271_vm3, %v8848_v32, %v9102_v25  ;;  %v9994_v32 = vsel %vm271_vm3, %v9222_v33, %v9260_v52  ;;  %v2536_v25 = vsel %vm273_vm4, %v2535_v28, %v9366_v30  ;;  %v12985_v30 = vld [vmem:[#allocation43_spill] sm:$0xff]  ;;  %v13014_v27 = vld [vmem:[#allocation66_spill] sm:$0xff] }
 0xb24   : > { %v4099_v17 = vcombine.high %v4095_v4, %v12784_v41  ;;  %v2316_v56 = vsel %vm273_vm4, %v2315_v57, %v9204_v10  ;;  %v10011_v33 = vsel %vm275_vm5, %v2539_v29, %v9374_v13  ;;  %v2983_v52 = vsel %vm271_vm3, %v9514_v61, %v9564_v58  ;;  %v12990_v45 = vld [vmem:[#allocation51_spill] sm:$0xff]  ;;  %v12993_v58 = vld [vmem:[#allocation37_spill] sm:$0xff]  ;;  %v13000_v57 = vld [vmem:[#allocation62_spill] sm:$0xff] }
 0xb25   : > { %3868 = vrot.lane.b32.xlu1 %v3846_v5, %s8002_s20  ;;  %v2319_v5 = vsel %vm273_vm4, %v2318_v49, %v9214_v53  ;;  %v9979_v20 = vsel %vm275_vm5, %v2316_v56, %v9210_v60  ;;  %v10024_v26 = vsel %vm271_vm3, %v12986_v6, %v12985_v30  ;;  %v13005_v30 = vld [vmem:[#allocation75_spill] sm:$0xff] }
 0xb26   : > { %v9989_v10 = vsel %vm275_vm5, %v2319_v5, %v9212_v40  ;;  %v10007_v40 = vsel %vm275_vm5, %v2536_v25, %v9372_v7  ;;  %v2986_v7 = vsel %vm271_vm3, %v9517_v2, %v9566_v38  ;;  %v12995_v38 = vld [vmem:[#allocation13_spill] sm:$0xff]  ;;  %v13001_v5 = vld [vmem:[#allocation67_spill] sm:$0xff] }
 0xb27   : > { %3864 = vrot.lane.b32.xlu0 %v3842_v46, %s8001_s19  ;;  %v4098_v46 = vcombine.high %v9930_v37, %v12784_v41  ;;  %v13003_v25 = vld [vmem:[#allocation65_spill] sm:$0xff] }
 0xb29   : > { %4101 = vrot.lane.b32.xlu1 %v4096_v19, %s8003_s21  ;;  %v9966_v19 = vsel %vm271_vm3, %v8832_v44, %v9050_v43  ;;  %v2763_v44 = vsel %vm271_vm3, %v9396_v47, %v9424_v14  ;;  %v2766_v43 = vsel %vm271_vm3, %v9399_v59, %v9426_v62  ;;  %v12989_v59 = vld [vmem:[#allocation44_spill] sm:$0xff]  ;;  %v2987_v14 = vsel %vm273_vm4, %v2986_v7, %v12990_v45  ;;  %v12991_v62 = vld [vmem:[#allocation82_spill] sm:$0xff] }
 0xb2a   : > { %v2767_v60 = vsel %vm273_vm4, %v2766_v43, %v9432_v23  ;;  %v2764_v16 = vsel %vm273_vm4, %v2763_v44, %v12987_v55  ;;  %v12992_v23 = vld [vmem:[#allocation73_spill] sm:$0xff]  ;;  %v13002_v44 = vld [vmem:[#allocation54_spill] sm:$0xff]  ;;  %v13006_v55 = vld [vmem:[#allocation72_spill] sm:$0xff] }
 0xb2b   : > { %3945 = vperm.xlu0 %7959, %v3942_v42   ;;  %v10033_v47 = vsel %vm275_vm5, %v2764_v16, %v12988_v24  ;;  %v10037_v3 = vsel %vm275_vm5, %v2767_v60, %v12989_v59  ;;  %v3207_v61 = vsel %vm271_vm3, %v12992_v23, %v12991_v62  ;;  %v10052_v42 = vsel %vm271_vm3, %v12996_v48, %v12995_v38  ;;  %v13004_v60 = vld [vmem:[#allocation48_spill] sm:$0xff]  ;;  %v13012_v23 = vld [vmem:[#allocation61_spill] sm:$0xff] }
 0xb2c   : > { %v10072_v43 = vsel %vm275_vm5, %v2987_v14, %v13002_v44  ;;  %v3208_v6 = vsel %vm273_vm4, %v3207_v61, %v13005_v30  ;;  %v13008_v7 = vld [vmem:[#allocation68_spill] sm:$0xff]  ;;  %v13011_v14 = vld [vmem:[#allocation7_spill] sm:$0xff]  ;;  %v13020_v44 = vld [vmem:[#allocation17_spill] sm:$0xff] }
 0xb2d   : > { %4109 = vrot.lane.b32.xlu1 %v4097_v50, %s8002_s20  ;;  %v12997_v50 = vld [vmem:[#allocation59_spill] sm:$0xff]  ;;  %v13009_v24 = vld [vmem:[#allocation8_spill] sm:$0xff]  ;;  %v3655_v62 = vsel %vm273_vm4, %v3654_v18, %v13011_v14 }
 0xb2e   : > { %v2984_v9 = vsel %vm273_vm4, %v2983_v52, %v12997_v50  ;;  %v10077_v52 = vsel %vm271_vm3, %v13004_v60, %v13003_v25  ;;  %v13010_v59 = vld [vmem:[#allocation32_spill] sm:$0xff]  ;;  %v13021_v60 = vld [vmem:[#allocation2_spill] sm:$0xff] }
 0xb2f   : > { %4105 = vrot.lane.b32.xlu0 %v4079_v39, %s8001_s19  ;;  %v12994_v39 = vld [vmem:[#allocation33_spill] sm:$0xff]  ;;  %v10061_v49 = vsel %vm275_vm5, %v2984_v9, %v13000_v57  ;;  %v3651_v45 = vsel %vm271_vm3, %v13010_v59, %v13009_v24  ;;  %v13016_v50 = vld [vmem:[#allocation52_spill] sm:$0xff]  ;;  %v13026_v24 = vld [vmem:[#allocation6_spill] sm:$0xff] }
 0xb30   : > { %v10047_v2 = vsel %vm271_vm3, %v12994_v39, %v12993_v58  ;;  %v3430_v58 = vsel %vm271_vm3, %v13014_v27, %v13013_v31  ;;  %v13015_v39 = vld [vmem:[#allocation69_spill] sm:$0xff]  ;;  %v13017_v9 = vld [vmem:[#allocation60_spill] sm:$0xff]  ;;  %v3652_v25 = vsel %vm273_vm4, %v3651_v45, %v13020_v44  ;;  %v13027_v59 = vld [vmem:[#allocation3_spill] sm:$0xff] }
 0xb31   : > { %4117 = vrot.lane.b32.xlu1 %v4095_v4, %s8001_s19  ;;  %v12998_v4 = vld [vmem:[#allocation64_spill] sm:$0xff]  ;;  %v3428_v38 = vsel %vm273_vm4, %v3427_v0, %v13015_v39  ;;  %v13019_v57 = vld [vmem:[#allocation9_spill] sm:$0xff]  ;;  %v3656_v0 = vsel %vm275_vm5, %v3655_v62, %v13021_v60  ;;  %v13029_v27 = vld [vmem:[#allocation42_spill] sm:$0xff] }
 0xb32   : > { %v13022_v30 = vld [vmem:[#allocation4_spill] sm:$0xff]  ;;  %v13035_v60 = vld [vmem:[#allocation71_spill] sm:$0xff] }
 0xb33   : > { %4113 = vrot.lane.b32.xlu0 %v4098_v46, %s8003_s21  ;;  %v12999_v46 = vld [vmem:[#allocation78_spill] sm:$0xff] }
 0xb35   : > { %4134 = vrot.lane.b32.xlu1 %v9871_v63, %s8000_s18 }
 0xb37   : > { %4121 = vrot.lane.b32.xlu0 %v4099_v17, %s8002_s20  ;;  %v3210_v17 = vsel %vm271_vm3, %v12999_v46, %v12998_v4  ;;  %v3317_v4 = vsel %vm271_vm3, %v13017_v9, %v13016_v50  ;;  %v13018_v46 = vld [vmem:[#allocation57_spill] sm:$0xff] }
 0xb38   : > { %v3211_v28 = vsel %vm273_vm4, %v3210_v17, %v13001_v5  ;;  %v3429_v17 = vsel %vm275_vm5, %v3428_v38, %v13018_v46  ;;  %v3431_v5 = vsel %vm273_vm4, %v3430_v58, %v13019_v57  ;;  %v13030_v58 = vld [vmem:[#allocation41_spill] sm:$0xff]  ;;  %v13031_v38 = vld [vmem:[#allocation38_spill] sm:$0xff]  ;;  %v3916_v57 = vrot.slane %v3656_v0, 4 }
 0xb39   : > { %4138 = vrot.lane.b32.xlu1 %v9874_v51, %s8000_s18  ;;  %v10098_v61 = vsel %vm275_vm5, %v3211_v28, %v13012_v23  ;;  %v13028_v23 = vld [vmem:[#allocation28_spill] sm:$0xff]  ;;  %v13033_v9 = vld [vmem:[#allocation25_spill] sm:$0xff] }
 0xb3a   : > { %v3432_v31 = vsel %vm275_vm5, %v3431_v5, %v13028_v23  ;;  %v13040_v23 = vld [vmem:[#allocation56_spill] sm:$0xff] }
 0xb3b   : > { %4136 = vrot.lane.b32.xlu0 %v9877_v54, %s8000_s18 }
 0xb3f   : > { %4140 = vrot.lane.b32.xlu0 %v9880_v15, %s8000_s18 }
 0xb8f   : > { %v3853_v53 = vpop.permute.xlu1 %3852 }
 0xb91   : > { %v3849_v13 = vpop.permute.xlu0 %3848 }
 0xb92   : > { %v3871_v56 = vsel %vm271_vm3, %v9894_v36, %v3849_v13  ;;  %v13007_v36 = vld [vmem:[#allocation49_spill] sm:$0xff]  ;;  %v10089_v13 = vsel %vm275_vm5, %v3208_v6, %v13008_v7  ;;  %v13025_v7 = vld [vmem:[#allocation16_spill] sm:$0xff] }
 0xb93   : > { %v3861_v29 = vpop.permute.xlu1 %3860  ;;  %v3100_v16 = vsel %vm271_vm3, %v13007_v36, %v13006_v55  ;;  %v3872_v48 = vsel %vm273_vm4, %v3871_v56, %v3853_v53  ;;  %v13023_v53 = vld [vmem:[#allocation15_spill] sm:$0xff]  ;;  %v13024_v55 = vld [vmem:[#allocation30_spill] sm:$0xff] }
 0xb94   : > { %v3764_v56 = vsel %vm271_vm3, %v13023_v53, %v13022_v30  ;;  %v3874_v6 = vsel %vm271_vm3, %v9897_v12, %v3861_v29  ;;  %v3653_v36 = vsel %vm275_vm5, %v3652_v25, %v13024_v55  ;;  %v3544_v12 = vsel %vm271_vm3, %v13030_v58, %v13029_v27  ;;  %v13034_v25 = vld [vmem:[#allocation77_spill] sm:$0xff]  ;;  %v13036_v53 = vld [vmem:[#allocation19_spill] sm:$0xff]  ;;  %v13042_v58 = vld [vmem:[#allocation76_spill] sm:$0xff] }
 0xb95   : > { %v3857_v35 = vpop.permute.xlu0 %3856  ;;  %v3765_v45 = vsel %vm273_vm4, %v3764_v56, %v13027_v59  ;;  %v3545_v46 = vsel %vm273_vm4, %v3544_v12, %v13033_v9  ;;  %v3320_v5 = vsel %vm271_vm3, %v13035_v60, %v13034_v25  ;;  %v3915_v30 = vrot.slane %v3653_v36, 4  ;;  %v13041_v27 = vld [vmem:[#allocation39_spill] sm:$0xff]  ;;  %v13047_v60 = vld [vmem:[#allocation81_spill] sm:$0xff] }
 0xb96   : > { %v3873_v28 = vsel %vm275_vm5, %v3872_v48, %v3857_v35  ;;  %v3761_v35 = vsel %vm271_vm3, %v13026_v24, %v13025_v7  ;;  %v13032_v48 = vld [vmem:[#allocation70_spill] sm:$0xff]  ;;  %v3910_v7 = vrot.slane %v3432_v31, 4  ;;  %v3101_v31 = vsel %vm273_vm4, %v3100_v16, %v13042_v58 }
 0xb97   : > { %v3869_v14 = vpop.permute.xlu1 %3868  ;;  %v3921_v29 = vrot.slane %v3873_v28, 4  ;;  %v3541_v50 = vsel %vm271_vm3, %v13032_v48, %v13031_v38  ;;  %v3762_v56 = vsel %vm273_vm4, %v3761_v35, %v13036_v53  ;;  %v13037_v28 = vld [vmem:[#allocation5_spill] sm:$0xff]  ;;  %v13039_v24 = vld [vmem:[#allocation18_spill] sm:$0xff]  ;;  %v3904_v12 = vrot.slane %v10098_v61, 4 }
 0xb98   : > { %v3763_v59 = vsel %vm275_vm5, %v3762_v56, %v13039_v24  ;;  %v3542_v36 = vsel %vm273_vm4, %v3541_v50, %v13040_v23  ;;  %v3903_v48 = vrot.slane %v10089_v13, 4  ;;  %v13044_v50 = vld [vmem:[#allocation55_spill] sm:$0xff]  ;;  %v13046_v16 = vld [vmem:[#allocation14_spill] sm:$0xff]  ;;  %v3898_v25 = vrot.slane %v10072_v43, 4  ;;  %v13053_v24 = vld [vmem:[#allocation36_spill] sm:$0xff] }
 0xb99   : > { %v3865_v18 = vpop.permute.xlu0 %3864  ;;  %v3939_v35 = vsel %vm2001_vm6, %v3763_v59, %v3921_v29  ;;  %v3318_v9 = vsel %vm273_vm4, %v3317_v4, %v13044_v50  ;;  %v2877_v61 = vsel %vm273_vm4, %v10052_v42, %v13046_v16  ;;  %v3897_v4 = vrot.slane %v10061_v49, 4  ;;  %v13049_v56 = vld [vmem:[#allocation79_spill] sm:$0xff]  ;;  %v13057_v58 = vld [vmem:[#allocation46_spill] sm:$0xff]  ;;  %v13063_v16 = vld [vmem:[#allocation12_spill] sm:$0xff] }
 0xb9a   : > { %v3875_v62 = vsel %vm273_vm4, %v3874_v6, %v3865_v18  ;;  %v3766_v6 = vsel %vm275_vm5, %v3765_v45, %v13037_v28  ;;  %v13038_v18 = vld [vmem:[#allocation80_spill] sm:$0xff]  ;;  %v3546_v45 = vsel %vm275_vm5, %v3545_v46, %v13041_v27  ;;  %v13045_v46 = vld [vmem:[#allocation58_spill] sm:$0xff]  ;;  %v3102_v42 = vsel %vm275_vm5, %v3101_v31, %v13049_v56 }
 0xb9b   : > { %v3876_v39 = vsel %vm275_vm5, %v3875_v62, %v3869_v14  ;;  %v3321_v55 = vsel %vm273_vm4, %v3320_v5, %v13038_v18  ;;  %v10154_v14 = vpop.permute.xlu1 %4101  ;;  %v3909_v62 = vrot.slane %v3429_v17, 4  ;;  %v3938_v17 = vsel %vm2001_vm6, %v3546_v45, %v3916_v57  ;;  %v13048_v5 = vld [vmem:[#allocation63_spill] sm:$0xff]  ;;  %v13050_v28 = vld [vmem:[#allocation10_spill] sm:$0xff] }
 0xb9c   : > { %v3922_v44 = vrot.slane %v3876_v39, 4  ;;  %v13043_v39 = vld [vmem:[#allocation24_spill] sm:$0xff]  ;;  %v3319_v57 = vsel %vm275_vm5, %v3318_v9, %v13047_v60  ;;  %v2657_v43 = vsel %vm273_vm4, %v10024_v26, %v13050_v28  ;;  %v13051_v18 = vld [vmem:[#allocation74_spill] sm:$0xff]  ;;  %v3934_v49 = vsel %vm2001_vm6, %v3102_v42, %v3904_v12 }
 0xb9d   : > { %v3543_v38 = vsel %vm275_vm5, %v3542_v36, %v13043_v39  ;;  %v3935_v53 = vsel %vm2001_vm6, %v3319_v57, %v3909_v62  ;;  %v2874_v59 = vsel %vm273_vm4, %v10047_v2, %v13053_v24  ;;  %v13054_v26 = vld [vmem:[#allocation40_spill] sm:$0xff]  ;;  %v13055_v62 = vld [vmem:[#allocation22_spill] sm:$0xff]  ;;  %v3886_v36 = vrot.slane %v10011_v33, 4  ;;  %v13059_v39 = vld [vmem:[#allocation23_spill] sm:$0xff] }
 0xb9e   : > { %v3940_v0 = vsel %vm2001_vm6, %v3766_v6, %v3922_v44  ;;  %v3937_v29 = vsel %vm2001_vm6, %v3543_v38, %v3915_v30  ;;  %v3322_v44 = vsel %vm275_vm5, %v3321_v55, %v13045_v46  ;;  %v3098_v30 = vsel %vm273_vm4, %v10077_v52, %v13048_v5  ;;  %v13061_v9 = vld [vmem:[#allocation34_spill] sm:$0xff]  ;;  %v13066_v5 = vld [vmem:[#allocation20_spill] sm:$0xff] }
 0xb9f   : > { %3967 = vmatprep.subr.mxu1 %v3940_v0  ;;  %v3936_v13 = vsel %vm2001_vm6, %v3322_v44, %v3910_v7  ;;  %v3892_v6 = vrot.slane %v10037_v3, 4  ;;  %v3099_v55 = vsel %vm275_vm5, %v3098_v30, %v13051_v18  ;;  %v10194_v7 = vpop.permute.xlu1 %4109  ;;  %v3891_v52 = vrot.slane %v10033_v47, 4  ;;  %v13062_v44 = vld [vmem:[#allocation27_spill] sm:$0xff]  ;;  %v3941_v56 = vld [vmem:[%s12646_s1] sm:$0xff] }
 0xba0   : > { %3968 = vmatpush1.msra.mxu1 %v3939_v35  ;;  %13052 = vst [vmem:[#allocation43_spill] sm:$0xff] %v10194_v7  ;;  %v3933_v0 = vsel %vm2001_vm6, %v3099_v55, %v3903_v48  ;;  %v2878_v3 = vsel %vm275_vm5, %v2877_v61, %v13054_v26  ;;  %v2429_v23 = vsel %vm273_vm4, %v10003_v22, %v13055_v62  ;;  %v13056_v35 = vld [vmem:[#allocation45_spill] sm:$0xff]  ;;  %v3885_v45 = vrot.slane %v10007_v40, 4  ;;  %v13058_v22 = vld [vmem:[#allocation31_spill] sm:$0xff] }
 0xba1   : > { %3969 = vmatprep.subr.mxu1 %v3938_v17  ;;  %v2875_v27 = vsel %vm275_vm5, %v2874_v59, %v13056_v35  ;;  %v3932_v2 = vsel %vm2001_vm6, %v2878_v3, %v3898_v25  ;;  %v2654_v31 = vsel %vm273_vm4, %v10019_v1, %v13057_v58  ;;  %v2658_v33 = vsel %vm275_vm5, %v2657_v43, %v13058_v22  ;;  %v13060_v48 = vld [vmem:[#allocation29_spill] sm:$0xff] }
 0xba2   : > { %3970 = vmatpush1.msra.mxu1 %v3937_v29  ;;  %v3931_v12 = vsel %vm2001_vm6, %v2875_v27, %v3897_v4  ;;  %v2205_v38 = vsel %vm273_vm4, %v9975_v34, %v13059_v39  ;;  %v3880_v17 = vrot.slane %v9989_v10, 4  ;;  %v2655_v50 = vsel %vm275_vm5, %v2654_v31, %v13060_v48 }
 0xba3   : > { %3971 = vmatprep.subr.mxu1 %v3936_v13  ;;  %v3930_v40 = vsel %vm2001_vm6, %v2658_v33, %v3892_v6  ;;  %v3879_v1 = vrot.slane %v9979_v20, 4  ;;  %v2426_v29 = vsel %vm273_vm4, %v9994_v32, %v13061_v9  ;;  %v3929_v46 = vsel %vm2001_vm6, %v2655_v50, %v3891_v52  ;;  %v10238_v60 = vpop.permute.xlu1 %4117  ;;  %v13064_v20 = vld [vmem:[#allocation11_spill] sm:$0xff]  ;;  %v13065_v13 = vld [vmem:[#allocation21_spill] sm:$0xff] }
 0xba4   : > { %3972 = vmatpush1.msra.mxu1 %v3935_v53  ;;  %v2430_v34 = vsel %vm275_vm5, %v2429_v23, %v13062_v44  ;;  %v2427_v10 = vsel %vm275_vm5, %v2426_v29, %v13063_v16  ;;  %v2202_v32 = vsel %vm273_vm4, %v9966_v19, %v13064_v20  ;;  %v2206_v4 = vsel %vm275_vm5, %v2205_v38, %v13065_v13 }
 0xba5   : > { %3973 = vmatprep.subr.mxu1 %v3934_v49  ;;  %v3928_v25 = vsel %vm2001_vm6, %v2430_v34, %v3886_v36  ;;  %v3927_v57 = vsel %vm2001_vm6, %v2427_v10, %v3885_v45  ;;  %v2203_v30 = vsel %vm275_vm5, %v2202_v32, %v13066_v5  ;;  %v3926_v53 = vsel %vm2001_vm6, %v2206_v4, %v3880_v17 }
 0xba6   : > { %3974 = vmatpush1.msra.mxu1 %v3933_v0  ;;  %v10209_v47 = vpop.permute.xlu0 %3945  ;;  %v3925_v42 = vsel %vm2001_vm6, %v2203_v30, %v3879_v1 }
 0xba7   : > { %3975 = vmatprep.subr.mxu1 %v3932_v2  ;;  %v4135_v28 = vpop.permute.xlu1 %4134 }
 0xba8   : > { %3976 = vmatpush1.msra.mxu1 %v3931_v12 }
 0xba9   : > { %3977 = vmatprep.subr.mxu1 %v3930_v40 }
 0xbaa   : > { %3978 = vmatpush1.msra.mxu1 %v3929_v46  ;;  %v10235_v61 = vpop.permute.xlu0 %4105 }
 0xbab   : > { %3979 = vmatprep.subr.mxu1 %v3928_v25  ;;  %v4139_v6 = vpop.permute.xlu1 %4138 }
 0xbac   : > { %3980 = vmatpush1.msra.mxu1 %v3927_v57  ;;  %v4146_v55 = vcombine.low %v4135_v28, %v4139_v6  ;;  %v4147_v49 = vcombine.high %v4135_v28, %v4139_v6 }
 0xbad   : > { %3981 = vmatprep.subr.mxu1 %v3926_v53 }
 0xbae   : > { %3982 = vmatpush1.msra.mxu1 %v3925_v42  ;;  %v10253_v19 = vpop.permute.xlu0 %4113  ;;  %v4154_v0 = vrot.slane %v4146_v55, %v8045_v8  ;;  %v4161_v26 = vrot.slane %v4147_v49, %v8045_v8 }
 0xbaf   : > { %7934 = vmatmul.mubr.msk.f32.vlgmr.msra.gmra.mxu1 %vm273_vm4, %v3941_v56 }
 0xbb0   : > { %7861 = vmatprep.mubr.f32.mxu1 %v12784_v41 }
 0xbb2   : > { %v10257_v43 = vpop.permute.xlu0 %4121 }
 0xbb3   : > { %13067 = vst [vmem:[#allocation35_spill] sm:$0xff] %v10257_v43 }
 0xbb6   : > { %v4137_v18 = vpop.permute.xlu0 %4136 }
 0xbba   : > { %v4141_v52 = vpop.permute.xlu0 %4140 }
 0xbbb   : > { %v4162_v24 = vcombine.low %v4137_v18, %v4141_v52  ;;  %v4163_v59 = vcombine.high %v4137_v18, %v4141_v52 }
 0xbbd   : > { %v4170_v3 = vrot.slane %v4162_v24, %v8045_v8  ;;  %v4177_v62 = vrot.slane %v4163_v59, %v8045_v8 }
 0xbbf   : > { %v4178_v23 = vcombine.low %v4154_v0, %v4170_v3  ;;  %v4179_v36 = vcombine.high %v4154_v0, %v4170_v3  ;;  %v4194_v35 = vcombine.low %v4161_v26, %v4177_v62  ;;  %v4195_v27 = vcombine.high %v4161_v26, %v4177_v62 }
 0xbc1   : > { %v4193_v2 = vrot.slane %v4179_v36, %v8074_v21  ;;  %v10265_v45 = vrot.slane %v4178_v23, %v8074_v21  ;;  %v10268_v58 = vrot.slane %v4194_v35, %v8074_v21  ;;  %v4209_v22 = vrot.slane %v4195_v27, %v8074_v21  ;;  %v10350_v27 = vld [vmem:[%s8043_s17 + $0x18] sm:$0x7] }
 0xbc3   : > { %4219 = vrot.lane.b32.xlu0 %v4193_v2, %s8001_s19  ;;  %v4210_v31 = vcombine.high %v10265_v45, %v12784_v41  ;;  %v4212_v12 = vcombine.high %v10268_v58, %v12784_v41  ;;  %v4211_v33 = vcombine.high %v4193_v2, %v12784_v41  ;;  %v4213_v39 = vcombine.high %v4209_v22, %v12784_v41  ;;  %v10353_v2 = vld [vmem:[%s8043_s17 + $0x40] sm:$0x7] }
 0xbc5   : > { %4215 = vrot.lane.b32.xlu1 %v4210_v31, %s8003_s21 }
 0xbc7   : > { %4227 = vrot.lane.b32.xlu0 %v4212_v12, %s8003_s21  ;;  %v10358_v12 = vld [vmem:[%s8043_s17 + $0x68] sm:$0x7] }
 0xbc9   : > { %4223 = vrot.lane.b32.xlu1 %v4211_v33, %s8002_s20  ;;  %v4468_v33 = vrot.slane %v9871_v63, 1 }
 0xbcb   : > { %4235 = vrot.lane.b32.xlu0 %v4213_v39, %s8002_s20  ;;  %v4469_v39 = vrot.slane %v10350_v27, 1 }
 0xbcd   : > { %4231 = vrot.lane.b32.xlu1 %v4209_v22, %s8001_s19 }
 0xbcf   : > { %4246 = vrot.lane.b32.xlu0 %v9877_v54, %s8004_s22 }
 0xbd1   : > { %4244 = vrot.lane.b32.xlu1 %v9871_v63, %s8004_s22 }
 0xbd3   : > { %4250 = vrot.lane.b32.xlu0 %v9880_v15, %s8004_s22 }
 0xbd5   : > { %4248 = vrot.lane.b32.xlu1 %v9874_v51, %s8004_s22 }
 0xc35   : > { %v10291_v38 = vpop.permute.xlu0 %4219 }
 0xc37   : > { %v10293_v17 = vpop.permute.xlu1 %4215 }
 0xc39   : > { %v10295_v48 = vpop.permute.xlu0 %4227 }
 0xc3b   : > { %v10297_v50 = vpop.permute.xlu1 %4223 }
 0xc3c   : > { %13068 = vst [vmem:[#allocation26_spill] sm:$0xff] %v10297_v50 }
 0xc3d   : > { %v10299_v40 = vpop.permute.xlu0 %4235 }
 0xc3e   : > { %13069 = vst [vmem:[#allocation47_spill] sm:$0xff] %v10299_v40 }
 0xc3f   : > { %v10301_v1 = vpop.permute.xlu1 %4231 }
 0xc41   : > { %v4247_v9 = vpop.permute.xlu0 %4246 }
 0xc43   : > { %v4245_v29 = vpop.permute.xlu1 %4244 }
 0xc45   : > { %v4251_v46 = vpop.permute.xlu0 %4250 }
 0xc46   : > { %v4272_v44 = vcombine.low %v4247_v9, %v4251_v46  ;;  %v4273_v34 = vcombine.high %v4247_v9, %v4251_v46  ;;  %v4471_v9 = vrot.slane %v9877_v54, 1  ;;  %v4474_v46 = vrot.slane %v9874_v51, 1 }
 0xc47   : > { %v4249_v16 = vpop.permute.xlu1 %4248 }
 0xc48   : > { %v4256_v10 = vcombine.low %v4245_v29, %v4249_v16  ;;  %v4257_v25 = vcombine.high %v4245_v29, %v4249_v16  ;;  %v4280_v20 = vrot.slane %v4272_v44, %v8045_v8  ;;  %v4287_v32 = vrot.slane %v4273_v34, %v8045_v8 }
 0xc49   : > { %v4472_v29 = vrot.slane %v10353_v2, 1  ;;  %v4475_v44 = vrot.slane %v10358_v12, 1  ;;  %v4477_v34 = vrot.slane %v9880_v15, 1 }
 0xc4a   : > { %v4264_v57 = vrot.slane %v4256_v10, %v8045_v8  ;;  %v4271_v13 = vrot.slane %v4257_v25, %v8045_v8 }
 0xc4c   : > { %v4288_v4 = vcombine.low %v4264_v57, %v4280_v20  ;;  %v4289_v5 = vcombine.high %v4264_v57, %v4280_v20  ;;  %v4304_v30 = vcombine.low %v4271_v13, %v4287_v32  ;;  %v4305_v53 = vcombine.high %v4271_v13, %v4287_v32 }
 0xc4d   : > { %v10372_v20 = vsel %vm618_vm0, %v4468_v33, %v4469_v39  ;;  %v10375_v32 = vsel %vm618_vm0, %v4471_v9, %v4472_v29 }
 0xc4e   : > { %v4303_v56 = vrot.slane %v4289_v5, %v8074_v21  ;;  %v10309_v42 = vrot.slane %v4288_v4, %v8074_v21  ;;  %v10312_v28 = vrot.slane %v4304_v30, %v8074_v21  ;;  %v4319_v55 = vrot.slane %v4305_v53, %v8074_v21 }
 0xc4f   : > { %v10378_v4 = vsel %vm618_vm0, %v4474_v46, %v4475_v44 }
 0xc50   : > { %13070 = vst [vmem:[#allocation44_spill] sm:$0xff] %v10309_v42  ;;  %13071 = vst [vmem:[#allocation51_spill] sm:$0xff] %v10312_v28  ;;  %4329 = vrot.lane.b32.xlu0 %v4303_v56, %s8001_s19  ;;  %v4320_v6 = vcombine.high %v10309_v42, %v12784_v41  ;;  %v4322_v18 = vcombine.high %v10312_v28, %v12784_v41  ;;  %v4321_v49 = vcombine.high %v4303_v56, %v12784_v41 }
 0xc51   : > { %v4323_v52 = vcombine.high %v4319_v55, %v12784_v41 }
 0xc52   : > { %4325 = vrot.lane.b32.xlu1 %v4320_v6, %s8003_s21  ;;  %v4484_v6 = vcombine.low %v10372_v20, %v10378_v4 }
 0xc54   : > { %4337 = vrot.lane.b32.xlu0 %v4322_v18, %s8003_s21  ;;  %v4492_v39 = vrot.slane %v4484_v6, %v8045_v8 }
 0xc56   : > { %4333 = vrot.lane.b32.xlu1 %v4321_v49, %s8002_s20 }
 0xc58   : > { %4345 = vrot.lane.b32.xlu0 %v4323_v52, %s8002_s20 }
 0xc5a   : > { %4341 = vrot.lane.b32.xlu1 %v4319_v55, %s8001_s19 }
 0xc5c   : > { %4356 = vrot.lane.b32.xlu0 %v9877_v54, %s8005_s23 }
 0xc5e   : > { %4354 = vrot.lane.b32.xlu1 %v9871_v63, %s8005_s23 }
 0xc60   : > { %4360 = vrot.lane.b32.xlu0 %v9880_v15, %s8005_s23 }
 0xc62   : > { %4358 = vrot.lane.b32.xlu1 %v9874_v51, %s8005_s23 }
 0xc6f   : > { %v4017_v24 = vpop.f32.mrf.mxu1 }
 0xc70   : > { %v4018_v59 = vadd.f32 %v4017_v24, %v10209_v47 }
 0xc71   : > { %v4019_v0 = vpop.f32.mrf.mxu1 }
 0xc72   : > { %4022 = vst [vmem:[%s9252_s4 + $0x10] sm:$0xff] %v4018_v59  ;;  %v4020_v26 = vadd.f32 %v4019_v0, %v10209_v47  ;;  %v10361_v47 = vld [vmem:[%s8043_s17 + $0x90] sm:$0x7]  ;;  %v4485_v59 = vcombine.high %v10372_v20, %v10378_v4 }
 0xc73   : > { %v4478_v16 = vrot.slane %v10361_v47, 1 }
 0xc74   : > { %4023 = vst [vmem:[%s9252_s4 + $0x18] sm:$0xff] %v4020_v26 }
 0xc75   : > { %v10381_v5 = vsel %vm618_vm0, %v4477_v34, %v4478_v16 }
 0xc76   : > { %v4500_v18 = vcombine.low %v10375_v32, %v10381_v5  ;;  %v4501_v33 = vcombine.high %v10375_v32, %v10381_v5 }
 0xc78   : > { %v4508_v9 = vrot.slane %v4500_v18, %v8045_v8 }
 0xcc2   : > { %v10339_v3 = vpop.permute.xlu0 %4329 }
 0xcc3   : > { %13072 = vst [vmem:[#allocation82_spill] sm:$0xff] %v10339_v3 }
 0xcc4   : > { %v10341_v62 = vpop.permute.xlu1 %4325 }
 0xcc5   : > { %13073 = vst [vmem:[#allocation73_spill] sm:$0xff] %v10341_v62 }
 0xcc6   : > { %v10343_v23 = vpop.permute.xlu0 %4337 }
 0xcc7   : > { %13074 = vst [vmem:[#allocation37_spill] sm:$0xff] %v10343_v23 }
 0xcc8   : > { %v10345_v36 = vpop.permute.xlu1 %4333 }
 0xcc9   : > { %13075 = vst [vmem:[#allocation33_spill] sm:$0xff] %v10345_v36 }
 0xcca   : > { %v10347_v35 = vpop.permute.xlu0 %4345 }
 0xccb   : > { %13076 = vst [vmem:[#allocation13_spill] sm:$0xff] %v10347_v35 }
 0xccc   : > { %v10355_v31 = vpop.permute.xlu1 %4341 }
 0xccd   : > { %13077 = vst [vmem:[#allocation50_spill] sm:$0xff] %v10355_v31 }
 0xcce   : > { %v4357_v22 = vpop.permute.xlu0 %4356 }
 0xcd0   : > { %v4355_v10 = vpop.permute.xlu1 %4354 }
 0xcd2   : > { %v4361_v25 = vpop.permute.xlu0 %4360 }
 0xcd3   : > { %v4382_v57 = vcombine.low %v4357_v22, %v4361_v25  ;;  %v4383_v13 = vcombine.high %v4357_v22, %v4361_v25  ;;  %v4515_v25 = vrot.slane %v4501_v33, %v8045_v8 }
 0xcd4   : > { %v4359_v30 = vpop.permute.xlu1 %4358 }
 0xcd5   : > { %v4366_v53 = vcombine.low %v4355_v10, %v4359_v30  ;;  %v4367_v56 = vcombine.high %v4355_v10, %v4359_v30  ;;  %v4390_v55 = vrot.slane %v4382_v57, %v8045_v8  ;;  %v4397_v49 = vrot.slane %v4383_v13, %v8045_v8 }
 0xcd6   : > { %v4499_v10 = vrot.slane %v4485_v59, %v8045_v8  ;;  %v4516_v30 = vcombine.low %v4492_v39, %v4508_v9 }
 0xcd7   : > { %v4374_v52 = vrot.slane %v4366_v53, %v8045_v8  ;;  %v4381_v24 = vrot.slane %v4367_v56, %v8045_v8  ;;  %v4517_v56 = vcombine.high %v4492_v39, %v4508_v9 }
 0xcd8   : > { %v4532_v6 = vcombine.low %v4499_v10, %v4515_v25 }
 0xcd9   : > { %v4398_v0 = vcombine.low %v4374_v52, %v4390_v55  ;;  %v4399_v26 = vcombine.high %v4374_v52, %v4390_v55  ;;  %v4414_v22 = vcombine.low %v4381_v24, %v4397_v49  ;;  %v4415_v29 = vcombine.high %v4381_v24, %v4397_v49 }
 0xcda   : > { %v10418_v55 = vrot.slane %v4516_v30, %v8074_v21  ;;  %v4531_v49 = vrot.slane %v4517_v56, %v8074_v21  ;;  %v10423_v52 = vrot.slane %v4532_v6, %v8074_v21  ;;  %v4533_v24 = vcombine.high %v4499_v10, %v4515_v25 }
 0xcdb   : > { %v4413_v46 = vrot.slane %v4399_v26, %v8074_v21  ;;  %v10399_v44 = vrot.slane %v4398_v0, %v8074_v21  ;;  %v10402_v34 = vrot.slane %v4414_v22, %v8074_v21  ;;  %v4429_v13 = vrot.slane %v4415_v29, %v8074_v21 }
 0xcdc   : > { %13080 = vst [vmem:[#allocation78_spill] sm:$0xff] %v10418_v55  ;;  %13081 = vst [vmem:[#allocation62_spill] sm:$0xff] %v10423_v52  ;;  %v4548_v59 = vcombine.high %v10418_v55, %v12784_v41  ;;  %v4550_v0 = vcombine.high %v10423_v52, %v12784_v41  ;;  %v4547_v26 = vrot.slane %v4533_v24, %v8074_v21 }
 0xcdd   : > { %13078 = vst [vmem:[#allocation59_spill] sm:$0xff] %v10399_v44  ;;  %13079 = vst [vmem:[#allocation64_spill] sm:$0xff] %v10402_v34  ;;  %4439 = vrot.lane.b32.xlu0 %v4413_v46, %s8001_s19  ;;  %v4430_v16 = vcombine.high %v10399_v44, %v12784_v41  ;;  %v4432_v57 = vcombine.high %v10402_v34, %v12784_v41  ;;  %v4431_v53 = vcombine.high %v4413_v46, %v12784_v41 }
 0xcde   : > { %v4433_v18 = vcombine.high %v4429_v13, %v12784_v41  ;;  %v4549_v22 = vcombine.high %v4531_v49, %v12784_v41  ;;  %v4551_v33 = vcombine.high %v4547_v26, %v12784_v41 }
 0xcdf   : > { %4435 = vrot.lane.b32.xlu1 %v4430_v16, %s8003_s21 }
 0xce1   : > { %4447 = vrot.lane.b32.xlu0 %v4432_v57, %s8003_s21 }
 0xce3   : > { %4443 = vrot.lane.b32.xlu1 %v4431_v53, %s8002_s20 }
 0xce5   : > { %4455 = vrot.lane.b32.xlu0 %v4433_v18, %s8002_s20 }
 0xce7   : > { %4451 = vrot.lane.b32.xlu1 %v4429_v13, %s8001_s19 }
 0xce9   : > { %4557 = vrot.lane.b32.xlu0 %v4531_v49, %s8001_s19 }
 0xceb   : > { %4553 = vrot.lane.b32.xlu1 %v4548_v59, %s8003_s21 }
 0xced   : > { %4565 = vrot.lane.b32.xlu0 %v4550_v0, %s8003_s21 }
 0xcef   : > { %4561 = vrot.lane.b32.xlu1 %v4549_v22, %s8002_s20 }
 0xcf1   : > { %4573 = vrot.lane.b32.xlu0 %v4551_v33, %s8002_s20 }
 0xcf3   : > { %4569 = vrot.lane.b32.xlu1 %v4547_v26, %s8001_s19 }
 0xcf5   : > { %4584 = vrot.lane.b32.xlu0 %v10375_v32, %s8000_s18 }
 0xcf7   : > { %4582 = vrot.lane.b32.xlu1 %v10372_v20, %s8000_s18 }
 0xcf9   : > { %4588 = vrot.lane.b32.xlu0 %v10381_v5, %s8000_s18 }
 0xcfb   : > { %4586 = vrot.lane.b32.xlu1 %v10378_v4, %s8000_s18 }
 0xd4f   : > { %v10447_v39 = vpop.permute.xlu0 %4439 }
 0xd50   : > { %13082 = vst [vmem:[#allocation67_spill] sm:$0xff] %v10447_v39 }
 0xd51   : > { %v10449_v9 = vpop.permute.xlu1 %4435 }
 0xd52   : > { %13083 = vst [vmem:[#allocation54_spill] sm:$0xff] %v10449_v9 }
 0xd53   : > { %v10451_v29 = vpop.permute.xlu0 %4447 }
 0xd54   : > { %13084 = vst [vmem:[#allocation65_spill] sm:$0xff] %v10451_v29 }
 0xd55   : > { %v10453_v46 = vpop.permute.xlu1 %4443 }
 0xd56   : > { %13085 = vst [vmem:[#allocation48_spill] sm:$0xff] %v10453_v46 }
 0xd57   : > { %v10455_v16 = vpop.permute.xlu0 %4455 }
 0xd58   : > { %13086 = vst [vmem:[#allocation75_spill] sm:$0xff] %v10455_v16 }
 0xd59   : > { %v10457_v10 = vpop.permute.xlu1 %4451 }
 0xd5a   : > { %13087 = vst [vmem:[#allocation72_spill] sm:$0xff] %v10457_v10 }
 0xd5b   : > { %v10459_v25 = vpop.permute.xlu0 %4557 }
 0xd5c   : > { %13088 = vst [vmem:[#allocation49_spill] sm:$0xff] %v10459_v25 }
 0xd5d   : > { %v10461_v57 = vpop.permute.xlu1 %4553 }
 0xd5e   : > { %13089 = vst [vmem:[#allocation68_spill] sm:$0xff] %v10461_v57 }
 0xd5f   : > { %v10463_v13 = vpop.permute.xlu0 %4565 }
 0xd60   : > { %13090 = vst [vmem:[#allocation8_spill] sm:$0xff] %v10463_v13 }
 0xd61   : > { %v10465_v30 = vpop.permute.xlu1 %4561 }
 0xd62   : > { %13091 = vst [vmem:[#allocation32_spill] sm:$0xff] %v10465_v30 }
 0xd63   : > { %v10467_v53 = vpop.permute.xlu0 %4573 }
 0xd64   : > { %13092 = vst [vmem:[#allocation7_spill] sm:$0xff] %v10467_v53 }
 0xd65   : > { %v10469_v56 = vpop.permute.xlu1 %4569 }
 0xd66   : > { %13093 = vst [vmem:[#allocation61_spill] sm:$0xff] %v10469_v56 }
 0xd67   : > { %v4585_v6 = vpop.permute.xlu0 %4584 }
 0xd69   : > { %v4583_v18 = vpop.permute.xlu1 %4582 }
 0xd6b   : > { %v4589_v49 = vpop.permute.xlu0 %4588 }
 0xd6c   : > { %v4610_v24 = vcombine.low %v4585_v6, %v4589_v49  ;;  %v4611_v59 = vcombine.high %v4585_v6, %v4589_v49 }
 0xd6d   : > { %v4587_v0 = vpop.permute.xlu1 %4586 }
 0xd6e   : > { %v4594_v26 = vcombine.low %v4583_v18, %v4587_v0  ;;  %v4595_v22 = vcombine.high %v4583_v18, %v4587_v0  ;;  %v4618_v33 = vrot.slane %v4610_v24, %v8045_v8  ;;  %v4625_v7 = vrot.slane %v4611_v59, %v8045_v8 }
 0xd70   : > { %v4602_v25 = vrot.slane %v4594_v26, %v8045_v8  ;;  %v4609_v30 = vrot.slane %v4595_v22, %v8045_v8 }
 0xd72   : > { %v4626_v52 = vcombine.low %v4602_v25, %v4618_v33  ;;  %v4627_v53 = vcombine.high %v4602_v25, %v4618_v33  ;;  %v4642_v13 = vcombine.low %v4609_v30, %v4625_v7  ;;  %v4643_v56 = vcombine.high %v4609_v30, %v4625_v7 }
 0xd74   : > { %v4641_v16 = vrot.slane %v4627_v53, %v8074_v21  ;;  %v10477_v46 = vrot.slane %v4626_v52, %v8074_v21  ;;  %v10480_v6 = vrot.slane %v4642_v13, %v8074_v21  ;;  %v4657_v7 = vrot.slane %v4643_v56, %v8074_v21 }
 0xd76   : > { %13094 = vst [vmem:[#allocation53_spill] sm:$0xff] %v10477_v46  ;;  %13095 = vst [vmem:[#allocation66_spill] sm:$0xff] %v10480_v6  ;;  %4667 = vrot.lane.b32.xlu0 %v4641_v16, %s8001_s19  ;;  %v4658_v18 = vcombine.high %v10477_v46, %v12784_v41  ;;  %v4660_v25 = vcombine.high %v10480_v6, %v12784_v41  ;;  %v4659_v52 = vcombine.high %v4641_v16, %v12784_v41 }
 0xd77   : > { %v4661_v13 = vcombine.high %v4657_v7, %v12784_v41 }
 0xd78   : > { %4663 = vrot.lane.b32.xlu1 %v4658_v18, %s8003_s21 }
 0xd7a   : > { %4675 = vrot.lane.b32.xlu0 %v4660_v25, %s8003_s21 }
 0xd7c   : > { %4671 = vrot.lane.b32.xlu1 %v4659_v52, %s8002_s20 }
 0xd7e   : > { %4683 = vrot.lane.b32.xlu0 %v4661_v13, %s8002_s20 }
 0xd80   : > { %4679 = vrot.lane.b32.xlu1 %v4657_v7, %s8001_s19 }
 0xd82   : > { %4694 = vrot.lane.b32.xlu0 %v10375_v32, %s8004_s22 }
 0xd84   : > { %4692 = vrot.lane.b32.xlu1 %v10372_v20, %s8004_s22 }
 0xd86   : > { %4698 = vrot.lane.b32.xlu0 %v10381_v5, %s8004_s22 }
 0xd88   : > { %4696 = vrot.lane.b32.xlu1 %v10378_v4, %s8004_s22 }
 0xde8   : > { %v10503_v16 = vpop.permute.xlu0 %4667 }
 0xde9   : > { %13096 = vst [vmem:[#allocation69_spill] sm:$0xff] %v10503_v16 }
 0xdea   : > { %v10505_v30 = vpop.permute.xlu1 %4663 }
 0xdeb   : > { %13097 = vst [vmem:[#allocation52_spill] sm:$0xff] %v10505_v30 }
 0xdec   : > { %v10507_v53 = vpop.permute.xlu0 %4675 }
 0xded   : > { %13098 = vst [vmem:[#allocation60_spill] sm:$0xff] %v10507_v53 }
 0xdee   : > { %v10509_v56 = vpop.permute.xlu1 %4671 }
 0xdef   : > { %13099 = vst [vmem:[#allocation57_spill] sm:$0xff] %v10509_v56 }
 0xdf0   : > { %v10511_v49 = vpop.permute.xlu0 %4683 }
 0xdf1   : > { %13100 = vst [vmem:[#allocation9_spill] sm:$0xff] %v10511_v49 }
 0xdf2   : > { %v10513_v24 = vpop.permute.xlu1 %4679 }
 0xdf3   : > { %13101 = vst [vmem:[#allocation17_spill] sm:$0xff] %v10513_v24 }
 0xdf4   : > { %v4695_v59 = vpop.permute.xlu0 %4694 }
 0xdf6   : > { %v4693_v0 = vpop.permute.xlu1 %4692 }
 0xdf8   : > { %v4699_v26 = vpop.permute.xlu0 %4698 }
 0xdf9   : > { %v4720_v22 = vcombine.low %v4695_v59, %v4699_v26  ;;  %v4721_v33 = vcombine.high %v4695_v59, %v4699_v26 }
 0xdfa   : > { %v4697_v18 = vpop.permute.xlu1 %4696 }
 0xdfb   : > { %v4704_v25 = vcombine.low %v4693_v0, %v4697_v18  ;;  %v4705_v7 = vcombine.high %v4693_v0, %v4697_v18  ;;  %v4728_v52 = vrot.slane %v4720_v22, %v8045_v8  ;;  %v4735_v13 = vrot.slane %v4721_v33, %v8045_v8 }
 0xdfc   : > { %v4915_v18 = vrot.slane %v9877_v54, 2 }
 0xdfd   : > { %v4712_v6 = vrot.slane %v4704_v25, %v8045_v8  ;;  %v4719_v56 = vrot.slane %v4705_v7, %v8045_v8  ;;  %v4918_v25 = vrot.slane %v9874_v51, 2  ;;  %v4919_v7 = vrot.slane %v10358_v12, 2 }
 0xdff   : > { %v4736_v53 = vcombine.low %v4712_v6, %v4728_v52  ;;  %v4737_v49 = vcombine.high %v4712_v6, %v4728_v52  ;;  %v4752_v16 = vcombine.low %v4719_v56, %v4735_v13  ;;  %v4753_v24 = vcombine.high %v4719_v56, %v4735_v13 }
 0xe00   : > { %v4921_v52 = vrot.slane %v9880_v15, 2  ;;  %v4922_v13 = vrot.slane %v10361_v47, 2 }
 0xe01   : > { %v4751_v35 = vrot.slane %v4737_v49, %v8074_v21  ;;  %v10521_v39 = vrot.slane %v4736_v53, %v8074_v21  ;;  %v10524_v59 = vrot.slane %v4752_v16, %v8074_v21  ;;  %v4767_v56 = vrot.slane %v4753_v24, %v8074_v21 }
 0xe02   : > { %v10577_v51 = vsel %vm1063_vm1, %v4921_v52, %v4922_v13 }
 0xe03   : > { %13102 = vst [vmem:[#allocation2_spill] sm:$0xff] %v10521_v39  ;;  %13103 = vst [vmem:[#allocation4_spill] sm:$0xff] %v10524_v59  ;;  %4777 = vrot.lane.b32.xlu0 %v4751_v35, %s8001_s19  ;;  %v4768_v0 = vcombine.high %v10521_v39, %v12784_v41  ;;  %v4770_v6 = vcombine.high %v10524_v59, %v12784_v41  ;;  %v4769_v53 = vcombine.high %v4751_v35, %v12784_v41 }
 0xe04   : > { %v4771_v16 = vcombine.high %v4767_v56, %v12784_v41 }
 0xe05   : > { %4773 = vrot.lane.b32.xlu1 %v4768_v0, %s8003_s21 }
 0xe07   : > { %4785 = vrot.lane.b32.xlu0 %v4770_v6, %s8003_s21 }
 0xe09   : > { %4781 = vrot.lane.b32.xlu1 %v4769_v53, %s8002_s20 }
 0xe0b   : > { %4793 = vrot.lane.b32.xlu0 %v4771_v16, %s8002_s20  ;;  %v10574_v16 = vsel %vm1063_vm1, %v4918_v25, %v4919_v7 }
 0xe0d   : > { %4789 = vrot.lane.b32.xlu1 %v4767_v56, %s8001_s19 }
 0xe0f   : > { %4804 = vrot.lane.b32.xlu0 %v10375_v32, %s8005_s23 }
 0xe11   : > { %4802 = vrot.lane.b32.xlu1 %v10372_v20, %s8005_s23  ;;  %v4912_v20 = vrot.slane %v9871_v63, 2 }
 0xe13   : > { %4808 = vrot.lane.b32.xlu0 %v10381_v5, %s8005_s23  ;;  %v4913_v5 = vrot.slane %v10350_v27, 2 }
 0xe15   : > { %4806 = vrot.lane.b32.xlu1 %v10378_v4, %s8005_s23  ;;  %v4916_v4 = vrot.slane %v10353_v2, 2  ;;  %v10568_v56 = vsel %vm1063_vm1, %v4912_v20, %v4913_v5 }
 0xe16   : > { %v4929_v25 = vcombine.high %v10568_v56, %v10574_v16 }
 0xe17   : > { %v10571_v63 = vsel %vm1063_vm1, %v4915_v18, %v4916_v4 }
 0xe18   : > { %v4944_v20 = vcombine.low %v10571_v63, %v10577_v51  ;;  %v4945_v13 = vcombine.high %v10571_v63, %v10577_v51 }
 0xe75   : > { %v10547_v35 = vpop.permute.xlu0 %4777 }
 0xe76   : > { %13104 = vst [vmem:[#allocation15_spill] sm:$0xff] %v10547_v35  ;;  %v4928_v35 = vcombine.low %v10568_v56, %v10574_v16 }
 0xe77   : > { %v10549_v49 = vpop.permute.xlu1 %4773 }
 0xe78   : > { %13105 = vst [vmem:[#allocation30_spill] sm:$0xff] %v10549_v49 }
 0xe79   : > { %v10551_v24 = vpop.permute.xlu0 %4785 }
 0xe7a   : > { %13106 = vst [vmem:[#allocation16_spill] sm:$0xff] %v10551_v24 }
 0xe7b   : > { %v10553_v26 = vpop.permute.xlu1 %4781 }
 0xe7c   : > { %13107 = vst [vmem:[#allocation6_spill] sm:$0xff] %v10553_v26 }
 0xe7d   : > { %v10555_v22 = vpop.permute.xlu0 %4793 }
 0xe7e   : > { %13108 = vst [vmem:[#allocation3_spill] sm:$0xff] %v10555_v22 }
 0xe7f   : > { %v10557_v32 = vpop.permute.xlu1 %4789 }
 0xe80   : > { %13109 = vst [vmem:[#allocation28_spill] sm:$0xff] %v10557_v32 }
 0xe81   : > { %v4805_v33 = vpop.permute.xlu0 %4804 }
 0xe83   : > { %v4803_v0 = vpop.permute.xlu1 %4802 }
 0xe85   : > { %v4809_v6 = vpop.permute.xlu0 %4808 }
 0xe86   : > { %v4830_v53 = vcombine.low %v4805_v33, %v4809_v6  ;;  %v4831_v54 = vcombine.high %v4805_v33, %v4809_v6  ;;  %v4952_v6 = vrot.slane %v4944_v20, %v8045_v8 }
 0xe87   : > { %v4807_v26 = vpop.permute.xlu1 %4806 }
 0xe88   : > { %v4814_v15 = vcombine.low %v4803_v0, %v4807_v26  ;;  %v4815_v22 = vcombine.high %v4803_v0, %v4807_v26  ;;  %v4838_v5 = vrot.slane %v4830_v53, %v8045_v8  ;;  %v4845_v18 = vrot.slane %v4831_v54, %v8045_v8 }
 0xe89   : > { %v4936_v0 = vrot.slane %v4928_v35, %v8045_v8  ;;  %v4959_v35 = vrot.slane %v4945_v13, %v8045_v8 }
 0xe8a   : > { %v4822_v33 = vrot.slane %v4814_v15, %v8045_v8  ;;  %v4829_v4 = vrot.slane %v4815_v22, %v8045_v8 }
 0xe8c   : > { %v4846_v7 = vcombine.low %v4822_v33, %v4838_v5  ;;  %v4847_v52 = vcombine.high %v4822_v33, %v4838_v5  ;;  %v4862_v26 = vcombine.low %v4829_v4, %v4845_v18  ;;  %v4863_v53 = vcombine.high %v4829_v4, %v4845_v18 }
 0xe8d   : > { %v4943_v33 = vrot.slane %v4929_v25, %v8045_v8  ;;  %v4960_v4 = vcombine.low %v4936_v0, %v4952_v6 }
 0xe8e   : > { %v4861_v54 = vrot.slane %v4847_v52, %v8074_v21  ;;  %v10595_v15 = vrot.slane %v4846_v7, %v8074_v21  ;;  %v10598_v22 = vrot.slane %v4862_v26, %v8074_v21  ;;  %v4877_v18 = vrot.slane %v4863_v53, %v8074_v21 }
 0xe8f   : > { %v4961_v52 = vcombine.high %v4936_v0, %v4952_v6  ;;  %v4976_v26 = vcombine.low %v4943_v33, %v4959_v35  ;;  %v10614_v13 = vrot.slane %v4960_v4, %v8074_v21 }
 0xe90   : > { %13110 = vst [vmem:[#allocation42_spill] sm:$0xff] %v10595_v15  ;;  %13111 = vst [vmem:[#allocation41_spill] sm:$0xff] %v10598_v22  ;;  %4887 = vrot.lane.b32.xlu0 %v4861_v54, %s8001_s19  ;;  %v4878_v5 = vcombine.high %v10595_v15, %v12784_v41  ;;  %v4880_v20 = vcombine.high %v10598_v22, %v12784_v41  ;;  %v4879_v7 = vcombine.high %v4861_v54, %v12784_v41 }
 0xe91   : > { %v4881_v25 = vcombine.high %v4877_v18, %v12784_v41  ;;  %13112 = vst [vmem:[#allocation38_spill] sm:$0xff] %v10614_v13  ;;  %v10619_v53 = vrot.slane %v4976_v26, %v8074_v21  ;;  %v4977_v15 = vcombine.high %v4943_v33, %v4959_v35  ;;  %v4992_v0 = vcombine.high %v10614_v13, %v12784_v41 }
 0xe92   : > { %4883 = vrot.lane.b32.xlu1 %v4878_v5, %s8003_s21  ;;  %v4975_v5 = vrot.slane %v4961_v52, %v8074_v21 }
 0xe93   : > { %13113 = vst [vmem:[#allocation70_spill] sm:$0xff] %v10619_v53  ;;  %v4994_v6 = vcombine.high %v10619_v53, %v12784_v41  ;;  %v4991_v54 = vrot.slane %v4977_v15, %v8074_v21 }
 0xe94   : > { %4895 = vrot.lane.b32.xlu0 %v4880_v20, %s8003_s21  ;;  %v4993_v20 = vcombine.high %v4975_v5, %v12784_v41 }
 0xe95   : > { %v4995_v33 = vcombine.high %v4991_v54, %v12784_v41 }
 0xe96   : > { %4891 = vrot.lane.b32.xlu1 %v4879_v7, %s8002_s20 }
 0xe98   : > { %4903 = vrot.lane.b32.xlu0 %v4881_v25, %s8002_s20 }
 0xe9a   : > { %4899 = vrot.lane.b32.xlu1 %v4877_v18, %s8001_s19 }
 0xe9c   : > { %5001 = vrot.lane.b32.xlu0 %v4975_v5, %s8001_s19 }
 0xe9e   : > { %4997 = vrot.lane.b32.xlu1 %v4992_v0, %s8003_s21 }
 0xea0   : > { %5009 = vrot.lane.b32.xlu0 %v4994_v6, %s8003_s21 }
 0xea2   : > { %5005 = vrot.lane.b32.xlu1 %v4993_v20, %s8002_s20 }
 0xea4   : > { %5017 = vrot.lane.b32.xlu0 %v4995_v33, %s8002_s20 }
 0xea6   : > { %5013 = vrot.lane.b32.xlu1 %v4991_v54, %s8001_s19 }
 0xea8   : > { %5028 = vrot.lane.b32.xlu0 %v10571_v63, %s8000_s18 }
 0xeaa   : > { %5026 = vrot.lane.b32.xlu1 %v10568_v56, %s8000_s18 }
 0xeac   : > { %5032 = vrot.lane.b32.xlu0 %v10577_v51, %s8000_s18 }
 0xeae   : > { %5030 = vrot.lane.b32.xlu1 %v10574_v16, %s8000_s18 }
 0xf02   : > { %v10643_v15 = vpop.permute.xlu0 %4887 }
 0xf03   : > { %13114 = vst [vmem:[#allocation25_spill] sm:$0xff] %v10643_v15 }
 0xf04   : > { %v10645_v35 = vpop.permute.xlu1 %4883 }
 0xf05   : > { %13115 = vst [vmem:[#allocation77_spill] sm:$0xff] %v10645_v35 }
 0xf06   : > { %v10647_v18 = vpop.permute.xlu0 %4895 }
 0xf07   : > { %13116 = vst [vmem:[#allocation71_spill] sm:$0xff] %v10647_v18 }
 0xf08   : > { %v10649_v4 = vpop.permute.xlu1 %4891 }
 0xf09   : > { %13117 = vst [vmem:[#allocation19_spill] sm:$0xff] %v10649_v4 }
 0xf0a   : > { %v10651_v7 = vpop.permute.xlu0 %4903 }
 0xf0b   : > { %13118 = vst [vmem:[#allocation5_spill] sm:$0xff] %v10651_v7 }
 0xf0c   : > { %v10653_v52 = vpop.permute.xlu1 %4899 }
 0xf0d   : > { %13119 = vst [vmem:[#allocation80_spill] sm:$0xff] %v10653_v52 }
 0xf0e   : > { %v10655_v26 = vpop.permute.xlu0 %5001 }
 0xf0f   : > { %13120 = vst [vmem:[#allocation18_spill] sm:$0xff] %v10655_v26 }
 0xf10   : > { %v10657_v25 = vpop.permute.xlu1 %4997 }
 0xf11   : > { %13121 = vst [vmem:[#allocation56_spill] sm:$0xff] %v10657_v25 }
 0xf12   : > { %v10659_v5 = vpop.permute.xlu0 %5009 }
 0xf13   : > { %13122 = vst [vmem:[#allocation39_spill] sm:$0xff] %v10659_v5 }
 0xf14   : > { %v10661_v0 = vpop.permute.xlu1 %5005 }
 0xf15   : > { %13123 = vst [vmem:[#allocation76_spill] sm:$0xff] %v10661_v0 }
 0xf16   : > { %v10663_v6 = vpop.permute.xlu0 %5017 }
 0xf17   : > { %13124 = vst [vmem:[#allocation24_spill] sm:$0xff] %v10663_v6 }
 0xf18   : > { %v10665_v54 = vpop.permute.xlu1 %5013 }
 0xf19   : > { %13125 = vst [vmem:[#allocation55_spill] sm:$0xff] %v10665_v54 }
 0xf1a   : > { %v5029_v20 = vpop.permute.xlu0 %5028 }
 0xf1c   : > { %v5027_v33 = vpop.permute.xlu1 %5026 }
 0xf1e   : > { %v5033_v53 = vpop.permute.xlu0 %5032 }
 0xf1f   : > { %v5054_v13 = vcombine.low %v5029_v20, %v5033_v53  ;;  %v5055_v4 = vcombine.high %v5029_v20, %v5033_v53 }
 0xf20   : > { %v5031_v15 = vpop.permute.xlu1 %5030 }
 0xf21   : > { %v5038_v7 = vcombine.low %v5027_v33, %v5031_v15  ;;  %v5039_v52 = vcombine.high %v5027_v33, %v5031_v15  ;;  %v5062_v26 = vrot.slane %v5054_v13, %v8045_v8  ;;  %v5069_v25 = vrot.slane %v5055_v4, %v8045_v8 }
 0xf23   : > { %v5046_v5 = vrot.slane %v5038_v7, %v8045_v8  ;;  %v5053_v0 = vrot.slane %v5039_v52, %v8045_v8 }
 0xf25   : > { %v5070_v35 = vcombine.low %v5046_v5, %v5062_v26  ;;  %v5071_v6 = vcombine.high %v5046_v5, %v5062_v26  ;;  %v5086_v32 = vcombine.low %v5053_v0, %v5069_v25  ;;  %v5087_v54 = vcombine.high %v5053_v0, %v5069_v25 }
 0xf27   : > { %v5085_v39 = vrot.slane %v5071_v6, %v8074_v21  ;;  %v10673_v49 = vrot.slane %v5070_v35, %v8074_v21  ;;  %v10676_v53 = vrot.slane %v5086_v32, %v8074_v21  ;;  %v5101_v4 = vrot.slane %v5087_v54, %v8074_v21 }
 0xf29   : > { %13126 = vst [vmem:[#allocation58_spill] sm:$0xff] %v10673_v49  ;;  %13127 = vst [vmem:[#allocation14_spill] sm:$0xff] %v10676_v53  ;;  %5111 = vrot.lane.b32.xlu0 %v5085_v39, %s8001_s19  ;;  %v5102_v13 = vcombine.high %v10673_v49, %v12784_v41  ;;  %v5104_v15 = vcombine.high %v10676_v53, %v12784_v41  ;;  %v5103_v35 = vcombine.high %v5085_v39, %v12784_v41 }
 0xf2a   : > { %v5105_v32 = vcombine.high %v5101_v4, %v12784_v41 }
 0xf2b   : > { %5107 = vrot.lane.b32.xlu1 %v5102_v13, %s8003_s21 }
 0xf2d   : > { %5119 = vrot.lane.b32.xlu0 %v5104_v15, %s8003_s21 }
 0xf2f   : > { %5115 = vrot.lane.b32.xlu1 %v5103_v35, %s8002_s20 }
 0xf31   : > { %5127 = vrot.lane.b32.xlu0 %v5105_v32, %s8002_s20 }
 0xf33   : > { %5123 = vrot.lane.b32.xlu1 %v5101_v4, %s8001_s19 }
 0xf35   : > { %5138 = vrot.lane.b32.xlu0 %v10571_v63, %s8004_s22 }
 0xf37   : > { %5136 = vrot.lane.b32.xlu1 %v10568_v56, %s8004_s22 }
 0xf39   : > { %5142 = vrot.lane.b32.xlu0 %v10577_v51, %s8004_s22 }
 0xf3b   : > { %5140 = vrot.lane.b32.xlu1 %v10574_v16, %s8004_s22 }
 0xf9b   : > { %v10699_v39 = vpop.permute.xlu0 %5111 }
 0xf9c   : > { %13128 = vst [vmem:[#allocation81_spill] sm:$0xff] %v10699_v39 }
 0xf9d   : > { %v10701_v7 = vpop.permute.xlu1 %5107 }
 0xf9e   : > { %13129 = vst [vmem:[#allocation63_spill] sm:$0xff] %v10701_v7 }
 0xf9f   : > { %v10703_v52 = vpop.permute.xlu0 %5119 }
 0xfa0   : > { %13130 = vst [vmem:[#allocation79_spill] sm:$0xff] %v10703_v52 }
 0xfa1   : > { %v10705_v26 = vpop.permute.xlu1 %5115 }
 0xfa2   : > { %13131 = vst [vmem:[#allocation10_spill] sm:$0xff] %v10705_v26 }
 0xfa3   : > { %v10707_v25 = vpop.permute.xlu0 %5127 }
 0xfa4   : > { %13132 = vst [vmem:[#allocation74_spill] sm:$0xff] %v10707_v25 }
 0xfa5   : > { %v10709_v5 = vpop.permute.xlu1 %5123 }
 0xfa6   : > { %13133 = vst [vmem:[#allocation36_spill] sm:$0xff] %v10709_v5 }
 0xfa7   : > { %v5139_v0 = vpop.permute.xlu0 %5138 }
 0xfa9   : > { %v5137_v6 = vpop.permute.xlu1 %5136 }
 0xfab   : > { %v5143_v54 = vpop.permute.xlu0 %5142 }
 0xfac   : > { %v5164_v20 = vcombine.low %v5139_v0, %v5143_v54  ;;  %v5165_v33 = vcombine.high %v5139_v0, %v5143_v54 }
 0xfad   : > { %v5141_v13 = vpop.permute.xlu1 %5140 }
 0xfae   : > { %v5148_v15 = vcombine.low %v5137_v6, %v5141_v13  ;;  %v5149_v4 = vcombine.high %v5137_v6, %v5141_v13  ;;  %v5172_v35 = vrot.slane %v5164_v20, %v8045_v8  ;;  %v5179_v32 = vrot.slane %v5165_v33, %v8045_v8  ;;  %v7981_v33 = vld [vmem:[%s8043_s17 + $0x10] sm:$0xff] }
 0xfaf   : > { %v5356_v13 = vrot.slane %v7981_v33, 3 }
 0xfb0   : > { %v5156_v39 = vrot.slane %v5148_v15, %v8045_v8  ;;  %v5163_v26 = vrot.slane %v5149_v4, %v8045_v8  ;;  %v7982_v15 = vld [vmem:[%s8043_s17 + $0x38] sm:$0xff]  ;;  %v5360_v4 = vrot.slane %v10353_v2, 3 }
 0xfb2   : > { %v5180_v53 = vcombine.low %v5156_v39, %v5172_v35  ;;  %v5181_v25 = vcombine.high %v5156_v39, %v5172_v35  ;;  %v5196_v52 = vcombine.low %v5163_v26, %v5179_v32  ;;  %v5197_v5 = vcombine.high %v5163_v26, %v5179_v32  ;;  %v7983_v35 = vld [vmem:[%s8043_s17 + $0x60] sm:$0xff] }
 0xfb3   : > { %v5362_v32 = vrot.slane %v7983_v35, 3 }
 0xfb4   : > { %v5195_v49 = vrot.slane %v5181_v25, %v8074_v21  ;;  %v10717_v7 = vrot.slane %v5180_v53, %v8074_v21  ;;  %v10720_v0 = vrot.slane %v5196_v52, %v8074_v21  ;;  %v5211_v26 = vrot.slane %v5197_v5, %v8074_v21 }
 0xfb6   : > { %13134 = vst [vmem:[#allocation40_spill] sm:$0xff] %v10717_v7  ;;  %13135 = vst [vmem:[#allocation22_spill] sm:$0xff] %v10720_v0  ;;  %5221 = vrot.lane.b32.xlu0 %v5195_v49, %s8001_s19  ;;  %v5212_v6 = vcombine.high %v10717_v7, %v12784_v41  ;;  %v5214_v39 = vcombine.high %v10720_v0, %v12784_v41  ;;  %v5213_v53 = vcombine.high %v5195_v49, %v12784_v41  ;;  %v10920_v7 = vld [vmem:[%s8043_s17 + $0x70] sm:$0x7] }
 0xfb7   : > { %v5215_v52 = vcombine.high %v5211_v26, %v12784_v41  ;;  %v7286_v22 = vrot.slane %v10920_v7, 3 }
 0xfb8   : > { %5217 = vrot.lane.b32.xlu1 %v5212_v6, %s8003_s21  ;;  %v5363_v6 = vrot.slane %v10358_v12, 3 }
 0xfba   : > { %5229 = vrot.lane.b32.xlu0 %v5214_v39, %s8003_s21  ;;  %v7984_v39 = vld [vmem:[%s8043_s17 + $0x88] sm:$0xff]  ;;  %v10770_v2 = vsel %vm1508_vm2, %v5362_v32, %v5363_v6 }
 0xfbc   : > { %5225 = vrot.lane.b32.xlu1 %v5213_v53, %s8002_s20  ;;  %v5366_v53 = vrot.slane %v10361_v47, 3 }
 0xfbe   : > { %5237 = vrot.lane.b32.xlu0 %v5215_v52, %s8002_s20 }
 0xfc0   : > { %5233 = vrot.lane.b32.xlu1 %v5211_v26, %s8001_s19  ;;  %v5365_v26 = vrot.slane %v7984_v39, 3 }
 0xfc2   : > { %5248 = vrot.lane.b32.xlu0 %v10571_v63, %s8005_s23  ;;  %v10773_v35 = vsel %vm1508_vm2, %v5365_v26, %v5366_v53 }
 0xfc4   : > { %5246 = vrot.lane.b32.xlu1 %v10568_v56, %s8005_s23 }
 0xfc6   : > { %5252 = vrot.lane.b32.xlu0 %v10577_v51, %s8005_s23  ;;  %v5357_v51 = vrot.slane %v10350_v27, 3 }
 0xfc8   : > { %5250 = vrot.lane.b32.xlu1 %v10574_v16, %s8005_s23  ;;  %v5359_v16 = vrot.slane %v7982_v15, 3 }
 0xfca   : > { %v10767_v33 = vsel %vm1508_vm2, %v5359_v16, %v5360_v4 }
 0xfcb   : > { %v5389_v53 = vcombine.high %v10767_v33, %v10773_v35 }
0x1028   : > { %v10743_v49 = vpop.permute.xlu0 %5221 }
0x1029   : > { %13136 = vst [vmem:[#allocation45_spill] sm:$0xff] %v10743_v49 }
0x102a   : > { %v10745_v25 = vpop.permute.xlu1 %5217 }
0x102b   : > { %13137 = vst [vmem:[#allocation46_spill] sm:$0xff] %v10745_v25 }
0x102c   : > { %v10747_v5 = vpop.permute.xlu0 %5229 }
0x102d   : > { %13138 = vst [vmem:[#allocation31_spill] sm:$0xff] %v10747_v5  ;;  %v10917_v5 = vld [vmem:[%s8043_s17 + $0x68] sm:$0xff] }
0x102e   : > { %v10749_v54 = vpop.permute.xlu1 %5225  ;;  %v6397_v59 = vrot.slane %v10917_v5, 1 }
0x102f   : > { %13139 = vst [vmem:[#allocation23_spill] sm:$0xff] %v10749_v54 }
0x1030   : > { %v10751_v63 = vpop.permute.xlu0 %5237 }
0x1031   : > { %13140 = vst [vmem:[#allocation29_spill] sm:$0xff] %v10751_v63  ;;  %v10764_v63 = vsel %vm1508_vm2, %v5356_v13, %v5357_v51  ;;  %v5388_v13 = vcombine.low %v10767_v33, %v10773_v35 }
0x1032   : > { %v10753_v20 = vpop.permute.xlu1 %5233  ;;  %v5372_v47 = vcombine.low %v10764_v63, %v10770_v2  ;;  %v5373_v4 = vcombine.high %v10764_v63, %v10770_v2 }
0x1033   : > { %13141 = vst [vmem:[#allocation34_spill] sm:$0xff] %v10753_v20  ;;  %v10907_v20 = vld [vmem:[%s8043_s17 + $0x90] sm:$0xff] }
0x1034   : > { %v5249_v56 = vpop.permute.xlu0 %5248 }
0x1036   : > { %v5247_v52 = vpop.permute.xlu1 %5246 }
0x1038   : > { %v5253_v54 = vpop.permute.xlu0 %5252 }
0x1039   : > { %v5274_v27 = vcombine.low %v5249_v56, %v5253_v54  ;;  %v5275_v15 = vcombine.high %v5249_v56, %v5253_v54 }
0x103a   : > { %v5251_v12 = vpop.permute.xlu1 %5250 }
0x103b   : > { %v5258_v39 = vcombine.low %v5247_v52, %v5251_v12  ;;  %v5259_v49 = vcombine.high %v5247_v52, %v5251_v12  ;;  %v5282_v51 = vrot.slane %v5274_v27, %v8045_v8  ;;  %v5289_v16 = vrot.slane %v5275_v15, %v8045_v8 }
0x103c   : > { %v5380_v52 = vrot.slane %v5372_v47, %v8045_v8  ;;  %v5396_v12 = vrot.slane %v5388_v13, %v8045_v8  ;;  %v5403_v47 = vrot.slane %v5389_v53, %v8045_v8 }
0x103d   : > { %v5266_v54 = vrot.slane %v5258_v39, %v8045_v8  ;;  %v5273_v56 = vrot.slane %v5259_v49, %v8045_v8 }
0x103f   : > { %v5290_v32 = vcombine.low %v5266_v54, %v5282_v51  ;;  %v5291_v6 = vcombine.high %v5266_v54, %v5282_v51  ;;  %v5306_v26 = vcombine.low %v5273_v56, %v5289_v16  ;;  %v5307_v27 = vcombine.high %v5273_v56, %v5289_v16 }
0x1040   : > { %v5387_v54 = vrot.slane %v5373_v4, %v8045_v8  ;;  %v5404_v56 = vcombine.low %v5380_v52, %v5396_v12 }
0x1041   : > { %v5305_v15 = vrot.slane %v5291_v6, %v8074_v21  ;;  %v10791_v39 = vrot.slane %v5290_v32, %v8074_v21  ;;  %v10794_v49 = vrot.slane %v5306_v26, %v8074_v21  ;;  %v5321_v16 = vrot.slane %v5307_v27, %v8074_v21 }
0x1042   : > { %v5405_v6 = vcombine.high %v5380_v52, %v5396_v12  ;;  %v5420_v26 = vcombine.low %v5387_v54, %v5403_v47  ;;  %v10810_v53 = vrot.slane %v5404_v56, %v8074_v21 }
0x1043   : > { %13142 = vst [vmem:[#allocation27_spill] sm:$0xff] %v10791_v39  ;;  %13143 = vst [vmem:[#allocation12_spill] sm:$0xff] %v10794_v49  ;;  %5331 = vrot.lane.b32.xlu0 %v5305_v15, %s8001_s19  ;;  %v5322_v51 = vcombine.high %v10791_v39, %v12784_v41  ;;  %v5324_v13 = vcombine.high %v10794_v49, %v12784_v41  ;;  %v5323_v32 = vcombine.high %v5305_v15, %v12784_v41 }
0x1044   : > { %v5325_v4 = vcombine.high %v5321_v16, %v12784_v41  ;;  %13144 = vst [vmem:[#allocation11_spill] sm:$0xff] %v10810_v53  ;;  %v10815_v27 = vrot.slane %v5420_v26, %v8074_v21  ;;  %v5421_v49 = vcombine.high %v5387_v54, %v5403_v47  ;;  %v5436_v52 = vcombine.high %v10810_v53, %v12784_v41 }
0x1045   : > { %5327 = vrot.lane.b32.xlu1 %v5322_v51, %s8003_s21  ;;  %v5419_v51 = vrot.slane %v5405_v6, %v8074_v21 }
0x1046   : > { %13145 = vst [vmem:[#allocation21_spill] sm:$0xff] %v10815_v27  ;;  %v5438_v12 = vcombine.high %v10815_v27, %v12784_v41  ;;  %v5435_v15 = vrot.slane %v5421_v49, %v8074_v21 }
0x1047   : > { %5339 = vrot.lane.b32.xlu0 %v5324_v13, %s8003_s21  ;;  %v5437_v13 = vcombine.high %v5419_v51, %v12784_v41 }
0x1048   : > { %v5439_v54 = vcombine.high %v5435_v15, %v12784_v41 }
0x1049   : > { %5335 = vrot.lane.b32.xlu1 %v5323_v32, %s8002_s20 }
0x104b   : > { %5347 = vrot.lane.b32.xlu0 %v5325_v4, %s8002_s20 }
0x104d   : > { %5343 = vrot.lane.b32.xlu1 %v5321_v16, %s8001_s19 }
0x104f   : > { %5445 = vrot.lane.b32.xlu0 %v5419_v51, %s8001_s19 }
0x1051   : > { %5441 = vrot.lane.b32.xlu1 %v5436_v52, %s8003_s21 }
0x1053   : > { %5453 = vrot.lane.b32.xlu0 %v5438_v12, %s8003_s21 }
0x1055   : > { %5449 = vrot.lane.b32.xlu1 %v5437_v13, %s8002_s20 }
0x1057   : > { %5461 = vrot.lane.b32.xlu0 %v5439_v54, %s8002_s20 }
0x1059   : > { %5457 = vrot.lane.b32.xlu1 %v5435_v15, %s8001_s19 }
0x105b   : > { %5472 = vrot.lane.b32.xlu0 %v10767_v33, %s8000_s18 }
0x105d   : > { %5470 = vrot.lane.b32.xlu1 %v10764_v63, %s8000_s18 }
0x105f   : > { %5476 = vrot.lane.b32.xlu0 %v10773_v35, %s8000_s18 }
0x1061   : > { %5474 = vrot.lane.b32.xlu1 %v10770_v2, %s8000_s18 }
0x10b5   : > { %v10839_v49 = vpop.permute.xlu0 %5331 }
0x10b6   : > { %13146 = vst [vmem:[#allocation20_spill] sm:$0xff] %v10839_v49 }
0x10b7   : > { %v10841_v47 = vpop.permute.xlu1 %5327 }
0x10b8   : > { %13147 = vst [vmem:[#allocation83_spill] sm:$0xff] %v10841_v47  ;;  %v7285_v47 = vrot.slane %v10917_v5, 3 }
0x10b9   : > { %v10843_v16 = vpop.permute.xlu0 %5339 }
0x10ba   : > { %13148 = vst [vmem:[#allocation84_spill] sm:$0xff] %v10843_v16 }
0x10bb   : > { %v10845_v56 = vpop.permute.xlu1 %5335 }
0x10bc   : > { %13149 = vst [vmem:[#allocation85_spill] sm:$0xff] %v10845_v56  ;;  %v7288_v56 = vrot.slane %v10907_v20, 3 }
0x10bd   : > { %v10847_v32 = vpop.permute.xlu0 %5347 }
0x10be   : > { %13150 = vst [vmem:[#allocation86_spill] sm:$0xff] %v10847_v32 }
0x10bf   : > { %v10849_v6 = vpop.permute.xlu1 %5343 }
0x10c0   : > { %13151 = vst [vmem:[#allocation87_spill] sm:$0xff] %v10849_v6 }
0x10c1   : > { %v10851_v26 = vpop.permute.xlu0 %5445 }
0x10c2   : > { %13152 = vst [vmem:[#allocation88_spill] sm:$0xff] %v10851_v26 }
0x10c3   : > { %v10853_v4 = vpop.permute.xlu1 %5441 }
0x10c4   : > { %13153 = vst [vmem:[#allocation89_spill] sm:$0xff] %v10853_v4 }
0x10c5   : > { %v10855_v51 = vpop.permute.xlu0 %5453 }
0x10c6   : > { %13154 = vst [vmem:[#allocation90_spill] sm:$0xff] %v10855_v51 }
0x10c7   : > { %v10857_v52 = vpop.permute.xlu1 %5449 }
0x10c8   : > { %13155 = vst [vmem:[#allocation91_spill] sm:$0xff] %v10857_v52 }
0x10c9   : > { %v10859_v12 = vpop.permute.xlu0 %5461 }
0x10ca   : > { %13156 = vst [vmem:[#allocation92_spill] sm:$0xff] %v10859_v12 }
0x10cb   : > { %v10861_v15 = vpop.permute.xlu1 %5457 }
0x10cc   : > { %13157 = vst [vmem:[#allocation93_spill] sm:$0xff] %v10861_v15 }
0x10cd   : > { %v10863_v13 = vpop.permute.xlu0 %5472 }
0x10cf   : > { %v10865_v54 = vpop.permute.xlu1 %5470 }
0x10d1   : > { %v10867_v53 = vpop.permute.xlu0 %5476 }
0x10d2   : > { %v5498_v26 = vcombine.low %v10863_v13, %v10867_v53 }
0x10d3   : > { %v10871_v4 = vpop.permute.xlu1 %5474 }
0x10d4   : > { %v5482_v52 = vcombine.low %v10865_v54, %v10871_v4  ;;  %v5506_v12 = vrot.slane %v5498_v26, %v8045_v8  ;;  %v10889_v26 = vld [vmem:[%s8043_s17 + $0x40] sm:$0xff] }
0x10d6   : > { %v5490_v15 = vrot.slane %v5482_v52, %v8045_v8  ;;  %v10892_v52 = vld [vmem:[%s8043_s17 + $0x48] sm:$0x7] }
0x10d8   : > { %v5514_v32 = vcombine.low %v5490_v15, %v5506_v12  ;;  %v5515_v27 = vcombine.high %v5490_v15, %v5506_v12  ;;  %v7282_v12 = vrot.slane %v10889_v26, 3  ;;  %v7283_v15 = vrot.slane %v10892_v52, 3 }
0x10da   : > { %v10878_v51 = vrot.slane %v5515_v27, %v8074_v21  ;;  %v10881_v6 = vrot.slane %v5514_v32, %v8074_v21  ;;  %v10897_v27 = vld [vmem:[%s8043_s17 + $0x18] sm:$0xff]  ;;  %v10900_v32 = vld [vmem:[%s8043_s17 + $0x20] sm:$0x7]  ;;  %v10923_v25 = vsel %vm1508_vm2, %v7282_v12, %v7283_v15  ;;  %v10942_v15 = vsel %vm1508_vm2, %v7285_v47, %v7286_v22 }
0x10db   : > { %v7280_v0 = vrot.slane %v10900_v32, 3  ;;  %v6838_v22 = vrot.slane %v10889_v26, 2 }
0x10dc   : > { %13158 = vst [vmem:[#allocation94_spill] sm:$0xff] %v10881_v6  ;;  %5555 = vrot.lane.b32.xlu0 %v10878_v51, %s8001_s19  ;;  %v5546_v16 = vcombine.high %v10881_v6, %v12784_v41  ;;  %v7279_v6 = vrot.slane %v10897_v27, 3 }
0x10de   : > { %5551 = vrot.lane.b32.xlu1 %v5546_v16, %s8003_s21  ;;  %v10910_v16 = vld [vmem:[%s8043_s17 + $0x98] sm:$0x7]  ;;  %v10930_v39 = vsel %vm1508_vm2, %v7279_v6, %v7280_v0  ;;  %v6839_v0 = vrot.slane %v10892_v52, 2  ;;  %v6842_v6 = vrot.slane %v10920_v7, 2 }
0x10df   : > { %v7289_v49 = vrot.slane %v10910_v16, 3  ;;  %v6401_v18 = vrot.slane %v10910_v16, 1 }
0x10e0   : > { %5692 = vrot.lane.b32.xlu0 %v10767_v33, %s8005_s23 }
0x10e1   : > { %v10937_v12 = vsel %vm1508_vm2, %v7288_v56, %v7289_v49  ;;  %v6845_v49 = vrot.slane %v10910_v16, 2  ;;  %v6841_v56 = vrot.slane %v10917_v5, 2 }
0x10e2   : > { %5690 = vrot.lane.b32.xlu1 %v10764_v63, %s8005_s23 }
0x10e4   : > { %5696 = vrot.lane.b32.xlu0 %v10773_v35, %s8005_s23 }
0x10e6   : > { %5694 = vrot.lane.b32.xlu1 %v10770_v2, %s8005_s23 }
0x10e8   : > { %7615 = vrot.lane.b32.xlu0 %v10923_v25, %s8005_s23 }
0x10ea   : > { %7613 = vrot.lane.b32.xlu1 %v10930_v39, %s8005_s23 }
0x10ec   : > { %7619 = vrot.lane.b32.xlu0 %v10937_v12, %s8005_s23 }
0x10ee   : > { %7617 = vrot.lane.b32.xlu1 %v10942_v15, %s8005_s23 }
0x10f0   : > { %5582 = vrot.lane.b32.xlu0 %v10767_v33, %s8004_s22  ;;  %v6836_v33 = vrot.slane %v10900_v32, 2 }
0x10f2   : > { %5580 = vrot.lane.b32.xlu1 %v10764_v63, %s8004_s22  ;;  %v6835_v63 = vrot.slane %v10897_v27, 2 }
0x10f4   : > { %5586 = vrot.lane.b32.xlu0 %v10773_v35, %s8004_s22  ;;  %v6844_v35 = vrot.slane %v10907_v20, 2  ;;  %v10982_v47 = vsel %vm1063_vm1, %v6835_v63, %v6836_v33  ;;  %v6394_v63 = vrot.slane %v10889_v26, 1  ;;  %v6395_v33 = vrot.slane %v10892_v52, 1 }
0x10f6   : > { %5584 = vrot.lane.b32.xlu1 %v10770_v2, %s8004_s22  ;;  %v10975_v2 = vsel %vm1063_vm1, %v6838_v22, %v6839_v0  ;;  %v10989_v22 = vsel %vm1063_vm1, %v6844_v35, %v6845_v49  ;;  %v10994_v0 = vsel %vm1063_vm1, %v6841_v56, %v6842_v6  ;;  %v6391_v35 = vrot.slane %v10897_v27, 1 }
0x10f7   : > { %v6392_v49 = vrot.slane %v10900_v32, 1  ;;  %v11019_v56 = vsel %vm618_vm0, %v6394_v63, %v6395_v33  ;;  %v6400_v6 = vrot.slane %v10907_v20, 1  ;;  %v6398_v32 = vrot.slane %v10920_v7, 1 }
0x10f8   : > { %7395 = vrot.lane.b32.xlu0 %v10923_v25, %s8000_s18 }
0x10f9   : > { %v11026_v52 = vsel %vm618_vm0, %v6391_v35, %v6392_v49  ;;  %v11033_v63 = vsel %vm618_vm0, %v6400_v6, %v6401_v18  ;;  %v11038_v16 = vsel %vm618_vm0, %v6397_v59, %v6398_v32 }
0x10fa   : > { %7393 = vrot.lane.b32.xlu1 %v10930_v39, %s8000_s18 }
0x10fc   : > { %7399 = vrot.lane.b32.xlu0 %v10937_v12, %s8000_s18 }
0x10fe   : > { %7397 = vrot.lane.b32.xlu1 %v10942_v15, %s8000_s18 }
0x1100   : > { %7505 = vrot.lane.b32.xlu0 %v10923_v25, %s8004_s22 }
0x1102   : > { %7503 = vrot.lane.b32.xlu1 %v10930_v39, %s8004_s22 }
0x1104   : > { %7509 = vrot.lane.b32.xlu0 %v10937_v12, %s8004_s22 }
0x1106   : > { %7507 = vrot.lane.b32.xlu1 %v10942_v15, %s8004_s22 }
0x1108   : > { %7171 = vrot.lane.b32.xlu0 %v10975_v2, %s8005_s23 }
0x110a   : > { %7169 = vrot.lane.b32.xlu1 %v10982_v47, %s8005_s23 }
0x110c   : > { %7175 = vrot.lane.b32.xlu0 %v10989_v22, %s8005_s23 }
0x110e   : > { %7173 = vrot.lane.b32.xlu1 %v10994_v0, %s8005_s23 }
0x1110   : > { %6951 = vrot.lane.b32.xlu0 %v10975_v2, %s8000_s18 }
0x1112   : > { %6949 = vrot.lane.b32.xlu1 %v10982_v47, %s8000_s18 }
0x1114   : > { %6955 = vrot.lane.b32.xlu0 %v10989_v22, %s8000_s18 }
0x1116   : > { %6953 = vrot.lane.b32.xlu1 %v10994_v0, %s8000_s18 }
0x1118   : > { %7061 = vrot.lane.b32.xlu0 %v10975_v2, %s8004_s22 }
0x111a   : > { %7059 = vrot.lane.b32.xlu1 %v10982_v47, %s8004_s22 }
0x111c   : > { %7065 = vrot.lane.b32.xlu0 %v10989_v22, %s8004_s22 }
0x111e   : > { %7063 = vrot.lane.b32.xlu1 %v10994_v0, %s8004_s22 }
0x1120   : > { %6727 = vrot.lane.b32.xlu0 %v11019_v56, %s8005_s23 }
0x1122   : > { %6725 = vrot.lane.b32.xlu1 %v11026_v52, %s8005_s23 }
0x1124   : > { %6731 = vrot.lane.b32.xlu0 %v11033_v63, %s8005_s23 }
0x1126   : > { %6729 = vrot.lane.b32.xlu1 %v11038_v16, %s8005_s23 }
0x1128   : > { %6507 = vrot.lane.b32.xlu0 %v11019_v56, %s8000_s18 }
0x112a   : > { %6505 = vrot.lane.b32.xlu1 %v11026_v52, %s8000_s18 }
0x112c   : > { %6511 = vrot.lane.b32.xlu0 %v11033_v63, %s8000_s18 }
0x112e   : > { %6509 = vrot.lane.b32.xlu1 %v11038_v16, %s8000_s18 }
0x1130   : > { %6617 = vrot.lane.b32.xlu0 %v11019_v56, %s8004_s22 }
0x1132   : > { %6615 = vrot.lane.b32.xlu1 %v11026_v52, %s8004_s22 }
0x1134   : > { %6621 = vrot.lane.b32.xlu0 %v11033_v63, %s8004_s22 }
0x1136   : > { %6619 = vrot.lane.b32.xlu1 %v11038_v16, %s8004_s22 }
0x1138   : > { %6279 = vrot.lane.b32.xlu0 %v10889_v26, %s8005_s23 }
0x113a   : > { %6277 = vrot.lane.b32.xlu1 %v10897_v27, %s8005_s23 }
0x113c   : > { %6283 = vrot.lane.b32.xlu0 %v10907_v20, %s8005_s23 }
0x113e   : > { %6281 = vrot.lane.b32.xlu1 %v10917_v5, %s8005_s23 }
0x1140   : > { %6059 = vrot.lane.b32.xlu0 %v10889_v26, %s8000_s18 }
0x1142   : > { %6057 = vrot.lane.b32.xlu1 %v10897_v27, %s8000_s18 }
0x1144   : > { %6063 = vrot.lane.b32.xlu0 %v10907_v20, %s8000_s18 }
0x1146   : > { %6061 = vrot.lane.b32.xlu1 %v10917_v5, %s8000_s18 }
0x1148   : > { %6169 = vrot.lane.b32.xlu0 %v10889_v26, %s8004_s22 }
0x114a   : > { %6167 = vrot.lane.b32.xlu1 %v10897_v27, %s8004_s22 }
0x114c   : > { %6173 = vrot.lane.b32.xlu0 %v10907_v20, %s8004_s22 }
0x114e   : > { %v11082_v59 = vpop.permute.xlu0 %5555  ;;  %6171 = vrot.lane.b32.xlu1 %v10917_v5, %s8004_s22 }
0x114f   : > { %13159 = vst [vmem:[#allocation95_spill] sm:$0xff] %v11082_v59 }
0x1150   : > { %v11086_v18 = vpop.permute.xlu1 %5551 }
0x1151   : > { %13160 = vst [vmem:[#allocation96_spill] sm:$0xff] %v11086_v18  ;;  %v5483_v18 = vcombine.high %v10865_v54, %v10871_v4 }
0x1152   : > { %v5693_v7 = vpop.permute.xlu0 %5692 }
0x1154   : > { %v5691_v33 = vpop.permute.xlu1 %5690 }
0x1156   : > { %v5697_v35 = vpop.permute.xlu0 %5696 }
0x1157   : > { %v5719_v49 = vcombine.high %v5693_v7, %v5697_v35  ;;  %v5718_v6 = vcombine.low %v5693_v7, %v5697_v35  ;;  %v5499_v7 = vcombine.high %v10863_v13, %v10867_v53 }
0x1158   : > { %v5695_v32 = vpop.permute.xlu1 %5694 }
0x1159   : > { %v5702_v26 = vcombine.low %v5691_v33, %v5695_v32  ;;  %v5703_v24 = vcombine.high %v5691_v33, %v5695_v32  ;;  %v5733_v27 = vrot.slane %v5719_v49, %v8045_v8  ;;  %v5726_v30 = vrot.slane %v5718_v6, %v8045_v8 }
0x115a   : > { %v7616_v46 = vpop.permute.xlu0 %7615  ;;  %v11103_v10 = vrot.slane %v5499_v7, %v8045_v8 }
0x115b   : > { %v5710_v20 = vrot.slane %v5702_v26, %v8045_v8  ;;  %v5717_v59 = vrot.slane %v5703_v24, %v8045_v8  ;;  %v11100_v24 = vrot.slane %v5483_v18, %v8045_v8 }
0x115c   : > { %v7614_v5 = vpop.permute.xlu1 %7613 }
0x115d   : > { %v5750_v36 = vcombine.low %v5717_v59, %v5733_v27  ;;  %v5734_v35 = vcombine.low %v5710_v20, %v5726_v30  ;;  %v5751_v9 = vcombine.high %v5717_v59, %v5733_v27  ;;  %v5735_v27 = vcombine.high %v5710_v20, %v5726_v30 }
0x115e   : > { %v7620_v55 = vpop.permute.xlu0 %7619 }
0x115f   : > { %v7641_v33 = vcombine.low %v7616_v46, %v7620_v55  ;;  %v7642_v32 = vcombine.high %v7616_v46, %v7620_v55  ;;  %v11097_v49 = vrot.slane %v5750_v36, %v8074_v21  ;;  %v11110_v13 = vrot.slane %v5734_v35, %v8074_v21 }
0x1160   : > { %v7618_v26 = vpop.permute.xlu1 %7617 }
0x1161   : > { %13161 = vst [vmem:[#allocation97_spill] sm:$0xff] %v11097_v49  ;;  %v7625_v6 = vcombine.low %v7614_v5, %v7618_v26  ;;  %v7626_v57 = vcombine.high %v7614_v5, %v7618_v26  ;;  %v5768_v53 = vcombine.high %v11097_v49, %v12784_v41  ;;  %13162 = vst [vmem:[#allocation98_spill] sm:$0xff] %v11110_v13 }
0x1162   : > { %v11105_v4 = vpop.permute.xlu0 %5582  ;;  %v11113_v36 = vrot.slane %v7641_v33, %v8045_v8  ;;  %v7656_v55 = vrot.slane %v7642_v32, %v8045_v8  ;;  %v5530_v5 = vcombine.low %v11100_v24, %v11103_v10  ;;  %v5766_v32 = vcombine.high %v11110_v13, %v12784_v41 }
0x1163   : > { %v11117_v46 = vrot.slane %v7625_v6, %v8045_v8  ;;  %v7640_v54 = vrot.slane %v7626_v57, %v8045_v8  ;;  %5783 = vrot.lane.b32.xlu1 %v5768_v53, %s8003_s21 }
0x1164   : > { %v11121_v18 = vpop.permute.xlu1 %5580  ;;  %v11142_v44 = vrot.slane %v5530_v5, %v8074_v21 }
0x1165   : > { %v7657_v7 = vcombine.low %v11117_v46, %v11113_v36  ;;  %v7673_v35 = vcombine.low %v7640_v54, %v7656_v55  ;;  %v7658_v23 = vcombine.high %v11117_v46, %v11113_v36 }
0x1166   : > { %v11127_v33 = vpop.permute.xlu0 %5586  ;;  %13165 = vst [vmem:[#allocation101_spill] sm:$0xff] %v11142_v44  ;;  %v5548_v59 = vcombine.high %v11142_v44, %v12784_v41  ;;  %v11165_v44 = vrot.slane %v5735_v27, %v8074_v21 }
0x1167   : > { %v11132_v26 = vrot.slane %v7673_v35, %v8074_v21  ;;  %v11135_v57 = vrot.slane %v7657_v7, %v8074_v21  ;;  %v5609_v6 = vcombine.high %v11105_v4, %v11127_v33  ;;  %5771 = vrot.lane.b32.xlu1 %v5766_v32, %s8003_s21  ;;  %v7674_v32 = vcombine.high %v7640_v54, %v7656_v55 }
0x1168   : > { %v5585_v53 = vpop.permute.xlu1 %5584 }
0x1169   : > { %13163 = vst [vmem:[#allocation99_spill] sm:$0xff] %v11132_v26  ;;  %13164 = vst [vmem:[#allocation100_spill] sm:$0xff] %v11135_v57  ;;  %v5593_v49 = vcombine.high %v11121_v18, %v5585_v53  ;;  %v7691_v35 = vcombine.high %v11132_v26, %v12784_v41  ;;  %v7689_v7 = vcombine.high %v11135_v57, %v12784_v41 }
0x116a   : > { %v7396_v34 = vpop.permute.xlu0 %7395  ;;  %v11152_v29 = vrot.slane %v5609_v6, %v8045_v8  ;;  %v7688_v3 = vrot.slane %v7674_v32, %v8074_v21 }
0x116b   : > { %v11149_v13 = vrot.slane %v5593_v49, %v8045_v8  ;;  %7706 = vrot.lane.b32.xlu0 %v7691_v35, %s8003_s21  ;;  %7694 = vrot.lane.b32.xlu1 %v7689_v7, %s8003_s21  ;;  %v5765_v49 = vrot.slane %v5751_v9, %v8074_v21 }
0x116c   : > { %v7394_v5 = vpop.permute.xlu1 %7393 }
0x116d   : > { %v5640_v26 = vcombine.low %v11149_v13, %v11152_v29  ;;  %v5769_v50 = vcombine.high %v5765_v49, %v12784_v41 }
0x116e   : > { %v7400_v57 = vpop.permute.xlu0 %7399 }
0x116f   : > { %v7422_v31 = vcombine.high %v7396_v34, %v7400_v57  ;;  %5787 = vrot.lane.b32.xlu0 %v5765_v49, %s8001_s19  ;;  %5563 = vrot.lane.b32.xlu1 %v5548_v59, %s8003_s21  ;;  %v11168_v30 = vrot.slane %v5640_v26, %v8074_v21 }
0x1170   : > { %v7398_v6 = vpop.permute.xlu1 %7397 }
0x1171   : > { %v7406_v35 = vcombine.high %v7394_v5, %v7398_v6  ;;  %13166 = vst [vmem:[#allocation102_spill] sm:$0xff] %v11168_v30  ;;  %v11171_v20 = vrot.slane %v7422_v31, %v8045_v8  ;;  %v5658_v26 = vcombine.high %v11168_v30, %v12784_v41  ;;  %v7405_v40 = vcombine.low %v7394_v5, %v7398_v6 }
0x1172   : > { %v7506_v7 = vpop.permute.xlu0 %7505 }
0x1173   : > { %v11174_v9 = vrot.slane %v7406_v35, %v8045_v8  ;;  %7710 = vrot.lane.b32.xlu0 %v7688_v3, %s8001_s19  ;;  %5775 = vrot.lane.b32.xlu1 %v11165_v44, %s8001_s19  ;;  %v5592_v35 = vcombine.low %v11121_v18, %v5585_v53  ;;  %v7421_v53 = vcombine.low %v7396_v34, %v7400_v57 }
0x1174   : > { %v7504_v55 = vpop.permute.xlu1 %7503  ;;  %v7672_v34 = vrot.slane %v7658_v23, %v8074_v21 }
0x1175   : > { %v7453_v54 = vcombine.low %v11174_v9, %v11171_v20  ;;  %v11208_v46 = vrot.slane %v5592_v35, %v8045_v8  ;;  %v11225_v49 = vrot.slane %v7421_v53, %v8045_v8 }
0x1176   : > { %v7510_v59 = vpop.permute.xlu0 %7509  ;;  %v7690_v42 = vcombine.high %v7672_v34, %v12784_v41 }
0x1177   : > { %v7532_v27 = vcombine.high %v7506_v7, %v7510_v59  ;;  %v11184_v31 = vrot.slane %v7453_v54, %v8074_v21  ;;  %5673 = vrot.lane.b32.xlu0 %v5658_v26, %s8003_s21  ;;  %v5608_v54 = vcombine.low %v11105_v4, %v11127_v33  ;;  %v5531_v4 = vcombine.high %v11100_v24, %v11103_v10 }
0x1178   : > { %v7508_v32 = vpop.permute.xlu1 %7507  ;;  %v11215_v33 = vrot.slane %v7405_v40, %v8045_v8  ;;  %v7531_v6 = vcombine.low %v7506_v7, %v7510_v59  ;;  %v5641_v24 = vcombine.high %v11149_v13, %v11152_v29  ;;  %v7692_v29 = vcombine.high %v7688_v3, %v12784_v41 }
0x1179   : > { %13167 = vst [vmem:[#allocation103_spill] sm:$0xff] %v11184_v31  ;;  %v7516_v28 = vcombine.high %v7504_v55, %v7508_v32  ;;  %v7471_v43 = vcombine.high %v11184_v31, %v12784_v41  ;;  %v11198_v26 = vrot.slane %v7532_v27, %v8045_v8  ;;  %v5545_v7 = vrot.slane %v5531_v4, %v8074_v21 }
0x117a   : > { %v11193_v30 = vpop.permute.xlu0 %7171  ;;  %v5655_v53 = vrot.slane %v5641_v24, %v8074_v21 }
0x117b   : > { %v11201_v18 = vrot.slane %v7516_v28, %v8045_v8  ;;  %5791 = vrot.lane.b32.xlu0 %v5769_v50, %s8002_s20  ;;  %7486 = vrot.lane.b32.xlu1 %v7471_v43, %s8003_s21  ;;  %v7515_v28 = vcombine.low %v7504_v55, %v7508_v32  ;;  %v5616_v43 = vrot.slane %v5608_v54, %v8045_v8 }
0x117c   : > { %v11205_v36 = vpop.permute.xlu1 %7169  ;;  %v7437_v55 = vcombine.low %v11215_v33, %v11225_v49  ;;  %v11245_v32 = vrot.slane %v7531_v6, %v8045_v8 }
0x117d   : > { %v7563_v5 = vcombine.low %v11201_v18, %v11198_v26  ;;  %v5624_v40 = vcombine.low %v11208_v46, %v5616_v43  ;;  %v11238_v27 = vrot.slane %v7515_v28, %v8045_v8 }
0x117e   : > { %v11218_v50 = vpop.permute.xlu0 %7175 }
0x117f   : > { %v11222_v57 = vrot.slane %v7563_v5, %v8074_v21  ;;  %7698 = vrot.lane.b32.xlu1 %v7672_v34, %s8001_s19  ;;  %v11252_v13 = vrot.slane %v5624_v40, %v8074_v21  ;;  %v7547_v54 = vcombine.low %v11238_v27, %v11245_v32  ;;  %v11258_v5 = vrot.slane %v7437_v55, %v8074_v21 }
0x1180   : > { %v11228_v10 = vpop.permute.xlu1 %7173  ;;  %v7198_v3 = vcombine.high %v11193_v30, %v11218_v50 }
0x1181   : > { %13168 = vst [vmem:[#allocation104_spill] sm:$0xff] %v11222_v57  ;;  %v7581_v23 = vcombine.high %v11222_v57, %v12784_v41  ;;  %13169 = vst [vmem:[#allocation105_spill] sm:$0xff] %v11252_v13  ;;  %v7182_v28 = vcombine.high %v11205_v36, %v11228_v10  ;;  %v5656_v40 = vcombine.high %v11252_v13, %v12784_v41 }
0x1182   : > { %v11241_v59 = vpop.permute.xlu0 %6951  ;;  %13170 = vst [vmem:[#allocation106_spill] sm:$0xff] %v11258_v5  ;;  %v11275_v24 = vrot.slane %v7547_v54, %v8074_v21  ;;  %v5767_v54 = vcombine.high %v11165_v44, %v12784_v41  ;;  %v7564_v44 = vcombine.high %v11201_v18, %v11198_v26 }
0x1183   : > { %7596 = vrot.lane.b32.xlu0 %v7581_v23, %s8003_s21  ;;  %5567 = vrot.lane.b32.xlu1 %v5545_v7, %s8001_s19  ;;  %v7469_v23 = vcombine.high %v11258_v5, %v12784_v41  ;;  %v11285_v31 = vrot.slane %v7182_v28, %v8045_v8  ;;  %v7454_v5 = vcombine.high %v11174_v9, %v11171_v20 }
0x1184   : > { %v11248_v35 = vpop.permute.xlu1 %6949  ;;  %13171 = vst [vmem:[#allocation107_spill] sm:$0xff] %v11275_v24  ;;  %v7579_v13 = vcombine.high %v11275_v24, %v12784_v41  ;;  %v5625_v24 = vcombine.high %v11208_v46, %v5616_v43  ;;  %v7578_v18 = vrot.slane %v7564_v44, %v8074_v21 }
0x1186   : > { %v11260_v4 = vpop.permute.xlu0 %6955  ;;  %v5639_v46 = vrot.slane %v5625_v24, %v8074_v21  ;;  %v7197_v24 = vcombine.low %v11193_v30, %v11218_v50  ;;  %v5659_v30 = vcombine.high %v5655_v53, %v12784_v41 }
0x1187   : > { %7714 = vrot.lane.b32.xlu0 %v7692_v29, %s8002_s20  ;;  %5677 = vrot.lane.b32.xlu1 %v5655_v53, %s8001_s19  ;;  %v11282_v29 = vrot.slane %v7198_v3, %v8045_v8  ;;  %v7296_v3 = vcombine.high %v10930_v39, %v10942_v15 }
0x1188   : > { %v11268_v6 = vpop.permute.xlu1 %6953  ;;  %v11361_v50 = vrot.slane %v7197_v24, %v8045_v8  ;;  %v5547_v24 = vcombine.high %v10878_v51, %v12784_v41 }
0x1189   : > { %v7229_v28 = vcombine.low %v11285_v31, %v11282_v29 }
0x118a   : > { %v11277_v55 = vpop.permute.xlu0 %7061 }
0x118b   : > { %5661 = vrot.lane.b32.xlu0 %v5656_v40, %s8003_s21  ;;  %7474 = vrot.lane.b32.xlu1 %v7469_v23, %s8003_s21  ;;  %v7312_v40 = vcombine.high %v10923_v25, %v10937_v12  ;;  %v7468_v23 = vrot.slane %v7454_v5, %v8074_v21  ;;  %v11321_v62 = vrot.slane %v7229_v28, %v8074_v21 }
0x118c   : > { %v11287_v57 = vpop.permute.xlu1 %7059  ;;  %v7181_v28 = vcombine.low %v11205_v36, %v11228_v10  ;;  %v7548_v36 = vcombine.high %v11238_v27, %v11245_v32 }
0x118d   : > { %13172 = vst [vmem:[#allocation108_spill] sm:$0xff] %v11321_v62 }
0x118e   : > { %v11305_v9 = vpop.permute.xlu0 %7065  ;;  %v11364_v10 = vrot.slane %v7181_v28, %v8045_v8  ;;  %v7562_v53 = vrot.slane %v7548_v36, %v8074_v21  ;;  %v7582_v36 = vcombine.high %v7578_v18, %v12784_v41 }
0x118f   : > { %5779 = vrot.lane.b32.xlu0 %v5767_v54, %s8002_s20  ;;  %7584 = vrot.lane.b32.xlu1 %v7579_v13, %s8003_s21  ;;  %v11314_v13 = vrot.slane %v7296_v3, %v8045_v8  ;;  %v11317_v54 = vrot.slane %v7312_v40, %v8045_v8  ;;  %v5549_v40 = vcombine.high %v5545_v7, %v12784_v41 }
0x1190   : > { %v11303_v20 = vpop.permute.xlu1 %7063  ;;  %v7438_v3 = vcombine.high %v11215_v33, %v11225_v49  ;;  %v7295_v7 = vcombine.low %v10930_v39, %v10942_v15  ;;  %v7213_v32 = vcombine.low %v11364_v10, %v11361_v50 }
0x1191   : > { %v7343_v43 = vcombine.low %v11314_v13, %v11317_v54 }
0x1192   : > { %v11327_v34 = vpop.permute.xlu0 %6727  ;;  %v11396_v28 = vrot.slane %v7213_v32, %v8074_v21 }
0x1193   : > { %7490 = vrot.lane.b32.xlu0 %v7468_v23, %s8001_s19  ;;  %7702 = vrot.lane.b32.xlu1 %v7690_v42, %s8002_s20  ;;  %v7247_v42 = vcombine.high %v11321_v62, %v12784_v41  ;;  %v11346_v44 = vrot.slane %v7343_v43, %v8074_v21  ;;  %v7311_v62 = vcombine.low %v10923_v25, %v10937_v12 }
0x1194   : > { %v11323_v26 = vpop.permute.xlu1 %6725  ;;  %v7452_v25 = vrot.slane %v7438_v3, %v8074_v21  ;;  %v11372_v12 = vrot.slane %v7295_v7, %v8045_v8  ;;  %v6978_v3 = vcombine.high %v11241_v59, %v11260_v4  ;;  %13174 = vst [vmem:[#allocation110_spill] sm:$0xff] %v11396_v28  ;;  %v7245_v32 = vcombine.high %v11396_v28, %v12784_v41 }
0x1195   : > { %13173 = vst [vmem:[#allocation109_spill] sm:$0xff] %v11346_v44  ;;  %v7361_v39 = vcombine.high %v11346_v44, %v12784_v41  ;;  %v11375_v15 = vrot.slane %v7311_v62, %v8045_v8  ;;  %v6962_v62 = vcombine.high %v11248_v35, %v11268_v6  ;;  %v7344_v28 = vcombine.high %v11314_v13, %v11317_v54 }
0x1196   : > { %v11355_v49 = vpop.permute.xlu0 %6731  ;;  %v11412_v51 = vrot.slane %v6978_v3, %v8045_v8  ;;  %v7088_v3 = vcombine.high %v11277_v55, %v11305_v9  ;;  %v6961_v44 = vcombine.low %v11248_v35, %v11268_v6 }
0x1197   : > { %7600 = vrot.lane.b32.xlu0 %v7578_v18, %s8001_s19  ;;  %5665 = vrot.lane.b32.xlu1 %v5639_v46, %s8001_s19  ;;  %v7230_v18 = vcombine.high %v11285_v31, %v11282_v29  ;;  %v6977_v31 = vcombine.low %v11241_v59, %v11260_v4  ;;  %v7358_v59 = vrot.slane %v7344_v28, %v8074_v21 }
0x1198   : > { %v11335_v5 = vpop.permute.xlu1 %6729  ;;  %v7087_v28 = vcombine.low %v11277_v55, %v11305_v9 }
0x1199   : > { %v11462_v35 = vrot.slane %v6977_v31, %v8045_v8  ;;  %v6738_v31 = vcombine.high %v11323_v26, %v11335_v5 }
0x119a   : > { %v11382_v43 = vpop.permute.xlu0 %6507 }
0x119b   : > { %5571 = vrot.lane.b32.xlu0 %v5549_v40, %s8002_s20  ;;  %7262 = vrot.lane.b32.xlu1 %v7247_v42, %s8003_s21  ;;  %v7327_v42 = vcombine.low %v11372_v12, %v11375_v15  ;;  %v7472_v40 = vcombine.high %v7468_v23, %v12784_v41 }
0x119c   : > { %v11353_v33 = vpop.permute.xlu1 %6505 }
0x119d   : > { %v11403_v23 = vrot.slane %v7327_v42, %v8074_v21 }
0x119f   : > { %5681 = vrot.lane.b32.xlu0 %v5659_v30, %s8002_s20  ;;  %7478 = vrot.lane.b32.xlu1 %v7452_v25, %s8001_s19  ;;  %13175 = vst [vmem:[#allocation111_spill] sm:$0xff] %v11403_v23  ;;  %v11405_v30 = vpop.permute.xlu0 %6511  ;;  %v7359_v42 = vcombine.high %v11403_v23, %v12784_v41  ;;  %v7244_v23 = vrot.slane %v7230_v18, %v8074_v21 }
0x11a0   : > { %v11377_v27 = vpop.permute.xlu1 %6509  ;;  %v7071_v18 = vcombine.low %v11287_v57, %v11303_v20 }
0x11a2   : > { %v11488_v55 = vrot.slane %v7071_v18, %v8045_v8 }
0x11a3   : > { %7376 = vrot.lane.b32.xlu0 %v7361_v39, %s8003_s21  ;;  %7588 = vrot.lane.b32.xlu1 %v7562_v53, %s8001_s19  ;;  %v11409_v39 = vrot.slane %v6962_v62, %v8045_v8  ;;  %v7072_v62 = vcombine.high %v11287_v57, %v11303_v20  ;;  %v11491_v20 = vrot.slane %v7087_v28, %v8045_v8 }
0x11a4   : > { %v11398_v7 = vpop.permute.xlu1 %6615  ;;  %v7248_v28 = vcombine.high %v7244_v23, %v12784_v41 }
0x11a5   : > { %v11440_v29 = vrot.slane %v7072_v62, %v8045_v8 }
0x11a7   : > { %7494 = vrot.lane.b32.xlu0 %v7472_v40, %s8002_s20  ;;  %5559 = vrot.lane.b32.xlu1 %v5547_v24, %s8002_s20  ;;  %v5657_v24 = vcombine.high %v5639_v46, %v12784_v41  ;;  %v11443_v46 = vrot.slane %v7088_v3, %v8045_v8 }
0x11a8   : > { %v11420_v40 = vpop.permute.xlu1 %6619 }
0x11a9   : > { %v7119_v6 = vcombine.low %v11440_v29, %v11443_v46 }
0x11ab   : > { %7604 = vrot.lane.b32.xlu0 %v7582_v36, %s8002_s20  ;;  %7250 = vrot.lane.b32.xlu1 %v7245_v32, %s8003_s21  ;;  %v7009_v36 = vcombine.low %v11409_v39, %v11412_v51  ;;  %v11431_v32 = vpop.permute.xlu0 %6617  ;;  %v11483_v3 = vrot.slane %v7119_v6, %v8074_v21 }
0x11ac   : > { %v11452_v54 = vpop.permute.xlu1 %6277 }
0x11ad   : > { %v11450_v13 = vrot.slane %v7009_v36, %v8074_v21  ;;  %13177 = vst [vmem:[#allocation113_spill] sm:$0xff] %v11483_v3 }
0x11af   : > { %5669 = vrot.lane.b32.xlu0 %v5657_v24, %s8002_s20  ;;  %7364 = vrot.lane.b32.xlu1 %v7359_v42, %s8003_s21  ;;  %v7470_v24 = vcombine.high %v7452_v25, %v12784_v41  ;;  %13176 = vst [vmem:[#allocation112_spill] sm:$0xff] %v11450_v13  ;;  %v11457_v4 = vpop.permute.xlu0 %6621  ;;  %v7214_v42 = vcombine.high %v11364_v10, %v11361_v50 }
0x11b0   : > { %v11467_v25 = vrot.slane %v6961_v44, %v8045_v8  ;;  %v7027_v62 = vcombine.high %v11450_v13, %v12784_v41  ;;  %v7328_v50 = vcombine.high %v11372_v12, %v11375_v15  ;;  %v11479_v10 = vpop.permute.xlu1 %6281  ;;  %v7580_v44 = vcombine.high %v7562_v53, %v12784_v41 }
0x11b1   : > { %v7228_v9 = vrot.slane %v7214_v42, %v8074_v21  ;;  %v7137_v15 = vcombine.high %v11483_v3, %v12784_v41  ;;  %v7103_v53 = vcombine.low %v11488_v55, %v11491_v20  ;;  %v6852_v13 = vcombine.high %v10982_v47, %v10994_v0 }
0x11b2   : > { %v6993_v57 = vcombine.low %v11467_v25, %v11462_v35  ;;  %v7342_v12 = vrot.slane %v7328_v50, %v8074_v21 }
0x11b3   : > { %7266 = vrot.lane.b32.xlu0 %v7244_v23, %s8001_s19  ;;  %7482 = vrot.lane.b32.xlu1 %v7470_v24, %s8002_s20  ;;  %v11494_v36 = vpop.permute.xlu0 %6279  ;;  %v6754_v24 = vcombine.high %v11327_v34, %v11355_v49  ;;  %v7362_v23 = vcombine.high %v7358_v59, %v12784_v41 }
0x11b4   : > { %v11508_v42 = vrot.slane %v6993_v57, %v8074_v21  ;;  %v11510_v6 = vpop.permute.xlu1 %6057  ;;  %v11526_v57 = vrot.slane %v7103_v53, %v8074_v21 }
0x11b5   : > { %v11521_v50 = vrot.slane %v6754_v24, %v8045_v8  ;;  %v7010_v24 = vcombine.high %v11409_v39, %v11412_v51  ;;  %v7120_v39 = vcombine.high %v11440_v29, %v11443_v46  ;;  %v6867_v46 = vcombine.low %v10975_v2, %v10989_v22 }
0x11b6   : > { %13178 = vst [vmem:[#allocation114_spill] sm:$0xff] %v11508_v42  ;;  %13179 = vst [vmem:[#allocation115_spill] sm:$0xff] %v11526_v57 }
0x11b7   : > { %7380 = vrot.lane.b32.xlu0 %v7358_v59, %s8001_s19  ;;  %7042 = vrot.lane.b32.xlu1 %v7027_v62, %s8003_s21  ;;  %v11514_v18 = vpop.permute.xlu0 %6283  ;;  %v11518_v62 = vrot.slane %v6738_v31, %v8045_v8  ;;  %v7024_v51 = vrot.slane %v7010_v24, %v8074_v21 }
0x11b8   : > { %v11535_v31 = vpop.permute.xlu1 %6061 }
0x11b9   : > { %v6785_v53 = vcombine.low %v11518_v62, %v11521_v50 }
0x11bb   : > { %7592 = vrot.lane.b32.xlu0 %v7580_v44, %s8002_s20  ;;  %7254 = vrot.lane.b32.xlu1 %v7228_v9, %s8001_s19  ;;  %v7025_v44 = vcombine.high %v11508_v42, %v12784_v41  ;;  %v7135_v42 = vcombine.high %v11526_v57, %v12784_v41  ;;  %v11543_v3 = vpop.permute.xlu0 %6059  ;;  %v6753_v57 = vcombine.low %v11327_v34, %v11355_v49 }
0x11bc   : > { %v6994_v49 = vcombine.high %v11467_v25, %v11462_v35  ;;  %v11599_v25 = vrot.slane %v6867_v46, %v8045_v8 }
0x11bf   : > { %7152 = vrot.lane.b32.xlu0 %v7137_v15, %s8003_s21  ;;  %7368 = vrot.lane.b32.xlu1 %v7342_v12, %s8001_s19  ;;  %v6868_v15 = vcombine.high %v10975_v2, %v10989_v22  ;;  %v11574_v34 = vpop.permute.xlu0 %6063 }
0x11c1   : > { %v11550_v59 = vrot.slane %v6868_v15, %v8045_v8  ;;  %v11564_v15 = vrot.slane %v6785_v53, %v8074_v21 }
0x11c3   : > { %7270 = vrot.lane.b32.xlu0 %v7248_v28, %s8002_s20  ;;  %7030 = vrot.lane.b32.xlu1 %v7025_v44, %s8003_s21  ;;  %v11547_v28 = vrot.slane %v6852_v13, %v8045_v8  ;;  %v6737_v44 = vcombine.low %v11323_v26, %v11335_v5  ;;  %v11561_v13 = vpop.permute.xlu1 %6167  ;;  %13180 = vst [vmem:[#allocation116_spill] sm:$0xff] %v11564_v15  ;;  %v11606_v53 = vpop.permute.xlu0 %6169 }
0x11c4   : > { %v6851_v26 = vcombine.low %v10982_v47, %v10994_v0  ;;  %v7134_v5 = vrot.slane %v7120_v39, %v8074_v21  ;;  %v6803_v2 = vcombine.high %v11564_v15, %v12784_v41  ;;  %v7360_v47 = vcombine.high %v7342_v12, %v12784_v41 }
0x11c5   : > { %v6899_v29 = vcombine.low %v11547_v28, %v11550_v59  ;;  %v7008_v12 = vrot.slane %v6994_v49, %v8074_v21 }
0x11c6   : > { %v11596_v35 = vrot.slane %v6851_v26, %v8045_v8 }
0x11c7   : > { %7384 = vrot.lane.b32.xlu0 %v7362_v23, %s8002_s20  ;;  %7140 = vrot.lane.b32.xlu1 %v7135_v42, %s8003_s21  ;;  %v7246_v23 = vcombine.high %v7228_v9, %v12784_v41  ;;  %v11580_v9 = vrot.slane %v6737_v44, %v8045_v8  ;;  %v11583_v42 = vrot.slane %v6753_v57, %v8045_v8  ;;  %v11593_v0 = vpop.permute.xlu1 %6171  ;;  %v11626_v26 = vpop.permute.xlu0 %6173 }
0x11c8   : > { %v11590_v22 = vrot.slane %v6899_v29, %v8074_v21  ;;  %v7104_v57 = vcombine.high %v11488_v55, %v11491_v20  ;;  %v6883_v44 = vcombine.low %v11596_v35, %v11599_v25  ;;  %v6518_v55 = vcombine.high %v11353_v33, %v11377_v27 }
0x11c9   : > { %v6769_v24 = vcombine.low %v11580_v9, %v11583_v42  ;;  %v6534_v20 = vcombine.high %v11382_v43, %v11405_v30 }
0x11ca   : > { %13181 = vst [vmem:[#allocation117_spill] sm:$0xff] %v11590_v22  ;;  %v6917_v39 = vcombine.high %v11590_v22, %v12784_v41  ;;  %v7118_v29 = vrot.slane %v7104_v57, %v8074_v21  ;;  %v11629_v49 = vrot.slane %v6883_v44, %v8074_v21  ;;  %v6628_v44 = vcombine.high %v11398_v7, %v11420_v40 }
0x11cb   : > { %7046 = vrot.lane.b32.xlu0 %v7024_v51, %s8001_s19  ;;  %7258 = vrot.lane.b32.xlu1 %v7246_v23, %s8002_s20  ;;  %v11622_v46 = vrot.slane %v6769_v24, %v8074_v21  ;;  %v11636_v15 = vrot.slane %v6534_v20, %v8045_v8  ;;  %v7138_v20 = vcombine.high %v7134_v5, %v12784_v41 }
0x11cc   : > { %13183 = vst [vmem:[#allocation119_spill] sm:$0xff] %v11629_v49 }
0x11cd   : > { %13182 = vst [vmem:[#allocation118_spill] sm:$0xff] %v11622_v46  ;;  %v6801_v24 = vcombine.high %v11622_v46, %v12784_v41 }
0x11cf   : > { %7156 = vrot.lane.b32.xlu0 %v7134_v5, %s8001_s19  ;;  %6818 = vrot.lane.b32.xlu1 %v6803_v2, %s8003_s21  ;;  %v7028_v2 = vcombine.high %v7024_v51, %v12784_v41  ;;  %v6786_v51 = vcombine.high %v11518_v62, %v11521_v50  ;;  %v6900_v62 = vcombine.high %v11547_v28, %v11550_v59 }
0x11d0   : > { %v6533_v50 = vcombine.low %v11382_v43, %v11405_v30  ;;  %v7026_v28 = vcombine.high %v7008_v12, %v12784_v41 }
0x11d1   : > { %v6800_v22 = vrot.slane %v6786_v51, %v8074_v21  ;;  %v6914_v43 = vrot.slane %v6900_v62, %v8074_v21  ;;  %v6643_v51 = vcombine.low %v11431_v32, %v11457_v4 }
0x11d3   : > { %7372 = vrot.lane.b32.xlu0 %v7360_v47, %s8002_s20  ;;  %7034 = vrot.lane.b32.xlu1 %v7008_v12, %s8001_s19  ;;  %v11633_v47 = vrot.slane %v6518_v55, %v8045_v8  ;;  %v6644_v55 = vcombine.high %v11431_v32, %v11457_v4  ;;  %v11717_v32 = vrot.slane %v6643_v51, %v8045_v8 }
0x11d5   : > { %v11618_v23 = vpop.permute.xlu1 %5783  ;;  %v6565_v46 = vcombine.low %v11633_v47, %v11636_v15  ;;  %v11669_v5 = vrot.slane %v6644_v55, %v8045_v8  ;;  %v7136_v55 = vcombine.high %v7118_v29, %v12784_v41 }
0x11d7   : > { %6932 = vrot.lane.b32.xlu0 %v6917_v39, %s8003_s21  ;;  %7144 = vrot.lane.b32.xlu1 %v7118_v29, %s8001_s19  ;;  %v6915_v39 = vcombine.high %v11629_v49, %v12784_v41  ;;  %v11666_v49 = vrot.slane %v6628_v44, %v8045_v8  ;;  %v11678_v59 = vrot.slane %v6565_v46, %v8074_v21 }
0x11d8   : > { %v6627_v46 = vcombine.low %v11398_v7, %v11420_v40 }
0x11d9   : > { %v11638_v57 = vpop.permute.xlu1 %5771  ;;  %13185 = vst [vmem:[#allocation121_spill] sm:$0xff] %v11678_v59 }
0x11da   : > { %v11714_v40 = vrot.slane %v6627_v46, %v8045_v8 }
0x11db   : > { %7050 = vrot.lane.b32.xlu0 %v7028_v2, %s8002_s20  ;;  %6806 = vrot.lane.b32.xlu1 %v6801_v24, %s8003_s21 }
0x11dc   : > { %v6659_v29 = vcombine.low %v11714_v40, %v11717_v32 }
0x11dd   : > { %v11655_v2 = vpop.permute.xlu0 %7706  ;;  %v11657_v24 = vpop.permute.xlu1 %7694 }
0x11de   : > { %13184 = vst [vmem:[#allocation120_spill] sm:$0xff] %v11657_v24  ;;  %v6517_v24 = vcombine.low %v11353_v33, %v11377_v27  ;;  %v11688_v33 = vrot.slane %v6533_v50, %v8045_v8  ;;  %v6675_v27 = vcombine.low %v11666_v49, %v11669_v5 }
0x11df   : > { %7160 = vrot.lane.b32.xlu0 %v7138_v20, %s8002_s20  ;;  %6920 = vrot.lane.b32.xlu1 %v6915_v39, %s8003_s21  ;;  %v6770_v39 = vcombine.high %v11580_v9, %v11583_v42  ;;  %v6583_v9 = vcombine.high %v11678_v59, %v12784_v41  ;;  %v6884_v42 = vcombine.high %v11596_v35, %v11599_v25 }
0x11e0   : > { %v11693_v12 = vrot.slane %v6517_v24, %v8045_v8  ;;  %v11709_v24 = vrot.slane %v6675_v27, %v8074_v21 }
0x11e1   : > { %v11674_v20 = vpop.permute.xlu0 %5787  ;;  %v11682_v30 = vpop.permute.xlu1 %5563  ;;  %v6784_v62 = vrot.slane %v6770_v39, %v8074_v21  ;;  %v11727_v35 = vrot.slane %v6884_v42, %v8074_v21  ;;  %v6306_v39 = vcombine.high %v11494_v36, %v11514_v18 }
0x11e2   : > { %13186 = vst [vmem:[#allocation122_spill] sm:$0xff] %v11709_v24  ;;  %v6549_v7 = vcombine.low %v11693_v12, %v11688_v33  ;;  %v6693_v25 = vcombine.high %v11709_v24, %v12784_v41  ;;  %v6408_v24 = vcombine.high %v11026_v52, %v11038_v16 }
0x11e3   : > { %6822 = vrot.lane.b32.xlu0 %v6800_v22, %s8001_s19  ;;  %7038 = vrot.lane.b32.xlu1 %v7026_v28, %s8002_s20  ;;  %v6290_v28 = vcombine.high %v11452_v54, %v11479_v10 }
0x11e4   : > { %v11740_v46 = vrot.slane %v6549_v7, %v8074_v21 }
0x11e5   : > { %v11699_v44 = vpop.permute.xlu0 %7710  ;;  %v11719_v4 = vpop.permute.xlu1 %5775  ;;  %v11749_v42 = vrot.slane %v6290_v28, %v8045_v8  ;;  %v6918_v28 = vcombine.high %v6914_v43, %v12784_v41 }
0x11e6   : > { %13188 = vst [vmem:[#allocation124_spill] sm:$0xff] %v11740_v46  ;;  %v6581_v7 = vcombine.high %v11740_v46, %v12784_v41  ;;  %v4238_v46 = vsel %vm271_vm3, %v10265_v45, %v10293_v17 }
0x11e7   : > { %6936 = vrot.lane.b32.xlu0 %v6914_v43, %s8001_s19  ;;  %6598 = vrot.lane.b32.xlu1 %v6583_v9, %s8003_s21  ;;  %v6804_v9 = vcombine.high %v6800_v22, %v12784_v41  ;;  %v6424_v22 = vcombine.high %v11019_v56, %v11033_v63 }
0x11e9   : > { %v11722_v50 = vpop.permute.xlu0 %5673  ;;  %v11799_v45 = vrot.slane %v6424_v22, %v8045_v8  ;;  %v13196_v22 = vld [vmem:[#allocation26_spill] sm:$0xff] }
0x11eb   : > { %7148 = vrot.lane.b32.xlu0 %v7136_v55, %s8002_s20  ;;  %6810 = vrot.lane.b32.xlu1 %v6784_v62, %s8001_s19  ;;  %v11752_v55 = vrot.slane %v6306_v39, %v8045_v8  ;;  %v4124_v39 = vsel %vm271_vm3, %v9913_v11, %v10154_v14  ;;  %v4241_v14 = vsel %vm271_vm3, %v10268_v58, %v10295_v48  ;;  %v13194_v48 = vld [vmem:[#allocation35_spill] sm:$0xff] }
0x11ed   : > { %v11737_v27 = vpop.permute.xlu1 %7486  ;;  %v11745_v51 = vpop.permute.xlu0 %5791  ;;  %v6337_v43 = vcombine.low %v11749_v42, %v11752_v55 }
0x11ee   : > { %13187 = vst [vmem:[#allocation123_spill] sm:$0xff] %v11737_v27  ;;  %v6566_v27 = vcombine.high %v11633_v47, %v11636_v15  ;;  %v4239_v15 = vsel %vm273_vm4, %v4238_v46, %v10291_v38  ;;  %v13192_v47 = vld [vmem:[#allocation73_spill] sm:$0xff]  ;;  %v6289_v46 = vcombine.low %v11452_v54, %v11479_v10 }
0x11ef   : > { %6708 = vrot.lane.b32.xlu0 %v6693_v25, %s8003_s21  ;;  %6924 = vrot.lane.b32.xlu1 %v11727_v35, %s8001_s19  ;;  %v11759_v25 = vrot.slane %v6659_v29, %v8074_v21  ;;  %v4127_v29 = vsel %vm271_vm3, %v9930_v37, %v10253_v19  ;;  %v11789_v37 = vsel %vm273_vm4, %v4124_v39, %v10235_v61 }
0x11f0   : > { %13191 = vst [vmem:[#allocation127_spill] sm:$0xff] %v11789_v37  ;;  %v11796_v19 = vrot.slane %v6408_v24, %v8045_v8  ;;  %v4128_v17 = vsel %vm273_vm4, %v4127_v29, %v10238_v60  ;;  %v4242_v61 = vsel %vm273_vm4, %v4241_v14, %v10301_v1  ;;  %v6676_v60 = vcombine.high %v11666_v49, %v11669_v5  ;;  %v13201_v5 = vld [vmem:[#allocation37_spill] sm:$0xff] }
0x11f1   : > { %v11754_v59 = vpop.permute.xlu1 %7698  ;;  %13190 = vst [vmem:[#allocation126_spill] sm:$0xff] %v11759_v25  ;;  %v6691_v11 = vcombine.high %v11759_v25, %v12784_v41  ;;  %v11813_v24 = vsel %vm275_vm5, %v4128_v17, %v13194_v48  ;;  %v11824_v1 = vrot.slane %v6566_v27, %v8074_v21  ;;  %v6305_v39 = vcombine.low %v11494_v36, %v11514_v18  ;;  %v13199_v17 = vld [vmem:[#allocation47_spill] sm:$0xff]  ;;  %v13204_v36 = vld [vmem:[#allocation50_spill] sm:$0xff]  ;;  %v13228_v25 = vld [vmem:[#allocation69_spill] sm:$0xff] }
0x11f2   : > { %13189 = vst [vmem:[#allocation125_spill] sm:$0xff] %v11754_v59  ;;  %13195 = vst [vmem:[#allocation73_spill] sm:$0xff] %v11813_v24  ;;  %v11834_v14 = vrot.slane %v6337_v43, %v8074_v21  ;;  %v11838_v49 = vsel %vm275_vm5, %v4242_v61, %v13199_v17  ;;  %v13202_v27 = vld [vmem:[#allocation51_spill] sm:$0xff]  ;;  %v6455_v10 = vcombine.low %v11796_v19, %v11799_v45  ;;  %v13206_v43 = vld [vmem:[#allocation64_spill] sm:$0xff] }
0x11f3   : > { %6826 = vrot.lane.b32.xlu0 %v6804_v9, %s8002_s20  ;;  %6586 = vrot.lane.b32.xlu1 %v6581_v7, %s8003_s21  ;;  %v13193_v7 = vld [vmem:[#allocation44_spill] sm:$0xff]  ;;  %13200 = vst [vmem:[#allocation26_spill] sm:$0xff] %v11838_v49  ;;  %v6423_v48 = vcombine.low %v11019_v56, %v11033_v63  ;;  %v6550_v56 = vcombine.high %v11693_v12, %v11688_v33  ;;  %v13239_v37 = vld [vmem:[#allocation41_spill] sm:$0xff] }
0x11f4   : > { %v4348_v58 = vsel %vm271_vm3, %v13193_v7, %v13192_v47  ;;  %13198 = vst [vmem:[#allocation35_spill] sm:$0xff] %v11834_v14  ;;  %v13203_v47 = vld [vmem:[#allocation82_spill] sm:$0xff]  ;;  %v6407_v7 = vcombine.low %v11026_v52, %v11038_v16  ;;  %v11870_v52 = vrot.slane %v6676_v60, %v8074_v21  ;;  %v11875_v63 = vrot.slane %v6289_v46, %v8045_v8  ;;  %v13215_v60 = vld [vmem:[#allocation52_spill] sm:$0xff]  ;;  %v13218_v46 = vld [vmem:[#allocation67_spill] sm:$0xff] }
0x11f5   : > { %v11779_v9 = vpop.permute.xlu0 %7596  ;;  %v11783_v59 = vpop.permute.xlu1 %5567  ;;  %v4349_v54 = vsel %vm273_vm4, %v4348_v58, %v13203_v47  ;;  %v13207_v58 = vld [vmem:[#allocation54_spill] sm:$0xff]  ;;  %v11878_v16 = vrot.slane %v6305_v39, %v8045_v8  ;;  %v6916_v33 = vcombine.high %v11727_v35, %v12784_v41  ;;  %v11896_v12 = vrot.slane %v6455_v10, %v8074_v21  ;;  %v13223_v10 = vld [vmem:[#allocation75_spill] sm:$0xff]  ;;  %v13237_v24 = vld [vmem:[#allocation4_spill] sm:$0xff] }
0x11f6   : > { %v13211_v47 = vld [vmem:[#allocation78_spill] sm:$0xff] }
0x11f7   : > { %6940 = vrot.lane.b32.xlu0 %v6918_v28, %s8002_s20  ;;  %6696 = vrot.lane.b32.xlu1 %v6691_v11, %s8003_s21  ;;  %v11817_v28 = vsel %vm275_vm5, %v4239_v15, %v13196_v22  ;;  %v6802_v11 = vcombine.high %v6784_v62, %v12784_v41  ;;  %v4351_v15 = vsel %vm271_vm3, %v13202_v27, %v13201_v5  ;;  %v13205_v62 = vld [vmem:[#allocation65_spill] sm:$0xff]  ;;  %v13208_v22 = vld [vmem:[#allocation59_spill] sm:$0xff]  ;;  %v13209_v5 = vld [vmem:[#allocation72_spill] sm:$0xff] }
0x11f8   : > { %13197 = vst [vmem:[#allocation44_spill] sm:$0xff] %v11817_v28  ;;  %v4352_v18 = vsel %vm273_vm4, %v4351_v15, %v13204_v36  ;;  %v4461_v61 = vsel %vm271_vm3, %v13206_v43, %v13205_v62  ;;  %v4458_v17 = vsel %vm271_vm3, %v13208_v22, %v13207_v58  ;;  %v13210_v15 = vld [vmem:[#allocation68_spill] sm:$0xff]  ;;  %v6355_v43 = vcombine.high %v11834_v14, %v12784_v41  ;;  %v13216_v22 = vld [vmem:[#allocation53_spill] sm:$0xff] }
0x11f9   : > { %v11821_v38 = vpop.permute.xlu0 %7714  ;;  %v11830_v29 = vpop.permute.xlu1 %5677  ;;  %v4462_v27 = vsel %vm273_vm4, %v4461_v61, %v13209_v5  ;;  %v4576_v36 = vsel %vm271_vm3, %v13211_v47, %v13210_v15  ;;  %v13213_v61 = vld [vmem:[#allocation33_spill] sm:$0xff]  ;;  %v4686_v5 = vsel %vm271_vm3, %v13216_v22, %v13215_v60  ;;  %13217 = vst [vmem:[#allocation51_spill] sm:$0xff] %v11896_v12  ;;  %v4459_v39 = vsel %vm273_vm4, %v4458_v17, %v13218_v46  ;;  %v13221_v60 = vld [vmem:[#allocation48_spill] sm:$0xff] }
0x11fa   : > { %v11886_v58 = vsel %vm275_vm5, %v4349_v54, %v13213_v61  ;;  %v11902_v54 = vrot.slane %v6407_v7, %v8045_v8  ;;  %v11905_v15 = vrot.slane %v6423_v48, %v8045_v8  ;;  %v13219_v47 = vld [vmem:[#allocation13_spill] sm:$0xff]  ;;  %v11913_v35 = vsel %vm275_vm5, %v4459_v39, %v13221_v60  ;;  %v13225_v17 = vld [vmem:[#allocation8_spill] sm:$0xff] }
0x11fb   : > { %6602 = vrot.lane.b32.xlu0 %v11824_v1, %s8001_s19  ;;  %6814 = vrot.lane.b32.xlu1 %v6802_v11, %s8002_s20  ;;  %13214 = vst [vmem:[#allocation37_spill] sm:$0xff] %v11886_v58  ;;  %v11909_v61 = vsel %vm275_vm5, %v4352_v18, %v13219_v47  ;;  %13222 = vst [vmem:[#allocation50_spill] sm:$0xff] %v11913_v35  ;;  %v11917_v22 = vsel %vm275_vm5, %v4462_v27, %v13223_v10  ;;  %v13227_v46 = vld [vmem:[#allocation49_spill] sm:$0xff]  ;;  %v13244_v58 = vld [vmem:[#allocation42_spill] sm:$0xff] }
0x11fc   : > { %13220 = vst [vmem:[#allocation82_spill] sm:$0xff] %v11909_v61  ;;  %13224 = vst [vmem:[#allocation65_spill] sm:$0xff] %v11917_v22  ;;  %v4577_v48 = vsel %vm273_vm4, %v4576_v36, %v13227_v46  ;;  %v4687_v18 = vsel %vm273_vm4, %v4686_v5, %v13228_v25  ;;  %v6660_v39 = vcombine.high %v11714_v40, %v11717_v32  ;;  %v13230_v10 = vld [vmem:[#allocation61_spill] sm:$0xff]  ;;  %v13231_v36 = vld [vmem:[#allocation60_spill] sm:$0xff] }
0x11fd   : > { %v11867_v62 = vpop.permute.xlu0 %5661  ;;  %v11880_v11 = vpop.permute.xlu1 %7474  ;;  %v6321_v47 = vcombine.low %v11875_v63, %v11878_v16  ;;  %v11935_v60 = vrot.slane %v6550_v56, %v8074_v21  ;;  %v6473_v40 = vcombine.high %v11896_v12, %v12784_v41  ;;  %v13235_v32 = vld [vmem:[#allocation17_spill] sm:$0xff]  ;;  %v13236_v5 = vld [vmem:[#allocation16_spill] sm:$0xff]  ;;  %v6070_v61 = vcombine.high %v11510_v6, %v11535_v31  ;;  %v13263_v35 = vld [vmem:[#allocation63_spill] sm:$0xff] }
0x11fe   : > { %13212 = vst [vmem:[#allocation47_spill] sm:$0xff] %v11880_v11  ;;  %v13233_v11 = vld [vmem:[#allocation57_spill] sm:$0xff]  ;;  %v13242_v12 = vld [vmem:[#allocation28_spill] sm:$0xff]  ;;  %v13264_v22 = vld [vmem:[#allocation58_spill] sm:$0xff] }
0x11ff   : > { %6712 = vrot.lane.b32.xlu0 %v11870_v52, %s8001_s19  ;;  %6370 = vrot.lane.b32.xlu1 %v6355_v43, %s8003_s21  ;;  %v13226_v43 = vld [vmem:[#allocation62_spill] sm:$0xff]  ;;  %v11944_v25 = vsel %vm275_vm5, %v4687_v18, %v13233_v11  ;;  %v6439_v11 = vcombine.low %v11902_v54, %v11905_v15  ;;  %v13253_v28 = vld [vmem:[#allocation5_spill] sm:$0xff] }
0x1200   : > { %v4579_v7 = vsel %vm271_vm3, %v13226_v43, %v13225_v17  ;;  %v13232_v43 = vld [vmem:[#allocation66_spill] sm:$0xff]  ;;  %13234 = vst [vmem:[#allocation54_spill] sm:$0xff] %v11944_v25 }
0x1201   : > { %v11924_v14 = vpop.permute.xlu0 %5779  ;;  %v11932_v27 = vpop.permute.xlu1 %7584  ;;  %v4580_v17 = vsel %vm273_vm4, %v4579_v7, %v13230_v10  ;;  %v4689_v46 = vsel %vm271_vm3, %v13232_v43, %v13231_v36  ;;  %v4799_v7 = vsel %vm271_vm3, %v13237_v24, %v13236_v5  ;;  %v13238_v10 = vld [vmem:[#allocation71_spill] sm:$0xff]  ;;  %v13241_v18 = vld [vmem:[#allocation2_spill] sm:$0xff]  ;;  %v13245_v5 = vld [vmem:[#allocation80_spill] sm:$0xff] }
0x1202   : > { %13229 = vst [vmem:[#allocation64_spill] sm:$0xff] %v11932_v27  ;;  %v4690_v56 = vsel %vm273_vm4, %v4689_v46, %v13235_v32  ;;  %v4909_v36 = vsel %vm271_vm3, %v13239_v37, %v13238_v10  ;;  %v4800_v46 = vsel %vm273_vm4, %v4799_v7, %v13242_v12  ;;  %v13243_v32 = vld [vmem:[#allocation77_spill] sm:$0xff]  ;;  %v6086_v27 = vcombine.high %v11543_v3, %v11574_v34 }
0x1203   : > { %6928 = vrot.lane.b32.xlu0 %v6916_v33, %s8002_s20  ;;  %6590 = vrot.lane.b32.xlu1 %v11935_v60, %s8001_s19  ;;  %v13240_v33 = vld [vmem:[#allocation30_spill] sm:$0xff]  ;;  %v4906_v24 = vsel %vm271_vm3, %v13244_v58, %v13243_v32  ;;  %v4910_v37 = vsel %vm273_vm4, %v4909_v36, %v13245_v5  ;;  %v11983_v12 = vrot.slane %v6321_v47, %v8074_v21  ;;  %v13248_v36 = vld [vmem:[#allocation32_spill] sm:$0xff]  ;;  %v13250_v32 = vld [vmem:[#allocation7_spill] sm:$0xff] }
0x1204   : > { %v4796_v43 = vsel %vm271_vm3, %v13241_v18, %v13240_v33  ;;  %v11980_v33 = vrot.slane %v6660_v39, %v8074_v21  ;;  %v11989_v18 = vsel %vm275_vm5, %v4577_v48, %v13248_v36  ;;  %v11994_v5 = vsel %vm275_vm5, %v4580_v17, %v13250_v32  ;;  %v13256_v36 = vld [vmem:[#allocation25_spill] sm:$0xff] }
0x1205   : > { %v11971_v10 = vpop.permute.xlu0 %7490  ;;  %v11977_v49 = vpop.permute.xlu1 %7702  ;;  %13247 = vst [vmem:[#allocation72_spill] sm:$0xff] %v11983_v12  ;;  %13249 = vst [vmem:[#allocation68_spill] sm:$0xff] %v11989_v18  ;;  %v12003_v58 = vsel %vm275_vm5, %v4910_v37, %v13253_v28  ;;  %v12008_v48 = vrot.slane %v6439_v11, %v8074_v21  ;;  %v4907_v32 = vsel %vm273_vm4, %v4906_v24, %v13256_v36  ;;  %v13257_v28 = vld [vmem:[#allocation3_spill] sm:$0xff]  ;;  %v13259_v36 = vld [vmem:[#allocation56_spill] sm:$0xff] }
0x1206   : > { %13246 = vst [vmem:[#allocation59_spill] sm:$0xff] %v11971_v10  ;;  %13251 = vst [vmem:[#allocation78_spill] sm:$0xff] %v11994_v5  ;;  %v13252_v10 = vld [vmem:[#allocation9_spill] sm:$0xff]  ;;  %v12022_v37 = vsel %vm275_vm5, %v4800_v46, %v13257_v28  ;;  %v12029_v39 = vrot.slane %v6070_v61, %v8045_v8  ;;  %v13260_v46 = vld [vmem:[#allocation38_spill] sm:$0xff] }
0x1207   : > { %6488 = vrot.lane.b32.xlu0 %v6473_v40, %s8003_s21  ;;  %v11999_v47 = vsel %vm275_vm5, %v4690_v56, %v13252_v10  ;;  %6700 = vrot.lane.b32.xlu1 %v11980_v33, %s8001_s19  ;;  %13254 = vst [vmem:[#allocation33_spill] sm:$0xff] %v12008_v48  ;;  %v13255_v40 = vld [vmem:[#allocation15_spill] sm:$0xff]  ;;  %v6584_v56 = vcombine.high %v11824_v1, %v12784_v41  ;;  %v13265_v1 = vld [vmem:[#allocation97_spill] sm:$0xff] }
0x1208   : > { %v12012_v17 = vsel %vm273_vm4, %v4796_v43, %v13255_v40  ;;  %v13258_v10 = vld [vmem:[#allocation19_spill] sm:$0xff]  ;;  %v12032_v43 = vrot.slane %v6086_v27, %v8045_v8  ;;  %v6353_v40 = vcombine.high %v11983_v12, %v12784_v41  ;;  %v12042_v28 = vsel %vm271_vm3, %v13260_v46, %v13259_v36 }
0x1209   : > { %v12016_v7 = vpop.permute.xlu0 %7600  ;;  %v12026_v11 = vsel %vm275_vm5, %v4907_v32, %v13258_v10  ;;  %v12034_v24 = vpop.permute.xlu1 %5665  ;;  %v13261_v32 = vld [vmem:[#allocation39_spill] sm:$0xff]  ;;  %v13262_v10 = vld [vmem:[#allocation70_spill] sm:$0xff]  ;;  %v5130_v27 = vsel %vm271_vm3, %v13264_v22, %v13263_v35  ;;  %v6180_v12 = vcombine.high %v11561_v13, %v11593_v0  ;;  %v5797_v18 = vsel %vm271_vm3, %v13265_v1, %v11618_v23 }
0x120a   : > { %v5023_v61 = vsel %vm271_vm3, %v13262_v10, %v13261_v32  ;;  %v6196_v36 = vcombine.high %v11606_v53, %v11626_v26  ;;  %v6471_v46 = vcombine.high %v12008_v48, %v12784_v41  ;;  %v13266_v32 = vld [vmem:[#allocation55_spill] sm:$0xff]  ;;  %v6338_v22 = vcombine.high %v11749_v42, %v11752_v55  ;;  %v13269_v48 = vld [vmem:[#allocation81_spill] sm:$0xff] }
0x120b   : > { %6606 = vrot.lane.b32.xlu0 %v6584_v56, %s8002_s20  ;;  %6358 = vrot.lane.b32.xlu1 %v6353_v40, %s8003_s21  ;;  %v12063_v35 = vsel %vm273_vm4, %v5023_v61, %v13266_v32  ;;  %v5798_v56 = vsel %vm273_vm4, %v5797_v18, %v11674_v20  ;;  %v6694_v23 = vcombine.high %v11870_v52, %v12784_v41  ;;  %v13267_v1 = vld [vmem:[#allocation79_spill] sm:$0xff]  ;;  %v13268_v40 = vld [vmem:[#allocation14_spill] sm:$0xff] }
0x120c   : > { %v5133_v25 = vsel %vm271_vm3, %v13268_v40, %v13267_v1  ;;  %v5131_v5 = vsel %vm273_vm4, %v5130_v27, %v13269_v48  ;;  %v6117_v61 = vcombine.low %v12029_v39, %v12032_v43  ;;  %v5799_v42 = vsel %vm275_vm5, %v5798_v56, %v11745_v51  ;;  %v13271_v20 = vld [vmem:[#allocation83_spill] sm:$0xff]  ;;  %v13273_v27 = vld [vmem:[#allocation10_spill] sm:$0xff] }
0x120d   : > { %v12069_v10 = vpop.permute.xlu0 %5571  ;;  %v12082_v55 = vpop.permute.xlu1 %7262  ;;  %v13272_v18 = vld [vmem:[#allocation27_spill] sm:$0xff]  ;;  %v6069_v52 = vcombine.low %v11510_v6, %v11535_v31  ;;  %v6085_v1 = vcombine.low %v11543_v3, %v11574_v34  ;;  %v6456_v48 = vcombine.high %v11796_v19, %v11799_v45  ;;  %v12096_v51 = vsel %vm275_vm5, %v5131_v5, %v13273_v27  ;;  %v13274_v6 = vld [vmem:[#allocation102_spill] sm:$0xff]  ;;  %v13275_v3 = vld [vmem:[#allocation36_spill] sm:$0xff] }
0x120e   : > { %13270 = vst [vmem:[#allocation52_spill] sm:$0xff] %v12082_v55  ;;  %v5350_v32 = vsel %vm271_vm3, %v13272_v18, %v13271_v20  ;;  %v12099_v56 = vrot.slane %v6180_v12, %v8045_v8  ;;  %v12102_v40 = vrot.slane %v6196_v36, %v8045_v8  ;;  %v5687_v31 = vsel %vm271_vm3, %v13274_v6, %v11722_v50  ;;  %v13279_v27 = vld [vmem:[#allocation85_spill] sm:$0xff]  ;;  %v13280_v6 = vld [vmem:[#allocation46_spill] sm:$0xff] }
0x120f   : > { %6716 = vrot.lane.b32.xlu0 %v6694_v23, %s8002_s20  ;;  %6476 = vrot.lane.b32.xlu1 %v6471_v46, %s8003_s21  ;;  %v5134_v34 = vsel %vm273_vm4, %v5133_v25, %v13275_v3  ;;  %v5845_v19 = vrot.slane %v5799_v42, 4  ;;  %v5688_v45 = vsel %vm273_vm4, %v5687_v31, %v11830_v29  ;;  %v12113_v12 = vrot.slane %v6338_v22, %v8074_v21  ;;  %v13276_v23 = vld [vmem:[#allocation20_spill] sm:$0xff]  ;;  %v13282_v3 = vld [vmem:[#allocation31_spill] sm:$0xff] }
0x1210   : > { %v5351_v36 = vsel %vm273_vm4, %v5350_v32, %v13276_v23  ;;  %v6582_v50 = vcombine.high %v11935_v60, %v12784_v41  ;;  %v12123_v25 = vrot.slane %v6117_v61, %v8074_v21  ;;  %v12126_v46 = vrot.slane %v6069_v52, %v8045_v8  ;;  %v13278_v60 = vld [vmem:[#allocation74_spill] sm:$0xff]  ;;  %v13281_v31 = vld [vmem:[#allocation40_spill] sm:$0xff] }
0x1211   : > { %v5682_v5 = vpop.permute.xlu0 %5681  ;;  %v12118_v18 = vpop.permute.xlu1 %7478  ;;  %v12129_v29 = vrot.slane %v6085_v1, %v8045_v8  ;;  %v12135_v42 = vrot.slane %v6456_v48, %v8074_v21  ;;  %v12140_v61 = vsel %vm275_vm5, %v5134_v34, %v13278_v60  ;;  %v12144_v52 = vsel %vm275_vm5, %v5351_v36, %v13279_v27 }
0x1212   : > { %v5689_v20 = vsel %vm275_vm5, %v5688_v45, %v5682_v5  ;;  %13277 = vst [vmem:[#allocation53_spill] sm:$0xff] %v12123_v25  ;;  %v6227_v1 = vcombine.low %v12099_v56, %v12102_v40  ;;  %v12152_v48 = vsel %vm271_vm3, %v13281_v31, %v13280_v6  ;;  %v13284_v45 = vld [vmem:[#allocation96_spill] sm:$0xff]  ;;  %v13285_v5 = vld [vmem:[#allocation94_spill] sm:$0xff]  ;;  %v6195_v60 = vcombine.low %v11606_v53, %v11626_v26 }
0x1213   : > { %6374 = vrot.lane.b32.xlu0 %v12113_v12, %s8001_s19  ;;  %v5863_v22 = vsel %vm2001_vm6, %v5689_v20, %v5845_v19  ;;  %6594 = vrot.lane.b32.xlu1 %v6582_v50, %s8002_s20  ;;  %v13283_v19 = vld [vmem:[#allocation22_spill] sm:$0xff]  ;;  %v5574_v23 = vsel %vm271_vm3, %v13285_v5, %v13284_v45  ;;  %v6440_v20 = vcombine.high %v11902_v54, %v11905_v15  ;;  %v13288_v54 = vld [vmem:[#allocation12_spill] sm:$0xff]  ;;  %v13292_v45 = vld [vmem:[#allocation99_spill] sm:$0xff] }
0x1214   : > { %5890 = vmatprep.subr.mxu0 %v5863_v22  ;;  %v5243_v34 = vsel %vm271_vm3, %v13283_v19, %v13282_v3  ;;  %v6322_v50 = vcombine.high %v11875_v63, %v11878_v16  ;;  %v6179_v22 = vcombine.low %v11561_v13, %v11593_v0  ;;  %v6135_v6 = vcombine.high %v12123_v25, %v12784_v41  ;;  %v13286_v31 = vld [vmem:[#allocation34_spill] sm:$0xff]  ;;  %v13287_v19 = vld [vmem:[#allocation84_spill] sm:$0xff]  ;;  %v13289_v0 = vld [vmem:[#allocation87_spill] sm:$0xff] }
0x1215   : > { %v12160_v36 = vpop.permute.xlu0 %7376  ;;  %v12170_v27 = vpop.permute.xlu1 %7588  ;;  %v12176_v3 = vsel %vm273_vm4, %v5243_v34, %v13286_v31  ;;  %v5353_v15 = vsel %vm271_vm3, %v13288_v54, %v13287_v19  ;;  %v6101_v13 = vcombine.low %v12126_v46, %v12129_v29  ;;  %v13290_v26 = vld [vmem:[#allocation90_spill] sm:$0xff]  ;;  %v13291_v16 = vld [vmem:[#allocation21_spill] sm:$0xff]  ;;  %v7720_v5 = vsel %vm271_vm3, %v13292_v45, %v11655_v2 }
0x1216   : > { %v5354_v53 = vsel %vm273_vm4, %v5353_v15, %v13289_v0  ;;  %v5467_v34 = vsel %vm271_vm3, %v13291_v16, %v13290_v26  ;;  %v12196_v31 = vrot.slane %v6227_v1, %v8074_v21  ;;  %v7721_v19 = vsel %vm273_vm4, %v7720_v5, %v11699_v44  ;;  %v13294_v15 = vld [vmem:[#allocation95_spill] sm:$0xff]  ;;  %v12236_v5 = vld [vmem:[%s8043_s17 + $0x40] sm:$0xff] }
0x1217   : > { %6492 = vrot.lane.b32.xlu0 %v12135_v42, %s8001_s19  ;;  %6150 = vrot.lane.b32.xlu1 %v6135_v6, %s8003_s21  ;;  %v5575_v0 = vsel %vm273_vm4, %v5574_v23, %v13294_v15  ;;  %v6692_v2 = vcombine.high %v11980_v33, %v12784_v41  ;;  %v12207_v26 = vrot.slane %v6440_v20, %v8074_v21  ;;  %v13295_v23 = vld [vmem:[#allocation101_spill] sm:$0xff] }
0x1218   : > { %13293 = vst [vmem:[#allocation67_spill] sm:$0xff] %v12196_v31  ;;  %v12210_v6 = vrot.slane %v6179_v22, %v8045_v8  ;;  %v12213_v1 = vrot.slane %v6195_v60, %v8045_v8  ;;  %v7722_v44 = vsel %vm275_vm5, %v7721_v19, %v11821_v38  ;;  %v12218_v45 = vrot.slane %v6322_v50, %v8074_v21  ;;  %v12228_v22 = vld [vmem:[%s8043_s17 + $0x18] sm:$0xff]  ;;  %v12231_v60 = vld [vmem:[%s8043_s17 + $0x68] sm:$0xff]  ;;  %v12239_v50 = vld [vmem:[%s8043_s17 + $0x90] sm:$0xff] }
0x1219   : > { %v12200_v54 = vpop.permute.xlu0 %7494  ;;  %v5560_v16 = vpop.permute.xlu1 %5559  ;;  %v5577_v33 = vsel %vm271_vm3, %v13295_v23, %v11682_v30  ;;  %v12225_v20 = vrot.slane %v6101_v13, %v8074_v21  ;;  %v5956_v38 = vcombine.high %v12228_v22, %v12231_v60  ;;  %v5972_v19 = vcombine.high %v12236_v5, %v12239_v50  ;;  %v13296_v30 = vld [vmem:[#allocation98_spill] sm:$0xff]  ;;  %v13297_v13 = vld [vmem:[#allocation104_spill] sm:$0xff] }
0x121a   : > { %v5794_v15 = vsel %vm271_vm3, %v13296_v30, %v11638_v57  ;;  %v5578_v23 = vsel %vm273_vm4, %v5577_v33, %v11783_v59  ;;  %v6245_v32 = vcombine.high %v12196_v31, %v12784_v41  ;;  %v7768_v25 = vrot.slane %v7722_v44, 4 }
0x121b   : > { %6704 = vrot.lane.b32.xlu0 %v6692_v2, %s8002_s20  ;;  %v7610_v2 = vsel %vm271_vm3, %v13297_v13, %v11779_v9  ;;  %6362 = vrot.lane.b32.xlu1 %v12218_v45, %s8001_s19  ;;  %v5795_v63 = vsel %vm273_vm4, %v5794_v15, %v11719_v4  ;;  %v5579_v30 = vsel %vm275_vm5, %v5578_v23, %v12069_v10  ;;  %v13298_v4 = vld [vmem:[#allocation86_spill] sm:$0xff]  ;;  %v13300_v15 = vld [vmem:[#allocation11_spill] sm:$0xff] }
0x121c   : > { %v7611_v57 = vsel %vm273_vm4, %v7610_v2, %v12016_v7  ;;  %v6211_v59 = vcombine.low %v12210_v6, %v12213_v1  ;;  %v5796_v33 = vsel %vm275_vm5, %v5795_v63, %v11924_v14  ;;  %v5576_v13 = vsel %vm275_vm5, %v5575_v0, %v5560_v16  ;;  %v13299_v7 = vld [vmem:[#allocation89_spill] sm:$0xff] }
0x121d   : > { %v7605_v9 = vpop.permute.xlu0 %7604  ;;  %v12267_v55 = vpop.permute.xlu1 %7250  ;;  %v5355_v44 = vsel %vm275_vm5, %v5354_v53, %v13298_v4  ;;  %v5464_v10 = vsel %vm271_vm3, %v13300_v15, %v13299_v7  ;;  %v13301_v2 = vld [vmem:[#allocation93_spill] sm:$0xff]  ;;  %v5839_v16 = vrot.slane %v5579_v30, 4  ;;  %v12284_v53 = vrot.slane %v5956_v38, %v8045_v8 }
0x121e   : > { %v7612_v31 = vsel %vm275_vm5, %v7611_v57, %v7605_v9  ;;  %v5468_v23 = vsel %vm273_vm4, %v5467_v34, %v13301_v2  ;;  %v13302_v63 = vld [vmem:[#allocation105_spill] sm:$0xff]  ;;  %v12287_v57 = vrot.slane %v5972_v19, %v8045_v8  ;;  %v5844_v34 = vrot.slane %v5796_v33, 4  ;;  %v13303_v33 = vld [vmem:[#allocation88_spill] sm:$0xff]  ;;  %v13305_v2 = vld [vmem:[#allocation91_spill] sm:$0xff] }
0x121f   : > { %6260 = vrot.lane.b32.xlu0 %v6245_v32, %s8003_s21  ;;  %v7786_v14 = vsel %vm2001_vm6, %v7612_v31, %v7768_v25  ;;  %v5684_v0 = vsel %vm271_vm3, %v13302_v63, %v11867_v62  ;;  %6480 = vrot.lane.b32.xlu1 %v12207_v26, %s8001_s19  ;;  %v5838_v25 = vrot.slane %v5576_v13, 4  ;;  %v6356_v62 = vcombine.high %v12113_v12, %v12784_v41  ;;  %v13304_v13 = vld [vmem:[#allocation92_spill] sm:$0xff]  ;;  %v13306_v63 = vld [vmem:[#allocation45_spill] sm:$0xff] }
0x1220   : > { %7813 = vmatprep.subr.mxu1 %v7786_v14  ;;  %v5685_v32 = vsel %vm273_vm4, %v5684_v0, %v12034_v24  ;;  %v5833_v30 = vrot.slane %v5355_v44, 4  ;;  %v6133_v38 = vcombine.high %v12225_v20, %v12784_v41  ;;  %v12299_v19 = vrot.slane %v6211_v59, %v8074_v21 }
0x1221   : > { %v5670_v31 = vpop.permute.xlu0 %5669  ;;  %v12294_v4 = vpop.permute.xlu1 %7364  ;;  %v5465_v7 = vsel %vm273_vm4, %v5464_v10, %v13303_v33  ;;  %v5469_v12 = vsel %vm275_vm5, %v5468_v23, %v13304_v13  ;;  %v6474_v44 = vcombine.high %v12135_v42, %v12784_v41  ;;  %v5827_v15 = vrot.slane %v12140_v61, 4 }
0x1222   : > { %v5686_v9 = vsel %vm275_vm5, %v5685_v32, %v5670_v31  ;;  %v5466_v14 = vsel %vm275_vm5, %v5465_v7, %v13305_v2  ;;  %v5861_v59 = vsel %vm2001_vm6, %v5469_v12, %v5839_v16  ;;  %v6003_v10 = vcombine.low %v12284_v53, %v12287_v57  ;;  %v13308_v16 = vld [vmem:[#allocation18_spill] sm:$0xff]  ;;  %v13312_v7 = vld [vmem:[#allocation24_spill] sm:$0xff] }
0x1223   : > { %6378 = vrot.lane.b32.xlu0 %v6356_v62, %s8002_s20  ;;  %v5862_v24 = vsel %vm2001_vm6, %v5686_v9, %v5844_v34  ;;  %6138 = vrot.lane.b32.xlu1 %v6133_v38, %s8003_s21  ;;  %v5241_v23 = vsel %vm273_vm4, %v12152_v48, %v13306_v63  ;;  %v6118_v42 = vcombine.high %v12029_v39, %v12032_v43  ;;  %v13307_v34 = vld [vmem:[#allocation29_spill] sm:$0xff]  ;;  %v13309_v62 = vld [vmem:[#allocation23_spill] sm:$0xff]  ;;  %v13310_v38 = vld [vmem:[#allocation76_spill] sm:$0xff]  ;;  %v5815_v13 = vrot.slane %v11999_v47, 4 }
0x1224   : > { %5891 = vmatpush1.msra.mxu0 %v5862_v24  ;;  %v5860_v61 = vsel %vm2001_vm6, %v5466_v14, %v5838_v25  ;;  %v5245_v32 = vsel %vm275_vm5, %v12176_v3, %v13307_v34  ;;  %v5021_v31 = vsel %vm273_vm4, %v12042_v28, %v13308_v16  ;;  %v5242_v9 = vsel %vm275_vm5, %v5241_v23, %v13309_v62  ;;  %v13313_v12 = vld [vmem:[#allocation120_spill] sm:$0xff]  ;;  %v13315_v14 = vld [vmem:[#allocation125_spill] sm:$0xff] }
0x1225   : > { %v12321_v0 = vpop.permute.xlu0 %7266  ;;  %5892 = vmatprep.subr.mxu0 %v5861_v59  ;;  %v12332_v48 = vpop.permute.xlu1 %7482  ;;  %v6243_v39 = vcombine.high %v12299_v19, %v12784_v41  ;;  %v5859_v43 = vsel %vm2001_vm6, %v5245_v32, %v5833_v30  ;;  %v5820_v25 = vrot.slane %v12026_v11, 4  ;;  %v5022_v3 = vsel %vm275_vm5, %v5021_v31, %v13310_v38  ;;  %v13314_v30 = vld [vmem:[#allocation100_spill] sm:$0xff]  ;;  %v13320_v31 = vld [vmem:[#allocation26_spill] sm:$0xff] }
0x1226   : > { %5893 = vmatpush1.msra.mxu0 %v5860_v61  ;;  %v13311_v28 = vrot.slane %v12144_v52, 4  ;;  %v5025_v24 = vsel %vm275_vm5, %v12063_v35, %v13312_v7  ;;  %v7717_v11 = vsel %vm271_vm3, %v13314_v30, %v13313_v12  ;;  %v12354_v2 = vrot.slane %v6003_v10, %v8074_v21  ;;  %v13317_v61 = vld [vmem:[#allocation6_spill] sm:$0xff]  ;;  %v13319_v32 = vld [vmem:[#allocation44_spill] sm:$0xff] }
0x1227   : > { %6496 = vrot.lane.b32.xlu0 %v6474_v44, %s8002_s20  ;;  %5894 = vmatprep.subr.mxu0 %v5859_v43  ;;  %v5857_v44 = vsel %vm2001_vm6, %v5025_v24, %v5827_v15  ;;  %v6228_v52 = vcombine.high %v12099_v56, %v12102_v40  ;;  %v7718_v35 = vsel %vm273_vm4, %v7717_v11, %v13315_v14  ;;  %v13316_v47 = vrot.slane %v12096_v51, 4  ;;  %v13321_v62 = vld [vmem:[#allocation64_spill] sm:$0xff]  ;;  %v13327_v24 = vld [vmem:[#allocation65_spill] sm:$0xff]  ;;  %v13329_v12 = vld [vmem:[#allocation82_spill] sm:$0xff] }
0x1228   : > { %v5858_v33 = vsel %vm2001_vm6, %v5242_v9, %v13311_v28  ;;  %6248 = vrot.lane.b32.xlu1 %v6243_v39, %s8003_s21  ;;  %v6132_v23 = vrot.slane %v6118_v42, %v8074_v21  ;;  %v4798_v15 = vsel %vm275_vm5, %v12012_v17, %v13317_v61  ;;  %v7719_v10 = vsel %vm275_vm5, %v7718_v35, %v11977_v49  ;;  %v13326_v38 = vld [vmem:[#allocation68_spill] sm:$0xff]  ;;  %v13333_v61 = vld [vmem:[#allocation43_spill] sm:$0xff] }
0x1229   : > { %5895 = vmatpush1.msra.mxu0 %v5858_v33  ;;  %v12360_v59 = vpop.permute.xlu0 %7380  ;;  %v5856_v63 = vsel %vm2001_vm6, %v5022_v3, %v13316_v47  ;;  %v12371_v56 = vpop.permute.xlu1 %7042  ;;  %v6354_v40 = vcombine.high %v12218_v45, %v12784_v41  ;;  %v13318_v34 = vrot.slane %v12003_v58, 4  ;;  %v5802_v42 = vrot.slane %v13319_v32, 4  ;;  %v13322_v58 = vld [vmem:[#allocation107_spill] sm:$0xff] }
0x122a   : > { %5896 = vmatprep.subr.mxu0 %v5857_v44  ;;  %v5854_v17 = vsel %vm2001_vm6, %v4798_v15, %v5820_v25  ;;  %v5955_v49 = vcombine.low %v12228_v22, %v12231_v60  ;;  %v5971_v16 = vcombine.low %v12236_v5, %v12239_v50  ;;  %v5803_v45 = vrot.slane %v13320_v31, 4  ;;  %v13324_v5 = vld [vmem:[#allocation54_spill] sm:$0xff]  ;;  %v13332_v44 = vld [vmem:[#allocation37_spill] sm:$0xff]  ;;  %v13334_v15 = vld [vmem:[#allocation127_spill] sm:$0xff] }
0x122b   : > { %5897 = vmatpush1.msra.mxu0 %v5856_v63  ;;  %v5855_v51 = vsel %vm2001_vm6, %v12022_v37, %v13318_v34  ;;  %6154 = vrot.lane.b32.xlu0 %v6132_v23, %s8001_s19  ;;  %v7607_v9 = vsel %vm271_vm3, %v13322_v58, %v13321_v62  ;;  %v13323_v37 = vld [vmem:[#allocation78_spill] sm:$0xff]  ;;  %v6021_v43 = vcombine.high %v12354_v2, %v12784_v41  ;;  %v7767_v25 = vrot.slane %v7719_v10, 4  ;;  %v13337_v31 = vld [vmem:[#allocation103_spill] sm:$0xff] }
0x122c   : > { %5898 = vmatprep.subr.mxu0 %v5855_v51  ;;  %6366 = vrot.lane.b32.xlu1 %v6354_v40, %s8002_s20  ;;  %v5853_v39 = vsel %vm2001_vm6, %v13323_v37, %v5815_v13  ;;  %v7608_v22 = vsel %vm273_vm4, %v7607_v9, %v12170_v27  ;;  %v13325_v50 = vrot.slane %v13324_v5, 4  ;;  %v6242_v28 = vrot.slane %v6228_v52, %v8074_v21  ;;  %v13330_v27 = vld [vmem:[#allocation50_spill] sm:$0xff]  ;;  %v13335_v40 = vld [vmem:[#allocation73_spill] sm:$0xff] }
0x122d   : > { %5899 = vmatpush1.msra.mxu0 %v5854_v17  ;;  %v7593_v60 = vpop.permute.xlu0 %7592  ;;  %v12403_v7 = vpop.permute.xlu1 %7254  ;;  %v13328_v13 = vrot.slane %v13327_v24, 4  ;;  %v13331_v11 = vrot.slane %v13330_v27, 4  ;;  %v6472_v35 = vcombine.high %v12207_v26, %v12784_v41  ;;  %v5963_v47 = vrot.slane %v5955_v49, %v8045_v8  ;;  %v13340_v24 = vld [vmem:[#allocation47_spill] sm:$0xff] }
0x122e   : > { %5900 = vmatprep.subr.mxu0 %v5853_v39  ;;  %v5852_v3 = vsel %vm2001_vm6, %v13326_v38, %v13325_v50  ;;  %v7609_v33 = vsel %vm275_vm5, %v7608_v22, %v7593_v60  ;;  %v5979_v63 = vrot.slane %v5971_v16, %v8045_v8  ;;  %v4126_v10 = vsel %vm275_vm5, %v13334_v15, %v13333_v61  ;;  %v13336_v16 = vld [vmem:[#allocation123_spill] sm:$0xff] }
0x122f   : > { %5901 = vmatpush1.msra.mxu0 %v5852_v3  ;;  %v5851_v30 = vsel %vm2001_vm6, %v13329_v12, %v13328_v13  ;;  %v5850_v14 = vsel %vm2001_vm6, %v13332_v44, %v13331_v11  ;;  %6264 = vrot.lane.b32.xlu0 %v6242_v28, %s8001_s19  ;;  %v7785_v52 = vsel %vm2001_vm6, %v7609_v33, %v7767_v25  ;;  %v13341_v13 = vld [vmem:[#allocation106_spill] sm:$0xff] }
0x1230   : > { %5902 = vmatprep.subr.mxu0 %v5851_v30  ;;  %6036 = vrot.lane.b32.xlu1 %v6021_v43, %s8003_s21  ;;  %v5849_v34 = vsel %vm2001_vm6, %v13335_v40, %v5803_v45  ;;  %v6102_v26 = vcombine.high %v12126_v46, %v12129_v29  ;;  %v5848_v32 = vsel %vm2001_vm6, %v4126_v10, %v5802_v42  ;;  %v13338_v42 = vld [vmem:[#allocation59_spill] sm:$0xff] }
0x1231   : > { %5903 = vmatpush1.msra.mxu0 %v5850_v14  ;;  %7814 = vmatpush1.msra.mxu1 %v7785_v52  ;;  %v12427_v51 = vpop.permute.xlu0 %7152  ;;  %v7369_v8 = vpop.permute.xlu1 %7368  ;;  %v6136_v17 = vcombine.high %v6132_v23, %v12784_v41  ;;  %v5987_v49 = vcombine.low %v5963_v47, %v5979_v63  ;;  %v7500_v45 = vsel %vm271_vm3, %v13337_v31, %v13336_v16 }
0x1232   : > { %5904 = vmatprep.subr.mxu0 %v5849_v34  ;;  %v6004_v46 = vcombine.high %v12284_v53, %v12287_v57  ;;  %v6212_v29 = vcombine.high %v12210_v6, %v12213_v1  ;;  %v7501_v62 = vsel %vm273_vm4, %v7500_v45, %v13338_v42  ;;  %v6116_v23 = vrot.slane %v6102_v26, %v8074_v21  ;;  %v13339_v6 = vld [vmem:[#allocation109_spill] sm:$0xff] }
0x1233   : > { %5905 = vmatpush1.msra.mxu0 %v5848_v32  ;;  %6484 = vrot.lane.b32.xlu0 %v6472_v35, %s8002_s20  ;;  %v7502_v9 = vsel %vm275_vm5, %v7501_v62, %v12200_v54  ;;  %v6246_v39 = vcombine.high %v6242_v28, %v12784_v41  ;;  %v12450_v53 = vrot.slane %v5987_v49, %v8074_v21  ;;  %v12472_v28 = vld [vmem:[%s12646_s1] sm:$0xff]  ;;  %v13343_v32 = vld [vmem:[#allocation52_spill] sm:$0xff]  ;;  %v13345_v45 = vld [vmem:[#allocation113_spill] sm:$0xff] }
0x1234   : > { %6158 = vrot.lane.b32.xlu1 %v6136_v17, %s8002_s20  ;;  %v7390_v1 = vsel %vm271_vm3, %v13339_v6, %v12160_v36  ;;  %v6018_v57 = vrot.slane %v6004_v46, %v8074_v21  ;;  %v7762_v43 = vrot.slane %v7502_v9, 4  ;;  %v6226_v22 = vrot.slane %v6212_v29, %v8074_v21  ;;  %7935 = vmatmul.mubr.msk.f32.vlgmr.msra.gmra.mxu0 %vm273_vm4, %v12472_v28 }
0x1235   : > { %v7271_v58 = vpop.permute.xlu0 %7270  ;;  %v12445_v37 = vpop.permute.xlu1 %7030  ;;  %v7391_v54 = vsel %vm273_vm4, %v7390_v1, %v12360_v59  ;;  %v6019_v36 = vcombine.high %v12450_v53, %v12784_v41  ;;  %v5988_v33 = vcombine.high %v5963_v47, %v5979_v63  ;;  %v7497_v12 = vsel %vm271_vm3, %v13341_v13, %v13340_v24  ;;  %v13342_v47 = vld [vmem:[#allocation111_spill] sm:$0xff]  ;;  %v13348_v13 = vld [vmem:[#allocation112_spill] sm:$0xff] }
0x1236   : > { %v6244_v59 = vcombine.high %v6226_v22, %v12784_v41  ;;  %v6022_v30 = vcombine.high %v6018_v57, %v12784_v41  ;;  %v7498_v27 = vsel %vm273_vm4, %v7497_v12, %v12118_v18  ;;  %v6134_v44 = vcombine.high %v6116_v23, %v12784_v41 }
0x1237   : > { %6142 = vrot.lane.b32.xlu0 %v6116_v23, %s8001_s19  ;;  %v7499_v14 = vsel %vm275_vm5, %v7498_v27, %v12332_v48  ;;  %v6002_v52 = vrot.slane %v5988_v33, %v8074_v21  ;;  %v7387_v63 = vsel %vm271_vm3, %v13342_v47, %v12294_v4  ;;  %v7788_v21 = vld [vmem:[%s12647_s2] sm:$0xff]  ;;  %v7166_v46 = vsel %vm271_vm3, %v13345_v45, %v12427_v51 }
0x1238   : > { %6268 = vrot.lane.b32.xlu1 %v6246_v39, %s8002_s20  ;;  %v7761_v61 = vrot.slane %v7499_v14, 4  ;;  %v7388_v18 = vsel %vm273_vm4, %v7387_v63, %v7369_v8  ;;  %v13344_v8 = vld [vmem:[#allocation108_spill] sm:$0xff] }
0x1239   : > { %v7385_v25 = vpop.permute.xlu0 %7384  ;;  %v7141_v5 = vpop.permute.xlu1 %7140  ;;  %v6020_v34 = vcombine.high %v6002_v52, %v12784_v41  ;;  %v7276_v17 = vsel %vm271_vm3, %v13344_v8, %v13343_v32 }
0x123a   : > { %v7392_v60 = vsel %vm275_vm5, %v7391_v54, %v7385_v25  ;;  %v7277_v49 = vsel %vm273_vm4, %v7276_v17, %v12321_v0  ;;  %v13347_v25 = vld [vmem:[#allocation115_spill] sm:$0xff] }
0x123b   : > { %6252 = vrot.lane.b32.xlu0 %v6226_v22, %s8001_s19  ;;  %v7784_v50 = vsel %vm2001_vm6, %v7392_v60, %v7762_v43  ;;  %v7278_v41 = vsel %vm275_vm5, %v7277_v49, %v7271_v58  ;;  %v13346_v58 = vld [vmem:[#allocation110_spill] sm:$0xff]  ;;  %v7163_v22 = vsel %vm271_vm3, %v13347_v25, %v7141_v5 }
0x123c   : > { %6040 = vrot.lane.b32.xlu1 %v6018_v57, %s8001_s19  ;;  %7815 = vmatprep.subr.mxu1 %v7784_v50  ;;  %v7756_v29 = vrot.slane %v7278_v41, 4  ;;  %v7273_v1 = vsel %vm271_vm3, %v13346_v58, %v12267_v55 }
0x123d   : > { %v12466_v38 = vpop.permute.xlu0 %7046  ;;  %v7259_v3 = vpop.permute.xlu1 %7258  ;;  %v7274_v57 = vsel %vm273_vm4, %v7273_v1, %v12403_v7 }
0x123e   : > { %v7275_v43 = vsel %vm275_vm5, %v7274_v57, %v7259_v3  ;;  %v7056_v3 = vsel %vm271_vm3, %v13348_v13, %v12371_v56 }
0x123f   : > { %6024 = vrot.lane.b32.xlu0 %v6019_v36, %s8003_s21  ;;  %v7755_v60 = vrot.slane %v7275_v43, 4  ;;  %v7057_v12 = vsel %vm273_vm4, %v7056_v3, %v12466_v38 }
0x1240   : > { %6256 = vrot.lane.b32.xlu1 %v6244_v59, %s8002_s20 }
0x1241   : > { %v7157_v11 = vpop.permute.xlu0 %7156  ;;  %v12487_v35 = vpop.permute.xlu1 %6818 }
0x1242   : > { %v7167_v42 = vsel %vm273_vm4, %v7166_v46, %v7157_v11  ;;  %v13349_v11 = vld [vmem:[#allocation117_spill] sm:$0xff]  ;;  %v13352_v46 = vld [vmem:[#allocation116_spill] sm:$0xff] }
0x1243   : > { %6146 = vrot.lane.b32.xlu0 %v6134_v44, %s8002_s20 }
0x1244   : > { %6044 = vrot.lane.b32.xlu1 %v6022_v30, %s8002_s20 }
0x1245   : > { %v7373_v15 = vpop.permute.xlu0 %7372  ;;  %v7035_v40 = vpop.permute.xlu1 %7034 }
0x1246   : > { %v7389_v10 = vsel %vm275_vm5, %v7388_v18, %v7373_v15  ;;  %v13350_v15 = vld [vmem:[#allocation114_spill] sm:$0xff] }
0x1247   : > { %6028 = vrot.lane.b32.xlu0 %v6002_v52, %s8001_s19  ;;  %v7783_v48 = vsel %vm2001_vm6, %v7389_v10, %v7761_v61  ;;  %v7053_v10 = vsel %vm271_vm3, %v13350_v15, %v12445_v37 }
0x1248   : > { %7816 = vmatpush1.msra.mxu1 %v7783_v48  ;;  %5868 = vperm.xlu1 %7960, %v7788_v21   ;;  %v7054_v48 = vsel %vm273_vm4, %v7053_v10, %v7035_v40 }
0x1249   : > { %v6933_v4 = vpop.permute.xlu0 %6932  ;;  %v7145_v26 = vpop.permute.xlu1 %7144 }
0x124a   : > { %v7164_v50 = vsel %vm273_vm4, %v7163_v22, %v7145_v26  ;;  %v6946_v44 = vsel %vm271_vm3, %v13349_v11, %v6933_v4  ;;  %v13351_v26 = vld [vmem:[#allocation119_spill] sm:$0xff]  ;;  %v13354_v22 = vld [vmem:[#allocation118_spill] sm:$0xff] }
0x124b   : > { %6032 = vrot.lane.b32.xlu0 %v6020_v34, %s8002_s20 }
0x124d   : > { %v7051_v16 = vpop.permute.xlu0 %7050  ;;  %v12510_v31 = vpop.permute.xlu1 %6806 }
0x124e   : > { %v7058_v30 = vsel %vm275_vm5, %v7057_v12, %v7051_v16 }
0x124f   : > { %7791 = vperm.xlu0 %7959, %v7788_v21   ;;  %v7750_v14 = vrot.slane %v7058_v30, 4 }
0x1251   : > { %v7161_v62 = vpop.permute.xlu0 %7160  ;;  %v6921_v9 = vpop.permute.xlu1 %6920 }
0x1252   : > { %v7168_v23 = vsel %vm275_vm5, %v7167_v42, %v7161_v62  ;;  %v6943_v32 = vsel %vm271_vm3, %v13351_v26, %v6921_v9 }
0x1253   : > { %v7782_v39 = vsel %vm2001_vm6, %v7168_v23, %v7756_v29  ;;  %v6832_v29 = vsel %vm271_vm3, %v13352_v46, %v12487_v35  ;;  %v13360_v46 = vld [vmem:[#allocation35_spill] sm:$0xff] }
0x1254   : > { %7817 = vmatprep.subr.mxu1 %v7782_v39  ;;  %v13353_v39 = vld [vmem:[#allocation122_spill] sm:$0xff] }
0x1255   : > { %v6823_v0 = vpop.permute.xlu0 %6822  ;;  %v7039_v6 = vpop.permute.xlu1 %7038 }
0x1256   : > { %v7055_v21 = vsel %vm275_vm5, %v7054_v48, %v7039_v6  ;;  %v6833_v42 = vsel %vm273_vm4, %v6832_v29, %v6823_v0 }
0x1257   : > { %v7749_v8 = vrot.slane %v7055_v21, 4 }
0x1259   : > { %v6937_v51 = vpop.permute.xlu0 %6936  ;;  %v12524_v54 = vpop.permute.xlu1 %6598 }
0x125a   : > { %v6947_v52 = vsel %vm273_vm4, %v6946_v44, %v6937_v51 }
0x125d   : > { %v7149_v36 = vpop.permute.xlu0 %7148  ;;  %v6811_v33 = vpop.permute.xlu1 %6810 }
0x125e   : > { %v7165_v59 = vsel %vm275_vm5, %v7164_v50, %v7149_v36 }
0x125f   : > { %v7781_v55 = vsel %vm2001_vm6, %v7165_v59, %v7755_v60  ;;  %v6829_v60 = vsel %vm271_vm3, %v13354_v22, %v12510_v31  ;;  %v13362_v22 = vld [vmem:[#allocation72_spill] sm:$0xff] }
0x1260   : > { %7818 = vmatpush1.msra.mxu1 %v7781_v55  ;;  %v6830_v50 = vsel %vm273_vm4, %v6829_v60, %v6811_v33  ;;  %v13356_v33 = vld [vmem:[#allocation121_spill] sm:$0xff] }
0x1261   : > { %v6709_v24 = vpop.permute.xlu0 %6708  ;;  %v6925_v7 = vpop.permute.xlu1 %6924 }
0x1262   : > { %v6944_v17 = vsel %vm273_vm4, %v6943_v32, %v6925_v7  ;;  %v6722_v6 = vsel %vm271_vm3, %v13353_v39, %v6709_v24  ;;  %v13355_v24 = vld [vmem:[#allocation126_spill] sm:$0xff] }
0x1265   : > { %v6827_v5 = vpop.permute.xlu0 %6826  ;;  %v12537_v27 = vpop.permute.xlu1 %6586 }
0x1266   : > { %v6834_v23 = vsel %vm275_vm5, %v6833_v42, %v6827_v5 }
0x1267   : > { %v7744_v58 = vrot.slane %v6834_v23, 4 }
0x1269   : > { %v6941_v47 = vpop.permute.xlu0 %6940  ;;  %v6697_v61 = vpop.permute.xlu1 %6696 }
0x126a   : > { %v6948_v63 = vsel %vm275_vm5, %v6947_v52, %v6941_v47  ;;  %v6719_v7 = vsel %vm271_vm3, %v13355_v24, %v6697_v61 }
0x126b   : > { %v7780_v56 = vsel %vm2001_vm6, %v6948_v63, %v7750_v14  ;;  %v6612_v14 = vsel %vm271_vm3, %v13356_v33, %v12524_v54 }
0x126c   : > { %7819 = vmatprep.subr.mxu1 %v7780_v56  ;;  %v13357_v56 = vld [vmem:[#allocation51_spill] sm:$0xff] }
0x126d   : > { %v6603_v18 = vpop.permute.xlu0 %6602  ;;  %v6815_v38 = vpop.permute.xlu1 %6814 }
0x126e   : > { %v6831_v59 = vsel %vm275_vm5, %v6830_v50, %v6815_v38  ;;  %v6613_v52 = vsel %vm273_vm4, %v6612_v14, %v6603_v18  ;;  %v13358_v18 = vld [vmem:[#allocation124_spill] sm:$0xff] }
0x126f   : > { %v7743_v13 = vrot.slane %v6831_v59, 4 }
0x1271   : > { %v6713_v34 = vpop.permute.xlu0 %6712  ;;  %v12549_v4 = vpop.permute.xlu1 %6370 }
0x1272   : > { %v6723_v1 = vsel %vm273_vm4, %v6722_v6, %v6713_v34  ;;  %v6384_v29 = vsel %vm271_vm3, %v13360_v46, %v12549_v4 }
0x1275   : > { %v6929_v49 = vpop.permute.xlu0 %6928  ;;  %v6591_v41 = vpop.permute.xlu1 %6590 }
0x1276   : > { %v6945_v16 = vsel %vm275_vm5, %v6944_v17, %v6929_v49 }
0x1277   : > { %v7779_v45 = vsel %vm2001_vm6, %v6945_v16, %v7749_v8  ;;  %v6609_v8 = vsel %vm271_vm3, %v13358_v18, %v12537_v27 }
0x1278   : > { %7820 = vmatpush1.msra.mxu1 %v7779_v45  ;;  %v6610_v17 = vsel %vm273_vm4, %v6609_v8, %v6591_v41 }
0x1279   : > { %v6489_v37 = vpop.permute.xlu0 %6488  ;;  %v6701_v40 = vpop.permute.xlu1 %6700 }
0x127a   : > { %v6720_v3 = vsel %vm273_vm4, %v6719_v7, %v6701_v40  ;;  %v6502_v38 = vsel %vm271_vm3, %v13357_v56, %v6489_v37  ;;  %v13359_v37 = vld [vmem:[#allocation33_spill] sm:$0xff] }
0x127b   : > { %v13363_v7 = vld [vmem:[#allocation53_spill] sm:$0xff] }
0x127d   : > { %v6607_v62 = vpop.permute.xlu0 %6606  ;;  %v12561_v9 = vpop.permute.xlu1 %6358 }
0x127e   : > { %v6614_v63 = vsel %vm275_vm5, %v6613_v52, %v6607_v62  ;;  %v6381_v60 = vsel %vm271_vm3, %v13362_v22, %v12561_v9 }
0x127f   : > { %v7738_v15 = vrot.slane %v6614_v63, 4 }
0x1281   : > { %v6717_v57 = vpop.permute.xlu0 %6716  ;;  %v6477_v43 = vpop.permute.xlu1 %6476 }
0x1282   : > { %v6724_v51 = vsel %vm275_vm5, %v6723_v1, %v6717_v57  ;;  %v6499_v40 = vsel %vm271_vm3, %v13359_v37, %v6477_v43  ;;  %v13361_v1 = vld [vmem:[#allocation67_spill] sm:$0xff] }
0x1283   : > { %v7778_v25 = vsel %vm2001_vm6, %v6724_v51, %v7744_v58 }
0x1284   : > { %7821 = vmatprep.subr.mxu1 %v7778_v25 }
0x1285   : > { %v6375_v35 = vpop.permute.xlu0 %6374  ;;  %v6595_v0 = vpop.permute.xlu1 %6594 }
0x1286   : > { %v6611_v16 = vsel %vm275_vm5, %v6610_v17, %v6595_v0  ;;  %v6385_v39 = vsel %vm273_vm4, %v6384_v29, %v6375_v35 }
0x1287   : > { %v7737_v42 = vrot.slane %v6611_v16, 4 }
0x1289   : > { %v6493_v36 = vpop.permute.xlu0 %6492  ;;  %v6151_v55 = vpop.permute.xlu1 %6150 }
0x128a   : > { %v6503_v10 = vsel %vm273_vm4, %v6502_v38, %v6493_v36 }
0x128d   : > { %v6705_v12 = vpop.permute.xlu0 %6704  ;;  %v6363_v30 = vpop.permute.xlu1 %6362 }
0x128e   : > { %v6721_v5 = vsel %vm275_vm5, %v6720_v3, %v6705_v12  ;;  %v6382_v36 = vsel %vm273_vm4, %v6381_v60, %v6363_v30 }
0x128f   : > { %v7777_v11 = vsel %vm2001_vm6, %v6721_v5, %v7743_v13  ;;  %v6164_v13 = vsel %vm271_vm3, %v13363_v7, %v6151_v55 }
0x1290   : > { %7822 = vmatpush1.msra.mxu1 %v7777_v11 }
0x1291   : > { %v6261_v31 = vpop.permute.xlu0 %6260  ;;  %v6481_v44 = vpop.permute.xlu1 %6480 }
0x1292   : > { %v6500_v62 = vsel %vm273_vm4, %v6499_v40, %v6481_v44  ;;  %v6274_v57 = vsel %vm271_vm3, %v13361_v1, %v6261_v31 }
0x1295   : > { %v6379_v47 = vpop.permute.xlu0 %6378  ;;  %v6139_v61 = vpop.permute.xlu1 %6138 }
0x1296   : > { %v6386_v6 = vsel %vm275_vm5, %v6385_v39, %v6379_v47  ;;  %v6161_v56 = vsel %vm271_vm3, %v12225_v20, %v6139_v61 }
0x1297   : > { %v7732_v43 = vrot.slane %v6386_v6, 4 }
0x1299   : > { %v6497_v48 = vpop.permute.xlu0 %6496 }
0x129a   : > { %v6504_v34 = vsel %vm275_vm5, %v6503_v10, %v6497_v48  ;;  %v6249_v21 = vpop.permute.xlu1 %6248 }
0x129b   : > { %v7776_v26 = vsel %vm2001_vm6, %v6504_v34, %v7738_v15  ;;  %v6271_v3 = vsel %vm271_vm3, %v12299_v19, %v6249_v21 }
0x129c   : > { %7823 = vmatprep.subr.mxu1 %v7776_v26 }
0x129d   : > { %v6155_v54 = vpop.permute.xlu0 %6154 }
0x129e   : > { %v6367_v32 = vpop.permute.xlu1 %6366  ;;  %v6165_v5 = vsel %vm273_vm4, %v6164_v13, %v6155_v54 }
0x129f   : > { %v6383_v24 = vsel %vm275_vm5, %v6382_v36, %v6367_v32 }
0x12a0   : > { %v7731_v11 = vrot.slane %v6383_v24, 4 }
0x12a1   : > { %v6265_v49 = vpop.permute.xlu0 %6264 }
0x12a2   : > { %v6037_v45 = vpop.permute.xlu1 %6036  ;;  %v6275_v4 = vsel %vm273_vm4, %v6274_v57, %v6265_v49 }
0x12a3   : > { %v6050_v14 = vsel %vm271_vm3, %v12354_v2, %v6037_v45 }
0x12a5   : > { %v6485_v23 = vpop.permute.xlu0 %6484 }
0x12a6   : > { %v6501_v27 = vsel %vm275_vm5, %v6500_v62, %v6485_v23  ;;  %v6159_v41 = vpop.permute.xlu1 %6158 }
0x12a7   : > { %v7775_v58 = vsel %vm2001_vm6, %v6501_v27, %v7737_v42  ;;  %v6166_v44 = vsel %vm275_vm5, %v6165_v5, %v6159_v41 }
0x12a8   : > { %7824 = vmatpush1.msra.mxu1 %v7775_v58  ;;  %v7726_v52 = vrot.slane %v6166_v44, 4 }
0x12a9   : > { %v6143_v51 = vpop.permute.xlu0 %6142 }
0x12aa   : > { %v6269_v25 = vpop.permute.xlu1 %6268  ;;  %v6162_v15 = vsel %vm273_vm4, %v6161_v56, %v6143_v51 }
0x12ab   : > { %v6276_v0 = vsel %vm275_vm5, %v6275_v4, %v6269_v25 }
0x12ac   : > { %v7774_v35 = vsel %vm2001_vm6, %v6276_v0, %v7732_v43 }
0x12ad   : > { %7825 = vmatprep.subr.mxu1 %v7774_v35  ;;  %v6253_v50 = vpop.permute.xlu0 %6252 }
0x12ae   : > { %v6041_v59 = vpop.permute.xlu1 %6040  ;;  %v6272_v31 = vsel %vm273_vm4, %v6271_v3, %v6253_v50 }
0x12af   : > { %v6051_v19 = vsel %vm273_vm4, %v6050_v14, %v6041_v59 }
0x12b1   : > { %v6025_v12 = vpop.permute.xlu0 %6024 }
0x12b2   : > { %v6257_v9 = vpop.permute.xlu1 %6256  ;;  %v6047_v48 = vsel %vm271_vm3, %v12450_v53, %v6025_v12 }
0x12b3   : > { %v6273_v30 = vsel %vm275_vm5, %v6272_v31, %v6257_v9 }
0x12b4   : > { %v7773_v33 = vsel %vm2001_vm6, %v6273_v30, %v7731_v11 }
0x12b5   : > { %7826 = vmatpush1.msra.mxu1 %v7773_v33  ;;  %v6147_v55 = vpop.permute.xlu0 %6146 }
0x12b6   : > { %v6045_v47 = vpop.permute.xlu1 %6044  ;;  %v6163_v2 = vsel %vm275_vm5, %v6162_v15, %v6147_v55 }
0x12b7   : > { %v6052_v63 = vsel %vm275_vm5, %v6051_v19, %v6045_v47  ;;  %v7725_v34 = vrot.slane %v6163_v2, 4 }
0x12b8   : > { %v7772_v38 = vsel %vm2001_vm6, %v6052_v63, %v7726_v52 }
0x12b9   : > { %7827 = vmatprep.subr.mxu1 %v7772_v38  ;;  %v6029_v10 = vpop.permute.xlu0 %6028 }
0x12ba   : > { %v6048_v21 = vsel %vm273_vm4, %v6047_v48, %v6029_v10 }
0x12bd   : > { %v6033_v26 = vpop.permute.xlu0 %6032 }
0x12be   : > { %v6049_v20 = vsel %vm275_vm5, %v6048_v21, %v6033_v26 }
0x12bf   : > { %v7771_v61 = vsel %vm2001_vm6, %v6049_v20, %v7725_v34 }
0x12c0   : > { %7828 = vmatpush1.msra.mxu1 %v7771_v61 }
0x12c1   : > { %7936 = vmatmul.mubr.msk.f32.vlgmr.msra.gmra.mxu1 %vm273_vm4, %v12472_v28 }
0x12c3   : > { %v5869_v18 = vpop.permute.xlu1 %5868 }
0x12ca   : > { %v7792_v53 = vpop.permute.xlu0 %7791 }
0x12f4   : > { %v5940_v54 = vpop.f32.mrf.mxu0 }
0x12f5   : > { %v5941_v8 = vadd.f32 %v5940_v54, %v5869_v18 }
0x12f6   : > { %v5942_v32 = vpop.f32.mrf.mxu0 }
0x12f7   : > { %v5943_v17 = vadd.f32 %v5942_v32, %v5869_v18  ;;  %5945 = vst [vmem:[%s9252_s4 + $0x20] sm:$0xff] %v5941_v8 }
0x12f9   : > { %5946 = vst [vmem:[%s9252_s4 + $0x28] sm:$0xff] %v5943_v17 }
0x1381   : > { %v7863_v49 = vpop.f32.mrf.mxu1 }
0x1382   : > { %v7864_v16 = vadd.f32 %v7863_v49, %v7792_v53 }
0x1383   : > { %v7865_v45 = vpop.f32.mrf.mxu1 }
0x1384   : > { %7868 = vst [vmem:[%s9252_s4 + $0x30] sm:$0xff] %v7864_v16  ;;  %v7866_v37 = vadd.f32 %v7865_v45, %v7792_v53 }
0x1386   : > { %7869 = vst [vmem:[%s9252_s4 + $0x38] sm:$0xff] %v7866_v37 }
0x1387 PF: > { %s13_s12 = sadd.s32 1, %s7995_s12  }
0x1388   : > { %p10_p4 = scmp.ge.s32.totalorder %s13_s12, 4  }
0x138a   :  { %12 = sbr.rel (!%p10_p4) target bundleno = 1 (0x1), region = 62 }

</bundles_post_ra>
